<compile_context>
chip_gen: v7x
topology: tpu7x:2x2x1
jax: 0.10.0
libtpu: 0.0.40
codegen_flags: <defaults>
</compile_context>

<pallas_src>
import math
import functools

import jax
import jax.numpy as jnp
from jax import lax
from jax.experimental import pallas as pl
from jax.experimental.pallas import tpu as pltpu


def _resblock_kernel(*refs, H, W, eps, has_skip):
    if has_skip:
        (x_ref, tb_ref, g1_ref, b1_ref, gagg1_ref, w1_ref, c1b_ref,
         g2_ref, b2_ref, gagg2_ref, w2_ref, c2b_ref,
         wsk_ref, bsk_ref, o_ref, pad1_ref, pad2_ref) = refs
    else:
        (x_ref, tb_ref, g1_ref, b1_ref, gagg1_ref, w1_ref, c1b_ref,
         g2_ref, b2_ref, gagg2_ref, w2_ref, c2b_ref,
         o_ref, pad1_ref, pad2_ref) = refs
        wsk_ref = bsk_ref = None

    N = H * W
    P = W + 8   # zero halo rows above/below (>= W+1; keeps the body store
                # sublane-aligned when W % 8 == 0)

    x = x_ref[...]                                           # (N, Cin) f32

    # Zero ONLY the halo slabs (2*P rows per buffer).  The body rows are
    # fully overwritten by each conv's input store, and the halos are never
    # written afterwards.  Done every grid step so the kernel is correct
    # regardless of how the parallel grid axis is sharded across cores.
    def zero_halos(pad_ref):
        c = pad_ref.shape[-1]
        pad_ref[0:P, :] = jnp.zeros((P, c), pad_ref.dtype)
        pad_ref[P + N:P + N + P, :] = jnp.zeros((P, c), pad_ref.dtype)

    zero_halos(pad1_ref)
    zero_halos(pad2_ref)

    # Column (w-coordinate) masks for the horizontal taps of the 3x3 conv:
    # tap dx is valid at output row n iff 0 <= (n % W) + dx < W.
    col = lax.broadcasted_iota(jnp.int32, (N, 1), 0) % W
    mask_l = (col >= 1).astype(jnp.float32)                  # dx = -1
    mask_r = (col <= W - 2).astype(jnp.float32)              # dx = +1

    def group_norm(y, gagg_ref, gamma_ref, beta_ref):
        # y: (N, C) f32.  gagg is pre-scaled by 1/(group_size * N) in wrapper.
        s = jnp.sum(y, axis=0, keepdims=True)                # (1, C)
        ss = jnp.sum(y * y, axis=0, keepdims=True)           # (1, C)
        mean = jnp.dot(s, gagg_ref[...], preferred_element_type=jnp.float32)
        ex2 = jnp.dot(ss, gagg_ref[...], preferred_element_type=jnp.float32)
        # NOTE: E[x^2]-mean^2 in f32 (clamped); fine at these N, consider a
        # centered second pass for production-scale activations.
        var = jnp.maximum(ex2 - mean * mean, 0.0)
        scale = lax.rsqrt(var + eps) * gamma_ref[...]        # (1, C)
        shift = beta_ref[...] - mean * scale                 # (1, C)
        return y * scale + shift                             # 2 VALU passes

    def conv3x3(y, pad_ref, w_ref, b_ref):
        # y: (N, Cin_c) f32; w_ref: (9, Cin_c, Cout_c) bf16; b_ref: (1, Cout_c)
        cout = w_ref.shape[-1]
        pad_ref[P:P + N, :] = y.astype(jnp.bfloat16)         # bf16 MXU operand
        acc_c = jnp.zeros((N, cout), jnp.float32)
        acc_l = jnp.zeros((N, cout), jnp.float32)
        acc_r = jnp.zeros((N, cout), jnp.float32)
        for dy in (-1, 0, 1):
            for dx in (-1, 0, 1):
                src = pad_ref[pl.ds(P + dy * W + dx, N), :]  # (N, Cin_c) bf16
                d = jnp.dot(src, w_ref[3 * (dy + 1) + (dx + 1)],
                            preferred_element_type=jnp.float32)
                if dx == -1:
                    acc_l = acc_l + d
                elif dx == 1:
                    acc_r = acc_r + d
                else:
                    acc_c = acc_c + d
        # boundary masks applied once per side (2 mults instead of 6)
        return acc_c + acc_l * mask_l + acc_r * mask_r + b_ref[...]

    def silu(v):
        # x * sigmoid(x); exp + approx reciprocal both live on the EUP slot.
        return v * pl.reciprocal(1.0 + jnp.exp(-v), approx=True)

    # ---- h = silu(conv1(norm1(x))) + time_mlp(te)  (time row precomputed) --
    h = group_norm(x, gagg1_ref, g1_ref, b1_ref)
    h = conv3x3(h, pad1_ref, w1_ref, c1b_ref)
    h = silu(h) + tb_ref[...]                                # (1, Cout) bcast

    # ---- h = silu(conv2(norm2(h))) ----
    h = group_norm(h, gagg2_ref, g2_ref, b2_ref)
    h = conv3x3(h, pad2_ref, w2_ref, c2b_ref)
    h = silu(h)

    # ---- residual ----
    if has_skip:
        skip = jnp.dot(x.astype(jnp.bfloat16), wsk_ref[...],
                       preferred_element_type=jnp.float32) + bsk_ref[...]
    else:
        skip = x

    o_ref[...] = (h + skip).astype(o_ref.dtype)


def _group_agg_matrix(C, num_groups, N):
    """(C, C) matrix M with M[i, j] = 1/(group_size*N) iff i, j share a group."""
    gs = C // num_groups
    grp = jnp.arange(C) // gs
    m = (grp[:, None] == grp[None, :]).astype(jnp.float32)
    return m / jnp.float32(gs * N)


def _vmem_limit_bytes():
    """Derive a per-generation VMEM limit (with headroom) instead of hardcoding."""
    cap = 128 * 1024 * 1024
    try:
        cap = int(pltpu.get_tpu_info().vmem_capacity_bytes)
    except Exception:
        pass
    return max(32 * 1024 * 1024, int(cap * 0.8))


def residual_block_unet(x, te, params, *, eps=1e-5):
    """x: (B, Cin, H, W) f32, te: (B, time_dim*4) f32, params: PyTorch-shaped dict."""
    B, Cin, H, W = x.shape
    Cout = params["conv1_w"].shape[0]
    N = H * W
    P = W + 8
    G1, G2 = min(16, Cin), min(16, Cout)
    assert Cin % G1 == 0 and Cout % G2 == 0
    has_skip = "skip_w" in params
    if not has_skip:
        assert Cin == Cout

    # channels-last, lane-dense activations: (B, N, C)
    x_nc = jnp.transpose(x.reshape(B, Cin, N), (0, 2, 1)).astype(jnp.float32)

    # time_mlp hoisted out of the kernel (M=1 matmul): tb = te @ W_t.T + b_t
    tb = (te.astype(jnp.float32) @ params["time_w"].astype(jnp.float32).T
          + params["time_b"].astype(jnp.float32)).reshape(B, 1, Cout)

    g1 = params["norm1_w"].reshape(1, Cin).astype(jnp.float32)
    b1 = params["norm1_b"].reshape(1, Cin).astype(jnp.float32)
    g2 = params["norm2_w"].reshape(1, Cout).astype(jnp.float32)
    b2 = params["norm2_b"].reshape(1, Cout).astype(jnp.float32)
    gagg1 = _group_agg_matrix(Cin, G1, N)
    gagg2 = _group_agg_matrix(Cout, G2, N)
    # conv weights (Cout, Cin, 3, 3) -> (9, Cin, Cout), bf16 for the MXU.
    w1 = jnp.transpose(params["conv1_w"], (2, 3, 1, 0)).reshape(9, Cin, Cout)
    w1 = w1.astype(jnp.bfloat16)
    c1b = params["conv1_b"].reshape(1, Cout).astype(jnp.float32)
    w2 = jnp.transpose(params["conv2_w"], (2, 3, 1, 0)).reshape(9, Cout, Cout)
    w2 = w2.astype(jnp.bfloat16)
    c2b = params["conv2_b"].reshape(1, Cout).astype(jnp.float32)

    inputs = [x_nc, tb, g1, b1, gagg1, w1, c1b, g2, b2, gagg2, w2, c2b]
    in_specs = [
        pl.BlockSpec((None, N, Cin), lambda b: (b, 0, 0)),      # x (batch squeezed)
        pl.BlockSpec((None, 1, Cout), lambda b: (b, 0, 0)),     # time row
        pl.BlockSpec((1, Cin), lambda b: (0, 0)),               # gamma1
        pl.BlockSpec((1, Cin), lambda b: (0, 0)),               # beta1
        pl.BlockSpec((Cin, Cin), lambda b: (0, 0)),             # group agg 1
        pl.BlockSpec((9, Cin, Cout), lambda b: (0, 0, 0)),      # conv1 weight
        pl.BlockSpec((1, Cout), lambda b: (0, 0)),              # conv1 bias
        pl.BlockSpec((1, Cout), lambda b: (0, 0)),              # gamma2
        pl.BlockSpec((1, Cout), lambda b: (0, 0)),               # beta2
        pl.BlockSpec((Cout, Cout), lambda b: (0, 0)),           # group agg 2
        pl.BlockSpec((9, Cout, Cout), lambda b: (0, 0, 0)),     # conv2 weight
        pl.BlockSpec((1, Cout), lambda b: (0, 0)),              # conv2 bias
    ]
    if has_skip:
        wsk = jnp.transpose(params["skip_w"].reshape(Cout, Cin), (1, 0))
        inputs += [wsk.astype(jnp.bfloat16),
                   params["skip_b"].reshape(1, Cout).astype(jnp.float32)]
        in_specs += [pl.BlockSpec((Cin, Cout), lambda b: (0, 0)),
                     pl.BlockSpec((1, Cout), lambda b: (0, 0))]

    kernel = functools.partial(_resblock_kernel, H=H, W=W, eps=eps,
                               has_skip=has_skip)

    out_nc = pl.pallas_call(
        kernel,
        out_shape=jax.ShapeDtypeStruct((B, N, Cout), jnp.float32),
        grid=(B,),
        in_specs=in_specs,
        out_specs=pl.BlockSpec((None, N, Cout), lambda b: (b, 0, 0)),
        scratch_shapes=[
            pltpu.VMEM((N + 2 * P, Cin), jnp.bfloat16),   # conv1 padded input
            pltpu.VMEM((N + 2 * P, Cout), jnp.bfloat16),  # conv2 padded input
        ],
        compiler_params=pltpu.CompilerParams(
            dimension_semantics=("parallel",),
            vmem_limit_bytes=_vmem_limit_bytes()),
    )(*inputs)

    return jnp.transpose(out_nc, (0, 2, 1)).reshape(B, Cout, H, W)


# ------------------------- pure-JAX reference -------------------------------

def _group_norm_ref(x, gamma, beta, num_groups, eps):
    B, C, H, W = x.shape
    xg = x.reshape(B, num_groups, -1)
    mean = xg.mean(axis=-1, keepdims=True)
    var = jnp.mean((xg - mean) ** 2, axis=-1, keepdims=True)
    xn = ((xg - mean) * lax.rsqrt(var + eps)).reshape(B, C, H, W)
    return xn * gamma[None, :, None, None] + beta[None, :, None, None]


def _conv2d_ref(x, w, b):
    out = lax.conv_general_dilated(
        x, w, window_strides=(1, 1), padding="SAME",
        dimension_numbers=("NCHW", "OIHW", "NCHW"),
        precision=lax.Precision.HIGHEST)
    return out + b[None, :, None, None]


def residual_block_ref(x, te, params, *, eps=1e-5):
    Cin = x.shape[1]
    Cout = params["conv1_w"].shape[0]
    h = _group_norm_ref(x, params["norm1_w"], params["norm1_b"], min(16, Cin), eps)
    h = _conv2d_ref(h, params["conv1_w"], params["conv1_b"])
    tb = te @ params["time_w"].T + params["time_b"]
    h = jax.nn.silu(h) + tb[:, :, None, None]
    h2 = _group_norm_ref(h, params["norm2_w"], params["norm2_b"], min(16, Cout), eps)
    h2 = _conv2d_ref(h2, params["conv2_w"], params["conv2_b"])
    h2 = jax.nn.silu(h2)
    if "skip_w" in params:
        skip = _conv2d_ref(x, params["skip_w"], params["skip_b"])
    else:
        skip = x
    return h2 + skip


def _init_params(key, in_ch, out_ch, time_dim):
    T4 = time_dim * 4
    ks = jax.random.split(key, 12)
    p = {
        "norm1_w": 1.0 + 0.1 * jax.random.normal(ks[0], (in_ch,), jnp.float32),
        "norm1_b": 0.1 * jax.random.normal(ks[1], (in_ch,), jnp.float32),
        "conv1_w": jax.random.normal(ks[2], (out_ch, in_ch, 3, 3),
                                     jnp.float32) / math.sqrt(9 * in_ch),
        "conv1_b": 0.1 * jax.random.normal(ks[3], (out_ch,), jnp.float32),
        "norm2_w": 1.0 + 0.1 * jax.random.normal(ks[4], (out_ch,), jnp.float32),
        "norm2_b": 0.1 * jax.random.normal(ks[5], (out_ch,), jnp.float32),
        "conv2_w": jax.random.normal(ks[6], (out_ch, out_ch, 3, 3),
                                     jnp.float32) / math.sqrt(9 * out_ch),
        "conv2_b": 0.1 * jax.random.normal(ks[7], (out_ch,), jnp.float32),
        "time_w": jax.random.normal(ks[8], (out_ch, T4),
                                    jnp.float32) / math.sqrt(T4),
        "time_b": 0.1 * jax.random.normal(ks[9], (out_ch,), jnp.float32),
    }
    if in_ch != out_ch:
        p["skip_w"] = jax.random.normal(ks[10], (out_ch, in_ch, 1, 1),
                                        jnp.float32) / math.sqrt(in_ch)
        p["skip_b"] = 0.1 * jax.random.normal(ks[11], (out_ch,), jnp.float32)
    return p


if __name__ == "__main__":
    key = jax.random.PRNGKey(0)
    k1, k2, k3, k4 = jax.random.split(key, 4)

    # Config 1: in_ch != out_ch (1x1-conv skip path), group_size = 1.
    B, Cin, Cout, H, W, Td = 2, 4, 8, 16, 16, 8
    x = jax.random.normal(k1, (B, Cin, H, W), dtype=jnp.float32)
    te = jax.random.normal(k2, (B, Td * 4), dtype=jnp.float32)
    params = _init_params(k3, Cin, Cout, Td)

    out = jax.block_until_ready(residual_block_unet(x, te, params))
    ref = residual_block_ref(x, te, params)
    assert out.shape == (B, Cout, H, W)
    err = jnp.max(jnp.abs(out - ref))
    assert jnp.allclose(out, ref, atol=5e-2, rtol=5e-2), \
        f"config1 max abs err = {err}"

    # Config 2: in_ch == out_ch (identity skip), group_size = 2.
    B2, C2, H2, W2, Td2 = 1, 32, 8, 8, 4
    x2 = jax.random.normal(k4, (B2, C2, H2, W2), dtype=jnp.float32)
    te2 = jax.random.normal(jax.random.fold_in(key, 7), (B2, Td2 * 4),
                            dtype=jnp.float32)
    params2 = _init_params(jax.random.fold_in(key, 8), C2, C2, Td2)

    out2 = jax.block_until_ready(residual_block_unet(x2, te2, params2))
    ref2 = residual_block_ref(x2, te2, params2)
    assert out2.shape == (B2, C2, H2, W2)
    err2 = jnp.max(jnp.abs(out2 - ref2))
    assert jnp.allclose(out2, ref2, atol=5e-2, rtol=5e-2), \
        f"config2 max abs err = {err2}"

    print("KERNEL_OK")
</pallas_src>

<mosaic_0001>
module attributes {stable_mosaic.version = 11 : i64} {
  func.func @_resblock_kernel(%arg0: i32, %arg1: memref<1x256x4xf32, #tpu.memory_space<vmem>>, %arg2: memref<1x1x8xf32, #tpu.memory_space<vmem>>, %arg3: memref<1x4xf32, #tpu.memory_space<vmem>>, %arg4: memref<1x4xf32, #tpu.memory_space<vmem>>, %arg5: memref<4x4xf32, #tpu.memory_space<vmem>>, %arg6: memref<9x4x8xbf16, #tpu.memory_space<vmem>>, %arg7: memref<1x8xf32, #tpu.memory_space<vmem>>, %arg8: memref<1x8xf32, #tpu.memory_space<vmem>>, %arg9: memref<1x8xf32, #tpu.memory_space<vmem>>, %arg10: memref<8x8xf32, #tpu.memory_space<vmem>>, %arg11: memref<9x8x8xbf16, #tpu.memory_space<vmem>>, %arg12: memref<1x8xf32, #tpu.memory_space<vmem>>, %arg13: memref<4x8xbf16, #tpu.memory_space<vmem>>, %arg14: memref<1x8xf32, #tpu.memory_space<vmem>>, %arg15: memref<1x256x8xf32, #tpu.memory_space<vmem>>, %arg16: memref<304x4xbf16, #tpu.memory_space<vmem>>, %arg17: memref<304x8xbf16, #tpu.memory_space<vmem>>) attributes {dimension_semantics = [#tpu.dimension_semantics<parallel>], iteration_bounds = array<i64: 2>, scalar_prefetch = 0 : i64, scratch_operands = 2 : i64, tpu.core_type = #tpu.core_type<tc>, window_params = [{transform_indices = @transform_0, window_bounds = array<i64: 1, 256, 4>}, {transform_indices = @transform_1, window_bounds = array<i64: 1, 1, 8>}, {pipeline_mode = #tpu.pipeline_mode<synchronous>, transform_indices = @transform_2, window_bounds = array<i64: 1, 4>}, {pipeline_mode = #tpu.pipeline_mode<synchronous>, transform_indices = @transform_3, window_bounds = array<i64: 1, 4>}, {pipeline_mode = #tpu.pipeline_mode<synchronous>, transform_indices = @transform_4, window_bounds = array<i64: 4, 4>}, {pipeline_mode = #tpu.pipeline_mode<synchronous>, transform_indices = @transform_5, window_bounds = array<i64: 9, 4, 8>}, {pipeline_mode = #tpu.pipeline_mode<synchronous>, transform_indices = @transform_6, window_bounds = array<i64: 1, 8>}, {pipeline_mode = #tpu.pipeline_mode<synchronous>, transform_indices = @transform_7, window_bounds = array<i64: 1, 8>}, {pipeline_mode = #tpu.pipeline_mode<synchronous>, transform_indices = @transform_8, window_bounds = array<i64: 1, 8>}, {pipeline_mode = #tpu.pipeline_mode<synchronous>, transform_indices = @transform_9, window_bounds = array<i64: 8, 8>}, {pipeline_mode = #tpu.pipeline_mode<synchronous>, transform_indices = @transform_10, window_bounds = array<i64: 9, 8, 8>}, {pipeline_mode = #tpu.pipeline_mode<synchronous>, transform_indices = @transform_11, window_bounds = array<i64: 1, 8>}, {pipeline_mode = #tpu.pipeline_mode<synchronous>, transform_indices = @transform_12, window_bounds = array<i64: 4, 8>}, {pipeline_mode = #tpu.pipeline_mode<synchronous>, transform_indices = @transform_13, window_bounds = array<i64: 1, 8>}, {transform_indices = @transform_14, window_bounds = array<i64: 1, 256, 8>}]} {
    %c0 = arith.constant 0 : index
    %c0_0 = arith.constant 0 : index
    %c0_1 = arith.constant 0 : index
    %0 = vector.load %arg1[%c0, %c0_0, %c0_1] : memref<1x256x4xf32, #tpu.memory_space<vmem>>, vector<1x256x4xf32>
    %1 = vector.shape_cast %0 : vector<1x256x4xf32> to vector<256x4xf32>
    %cst = arith.constant 0.000000e+00 : bf16
    %2 = vector.broadcast %cst : bf16 to vector<24x4xbf16>
    %c0_2 = arith.constant 0 : index
    %c0_3 = arith.constant 0 : index
    %3 = vector.load %arg16[%c0_2, %c0_3] : memref<304x4xbf16, #tpu.memory_space<vmem>>, vector<24x4xbf16>
    tpu.vector_store %arg16[%c0_2, %c0_3], %2 {strides = array<i32>} : memref<304x4xbf16, #tpu.memory_space<vmem>>, vector<24x4xbf16>,
    %cst_4 = arith.constant 0.000000e+00 : bf16
    %4 = vector.broadcast %cst_4 : bf16 to vector<24x4xbf16>
    %c280 = arith.constant 280 : index
    %c0_5 = arith.constant 0 : index
    %5 = vector.load %arg16[%c280, %c0_5] : memref<304x4xbf16, #tpu.memory_space<vmem>>, vector<24x4xbf16>
    tpu.vector_store %arg16[%c280, %c0_5], %4 {strides = array<i32>} : memref<304x4xbf16, #tpu.memory_space<vmem>>, vector<24x4xbf16>,
    %cst_6 = arith.constant 0.000000e+00 : bf16
    %6 = vector.broadcast %cst_6 : bf16 to vector<24x8xbf16>
    %c0_7 = arith.constant 0 : index
    %c0_8 = arith.constant 0 : index
    %7 = vector.load %arg17[%c0_7, %c0_8] : memref<304x8xbf16, #tpu.memory_space<vmem>>, vector<24x8xbf16>
    tpu.vector_store %arg17[%c0_7, %c0_8], %6 {strides = array<i32>} : memref<304x8xbf16, #tpu.memory_space<vmem>>, vector<24x8xbf16>,
    %cst_9 = arith.constant 0.000000e+00 : bf16
    %8 = vector.broadcast %cst_9 : bf16 to vector<24x8xbf16>
    %c280_10 = arith.constant 280 : index
    %c0_11 = arith.constant 0 : index
    %9 = vector.load %arg17[%c280_10, %c0_11] : memref<304x8xbf16, #tpu.memory_space<vmem>>, vector<24x8xbf16>
    tpu.vector_store %arg17[%c280_10, %c0_11], %8 {strides = array<i32>} : memref<304x8xbf16, #tpu.memory_space<vmem>>, vector<24x8xbf16>,
    %10 = tpu.iota {dimensions = array<i32: 0>} : vector<256x1xi32>
    %c16_i32 = arith.constant 16 : i32
    %c0_i32 = arith.constant 0 : i32
    %11 = arith.cmpi eq, %c16_i32, %c0_i32 : i32
    %c1_i32 = arith.constant 1 : i32
    %12 = arith.select %11, %c1_i32, %c16_i32 : i32
    %13 = vector.broadcast %12 : i32 to vector<256x1xi32>
    %14 = arith.remsi %10, %13 : vector<256x1xi32>
    %c0_i32_12 = arith.constant 0 : i32
    %15 = vector.broadcast %c0_i32_12 : i32 to vector<256x1xi32>
    %16 = arith.cmpi ne, %14, %15 : vector<256x1xi32>
    %c0_i32_13 = arith.constant 0 : i32
    %17 = vector.broadcast %c0_i32_13 : i32 to vector<256x1xi32>
    %18 = arith.cmpi slt, %14, %17 : vector<256x1xi32>
    %c0_i32_14 = arith.constant 0 : i32
    %19 = arith.cmpi slt, %12, %c0_i32_14 : i32
    %20 = vector.broadcast %19 : i1 to vector<256x1xi1>
    %21 = vector.broadcast %20 : vector<256x1xi1> to vector<256x1xi1>
    %22 = arith.xori %18, %21 : vector<256x1xi1>
    %23 = arith.andi %22, %16 : vector<256x1xi1>
    %24 = vector.broadcast %12 : i32 to vector<256x1xi32>
    %25 = arith.addi %14, %24 : vector<256x1xi32>
    %26 = arith.select %23, %25, %14 : vector<256x1xi1>, vector<256x1xi32>
    %c1_i32_15 = arith.constant 1 : i32
    %27 = vector.broadcast %c1_i32_15 : i32 to vector<256x1xi32>
    %28 = arith.cmpi sge, %26, %27 : vector<256x1xi32>
    %29 = arith.extui %28 : vector<256x1xi1> to vector<256x1xi32>
    %30 = arith.sitofp %29 : vector<256x1xi32> to vector<256x1xf32>
    %c14_i32 = arith.constant 14 : i32
    %31 = vector.broadcast %c14_i32 : i32 to vector<256x1xi32>
    %32 = arith.cmpi sle, %26, %31 : vector<256x1xi32>
    %33 = arith.extui %32 : vector<256x1xi1> to vector<256x1xi32>
    %34 = arith.sitofp %33 : vector<256x1xi32> to vector<256x1xf32>
    %cst_16 = arith.constant dense<0.000000e+00> : vector<4xf32>
    %35 = vector.multi_reduction <add>, %1, %cst_16 [0] : vector<256x4xf32> to vector<4xf32>
    %36 = vector.shape_cast %35 : vector<4xf32> to vector<1x4xf32>
    %37 = arith.mulf %1, %1 : vector<256x4xf32>
    %cst_17 = arith.constant dense<0.000000e+00> : vector<4xf32>
    %38 = vector.multi_reduction <add>, %37, %cst_17 [0] : vector<256x4xf32> to vector<4xf32>
    %39 = vector.shape_cast %38 : vector<4xf32> to vector<1x4xf32>
    %c0_18 = arith.constant 0 : index
    %c0_19 = arith.constant 0 : index
    %40 = vector.load %arg5[%c0_18, %c0_19] : memref<4x4xf32, #tpu.memory_space<vmem>>, vector<4x4xf32>
    %cst_20 = arith.constant dense<0.000000e+00> : vector<1x4xf32>
    %41 = tpu.matmul %36, %40, %cst_20 {dimension_numbers = #tpu.dot_dimension_numbers<[1], [0], [0], [1], [0, 0, 1, 1], [], []>} : vector<1x4xf32>, vector<4x4xf32>, vector<1x4xf32> -> vector<1x4xf32>
    %c0_21 = arith.constant 0 : index
    %c0_22 = arith.constant 0 : index
    %42 = vector.load %arg5[%c0_21, %c0_22] : memref<4x4xf32, #tpu.memory_space<vmem>>, vector<4x4xf32>
    %cst_23 = arith.constant dense<0.000000e+00> : vector<1x4xf32>
    %43 = tpu.matmul %39, %42, %cst_23 {dimension_numbers = #tpu.dot_dimension_numbers<[1], [0], [0], [1], [0, 0, 1, 1], [], []>} : vector<1x4xf32>, vector<4x4xf32>, vector<1x4xf32> -> vector<1x4xf32>
    %44 = arith.mulf %41, %41 : vector<1x4xf32>
    %45 = arith.subf %43, %44 : vector<1x4xf32>
    %cst_24 = arith.constant 0.000000e+00 : f32
    %46 = vector.broadcast %cst_24 : f32 to vector<1x4xf32>
    %47 = arith.maximumf %45, %46 : vector<1x4xf32>
    %cst_25 = arith.constant 9.99999974E-6 : f32
    %48 = vector.broadcast %cst_25 : f32 to vector<1x4xf32>
    %49 = arith.addf %47, %48 : vector<1x4xf32>
    %50 = math.rsqrt %49 : vector<1x4xf32>
    %c0_26 = arith.constant 0 : index
    %c0_27 = arith.constant 0 : index
    %51 = vector.load %arg3[%c0_26, %c0_27] : memref<1x4xf32, #tpu.memory_space<vmem>>, vector<1x4xf32>
    %52 = arith.mulf %50, %51 : vector<1x4xf32>
    %c0_28 = arith.constant 0 : index
    %c0_29 = arith.constant 0 : index
    %53 = vector.load %arg4[%c0_28, %c0_29] : memref<1x4xf32, #tpu.memory_space<vmem>>, vector<1x4xf32>
    %54 = arith.mulf %41, %52 : vector<1x4xf32>
    %55 = arith.subf %53, %54 : vector<1x4xf32>
    %56 = vector.broadcast %52 : vector<1x4xf32> to vector<256x4xf32>
    %57 = arith.mulf %1, %56 : vector<256x4xf32>
    %58 = vector.broadcast %55 : vector<1x4xf32> to vector<256x4xf32>
    %59 = arith.addf %57, %58 : vector<256x4xf32>
    %60 = arith.truncf %59 : vector<256x4xf32> to vector<256x4xbf16>
    %c24 = arith.constant 24 : index
    %c0_30 = arith.constant 0 : index
    %61 = vector.load %arg16[%c24, %c0_30] : memref<304x4xbf16, #tpu.memory_space<vmem>>, vector<256x4xbf16>
    tpu.vector_store %arg16[%c24, %c0_30], %60 {strides = array<i32>} : memref<304x4xbf16, #tpu.memory_space<vmem>>, vector<256x4xbf16>,
    %cst_31 = arith.constant 0.000000e+00 : f32
    %62 = vector.broadcast %cst_31 : f32 to vector<256x8xf32>
    %cst_32 = arith.constant 0.000000e+00 : f32
    %63 = vector.broadcast %cst_32 : f32 to vector<256x8xf32>
    %cst_33 = arith.constant 0.000000e+00 : f32
    %64 = vector.broadcast %cst_33 : f32 to vector<256x8xf32>
    %c7 = arith.constant 7 : index
    %c0_34 = arith.constant 0 : index
    %65 = vector.load %arg16[%c7, %c0_34] : memref<304x4xbf16, #tpu.memory_space<vmem>>, vector<256x4xbf16>
    %c0_35 = arith.constant 0 : index
    %c0_36 = arith.constant 0 : index
    %c0_37 = arith.constant 0 : index
    %66 = vector.load %arg6[%c0_35, %c0_36, %c0_37] : memref<9x4x8xbf16, #tpu.memory_space<vmem>>, vector<1x4x8xbf16>
    %67 = vector.shape_cast %66 : vector<1x4x8xbf16> to vector<4x8xbf16>
    %cst_38 = arith.constant dense<0.000000e+00> : vector<256x8xf32>
    %68 = tpu.matmul %65, %67, %cst_38 {dimension_numbers = #tpu.dot_dimension_numbers<[1], [0], [0], [1], [0, 0, 1, 1], [], []>} : vector<256x4xbf16>, vector<4x8xbf16>, vector<256x8xf32> -> vector<256x8xf32>
    %69 = arith.addf %63, %68 : vector<256x8xf32>
    %c8 = arith.constant 8 : index
    %c0_39 = arith.constant 0 : index
    %70 = vector.load %arg16[%c8, %c0_39] : memref<304x4xbf16, #tpu.memory_space<vmem>>, vector<256x4xbf16>
    %c1 = arith.constant 1 : index
    %c0_40 = arith.constant 0 : index
    %c0_41 = arith.constant 0 : index
    %71 = vector.load %arg6[%c1, %c0_40, %c0_41] : memref<9x4x8xbf16, #tpu.memory_space<vmem>>, vector<1x4x8xbf16>
    %72 = vector.shape_cast %71 : vector<1x4x8xbf16> to vector<4x8xbf16>
    %cst_42 = arith.constant dense<0.000000e+00> : vector<256x8xf32>
    %73 = tpu.matmul %70, %72, %cst_42 {dimension_numbers = #tpu.dot_dimension_numbers<[1], [0], [0], [1], [0, 0, 1, 1], [], []>} : vector<256x4xbf16>, vector<4x8xbf16>, vector<256x8xf32> -> vector<256x8xf32>
    %74 = arith.addf %62, %73 : vector<256x8xf32>
    %c9 = arith.constant 9 : index
    %c0_43 = arith.constant 0 : index
    %75 = vector.load %arg16[%c9, %c0_43] : memref<304x4xbf16, #tpu.memory_space<vmem>>, vector<256x4xbf16>
    %c2 = arith.constant 2 : index
    %c0_44 = arith.constant 0 : index
    %c0_45 = arith.constant 0 : index
    %76 = vector.load %arg6[%c2, %c0_44, %c0_45] : memref<9x4x8xbf16, #tpu.memory_space<vmem>>, vector<1x4x8xbf16>
    %77 = vector.shape_cast %76 : vector<1x4x8xbf16> to vector<4x8xbf16>
    %cst_46 = arith.constant dense<0.000000e+00> : vector<256x8xf32>
    %78 = tpu.matmul %75, %77, %cst_46 {dimension_numbers = #tpu.dot_dimension_numbers<[1], [0], [0], [1], [0, 0, 1, 1], [], []>} : vector<256x4xbf16>, vector<4x8xbf16>, vector<256x8xf32> -> vector<256x8xf32>
    %79 = arith.addf %64, %78 : vector<256x8xf32>
    %c23 = arith.constant 23 : index
    %c0_47 = arith.constant 0 : index
    %80 = vector.load %arg16[%c23, %c0_47] : memref<304x4xbf16, #tpu.memory_space<vmem>>, vector<256x4xbf16>
    %c3 = arith.constant 3 : index
    %c0_48 = arith.constant 0 : index
    %c0_49 = arith.constant 0 : index
    %81 = vector.load %arg6[%c3, %c0_48, %c0_49] : memref<9x4x8xbf16, #tpu.memory_space<vmem>>, vector<1x4x8xbf16>
    %82 = vector.shape_cast %81 : vector<1x4x8xbf16> to vector<4x8xbf16>
    %cst_50 = arith.constant dense<0.000000e+00> : vector<256x8xf32>
    %83 = tpu.matmul %80, %82, %cst_50 {dimension_numbers = #tpu.dot_dimension_numbers<[1], [0], [0], [1], [0, 0, 1, 1], [], []>} : vector<256x4xbf16>, vector<4x8xbf16>, vector<256x8xf32> -> vector<256x8xf32>
    %84 = arith.addf %69, %83 : vector<256x8xf32>
    %c24_51 = arith.constant 24 : index
    %c0_52 = arith.constant 0 : index
    %85 = vector.load %arg16[%c24_51, %c0_52] : memref<304x4xbf16, #tpu.memory_space<vmem>>, vector<256x4xbf16>
    %c4 = arith.constant 4 : index
    %c0_53 = arith.constant 0 : index
    %c0_54 = arith.constant 0 : index
    %86 = vector.load %arg6[%c4, %c0_53, %c0_54] : memref<9x4x8xbf16, #tpu.memory_space<vmem>>, vector<1x4x8xbf16>
    %87 = vector.shape_cast %86 : vector<1x4x8xbf16> to vector<4x8xbf16>
    %cst_55 = arith.constant dense<0.000000e+00> : vector<256x8xf32>
    %88 = tpu.matmul %85, %87, %cst_55 {dimension_numbers = #tpu.dot_dimension_numbers<[1], [0], [0], [1], [0, 0, 1, 1], [], []>} : vector<256x4xbf16>, vector<4x8xbf16>, vector<256x8xf32> -> vector<256x8xf32>
    %89 = arith.addf %74, %88 : vector<256x8xf32>
    %c25 = arith.constant 25 : index
    %c0_56 = arith.constant 0 : index
    %90 = vector.load %arg16[%c25, %c0_56] : memref<304x4xbf16, #tpu.memory_space<vmem>>, vector<256x4xbf16>
    %c5 = arith.constant 5 : index
    %c0_57 = arith.constant 0 : index
    %c0_58 = arith.constant 0 : index
    %91 = vector.load %arg6[%c5, %c0_57, %c0_58] : memref<9x4x8xbf16, #tpu.memory_space<vmem>>, vector<1x4x8xbf16>
    %92 = vector.shape_cast %91 : vector<1x4x8xbf16> to vector<4x8xbf16>
    %cst_59 = arith.constant dense<0.000000e+00> : vector<256x8xf32>
    %93 = tpu.matmul %90, %92, %cst_59 {dimension_numbers = #tpu.dot_dimension_numbers<[1], [0], [0], [1], [0, 0, 1, 1], [], []>} : vector<256x4xbf16>, vector<4x8xbf16>, vector<256x8xf32> -> vector<256x8xf32>
    %94 = arith.addf %79, %93 : vector<256x8xf32>
    %c39 = arith.constant 39 : index
    %c0_60 = arith.constant 0 : index
    %95 = vector.load %arg16[%c39, %c0_60] : memref<304x4xbf16, #tpu.memory_space<vmem>>, vector<256x4xbf16>
    %c6 = arith.constant 6 : index
    %c0_61 = arith.constant 0 : index
    %c0_62 = arith.constant 0 : index
    %96 = vector.load %arg6[%c6, %c0_61, %c0_62] : memref<9x4x8xbf16, #tpu.memory_space<vmem>>, vector<1x4x8xbf16>
    %97 = vector.shape_cast %96 : vector<1x4x8xbf16> to vector<4x8xbf16>
    %cst_63 = arith.constant dense<0.000000e+00> : vector<256x8xf32>
    %98 = tpu.matmul %95, %97, %cst_63 {dimension_numbers = #tpu.dot_dimension_numbers<[1], [0], [0], [1], [0, 0, 1, 1], [], []>} : vector<256x4xbf16>, vector<4x8xbf16>, vector<256x8xf32> -> vector<256x8xf32>
    %99 = arith.addf %84, %98 : vector<256x8xf32>
    %c40 = arith.constant 40 : index
    %c0_64 = arith.constant 0 : index
    %100 = vector.load %arg16[%c40, %c0_64] : memref<304x4xbf16, #tpu.memory_space<vmem>>, vector<256x4xbf16>
    %c7_65 = arith.constant 7 : index
    %c0_66 = arith.constant 0 : index
    %c0_67 = arith.constant 0 : index
    %101 = vector.load %arg6[%c7_65, %c0_66, %c0_67] : memref<9x4x8xbf16, #tpu.memory_space<vmem>>, vector<1x4x8xbf16>
    %102 = vector.shape_cast %101 : vector<1x4x8xbf16> to vector<4x8xbf16>
    %cst_68 = arith.constant dense<0.000000e+00> : vector<256x8xf32>
    %103 = tpu.matmul %100, %102, %cst_68 {dimension_numbers = #tpu.dot_dimension_numbers<[1], [0], [0], [1], [0, 0, 1, 1], [], []>} : vector<256x4xbf16>, vector<4x8xbf16>, vector<256x8xf32> -> vector<256x8xf32>
    %104 = arith.addf %89, %103 : vector<256x8xf32>
    %c41 = arith.constant 41 : index
    %c0_69 = arith.constant 0 : index
    %105 = vector.load %arg16[%c41, %c0_69] : memref<304x4xbf16, #tpu.memory_space<vmem>>, vector<256x4xbf16>
    %c8_70 = arith.constant 8 : index
    %c0_71 = arith.constant 0 : index
    %c0_72 = arith.constant 0 : index
    %106 = vector.load %arg6[%c8_70, %c0_71, %c0_72] : memref<9x4x8xbf16, #tpu.memory_space<vmem>>, vector<1x4x8xbf16>
    %107 = vector.shape_cast %106 : vector<1x4x8xbf16> to vector<4x8xbf16>
    %cst_73 = arith.constant dense<0.000000e+00> : vector<256x8xf32>
    %108 = tpu.matmul %105, %107, %cst_73 {dimension_numbers = #tpu.dot_dimension_numbers<[1], [0], [0], [1], [0, 0, 1, 1], [], []>} : vector<256x4xbf16>, vector<4x8xbf16>, vector<256x8xf32> -> vector<256x8xf32>
    %109 = arith.addf %94, %108 : vector<256x8xf32>
    %110 = vector.broadcast %30 : vector<256x1xf32> to vector<256x8xf32>
    %111 = arith.mulf %99, %110 : vector<256x8xf32>
    %112 = arith.addf %104, %111 : vector<256x8xf32>
    %113 = vector.broadcast %34 : vector<256x1xf32> to vector<256x8xf32>
    %114 = arith.mulf %109, %113 : vector<256x8xf32>
    %115 = arith.addf %112, %114 : vector<256x8xf32>
    %c0_74 = arith.constant 0 : index
    %c0_75 = arith.constant 0 : index
    %116 = vector.load %arg7[%c0_74, %c0_75] : memref<1x8xf32, #tpu.memory_space<vmem>>, vector<1x8xf32>
    %117 = vector.broadcast %116 : vector<1x8xf32> to vector<256x8xf32>
    %118 = arith.addf %115, %117 : vector<256x8xf32>
    %cst_76 = arith.constant 0.000000e+00 : f32
    %119 = vector.broadcast %cst_76 : f32 to vector<256x8xf32>
    %120 = arith.subf %119, %118 : vector<256x8xf32>
    %121 = math.exp %120 : vector<256x8xf32>
    %cst_77 = arith.constant 1.000000e+00 : f32
    %122 = vector.broadcast %cst_77 : f32 to vector<256x8xf32>
    %123 = arith.addf %122, %121 : vector<256x8xf32>
    %124 = tpu.reciprocal %123 {approx = true} : vector<256x8xf32> -> vector<256x8xf32>
    %125 = arith.mulf %118, %124 : vector<256x8xf32>
    %c0_78 = arith.constant 0 : index
    %c0_79 = arith.constant 0 : index
    %c0_80 = arith.constant 0 : index
    %126 = vector.load %arg2[%c0_78, %c0_79, %c0_80] : memref<1x1x8xf32, #tpu.memory_space<vmem>>, vector<1x1x8xf32>
    %127 = vector.shape_cast %126 : vector<1x1x8xf32> to vector<1x8xf32>
    %128 = vector.broadcast %127 : vector<1x8xf32> to vector<256x8xf32>
    %129 = arith.addf %125, %128 : vector<256x8xf32>
    %cst_81 = arith.constant dense<0.000000e+00> : vector<8xf32>
    %130 = vector.multi_reduction <add>, %129, %cst_81 [0] : vector<256x8xf32> to vector<8xf32>
    %131 = vector.shape_cast %130 : vector<8xf32> to vector<1x8xf32>
    %132 = arith.mulf %129, %129 : vector<256x8xf32>
    %cst_82 = arith.constant dense<0.000000e+00> : vector<8xf32>
    %133 = vector.multi_reduction <add>, %132, %cst_82 [0] : vector<256x8xf32> to vector<8xf32>
    %134 = vector.shape_cast %133 : vector<8xf32> to vector<1x8xf32>
    %c0_83 = arith.constant 0 : index
    %c0_84 = arith.constant 0 : index
    %135 = vector.load %arg10[%c0_83, %c0_84] : memref<8x8xf32, #tpu.memory_space<vmem>>, vector<8x8xf32>
    %cst_85 = arith.constant dense<0.000000e+00> : vector<1x8xf32>
    %136 = tpu.matmul %131, %135, %cst_85 {dimension_numbers = #tpu.dot_dimension_numbers<[1], [0], [0], [1], [0, 0, 1, 1], [], []>} : vector<1x8xf32>, vector<8x8xf32>, vector<1x8xf32> -> vector<1x8xf32>
    %c0_86 = arith.constant 0 : index
    %c0_87 = arith.constant 0 : index
    %137 = vector.load %arg10[%c0_86, %c0_87] : memref<8x8xf32, #tpu.memory_space<vmem>>, vector<8x8xf32>
    %cst_88 = arith.constant dense<0.000000e+00> : vector<1x8xf32>
    %138 = tpu.matmul %134, %137, %cst_88 {dimension_numbers = #tpu.dot_dimension_numbers<[1], [0], [0], [1], [0, 0, 1, 1], [], []>} : vector<1x8xf32>, vector<8x8xf32>, vector<1x8xf32> -> vector<1x8xf32>
    %139 = arith.mulf %136, %136 : vector<1x8xf32>
    %140 = arith.subf %138, %139 : vector<1x8xf32>
    %cst_89 = arith.constant 0.000000e+00 : f32
    %141 = vector.broadcast %cst_89 : f32 to vector<1x8xf32>
    %142 = arith.maximumf %140, %141 : vector<1x8xf32>
    %cst_90 = arith.constant 9.99999974E-6 : f32
    %143 = vector.broadcast %cst_90 : f32 to vector<1x8xf32>
    %144 = arith.addf %142, %143 : vector<1x8xf32>
    %145 = math.rsqrt %144 : vector<1x8xf32>
    %c0_91 = arith.constant 0 : index
    %c0_92 = arith.constant 0 : index
    %146 = vector.load %arg8[%c0_91, %c0_92] : memref<1x8xf32, #tpu.memory_space<vmem>>, vector<1x8xf32>
    %147 = arith.mulf %145, %146 : vector<1x8xf32>
    %c0_93 = arith.constant 0 : index
    %c0_94 = arith.constant 0 : index
    %148 = vector.load %arg9[%c0_93, %c0_94] : memref<1x8xf32, #tpu.memory_space<vmem>>, vector<1x8xf32>
    %149 = arith.mulf %136, %147 : vector<1x8xf32>
    %150 = arith.subf %148, %149 : vector<1x8xf32>
    %151 = vector.broadcast %147 : vector<1x8xf32> to vector<256x8xf32>
    %152 = arith.mulf %129, %151 : vector<256x8xf32>
    %153 = vector.broadcast %150 : vector<1x8xf32> to vector<256x8xf32>
    %154 = arith.addf %152, %153 : vector<256x8xf32>
    %155 = arith.truncf %154 : vector<256x8xf32> to vector<256x8xbf16>
    %c24_95 = arith.constant 24 : index
    %c0_96 = arith.constant 0 : index
    %156 = vector.load %arg17[%c24_95, %c0_96] : memref<304x8xbf16, #tpu.memory_space<vmem>>, vector<256x8xbf16>
    tpu.vector_store %arg17[%c24_95, %c0_96], %155 {strides = array<i32>} : memref<304x8xbf16, #tpu.memory_space<vmem>>, vector<256x8xbf16>,
    %cst_97 = arith.constant 0.000000e+00 : f32
    %157 = vector.broadcast %cst_97 : f32 to vector<256x8xf32>
    %cst_98 = arith.constant 0.000000e+00 : f32
    %158 = vector.broadcast %cst_98 : f32 to vector<256x8xf32>
    %cst_99 = arith.constant 0.000000e+00 : f32
    %159 = vector.broadcast %cst_99 : f32 to vector<256x8xf32>
    %c7_100 = arith.constant 7 : index
    %c0_101 = arith.constant 0 : index
    %160 = vector.load %arg17[%c7_100, %c0_101] : memref<304x8xbf16, #tpu.memory_space<vmem>>, vector<256x8xbf16>
    %c0_102 = arith.constant 0 : index
    %c0_103 = arith.constant 0 : index
    %c0_104 = arith.constant 0 : index
    %161 = vector.load %arg11[%c0_102, %c0_103, %c0_104] : memref<9x8x8xbf16, #tpu.memory_space<vmem>>, vector<1x8x8xbf16>
    %162 = vector.shape_cast %161 : vector<1x8x8xbf16> to vector<8x8xbf16>
    %cst_105 = arith.constant dense<0.000000e+00> : vector<256x8xf32>
    %163 = tpu.matmul %160, %162, %cst_105 {dimension_numbers = #tpu.dot_dimension_numbers<[1], [0], [0], [1], [0, 0, 1, 1], [], []>} : vector<256x8xbf16>, vector<8x8xbf16>, vector<256x8xf32> -> vector<256x8xf32>
    %164 = arith.addf %158, %163 : vector<256x8xf32>
    %c8_106 = arith.constant 8 : index
    %c0_107 = arith.constant 0 : index
    %165 = vector.load %arg17[%c8_106, %c0_107] : memref<304x8xbf16, #tpu.memory_space<vmem>>, vector<256x8xbf16>
    %c1_108 = arith.constant 1 : index
    %c0_109 = arith.constant 0 : index
    %c0_110 = arith.constant 0 : index
    %166 = vector.load %arg11[%c1_108, %c0_109, %c0_110] : memref<9x8x8xbf16, #tpu.memory_space<vmem>>, vector<1x8x8xbf16>
    %167 = vector.shape_cast %166 : vector<1x8x8xbf16> to vector<8x8xbf16>
    %cst_111 = arith.constant dense<0.000000e+00> : vector<256x8xf32>
    %168 = tpu.matmul %165, %167, %cst_111 {dimension_numbers = #tpu.dot_dimension_numbers<[1], [0], [0], [1], [0, 0, 1, 1], [], []>} : vector<256x8xbf16>, vector<8x8xbf16>, vector<256x8xf32> -> vector<256x8xf32>
    %169 = arith.addf %157, %168 : vector<256x8xf32>
    %c9_112 = arith.constant 9 : index
    %c0_113 = arith.constant 0 : index
    %170 = vector.load %arg17[%c9_112, %c0_113] : memref<304x8xbf16, #tpu.memory_space<vmem>>, vector<256x8xbf16>
    %c2_114 = arith.constant 2 : index
    %c0_115 = arith.constant 0 : index
    %c0_116 = arith.constant 0 : index
    %171 = vector.load %arg11[%c2_114, %c0_115, %c0_116] : memref<9x8x8xbf16, #tpu.memory_space<vmem>>, vector<1x8x8xbf16>
    %172 = vector.shape_cast %171 : vector<1x8x8xbf16> to vector<8x8xbf16>
    %cst_117 = arith.constant dense<0.000000e+00> : vector<256x8xf32>
    %173 = tpu.matmul %170, %172, %cst_117 {dimension_numbers = #tpu.dot_dimension_numbers<[1], [0], [0], [1], [0, 0, 1, 1], [], []>} : vector<256x8xbf16>, vector<8x8xbf16>, vector<256x8xf32> -> vector<256x8xf32>
    %174 = arith.addf %159, %173 : vector<256x8xf32>
    %c23_118 = arith.constant 23 : index
    %c0_119 = arith.constant 0 : index
    %175 = vector.load %arg17[%c23_118, %c0_119] : memref<304x8xbf16, #tpu.memory_space<vmem>>, vector<256x8xbf16>
    %c3_120 = arith.constant 3 : index
    %c0_121 = arith.constant 0 : index
    %c0_122 = arith.constant 0 : index
    %176 = vector.load %arg11[%c3_120, %c0_121, %c0_122] : memref<9x8x8xbf16, #tpu.memory_space<vmem>>, vector<1x8x8xbf16>
    %177 = vector.shape_cast %176 : vector<1x8x8xbf16> to vector<8x8xbf16>
    %cst_123 = arith.constant dense<0.000000e+00> : vector<256x8xf32>
    %178 = tpu.matmul %175, %177, %cst_123 {dimension_numbers = #tpu.dot_dimension_numbers<[1], [0], [0], [1], [0, 0, 1, 1], [], []>} : vector<256x8xbf16>, vector<8x8xbf16>, vector<256x8xf32> -> vector<256x8xf32>
    %179 = arith.addf %164, %178 : vector<256x8xf32>
    %c24_124 = arith.constant 24 : index
    %c0_125 = arith.constant 0 : index
    %180 = vector.load %arg17[%c24_124, %c0_125] : memref<304x8xbf16, #tpu.memory_space<vmem>>, vector<256x8xbf16>
    %c4_126 = arith.constant 4 : index
    %c0_127 = arith.constant 0 : index
    %c0_128 = arith.constant 0 : index
    %181 = vector.load %arg11[%c4_126, %c0_127, %c0_128] : memref<9x8x8xbf16, #tpu.memory_space<vmem>>, vector<1x8x8xbf16>
    %182 = vector.shape_cast %181 : vector<1x8x8xbf16> to vector<8x8xbf16>
    %cst_129 = arith.constant dense<0.000000e+00> : vector<256x8xf32>
    %183 = tpu.matmul %180, %182, %cst_129 {dimension_numbers = #tpu.dot_dimension_numbers<[1], [0], [0], [1], [0, 0, 1, 1], [], []>} : vector<256x8xbf16>, vector<8x8xbf16>, vector<256x8xf32> -> vector<256x8xf32>
    %184 = arith.addf %169, %183 : vector<256x8xf32>
    %c25_130 = arith.constant 25 : index
    %c0_131 = arith.constant 0 : index
    %185 = vector.load %arg17[%c25_130, %c0_131] : memref<304x8xbf16, #tpu.memory_space<vmem>>, vector<256x8xbf16>
    %c5_132 = arith.constant 5 : index
    %c0_133 = arith.constant 0 : index
    %c0_134 = arith.constant 0 : index
    %186 = vector.load %arg11[%c5_132, %c0_133, %c0_134] : memref<9x8x8xbf16, #tpu.memory_space<vmem>>, vector<1x8x8xbf16>
    %187 = vector.shape_cast %186 : vector<1x8x8xbf16> to vector<8x8xbf16>
    %cst_135 = arith.constant dense<0.000000e+00> : vector<256x8xf32>
    %188 = tpu.matmul %185, %187, %cst_135 {dimension_numbers = #tpu.dot_dimension_numbers<[1], [0], [0], [1], [0, 0, 1, 1], [], []>} : vector<256x8xbf16>, vector<8x8xbf16>, vector<256x8xf32> -> vector<256x8xf32>
    %189 = arith.addf %174, %188 : vector<256x8xf32>
    %c39_136 = arith.constant 39 : index
    %c0_137 = arith.constant 0 : index
    %190 = vector.load %arg17[%c39_136, %c0_137] : memref<304x8xbf16, #tpu.memory_space<vmem>>, vector<256x8xbf16>
    %c6_138 = arith.constant 6 : index
    %c0_139 = arith.constant 0 : index
    %c0_140 = arith.constant 0 : index
    %191 = vector.load %arg11[%c6_138, %c0_139, %c0_140] : memref<9x8x8xbf16, #tpu.memory_space<vmem>>, vector<1x8x8xbf16>
    %192 = vector.shape_cast %191 : vector<1x8x8xbf16> to vector<8x8xbf16>
    %cst_141 = arith.constant dense<0.000000e+00> : vector<256x8xf32>
    %193 = tpu.matmul %190, %192, %cst_141 {dimension_numbers = #tpu.dot_dimension_numbers<[1], [0], [0], [1], [0, 0, 1, 1], [], []>} : vector<256x8xbf16>, vector<8x8xbf16>, vector<256x8xf32> -> vector<256x8xf32>
    %194 = arith.addf %179, %193 : vector<256x8xf32>
    %c40_142 = arith.constant 40 : index
    %c0_143 = arith.constant 0 : index
    %195 = vector.load %arg17[%c40_142, %c0_143] : memref<304x8xbf16, #tpu.memory_space<vmem>>, vector<256x8xbf16>
    %c7_144 = arith.constant 7 : index
    %c0_145 = arith.constant 0 : index
    %c0_146 = arith.constant 0 : index
    %196 = vector.load %arg11[%c7_144, %c0_145, %c0_146] : memref<9x8x8xbf16, #tpu.memory_space<vmem>>, vector<1x8x8xbf16>
    %197 = vector.shape_cast %196 : vector<1x8x8xbf16> to vector<8x8xbf16>
    %cst_147 = arith.constant dense<0.000000e+00> : vector<256x8xf32>
    %198 = tpu.matmul %195, %197, %cst_147 {dimension_numbers = #tpu.dot_dimension_numbers<[1], [0], [0], [1], [0, 0, 1, 1], [], []>} : vector<256x8xbf16>, vector<8x8xbf16>, vector<256x8xf32> -> vector<256x8xf32>
    %199 = arith.addf %184, %198 : vector<256x8xf32>
    %c41_148 = arith.constant 41 : index
    %c0_149 = arith.constant 0 : index
    %200 = vector.load %arg17[%c41_148, %c0_149] : memref<304x8xbf16, #tpu.memory_space<vmem>>, vector<256x8xbf16>
    %c8_150 = arith.constant 8 : index
    %c0_151 = arith.constant 0 : index
    %c0_152 = arith.constant 0 : index
    %201 = vector.load %arg11[%c8_150, %c0_151, %c0_152] : memref<9x8x8xbf16, #tpu.memory_space<vmem>>, vector<1x8x8xbf16>
    %202 = vector.shape_cast %201 : vector<1x8x8xbf16> to vector<8x8xbf16>
    %cst_153 = arith.constant dense<0.000000e+00> : vector<256x8xf32>
    %203 = tpu.matmul %200, %202, %cst_153 {dimension_numbers = #tpu.dot_dimension_numbers<[1], [0], [0], [1], [0, 0, 1, 1], [], []>} : vector<256x8xbf16>, vector<8x8xbf16>, vector<256x8xf32> -> vector<256x8xf32>
    %204 = arith.addf %189, %203 : vector<256x8xf32>
    %205 = vector.broadcast %30 : vector<256x1xf32> to vector<256x8xf32>
    %206 = arith.mulf %194, %205 : vector<256x8xf32>
    %207 = arith.addf %199, %206 : vector<256x8xf32>
    %208 = vector.broadcast %34 : vector<256x1xf32> to vector<256x8xf32>
    %209 = arith.mulf %204, %208 : vector<256x8xf32>
    %210 = arith.addf %207, %209 : vector<256x8xf32>
    %c0_154 = arith.constant 0 : index
    %c0_155 = arith.constant 0 : index
    %211 = vector.load %arg12[%c0_154, %c0_155] : memref<1x8xf32, #tpu.memory_space<vmem>>, vector<1x8xf32>
    %212 = vector.broadcast %211 : vector<1x8xf32> to vector<256x8xf32>
    %213 = arith.addf %210, %212 : vector<256x8xf32>
    %cst_156 = arith.constant 0.000000e+00 : f32
    %214 = vector.broadcast %cst_156 : f32 to vector<256x8xf32>
    %215 = arith.subf %214, %213 : vector<256x8xf32>
    %216 = math.exp %215 : vector<256x8xf32>
    %cst_157 = arith.constant 1.000000e+00 : f32
    %217 = vector.broadcast %cst_157 : f32 to vector<256x8xf32>
    %218 = arith.addf %217, %216 : vector<256x8xf32>
    %219 = tpu.reciprocal %218 {approx = true} : vector<256x8xf32> -> vector<256x8xf32>
    %220 = arith.mulf %213, %219 : vector<256x8xf32>
    %221 = arith.truncf %1 : vector<256x4xf32> to vector<256x4xbf16>
    %c0_158 = arith.constant 0 : index
    %c0_159 = arith.constant 0 : index
    %222 = vector.load %arg13[%c0_158, %c0_159] : memref<4x8xbf16, #tpu.memory_space<vmem>>, vector<4x8xbf16>
    %cst_160 = arith.constant dense<0.000000e+00> : vector<256x8xf32>
    %223 = tpu.matmul %221, %222, %cst_160 {dimension_numbers = #tpu.dot_dimension_numbers<[1], [0], [0], [1], [0, 0, 1, 1], [], []>} : vector<256x4xbf16>, vector<4x8xbf16>, vector<256x8xf32> -> vector<256x8xf32>
    %c0_161 = arith.constant 0 : index
    %c0_162 = arith.constant 0 : index
    %224 = vector.load %arg14[%c0_161, %c0_162] : memref<1x8xf32, #tpu.memory_space<vmem>>, vector<1x8xf32>
    %225 = vector.broadcast %224 : vector<1x8xf32> to vector<256x8xf32>
    %226 = arith.addf %223, %225 : vector<256x8xf32>
    %227 = arith.addf %220, %226 : vector<256x8xf32>
    %c0_163 = arith.constant 0 : index
    %c0_164 = arith.constant 0 : index
    %c0_165 = arith.constant 0 : index
    %228 = vector.load %arg15[%c0_163, %c0_164, %c0_165] : memref<1x256x8xf32, #tpu.memory_space<vmem>>, vector<1x256x8xf32>
    %229 = vector.shape_cast %228 : vector<1x256x8xf32> to vector<256x8xf32>
    %230 = vector.shape_cast %227 : vector<256x8xf32> to vector<1x256x8xf32>
    tpu.vector_store %arg15[%c0_163, %c0_164, %c0_165], %230 {strides = array<i32>} : memref<1x256x8xf32, #tpu.memory_space<vmem>>, vector<1x256x8xf32>,
    return
  }
  func.func @transform_0(%arg0: i32) -> (i32, i32, i32) {
    %c0_i32 = arith.constant 0 : i32
    %c0_i32_0 = arith.constant 0 : i32
    %c0_i32_1 = arith.constant 0 : i32
    return %arg0, %c0_i32, %c0_i32_0 : i32, i32, i32
  }
  func.func @transform_1(%arg0: i32) -> (i32, i32, i32) {
    %c0_i32 = arith.constant 0 : i32
    %c0_i32_0 = arith.constant 0 : i32
    %c0_i32_1 = arith.constant 0 : i32
    return %arg0, %c0_i32, %c0_i32_0 : i32, i32, i32
  }
  func.func @transform_2(%arg0: i32) -> (i32, i32) {
    %c0_i32 = arith.constant 0 : i32
    %c0_i32_0 = arith.constant 0 : i32
    %c0_i32_1 = arith.constant 0 : i32
    return %c0_i32, %c0_i32_0 : i32, i32
  }
  func.func @transform_3(%arg0: i32) -> (i32, i32) {
    %c0_i32 = arith.constant 0 : i32
    %c0_i32_0 = arith.constant 0 : i32
    %c0_i32_1 = arith.constant 0 : i32
    return %c0_i32, %c0_i32_0 : i32, i32
  }
  func.func @transform_4(%arg0: i32) -> (i32, i32) {
    %c0_i32 = arith.constant 0 : i32
    %c0_i32_0 = arith.constant 0 : i32
    %c0_i32_1 = arith.constant 0 : i32
    return %c0_i32, %c0_i32_0 : i32, i32
  }
  func.func @transform_5(%arg0: i32) -> (i32, i32, i32) {
    %c0_i32 = arith.constant 0 : i32
    %c0_i32_0 = arith.constant 0 : i32
    %c0_i32_1 = arith.constant 0 : i32
    %c0_i32_2 = arith.constant 0 : i32
    return %c0_i32, %c0_i32_0, %c0_i32_1 : i32, i32, i32
  }
  func.func @transform_6(%arg0: i32) -> (i32, i32) {
    %c0_i32 = arith.constant 0 : i32
    %c0_i32_0 = arith.constant 0 : i32
    %c0_i32_1 = arith.constant 0 : i32
    return %c0_i32, %c0_i32_0 : i32, i32
  }
  func.func @transform_7(%arg0: i32) -> (i32, i32) {
    %c0_i32 = arith.constant 0 : i32
    %c0_i32_0 = arith.constant 0 : i32
    %c0_i32_1 = arith.constant 0 : i32
    return %c0_i32, %c0_i32_0 : i32, i32
  }
  func.func @transform_8(%arg0: i32) -> (i32, i32) {
    %c0_i32 = arith.constant 0 : i32
    %c0_i32_0 = arith.constant 0 : i32
    %c0_i32_1 = arith.constant 0 : i32
    return %c0_i32, %c0_i32_0 : i32, i32
  }
  func.func @transform_9(%arg0: i32) -> (i32, i32) {
    %c0_i32 = arith.constant 0 : i32
    %c0_i32_0 = arith.constant 0 : i32
    %c0_i32_1 = arith.constant 0 : i32
    return %c0_i32, %c0_i32_0 : i32, i32
  }
  func.func @transform_10(%arg0: i32) -> (i32, i32, i32) {
    %c0_i32 = arith.constant 0 : i32
    %c0_i32_0 = arith.constant 0 : i32
    %c0_i32_1 = arith.constant 0 : i32
    %c0_i32_2 = arith.constant 0 : i32
    return %c0_i32, %c0_i32_0, %c0_i32_1 : i32, i32, i32
  }
  func.func @transform_11(%arg0: i32) -> (i32, i32) {
    %c0_i32 = arith.constant 0 : i32
    %c0_i32_0 = arith.constant 0 : i32
    %c0_i32_1 = arith.constant 0 : i32
    return %c0_i32, %c0_i32_0 : i32, i32
  }
  func.func @transform_12(%arg0: i32) -> (i32, i32) {
    %c0_i32 = arith.constant 0 : i32
    %c0_i32_0 = arith.constant 0 : i32
    %c0_i32_1 = arith.constant 0 : i32
    return %c0_i32, %c0_i32_0 : i32, i32
  }
  func.func @transform_13(%arg0: i32) -> (i32, i32) {
    %c0_i32 = arith.constant 0 : i32
    %c0_i32_0 = arith.constant 0 : i32
    %c0_i32_1 = arith.constant 0 : i32
    return %c0_i32, %c0_i32_0 : i32, i32
  }
  func.func @transform_14(%arg0: i32) -> (i32, i32, i32) {
    %c0_i32 = arith.constant 0 : i32
    %c0_i32_0 = arith.constant 0 : i32
    %c0_i32_1 = arith.constant 0 : i32
    return %arg0, %c0_i32, %c0_i32_0 : i32, i32, i32
  }
}

</mosaic_0001>

<bundles_post_ra>
// kernel: tpu_custom_call.1
= control target key start
LH: loop header
LB: loop body
LE: loop exit
PB: predicated region body
PF: predicated region fallthrough
CT: control target
= control target key end

     0   :  { %s15802_s0 = inlined_call_operand.hbm [shape: f32[2,256,4], index: 0, kind: input, shape index: {}]   ;;  %s15803_s1 = inlined_call_operand.hbm [shape: f32[2,1,8], index: 1, kind: input, shape index: {}]   ;;  %s15804_s2 = inlined_call_operand.hbm [shape: f32[1,4], index: 2, kind: input, shape index: {}]   ;;  %s15805_s3 = inlined_call_operand.hbm [shape: f32[1,4], index: 3, kind: input, shape index: {}]   ;;  %s15806_s4 = inlined_call_operand.hbm [shape: f32[4,4], index: 4, kind: input, shape index: {}]   ;;  %s15807_s5 = inlined_call_operand.hbm [shape: bf16[9,4,8], index: 5, kind: input, shape index: {}]   ;;  %s15808_s6 = inlined_call_operand.hbm [shape: f32[1,8], index: 6, kind: input, shape index: {}]   ;;  %s15809_s7 = inlined_call_operand.hbm [shape: f32[1,8], index: 7, kind: input, shape index: {}]   ;;  %s15810_s8 = inlined_call_operand.hbm [shape: f32[1,8], index: 8, kind: input, shape index: {}]   ;;  %s15811_s9 = inlined_call_operand.hbm [shape: f32[8,8], index: 9, kind: input, shape index: {}]   ;;  %s15812_s10 = inlined_call_operand.hbm [shape: bf16[9,8,8], index: 10, kind: input, shape index: {}]   ;;  %s15813_s11 = inlined_call_operand.hbm [shape: f32[1,8], index: 11, kind: input, shape index: {}]   ;;  %s15814_s12 = inlined_call_operand.hbm [shape: bf16[4,8], index: 12, kind: input, shape index: {}]   ;;  %s15815_s13 = inlined_call_operand.hbm [shape: f32[1,8], index: 13, kind: input, shape index: {}]   ;;  %s15816_s14 = inlined_call_operand.hbm [shape: f32[2,256,8], index: 14, kind: output, shape index: {}]  }
   0x1   :  { %15950 = sst [smem:[#allocation118_spill]] %s15802_s0 }
   0x2   :  { %15951 = sst [smem:[#allocation119_spill]] %s15803_s1 }
   0x3   :  { %15952 = sst [smem:[#allocation120_spill]] %s15804_s2 }
   0x4   :  { %15953 = sst [smem:[#allocation121_spill]] %s15805_s3 }
   0x5   :  { %15954 = sst [smem:[#allocation122_spill]] %s15806_s4 }
   0x6   :  { %15955 = sst [smem:[#allocation123_spill]] %s15807_s5 }
   0x7   :  { %15956 = sst [smem:[#allocation124_spill]] %s15808_s6 }
   0x8   :  { %15957 = sst [smem:[#allocation125_spill]] %s15809_s7 }
   0x9   :  { %15958 = sst [smem:[#allocation126_spill]] %s15810_s8 }
   0xa   :  { %15959 = sst [smem:[#allocation127_spill]] %s15816_s14 }
   0xb   :  { %19 = vsyncpa [#allocation5], 0 }
   0xc   :  { %21 = vsyncpa [#allocation5 + $0x1], 0 }
   0xd   :  { %22 = vsyncpa [#allocation8], 0 }
   0xe   :  { %24 = vsyncpa [#allocation8 + $0x1], 0 }
   0xf   :  { %25 = vsyncpa [#allocation11], 0 }
  0x10   :  { %26 = vsyncpa [#allocation14], 0 }
  0x11   :  { %27 = vsyncpa [#allocation17], 0 }
  0x12   :  { %28 = vsyncpa [#allocation20], 0 }
  0x13   :  { %29 = vsyncpa [#allocation23], 0 }
  0x14   :  { %30 = vsyncpa [#allocation26], 0 }
  0x15   :  { %31 = vsyncpa [#allocation6], 0 }
  0x16   :  { %33 = vsyncpa [#allocation6 + $0x1], 0  ;;  %s11601_s29 = smov 0   ;;  %s11603_s30 = smov 0  }
  0x17   :  { %s11605_s15 = smov 0   ;;  %s11607_s16 = smov 0  }
  0x18 LB: > { %15960 = sst [smem:[#allocation38_spill]] %s11486_s29  ;;  %s11500_s17 = smov [#allocation9]   ;;  %s11498_s16 = sphi %s11607_s16, %s16342_s16   ;;  %s11494_s15 = sphi %s11605_s15, %s16341_s15   ;;  %s11490_s30 = sphi %s11603_s30, %s16340_s30   ;;  %s11486_s29 = sphi %s11601_s29, %s16339_s29  }
  0x19   : > { %s387_s18 = sshll.u32 %s11500_s17, 4  ;;  %s11622_s19 = sadd.s32 4294967295, %s11498_s16   ;;  %s11627_s18 = int_to_ptr.vmem [resolvable:$true] %s387_s18 }
  0x1a   : > { %15961 = sst [smem:[#allocation39_spill]] %s11622_s19  ;;  %p8739_p0 = scmp.ge.s32.totalorder %s11498_s16, 1 }
  0x1b   : > { %p15824_p1 = scmp.eq.s32.totalorder %s11622_s19, 0  ;;  %p374_p2 = scmp.lt.s32.totalorder %s11498_s16, 3 }
  0x1c   : > { %s11501_s21 = smov [#allocation10]   ;;  %s11502_s23 = smov [#allocation13]  }
  0x1d   : > { %p11629_p3 = pnand %p8739_p0, %p374_p2  ;;  %s398_s22 = sshll.u32 %s11501_s21, 4  ;;  %s11636_s22 = int_to_ptr.vmem [resolvable:$true] %s398_s22 }
  0x1e   : > { %s419_s24 = sshll.u32 %s11502_s23, 4  ;;  %s15965_s2 = sld [smem:[#allocation120_spill]]  ;;  %s11644_s24 = int_to_ptr.vmem [resolvable:$true] %s419_s24 }
  0x1f   : > { %s15962_s20 = scalar_select %p11629_p3, 1, 0 }
  0x20   : > { %p10582_p5 = pneg %p11629_p3 }
  0x21   : > { %15963 = sst [smem:[#allocation40_spill]] %s15962_s20 }
  0x22   : > { %p11640_p6 = pnand %p10582_p5, %p15824_p1 }
  0x24   : > { %s11004_s28 = scalar_lea.hbm %s15965_s2, 16  ;;  %p11654_p8 = pneg %p11640_p6 }
  0x25   : > { %p11005_p7 = scmp.ne.s32.totalorder %s15965_s2, %s11004_s28  ;;  %p11011_p11 = scmp.lt.u32.totalorder %s11004_s28, %s15965_s2 }
  0x27   : > { %p11007_p9 = pnand %p11654_p8, %p11005_p7 }
  0x29   : > { %p11008_p10 = pneg %p11007_p9 }
  0x2b   : > { %p11013_p12 = pnand %p11011_p11, %p11008_p10 }
  0x2d   : > { %11016 = shalt.err (!%p11013_p12)
}
  0x2e   : > { %s11017_s14 = scalar_lea.vmem %s11627_s18, 16  ;;  %s11024_s26 = scalar_lea.vmem %s11627_s18, 32 }
  0x2f   : > { %p11018_p13 = scmp.ne.s32.totalorder %s11627_s18, %s11017_s14  ;;  %p11025_p5 = scmp.lt.s32.totalorder %s11627_s18, %s11627_s18 }
  0x30   : > { %p11026_p7 = scmp.lt.s32.totalorder %s11024_s26, %s11017_s14 }
  0x31   : > { %p11020_p0 = pnand %p11018_p13, %p11654_p8 }
  0x32   : > { %p11027_p9 = por %p11026_p7, %p11025_p5 }
  0x33   : > { %p11021_p2 = pneg %p11020_p0 }
  0x35   : > { %p11028_p4 = pnand %p11027_p9, %p11021_p2 }
  0x37   : > { %11031 = shalt.err (!%p11028_p4)
}
  0x38   : > { %10585 = dma.hbm_to_vmem [thread:$0]  (!%p11640_p6), %s15965_s2, 16, %s11627_s18, [#allocation8]  }
  0x39   : > { %s15967_s3 = sld [smem:[#allocation121_spill]] }
  0x3f   : > { %s11032_s23 = scalar_lea.hbm %s15967_s3, 16 }
  0x40   : > { %p11033_p10 = scmp.ne.s32.totalorder %s15967_s3, %s11032_s23  ;;  %p11039_p4 = scmp.lt.u32.totalorder %s11032_s23, %s15967_s3 }
  0x42   : > { %p11035_p11 = pnand %p11033_p10, %p11654_p8 }
  0x44   : > { %p11036_p12 = pneg %p11035_p11 }
  0x46   : > { %p11041_p13 = pnand %p11039_p4, %p11036_p12 }
  0x48   : > { %11044 = shalt.err (!%p11041_p13)
}
  0x49   : > { %s11045_s18 = scalar_lea.vmem %s11636_s22, 16  ;;  %s11052_s0 = scalar_lea.vmem %s11636_s22, 32 }
  0x4a   : > { %p11046_p0 = scmp.ne.s32.totalorder %s11636_s22, %s11045_s18  ;;  %p11053_p7 = scmp.lt.s32.totalorder %s11636_s22, %s11636_s22 }
  0x4b   : > { %p11054_p9 = scmp.lt.s32.totalorder %s11052_s0, %s11045_s18 }
  0x4c   : > { %p11048_p2 = pnand %p11046_p0, %p11654_p8 }
  0x4d   : > { %p11055_p10 = por %p11054_p9, %p11053_p7 }
  0x4e   : > { %p11049_p5 = pneg %p11048_p2 }
  0x50   : > { %p11056_p11 = pnand %p11055_p10, %p11049_p5 }
  0x52   : > { %11059 = shalt.err (!%p11056_p11)
}
  0x53   : > { %10588 = dma.hbm_to_vmem [thread:$0]  (!%p11640_p6), %s15967_s3, 16, %s11636_s22, [#allocation11]  }
  0x54   : > { %s15968_s5 = sld [smem:[#allocation123_spill]] }
  0x5a   : > { %s11060_s17 = scalar_lea.hbm %s15968_s5, 288 }
  0x5b   : > { %p11061_p12 = scmp.ne.s32.totalorder %s15968_s5, %s11060_s17  ;;  %p11067_p0 = scmp.lt.u32.totalorder %s11060_s17, %s15968_s5 }
  0x5d   : > { %p11063_p4 = pnand %p11061_p12, %p11654_p8 }
  0x5f   : > { %p11064_p13 = pneg %p11063_p4 }
  0x61   : > { %p11069_p2 = pnand %p11067_p0, %p11064_p13 }
  0x63   : > { %11072 = shalt.err (!%p11069_p2)
}
  0x64   : > { %s11073_s22 = scalar_lea.vmem %s11644_s24, 288  ;;  %p11081_p10 = scmp.lt.s32.totalorder %s11644_s24, %s11644_s24 }
  0x65   : > { %p11074_p5 = scmp.ne.s32.totalorder %s11644_s24, %s11073_s22  ;;  %p11082_p11 = scmp.lt.s32.totalorder %s11073_s22, %s11073_s22 }
  0x67   : > { %p11076_p7 = pnand %p11074_p5, %p11654_p8  ;;  %p11083_p12 = por %p11082_p11, %p11081_p10 }
  0x69   : > { %p11077_p9 = pneg %p11076_p7 }
  0x6b   : > { %p11084_p4 = pnand %p11083_p12, %p11077_p9 }
  0x6d   : > { %11087 = shalt.err (!%p11084_p4)
}
  0x6e   : > { %s11503_s0 = smov 32   ;;  %s11504_s1 = smov 2  }
  0x6f   : > { %10594 = dma.hbm_to_vmem [thread:$0]  (!%p11640_p6), %s15968_s5, 288, %s11644_s24, [#allocation14], %s11503_s0, %s11503_s0, %s11504_s1  }
  0x70   : > { %s11505_s28 = smov [#allocation16]   ;;  %s11506_s23 = smov [#allocation19]  }
  0x71   : > { %s444_s17 = sshll.u32 %s11505_s28, 4  ;;  %s466_s14 = sshll.u32 %s11506_s23, 4  ;;  %s445_s17 = int_to_ptr.vmem [resolvable:$true] %s444_s17  ;;  %s467_s14 = int_to_ptr.vmem [resolvable:$true] %s466_s14 }
  0x72   : > { %s15969_s7 = sld [smem:[#allocation125_spill]] }
  0x78   : > { %s11088_s22 = scalar_lea.hbm %s15969_s7, 16 }
  0x79   : > { %p11089_p13 = scmp.ne.s32.totalorder %s15969_s7, %s11088_s22  ;;  %p11095_p5 = scmp.lt.u32.totalorder %s11088_s22, %s15969_s7 }
  0x7b   : > { %p11091_p0 = pnand %p11089_p13, %p11654_p8 }
  0x7d   : > { %p11092_p2 = pneg %p11091_p0 }
  0x7f   : > { %p11097_p7 = pnand %p11095_p5, %p11092_p2 }
  0x81   : > { %11100 = shalt.err (!%p11097_p7)
}
  0x82   : > { %s11101_s24 = scalar_lea.vmem %s445_s17, 16  ;;  %s11108_s0 = scalar_lea.vmem %s445_s17, 32 }
  0x83   : > { %p11102_p9 = scmp.ne.s32.totalorder %s445_s17, %s11101_s24  ;;  %p11109_p12 = scmp.lt.s32.totalorder %s445_s17, %s445_s17 }
  0x84   : > { %p11110_p4 = scmp.lt.s32.totalorder %s11108_s0, %s11101_s24 }
  0x85   : > { %p11104_p10 = pnand %p11102_p9, %p11654_p8 }
  0x86   : > { %p11111_p1 = por %p11110_p4, %p11109_p12 }
  0x87   : > { %p11105_p11 = pneg %p11104_p10 }
  0x89   : > { %p11112_p3 = pnand %p11111_p1, %p11105_p11 }
  0x8b   : > { %11115 = shalt.err (!%p11112_p3)
}
  0x8c   : > { %10600 = dma.hbm_to_vmem [thread:$0]  (!%p11640_p6), %s15969_s7, 16, %s445_s17, [#allocation17]  }
  0x8d   : > { %s11116_s1 = scalar_lea.hbm %s15811_s9, 128 }
  0x8e   : > { %p11117_p13 = scmp.ne.s32.totalorder %s15811_s9, %s11116_s1  ;;  %p11123_p3 = scmp.lt.u32.totalorder %s11116_s1, %s15811_s9 }
  0x90   : > { %p11119_p0 = pnand %p11117_p13, %p11654_p8 }
  0x92   : > { %p11120_p1 = pneg %p11119_p0 }
  0x94   : > { %p11125_p2 = pnand %p11123_p3, %p11120_p1 }
  0x96   : > { %11128 = shalt.err (!%p11125_p2)
}
  0x97   : > { %s11129_s26 = scalar_lea.vmem %s467_s14, 128  ;;  %p11137_p10 = scmp.lt.s32.totalorder %s467_s14, %s467_s14 }
  0x98   : > { %p11130_p5 = scmp.ne.s32.totalorder %s467_s14, %s11129_s26  ;;  %p11138_p11 = scmp.lt.s32.totalorder %s11129_s26, %s11129_s26 }
  0x9a   : > { %p11132_p7 = pnand %p11130_p5, %p11654_p8  ;;  %p11139_p12 = por %p11138_p11, %p11137_p10 }
  0x9c   : > { %p11133_p9 = pneg %p11132_p7 }
  0x9e   : > { %p11140_p4 = pnand %p11139_p12, %p11133_p9 }
  0xa0   : > { %11143 = shalt.err (!%p11140_p4)
}
  0xa1   : > { %10606 = dma.hbm_to_vmem [thread:$0]  (!%p11640_p6), %s15811_s9, 128, %s467_s14, [#allocation20]  }
  0xa2   : > { %s11507_s22 = smov [#allocation22]   ;;  %s11508_s0 = smov [#allocation12]  }
  0xa3   : > { %s490_s24 = sshll.u32 %s11507_s22, 4  ;;  %s409_s2 = sshll.u32 %s11508_s0, 4  ;;  %s491_s24 = int_to_ptr.vmem [resolvable:$true] %s490_s24  ;;  %s410_s2 = int_to_ptr.vmem [resolvable:$true] %s409_s2 }
  0xa4   : > { %s11144_s19 = scalar_lea.hbm %s15813_s11, 16 }
  0xa5   : > { %p11145_p13 = scmp.ne.s32.totalorder %s15813_s11, %s11144_s19  ;;  %p11151_p3 = scmp.lt.u32.totalorder %s11144_s19, %s15813_s11 }
  0xa7   : > { %p11147_p0 = pnand %p11145_p13, %p11654_p8 }
  0xa9   : > { %p11148_p1 = pneg %p11147_p0 }
  0xab   : > { %p11153_p2 = pnand %p11151_p3, %p11148_p1 }
  0xad   : > { %11156 = shalt.err (!%p11153_p2)
}
  0xae   : > { %s11157_s14 = scalar_lea.vmem %s491_s24, 16  ;;  %s11164_s23 = scalar_lea.vmem %s491_s24, 32 }
  0xaf   : > { %p11158_p5 = scmp.ne.s32.totalorder %s491_s24, %s11157_s14  ;;  %p11165_p10 = scmp.lt.s32.totalorder %s491_s24, %s491_s24 }
  0xb0   : > { %p11166_p11 = scmp.lt.s32.totalorder %s11164_s23, %s11157_s14 }
  0xb1   : > { %p11160_p7 = pnand %p11158_p5, %p11654_p8 }
  0xb2   : > { %p11167_p12 = por %p11166_p11, %p11165_p10 }
  0xb3   : > { %p11161_p9 = pneg %p11160_p7 }
  0xb5   : > { %p11168_p4 = pnand %p11167_p12, %p11161_p9 }
  0xb7   : > { %11171 = shalt.err (!%p11168_p4)
}
  0xb8   : > { %10612 = dma.hbm_to_vmem [thread:$0]  (!%p11640_p6), %s15813_s11, 16, %s491_s24, [#allocation23]  }
  0xb9   : > { %s15970_s4 = sld [smem:[#allocation122_spill]] }
  0xbf   : > { %s11172_s0 = scalar_lea.hbm %s15970_s4, 64 }
  0xc0   : > { %p11173_p13 = scmp.ne.s32.totalorder %s15970_s4, %s11172_s0  ;;  %p11179_p3 = scmp.lt.u32.totalorder %s11172_s0, %s15970_s4 }
  0xc2   : > { %p11175_p0 = pnand %p11173_p13, %p11654_p8 }
  0xc4   : > { %p11176_p1 = pneg %p11175_p0 }
  0xc6   : > { %p11181_p2 = pnand %p11179_p3, %p11176_p1 }
  0xc8   : > { %11184 = shalt.err (!%p11181_p2)
}
  0xc9   : > { %s11185_s20 = scalar_lea.vmem %s410_s2, 64  ;;  %p11193_p10 = scmp.lt.s32.totalorder %s410_s2, %s410_s2 }
  0xca   : > { %p11186_p5 = scmp.ne.s32.totalorder %s410_s2, %s11185_s20  ;;  %p11194_p11 = scmp.lt.s32.totalorder %s11185_s20, %s11185_s20 }
  0xcc   : > { %p11188_p7 = pnand %p11186_p5, %p11654_p8  ;;  %p11195_p12 = por %p11194_p11, %p11193_p10 }
  0xce   : > { %p11189_p9 = pneg %p11188_p7 }
  0xd0   : > { %p11196_p4 = pnand %p11195_p12, %p11189_p9 }
  0xd2   : > { %11199 = shalt.err (!%p11196_p4)
}
  0xd3   : > { %10591 = dma.hbm_to_vmem [thread:$0]  (!%p11640_p6), %s15970_s4, 64, %s410_s2, [#allocation11]  }
  0xd4   : > { %s11509_s28 = smov [#allocation15]   ;;  %s11510_s23 = smov [#allocation18]  }
  0xd5   : > { %s433_s14 = sshll.u32 %s11509_s28, 4  ;;  %s455_s26 = sshll.u32 %s11510_s23, 4  ;;  %s434_s14 = int_to_ptr.vmem [resolvable:$true] %s433_s14  ;;  %s456_s26 = int_to_ptr.vmem [resolvable:$true] %s455_s26 }
  0xd6   : > { %s15971_s6 = sld [smem:[#allocation124_spill]] }
  0xdc   : > { %s11200_s22 = scalar_lea.hbm %s15971_s6, 16 }
  0xdd   : > { %p11201_p13 = scmp.ne.s32.totalorder %s15971_s6, %s11200_s22  ;;  %p11207_p3 = scmp.lt.u32.totalorder %s11200_s22, %s15971_s6 }
  0xdf   : > { %p11203_p0 = pnand %p11201_p13, %p11654_p8 }
  0xe1   : > { %p11204_p1 = pneg %p11203_p0 }
  0xe3   : > { %p11209_p2 = pnand %p11207_p3, %p11204_p1 }
  0xe5   : > { %11212 = shalt.err (!%p11209_p2)
}
  0xe6   : > { %s11213_s2 = scalar_lea.vmem %s434_s14, 16  ;;  %s11220_s1 = scalar_lea.vmem %s434_s14, 32 }
  0xe7   : > { %p11214_p5 = scmp.ne.s32.totalorder %s434_s14, %s11213_s2  ;;  %p11221_p10 = scmp.lt.s32.totalorder %s434_s14, %s434_s14 }
  0xe8   : > { %p11222_p11 = scmp.lt.s32.totalorder %s11220_s1, %s11213_s2 }
  0xe9   : > { %p11216_p7 = pnand %p11214_p5, %p11654_p8 }
  0xea   : > { %p11223_p12 = por %p11222_p11, %p11221_p10 }
  0xeb   : > { %p11217_p9 = pneg %p11216_p7 }
  0xed   : > { %p11224_p4 = pnand %p11223_p12, %p11217_p9 }
  0xef   : > { %11227 = shalt.err (!%p11224_p4)
}
  0xf0   : > { %10597 = dma.hbm_to_vmem [thread:$0]  (!%p11640_p6), %s15971_s6, 16, %s434_s14, [#allocation14]  }
  0xf1   : > { %s15972_s8 = sld [smem:[#allocation126_spill]] }
  0xf7   : > { %s11228_s23 = scalar_lea.hbm %s15972_s8, 16 }
  0xf8   : > { %p11229_p13 = scmp.ne.s32.totalorder %s15972_s8, %s11228_s23  ;;  %p11235_p3 = scmp.lt.u32.totalorder %s11228_s23, %s15972_s8 }
  0xfa   : > { %p11231_p0 = pnand %p11229_p13, %p11654_p8 }
  0xfc   : > { %p11232_p1 = pneg %p11231_p0 }
  0xfe   : > { %p11237_p2 = pnand %p11235_p3, %p11232_p1 }
 0x100   : > { %11240 = shalt.err (!%p11237_p2)
}
 0x101   : > { %s11241_s3 = scalar_lea.vmem %s456_s26, 16  ;;  %s11248_s14 = scalar_lea.vmem %s456_s26, 32 }
 0x102   : > { %p11242_p5 = scmp.ne.s32.totalorder %s456_s26, %s11241_s3  ;;  %p11249_p10 = scmp.lt.s32.totalorder %s456_s26, %s456_s26 }
 0x103   : > { %p11250_p11 = scmp.lt.s32.totalorder %s11248_s14, %s11241_s3 }
 0x104   : > { %p11244_p7 = pnand %p11242_p5, %p11654_p8 }
 0x105   : > { %p11251_p12 = por %p11250_p11, %p11249_p10 }
 0x106   : > { %p11245_p9 = pneg %p11244_p7 }
 0x108   : > { %p11252_p4 = pnand %p11251_p12, %p11245_p9 }
 0x10a   : > { %11255 = shalt.err (!%p11252_p4)
}
 0x10b   : > { %10603 = dma.hbm_to_vmem [thread:$0]  (!%p11640_p6), %s15972_s8, 16, %s456_s26, [#allocation17]  }
 0x10c   : > { %s11511_s2 = smov [#allocation21]   ;;  %s11256_s27 = scalar_lea.hbm %s15812_s10, 576 }
 0x10d   : > { %s476_s1 = sshll.u32 %s11511_s2, 4  ;;  %p11257_p13 = scmp.ne.s32.totalorder %s15812_s10, %s11256_s27  ;;  %s477_s1 = int_to_ptr.vmem [resolvable:$true] %s476_s1 }
 0x10e   : > { %p11263_p3 = scmp.lt.u32.totalorder %s11256_s27, %s15812_s10 }
 0x10f   : > { %p11259_p0 = pnand %p11257_p13, %p11654_p8 }
 0x111   : > { %p11260_p1 = pneg %p11259_p0 }
 0x113   : > { %p11265_p2 = pnand %p11263_p3, %p11260_p1 }
 0x115   : > { %11268 = shalt.err (!%p11265_p2)
}
 0x116   : > { %s11269_s26 = scalar_lea.vmem %s477_s1, 576  ;;  %p11277_p10 = scmp.lt.s32.totalorder %s477_s1, %s477_s1 }
 0x117   : > { %p11270_p5 = scmp.ne.s32.totalorder %s477_s1, %s11269_s26  ;;  %p11278_p11 = scmp.lt.s32.totalorder %s11269_s26, %s11269_s26 }
 0x119   : > { %p11272_p7 = pnand %p11270_p5, %p11654_p8  ;;  %p11279_p12 = por %p11278_p11, %p11277_p10 }
 0x11b   : > { %p11273_p9 = pneg %p11272_p7 }
 0x11d   : > { %p11280_p4 = pnand %p11279_p12, %p11273_p9 }
 0x11f   : > { %11283 = shalt.err (!%p11280_p4)
}
 0x120   : > { %s11512_s22 = smov 64   ;;  %s11513_s0 = smov 4  }
 0x121   : > { %10609 = dma.hbm_to_vmem [thread:$0]  (!%p11640_p6), %s15812_s10, 576, %s477_s1, [#allocation20], %s11512_s22, %s11512_s22, %s11513_s0  }
 0x122   : > { %s11514_s29 = smov [#allocation24]   ;;  %s11515_s2 = smov [#allocation25]  }
 0x123   : > { %s501_s19 = sshll.u32 %s11514_s29, 4  ;;  %s512_s20 = sshll.u32 %s11515_s2, 4  ;;  %s502_s19 = int_to_ptr.vmem [resolvable:$true] %s501_s19  ;;  %s11849_s20 = int_to_ptr.vmem [resolvable:$true] %s512_s20 }
 0x124   : > { %s11284_s28 = scalar_lea.hbm %s15814_s12, 32 }
 0x125   : > { %p11285_p13 = scmp.ne.s32.totalorder %s15814_s12, %s11284_s28  ;;  %p11291_p3 = scmp.lt.u32.totalorder %s11284_s28, %s15814_s12 }
 0x127   : > { %p11287_p0 = pnand %p11285_p13, %p11654_p8 }
 0x129   : > { %p11288_p1 = pneg %p11287_p0 }
 0x12b   : > { %p11293_p2 = pnand %p11291_p3, %p11288_p1 }
 0x12d   : > { %11296 = shalt.err (!%p11293_p2)
}
 0x12e   : > { %s11297_s26 = scalar_lea.vmem %s502_s19, 32  ;;  %p11305_p10 = scmp.lt.s32.totalorder %s502_s19, %s502_s19 }
 0x12f   : > { %p11298_p5 = scmp.ne.s32.totalorder %s502_s19, %s11297_s26  ;;  %p11306_p11 = scmp.lt.s32.totalorder %s11297_s26, %s11297_s26 }
 0x131   : > { %p11300_p7 = pnand %p11298_p5, %p11654_p8  ;;  %p11307_p12 = por %p11306_p11, %p11305_p10 }
 0x133   : > { %p11301_p9 = pneg %p11300_p7 }
 0x135   : > { %p11308_p4 = pnand %p11307_p12, %p11301_p9 }
 0x137   : > { %11311 = shalt.err (!%p11308_p4)
}
 0x138   : > { %10615 = dma.hbm_to_vmem [thread:$0]  (!%p11640_p6), %s15814_s12, 32, %s502_s19, [#allocation23]  }
 0x139   : > { %s11312_s29 = scalar_lea.hbm %s15815_s13, 16 }
 0x13a   : > { %p11313_p13 = scmp.ne.s32.totalorder %s15815_s13, %s11312_s29  ;;  %p11319_p3 = scmp.lt.u32.totalorder %s11312_s29, %s15815_s13 }
 0x13c   : > { %p11315_p0 = pnand %p11313_p13, %p11654_p8 }
 0x13e   : > { %p11316_p1 = pneg %p11315_p0 }
 0x140   : > { %p11321_p2 = pnand %p11319_p3, %p11316_p1 }
 0x142   : > { %11324 = shalt.err (!%p11321_p2)
}
 0x143   : > { %s11325_s19 = scalar_lea.vmem %s11849_s20, 16  ;;  %s11332_s23 = scalar_lea.vmem %s11849_s20, 32 }
 0x144   : > { %p11326_p5 = scmp.ne.s32.totalorder %s11849_s20, %s11325_s19  ;;  %p11333_p10 = scmp.lt.s32.totalorder %s11849_s20, %s11849_s20 }
 0x145   : > { %p11334_p11 = scmp.lt.s32.totalorder %s11332_s23, %s11325_s19 }
 0x146   : > { %p11328_p7 = pnand %p11326_p5, %p11654_p8 }
 0x147   : > { %p11335_p12 = por %p11334_p11, %p11333_p10 }
 0x148   : > { %p11329_p9 = pneg %p11328_p7 }
 0x14a   : > { %p11336_p4 = pnand %p11335_p12, %p11329_p9 }
 0x14c   : > { %11339 = shalt.err (!%p11336_p4)
}
 0x14d   : > { %s15973_s21 = sld [smem:[#allocation38_spill]]  ;;  %s15974_s1 = sld [smem:[#allocation39_spill]] }
 0x14e   : > { %10618 = dma.hbm_to_vmem [thread:$0]  (!%p11640_p6), %s15815_s13, 16, %s11849_s20, [#allocation26]  }
 0x14f   : > { %s8738_s25 = sadd.s32 4294967294, %s11498_s16   ;;  %s11895_s26 = sadd.s32 1, %s11498_s16  }
 0x150   : > { %s43_s22 = ssub.s32 %s11498_s16, %s11895_s26  ;;  %s46_s0 = sadd.s32 1, %s11494_s15 }
 0x151   : > { %p44_p8 = scmp.eq.s32.totalorder %s43_s22, 0  ;;  %p53_p13 = scmp.ne.s32.totalorder %s11494_s15, %s11490_s30 }
 0x152   : > { %p54_p0 = scmp.eq.s32.totalorder %s11498_s16, 0  ;;  %p367_p7 = scmp.eq.s32.totalorder %s8738_s25, 1 }
 0x153   : > { %p59_p1 = scmp.ne.s32.totalorder %s11490_s30, %s15973_s21  ;;  %p15976_p2 = scmp.eq.s32.totalorder %s15974_s1, 0 }
 0x154   : > { %s11906_s3 = scalar_select %p44_p8, %s11494_s15, %s46_s0  }
 0x155   : > { %p11908_p3 = por %p54_p0, %p53_p13  ;;  %p11914_p6 = por %p15976_p2, %p59_p1 }
 0x156   : > { %p361_p5 = scmp.eq.s32.totalorder %s15974_s1, 1  ;;  %p10642_p9 = scmp.lt.s32.totalorder %s11498_s16, 2 }
 0x157   : > { %s15977_s20 = scalar_select %p11914_p6, 1, 0 }
 0x158   : > { %s11921_s29 = sand.u32 1, %s11494_s15   ;;  %p11923_p10 = por %p361_p5, %p53_p13 }
 0x159   : > { %p11927_p11 = por %p367_p7, %p59_p1  ;;  %s8753_s27 = sshll.u32 %s11921_s29, 8 }
 0x15a   : > { %s15978_s2 = scalar_select %p11923_p10, 1, 0 }
 0x15b   : > { %s15979_s24 = scalar_select %p11927_p11, 1, 0 }
 0x15c   : > { %s9123_s28 = sshll.u32 %s11498_s16, 12  ;;  %s15980_s17 = sld [smem:[#allocation118_spill]] }
 0x15d   : > { %s527_s21 = scalar_lea.vmem [#allocation4], %s8753_s27  ;;  %p11942_p12 = pnand %p10642_p9, %p11908_p3 }
 0x15e   : > { %s534_s1 = sshll.u32 %s527_s21, 4  ;;  %s524_s0 = scalar_lea.sflag [#allocation5], %s11921_s29  ;;  %s11938_s1 = int_to_ptr.vmem [resolvable:$true] %s534_s1 }
 0x15f   : > { %p11342_p8 = pneg %p11942_p12 }
 0x162   : > { %s11936_s18 = scalar_lea.hbm %s15980_s17, %s9123_s28  ;;  %s11345_s14 = scalar_lea.hbm %s15980_s17, 8192 }
 0x163   : > { %s11340_s19 = scalar_lea.hbm %s11936_s18, 4096  ;;  %p11346_p1 = scmp.lt.u32.totalorder %s11936_s18, %s15980_s17 }
 0x164   : > { %p11341_p4 = scmp.ne.s32.totalorder %s11936_s18, %s11340_s19  ;;  %p11347_p3 = scmp.lt.u32.totalorder %s11345_s14, %s11340_s19 }
 0x165   : > { %p11349_p5 = scmp.lt.u32.totalorder %s11340_s19, %s11936_s18 }
 0x166   : > { %p11343_p13 = pnand %p11342_p8, %p11341_p4  ;;  %p11348_p2 = por %p11347_p3, %p11346_p1 }
 0x168   : > { %p11344_p0 = pneg %p11343_p13  ;;  %p11350_p7 = por %p11349_p5, %p11348_p2 }
 0x16a   : > { %p11351_p9 = pnand %p11350_p7, %p11344_p0 }
 0x16c   : > { %11354 = shalt.err (!%p11351_p9)
}
 0x16d   : > { %s11355_s22 = scalar_lea.vmem %s11938_s1, 4096  ;;  %s11516_s27 = smov [#allocation4]  }
 0x16e   : > { %p11356_p4 = scmp.ne.s32.totalorder %s11938_s1, %s11355_s22  ;;  %s11360_s28 = sshll.u32 %s11516_s27, 4  ;;  %s11361_s28 = int_to_ptr.vmem [resolvable:$false] %s11360_s28 }
 0x16f   : > { %s11362_s23 = scalar_lea.vmem %s11361_s28, 8192  ;;  %p11363_p10 = scmp.lt.s32.totalorder %s11938_s1, %s11361_s28 }
 0x170   : > { %p11358_p13 = pnand %p11356_p4, %p11342_p8  ;;  %p11364_p1 = scmp.lt.s32.totalorder %s11362_s23, %s11355_s22 }
 0x172   : > { %p11359_p11 = pneg %p11358_p13  ;;  %p11365_p3 = por %p11364_p1, %p11363_p10 }
 0x174   : > { %p11366_p2 = pnand %p11365_p3, %p11359_p11 }
 0x176   : > { %11369 = shalt.err (!%p11366_p2)
}
 0x177   : > { %s11517_s19 = smov 128   ;;  %s11518_s14 = smov 8  }
 0x178   : > { %10622 = dma.hbm_to_vmem [thread:$0]  (!%p11942_p12), %s11936_s18, 4096, %s11938_s1, %s524_s0, %s11517_s19, %s11517_s19, %s11518_s14  }
 0x179   : > { %s8756_s21 = sshll.u32 %s11498_s16, 4  ;;  %s547_s27 = scalar_lea.vmem [#allocation7], %s11921_s29 }
 0x17a   : > { %s554_s28 = sshll.u32 %s547_s27, 4  ;;  %s15982_s4 = sld [smem:[#allocation119_spill]]  ;;  %s555_s28 = int_to_ptr.vmem [resolvable:$true] %s554_s28 }
 0x17b   : > { %s15983_s6 = sand.u32 1, %s11498_s16  }
 0x17c   : > { %s545_s7 = scalar_lea.sflag [#allocation8], %s15983_s6 }
 0x180   : > { %s11980_s5 = scalar_lea.hbm %s15982_s4, %s8756_s21  ;;  %s11375_s1 = scalar_lea.hbm %s15982_s4, 32 }
 0x181   : > { %s11370_s8 = scalar_lea.hbm %s11980_s5, 16  ;;  %p11376_p5 = scmp.lt.u32.totalorder %s11980_s5, %s15982_s4 }
 0x182   : > { %p11371_p10 = scmp.ne.s32.totalorder %s11980_s5, %s11370_s8  ;;  %p11377_p7 = scmp.lt.u32.totalorder %s11375_s1, %s11370_s8 }
 0x183   : > { %p11379_p4 = scmp.lt.u32.totalorder %s11370_s8, %s11980_s5 }
 0x184   : > { %p11373_p11 = pnand %p11371_p10, %p11342_p8  ;;  %p11378_p9 = por %p11377_p7, %p11376_p5 }
 0x186   : > { %p11374_p0 = pneg %p11373_p11  ;;  %p11380_p13 = por %p11379_p4, %p11378_p9 }
 0x188   : > { %p11381_p1 = pnand %p11380_p13, %p11374_p0 }
 0x18a   : > { %11384 = shalt.err (!%p11381_p1)
}
 0x18b   : > { %s11385_s6 = scalar_lea.vmem %s555_s28, 16  ;;  %s11519_s14 = smov [#allocation7]  }
 0x18c   : > { %p11386_p3 = scmp.ne.s32.totalorder %s555_s28, %s11385_s6  ;;  %s11390_s21 = sshll.u32 %s11519_s14, 4  ;;  %s11391_s21 = int_to_ptr.vmem [resolvable:$false] %s11390_s21 }
 0x18d   : > { %s11392_s27 = scalar_lea.vmem %s11391_s21, 32  ;;  %p11393_p11 = scmp.lt.s32.totalorder %s555_s28, %s11391_s21 }
 0x18e   : > { %p11388_p2 = pnand %p11386_p3, %p11342_p8  ;;  %p11394_p6 = scmp.lt.s32.totalorder %s11392_s27, %s11385_s6 }
 0x190   : > { %p11389_p10 = pneg %p11388_p2  ;;  %p11395_p5 = por %p11394_p6, %p11393_p11 }
 0x192   : > { %p11396_p7 = pnand %p11395_p5, %p11389_p10 }
 0x194   : > { %11399 = shalt.err (!%p11396_p7)
}
 0x195   : > { %10625 = dma.hbm_to_vmem [thread:$0]  (!%p11942_p12), %s11980_s5, 16, %s555_s28, %s545_s7  }
 0x196   : > { %s15984_s8 = sld [smem:[#allocation40_spill]] }
 0x19c   : > { %p15985_p0 = scmp.ne.s32.totalorder %s15984_s8, 0 }
 0x19e   : > { %563 = sbr.rel (%p15985_p0) target bundleno = 2421 (0x975), region = 76 }
 0x1a5   : > { %s12006_s22 = sand.u32 1, %s11490_s30   ;;  %p15986_p6 = scmp.ne.s32.totalorder %s15977_s20, 0 }
 0x1a6   : > { %s8758_s23 = sshll.u32 %s12006_s22, 8  ;;  %s566_s29 = scalar_lea.sflag [#allocation5], %s12006_s22 }
 0x1a7   : > { %s12012_s18 = scalar_lea.vmem [#allocation4], %s8758_s23 }
 0x1a8   : > { %11445 = dma.done.wait (%p15986_p6), %s566_s29, 4096  }
 0x1a9   : > { %11447 = vsyncadd (%p15986_p6), %s566_s29, 4294963200  ;;  %s15987_s5 = sld [smem:[#allocation39_spill]]  ;;  %s577_s28 = scalar_lea.vmem [#allocation7], %s12006_s22 }
 0x1af   : > { %s574_s7 = sand.u32 1, %s15987_s5  }
 0x1b0   : > { %s575_s25 = scalar_lea.sflag [#allocation8], %s574_s7 }
 0x1b1   : > { %11449 = dma.done.wait (%p15986_p6), %s575_s25, 16  }
 0x1b2   : > { %11451 = vsyncadd (%p15986_p6), %s575_s25, 4294967280  ;;  %p15988_p12 = scmp.eq.s32.totalorder %s15987_s5, 0 }
 0x1b4   : > { %11453 = dma.done.wait (%p15988_p12), [#allocation8], 16   ;;  %p15989_p8 = pmov %p15988_p12 }
 0x1b6   : > { %11455 = vsyncadd (%p15989_p8), [#allocation8], 4294967280  ;;  %p15990_p9 = pmov %p15989_p8 }
 0x1b7   : > { %p15991_p4 = pmov %p15989_p8 }
 0x1b8   : > { %11457 = dma.done.wait (%p15990_p9), [#allocation11], 80  }
 0x1b9   : > { %11459 = vsyncadd (%p15991_p4), [#allocation11], 4294967216  ;;  %p15992_p13 = pmov %p15991_p4 }
 0x1ba   : > { %p15993_p1 = pmov %p15991_p4 }
 0x1bb   : > { %11461 = dma.done.wait (%p15992_p13), [#allocation14], 304  }
 0x1bc   : > { %11463 = vsyncadd (%p15993_p1), [#allocation14], 4294966992  ;;  %p15994_p3 = pmov %p15993_p1 }
 0x1bd   : > { %p15995_p2 = pmov %p15993_p1 }
 0x1be   : > { %11465 = dma.done.wait (%p15994_p3), [#allocation17], 32  }
 0x1bf   : > { %11467 = vsyncadd (%p15995_p2), [#allocation17], 4294967264  ;;  %p15996_p10 = pmov %p15993_p1 }
 0x1c0   : > { %p15997_p11 = pmov %p15993_p1 }
 0x1c1   : > { %11469 = dma.done.wait (%p15996_p10), [#allocation20], 704  }
 0x1c2   : > { %11471 = vsyncadd (%p15997_p11), [#allocation20], 4294966592  ;;  %p15998_p5 = pmov %p15993_p1 }
 0x1c3   : > { %p15999_p7 = pmov %p15993_p1 }
 0x1c4   : > { %11473 = dma.done.wait (%p15998_p5), [#allocation23], 48  }
 0x1c5   : > { %11475 = vsyncadd (%p15999_p7), [#allocation23], 4294967248  ;;  %p16000_p0 = pmov %p15993_p1 }
 0x1c7   : > { %11477 = dma.done.wait (%p16000_p0), [#allocation26], 16   ;;  %p16001_p6 = pmov %p16000_p0 }
 0x1c8   : > { %v15830_v0 = vmov 0.0   ;;  %vm11521_vm0 = vmmov 0   ;;  %vm707_vm1 = vcmask 31744   ;;  %vm709_vm2 = vcmask 27648   ;;  %v12061_v2 = vld [vmem:[#allocation12] sm:$0xf] }
 0x1c9   : > { %11479 = vsyncadd (%p16001_p6), [#allocation26], 4294967280  ;;  %9456 = vmatprep.subr.mxu1 %v15830_v0  ;;  %9458 = vmatprep.mubr.msk.f32.mxu1 %vm11521_vm0, %v15830_v0  ;;  %v15828_v1 = vmov 0   ;;  %vm1504_vm3 = vcmask 1043456   ;;  %v12064_v3 = vld [vmem:[%s12012_s18] sm:$0xff]  ;;  %v12067_v4 = vld [vmem:[%s12012_s18 + $0x8] sm:$0xff] }
 0x1ca   : > { %710 = vst.msk [vmem:[#allocation2 + $0x8] sm:$0xf] %vm709_vm2, %v15828_v1  ;;  %9457 = vmatpush3.msk.msra.mxu1 %vm1504_vm3, %v12061_v2  ;;  %v12072_v5 = vld [vmem:[%s12012_s18 + $0x10] sm:$0xff]  ;;  %v12075_v6 = vld [vmem:[%s12012_s18 + $0x18] sm:$0xff]  ;;  %v1330_v7 = vsel %vm707_vm1, %v12064_v3, 0.0  ;;  %v1331_v8 = vsel %vm707_vm1, %v12067_v4, 0.0  ;;  %v1399_v32 = vmul.f32 %v12064_v3, %v12064_v3  ;;  %v1400_v33 = vmul.f32 %v12067_v4, %v12067_v4 }
 0x1cb   : > { %708 = vst.msk [vmem:[#allocation2] sm:$0xff] %vm707_vm1, %v15828_v1  ;;  %713 = vst.msk [vmem:[#allocation2 + $0x90] sm:$0xff] %vm707_vm1, %v15828_v1  ;;  %9461 = vmatprep.subr.mxu1 %v15830_v0  ;;  %v12083_v9 = vld [vmem:[%s12012_s18 + $0x20] sm:$0xff]  ;;  %v1332_v10 = vadd.f32 %v1331_v8, %v1330_v7  ;;  %v1333_v11 = vsel %vm707_vm1, %v12072_v5, 0.0  ;;  %v1335_v12 = vsel %vm707_vm1, %v12075_v6, 0.0  ;;  %v12090_v13 = vld [vmem:[%s12012_s18 + $0x28] sm:$0xff]  ;;  %v1401_v34 = vmul.f32 %v12072_v5, %v12072_v5 }
 0x1cc   : > { %v1337_v15 = vsel %vm707_vm1, %v12083_v9, 0.0  ;;  %v12095_v16 = vld [vmem:[%s12012_s18 + $0x30] sm:$0xff]  ;;  %v1339_v18 = vsel %vm707_vm1, %v12090_v13, 0.0  ;;  %v12100_v19 = vld [vmem:[%s12012_s18 + $0x38] sm:$0xff]  ;;  %v12105_v22 = vld [vmem:[%s12012_s18 + $0x40] sm:$0xff]  ;;  %v1402_v37 = vmul.f32 %v12075_v6, %v12075_v6  ;;  %v1403_v41 = vmul.f32 %v12083_v9, %v12083_v9  ;;  %s15529_s20 = scalar_lea.vmem [#allocation27], %s8758_s23 }
 0x1cd   : > { %v1334_v14 = vadd.f32 %v1333_v11, %v1332_v10  ;;  %v1341_v21 = vsel %vm707_vm1, %v12095_v16, 0.0  ;;  %v1343_v24 = vsel %vm707_vm1, %v12100_v19, 0.0  ;;  %v12110_v25 = vld [vmem:[%s12012_s18 + $0x48] sm:$0xff]  ;;  %v1345_v27 = vsel %vm707_vm1, %v12105_v22, 0.0  ;;  %v12115_v28 = vld [vmem:[%s12012_s18 + $0x50] sm:$0xff]  ;;  %v12118_v30 = vld [vmem:[%s12012_s18 + $0x58] sm:$0xff] }
 0x1ce   : > { %v1347_v31 = vsel %vm707_vm1, %v12110_v25, 0.0  ;;  %v1349_v36 = vsel %vm707_vm1, %v12115_v28, 0.0  ;;  %v12133_v38 = vld [vmem:[%s12012_s18 + $0x60] sm:$0xff]  ;;  %v1351_v40 = vsel %vm707_vm1, %v12118_v30, 0.0  ;;  %v1431_v42 = vsel %vm707_vm1, %v1399_v32, 0.0  ;;  %v12143_v45 = vld [vmem:[%s12012_s18 + $0x68] sm:$0xff] }
 0x1cf   : > { %v1336_v17 = vadd.f32 %v1335_v12, %v1334_v14  ;;  %v1432_v43 = vsel %vm707_vm1, %v1400_v33, 0.0  ;;  %v1434_v44 = vsel %vm707_vm1, %v1401_v34, 0.0  ;;  %v1353_v48 = vsel %vm707_vm1, %v12133_v38, 0.0  ;;  %v12151_v51 = vld [vmem:[%s12012_s18 + $0x70] sm:$0xff]  ;;  %v12159_v57 = vld [vmem:[%s12012_s18 + $0x78] sm:$0xff]  ;;  %v12167_v63 = vld [vmem:[%s12012_s18 + $0x80] sm:$0xff] }
 0x1d0   : > { %v1433_v47 = vadd.f32 %v1432_v43, %v1431_v42  ;;  %v1404_v49 = vmul.f32 %v12090_v13, %v12090_v13  ;;  %v1436_v50 = vsel %vm707_vm1, %v1402_v37, 0.0  ;;  %v1355_v54 = vsel %vm707_vm1, %v12143_v45, 0.0  ;;  %v12175_v14 = vld [vmem:[%s12012_s18 + $0x88] sm:$0xff]  ;;  %v12191_v32 = vld [vmem:[%s12012_s18 + $0x98] sm:$0xff]  ;;  %s9124_s1 = sshll.u32 %s15987_s5, 12  ;;  %s8531_s0 = sshll.u32 %s15529_s20, 4  ;;  %s15751_s0 = int_to_ptr.vmem [resolvable:$true] %s8531_s0 }
 0x1d1   : > { %v1338_v20 = vadd.f32 %v1337_v15, %v1336_v17  ;;  %v1405_v55 = vmul.f32 %v12095_v16, %v12095_v16  ;;  %v1438_v56 = vsel %vm707_vm1, %v1403_v41, 0.0  ;;  %v1357_v60 = vsel %vm707_vm1, %v12151_v51, 0.0  ;;  %s16333_s14 = sld [smem:[#allocation127_spill]]  ;;  %s8518_s27 = scalar_lea.sflag [#allocation6], %s12006_s22 }
 0x1d2   : > { %v1435_v53 = vadd.f32 %v1434_v44, %v1433_v47  ;;  %v1406_v61 = vmul.f32 %v12100_v19, %v12100_v19  ;;  %v1440_v62 = vsel %vm707_vm1, %v1404_v49, 0.0  ;;  %v1359_v10 = vsel %vm707_vm1, %v12159_v57, 0.0  ;;  %s11400_s8 = scalar_lea.vmem %s15751_s0, 4096  ;;  %p16335_p8 = scmp.ne.s32.totalorder %s15978_s2, 0 }
 0x1d3   : > { %v1340_v23 = vadd.f32 %v1339_v18, %v1338_v20  ;;  %v1407_v11 = vmul.f32 %v12105_v22, %v12105_v22  ;;  %v1442_v12 = vsel %vm707_vm1, %v1405_v55, 0.0  ;;  %v1361_v18 = vsel %vm707_vm1, %v12167_v63, 0.0  ;;  %p11401_p12 = scmp.ne.s32.totalorder %s15751_s0, %s11400_s8  ;;  %s11523_s23 = smov [#allocation27]  }
 0x1d4   : > { %v1437_v59 = vadd.f32 %v1436_v50, %v1435_v53  ;;  %v1408_v20 = vmul.f32 %v12110_v25, %v12110_v25  ;;  %v1367_v42 = vsel %vm707_vm1, %v12191_v32, 0.0  ;;  %v1411_v43 = vmul.f32 %v12133_v38, %v12133_v38  ;;  %v12215_v53 = vld [vmem:[%s12012_s18 + $0xb0] sm:$0xff]  ;;  %s11404_s29 = sshll.u32 %s11523_s23, 4  ;;  %s11405_s29 = int_to_ptr.vmem [resolvable:$false] %s11404_s29 }
 0x1d5   : > { %v1342_v26 = vadd.f32 %v1341_v21, %v1340_v23  ;;  %v1444_v21 = vsel %vm707_vm1, %v1406_v61, 0.0  ;;  %v12183_v23 = vld [vmem:[%s12012_s18 + $0x90] sm:$0xff]  ;;  %v1412_v50 = vmul.f32 %v12143_v45, %v12143_v45  ;;  %vm711_vm4 = vcmask 31748   ;;  %p11402_p9 = pnand %p11401_p12, %p16335_p8  ;;  %p11407_p13 = scmp.lt.s32.totalorder %s15751_s0, %s11405_s29 }
 0x1d6   : > { %v1439_v8 = vadd.f32 %v1438_v56, %v1437_v59  ;;  %v1448_v37 = vsel %vm707_vm1, %v1408_v20, 0.0  ;;  %v1454_v59 = vsel %vm707_vm1, %v1411_v43, 0.0  ;;  %712 = vst.msk [vmem:[#allocation2 + $0x88] sm:$0xf0] %vm711_vm4, %v15828_v1  ;;  %vm2063_vm5 = vcmask 1041408  }
 0x1d7   : > { %v1344_v29 = vadd.f32 %v1343_v24, %v1342_v26  ;;  %vm1862_vm6 = vsmask.f32 4352  ;;  %vm2878_vm7 = vsmask.f32 3328  ;;  %vm714_vm8 = vcmask 64512   ;;  %s15749_s21 = scalar_lea.hbm %s16333_s14, %s9124_s1  ;;  %p11403_p4 = pneg %p11402_p9 }
 0x1d8   : > { %v1441_v17 = vadd.f32 %v1440_v62, %v1439_v8  ;;  %v1414_v8 = vmul.f32 %v12159_v57, %v12159_v57  ;;  %vm718_vm9 = vcmask 64516  }
 0x1d9   : > { %v1346_v35 = vadd.f32 %v1345_v27, %v1344_v29  ;;  %v1363_v27 = vsel %vm707_vm1, %v12175_v14, 0.0  ;;  %v1409_v29 = vmul.f32 %v12115_v28, %v12115_v28 }
 0x1da   : > { %v1443_v26 = vadd.f32 %v1442_v12, %v1441_v17 }
 0x1db   : > { %v1348_v39 = vadd.f32 %v1347_v31, %v1346_v35  ;;  %v1446_v31 = vsel %vm707_vm1, %v1407_v11, 0.0  ;;  %v1365_v35 = vsel %vm707_vm1, %v12183_v23, 0.0  ;;  %v1450_v44 = vsel %vm707_vm1, %v1409_v29, 0.0  ;;  %v12231_v11 = vld [vmem:[%s12012_s18 + $0xc0] sm:$0xff] }
 0x1dc   : > { %v1445_v34 = vadd.f32 %v1444_v21, %v1443_v26  ;;  %v12239_v21 = vld [vmem:[%s12012_s18 + $0xc8] sm:$0xff]  ;;  %v1416_v29 = vmul.f32 %v12175_v14, %v12175_v14 }
 0x1dd   : > { %v1350_v46 = vadd.f32 %v1349_v36, %v1348_v39  ;;  %v1410_v36 = vmul.f32 %v12118_v30, %v12118_v30  ;;  %v12199_v39 = vld [vmem:[%s12012_s18 + $0xa0] sm:$0xff] }
 0x1de   : > { %v1447_v41 = vadd.f32 %v1446_v31, %v1445_v34  ;;  %v1369_v49 = vsel %vm707_vm1, %v12199_v39, 0.0  ;;  %v1460_v31 = vsel %vm707_vm1, %v1414_v8, 0.0 }
 0x1df   : > { %v1352_v52 = vadd.f32 %v1351_v40, %v1350_v46  ;;  %v12207_v46 = vld [vmem:[%s12012_s18 + $0xa8] sm:$0xff] }
 0x1e0   : > { %v1371_v56 = vsel %vm707_vm1, %v12207_v46, 0.0 }
 0x1e1   : > { %v1354_v58 = vadd.f32 %v1353_v48, %v1352_v52  ;;  %v1449_v48 = vadd.f32 %v1448_v37, %v1447_v41  ;;  %v1452_v52 = vsel %vm707_vm1, %v1410_v36, 0.0  ;;  %v1379_v36 = vsel %vm707_vm1, %v12239_v21, 0.0  ;;  %v12255_v41 = vld [vmem:[%s12012_s18 + $0xd8] sm:$0xff] }
 0x1e2   : > { %v1417_v37 = vmul.f32 %v12183_v23, %v12183_v23 }
 0x1e3   : > { %v1356_v7 = vadd.f32 %v1355_v54, %v1354_v58  ;;  %v1451_v55 = vadd.f32 %v1450_v44, %v1449_v48  ;;  %v1413_v58 = vmul.f32 %v12151_v51, %v12151_v51  ;;  %v1464_v48 = vsel %vm707_vm1, %v1416_v29, 0.0 }
 0x1e5   : > { %v1358_v15 = vadd.f32 %v1357_v60, %v1356_v7  ;;  %v12223_v60 = vld [vmem:[%s12012_s18 + $0xb8] sm:$0xff]  ;;  %v1453_v62 = vadd.f32 %v1452_v52, %v1451_v55  ;;  %v1373_v7 = vsel %vm707_vm1, %v12215_v53, 0.0  ;;  %v1458_v20 = vsel %vm707_vm1, %v1413_v58, 0.0  ;;  %v12271_v58 = vld [vmem:[%s12012_s18 + $0xe8] sm:$0xff] }
 0x1e6   : > { %v1375_v17 = vsel %vm707_vm1, %v12223_v60, 0.0  ;;  %v1419_v55 = vmul.f32 %v12199_v39, %v12199_v39 }
 0x1e7   : > { %v1360_v24 = vadd.f32 %v1359_v10, %v1358_v15  ;;  %v1456_v10 = vsel %vm707_vm1, %v1412_v50, 0.0  ;;  %v1455_v15 = vadd.f32 %v1454_v59, %v1453_v62 }
 0x1e9   : > { %v1362_v33 = vadd.f32 %v1361_v18, %v1360_v24  ;;  %v1415_v18 = vmul.f32 %v12167_v63, %v12167_v63  ;;  %v1457_v26 = vadd.f32 %v1456_v10, %v1455_v15  ;;  %v12279_v10 = vld [vmem:[%s12012_s18 + $0xf0] sm:$0xff] }
 0x1ea   : > { %v1389_v29 = vsel %vm707_vm1, %v12279_v10, 0.0 }
 0x1eb   : > { %v1364_v40 = vadd.f32 %v1363_v27, %v1362_v33  ;;  %v1377_v27 = vsel %vm707_vm1, %v12231_v11, 0.0  ;;  %v12247_v33 = vld [vmem:[%s12012_s18 + $0xd0] sm:$0xff] }
 0x1ec   : > { %v1381_v44 = vsel %vm707_vm1, %v12247_v33, 0.0 }
 0x1ed   : > { %v1366_v47 = vadd.f32 %v1365_v35, %v1364_v40  ;;  %v1459_v35 = vadd.f32 %v1458_v20, %v1457_v26  ;;  %v1462_v40 = vsel %vm707_vm1, %v1415_v18, 0.0  ;;  %v1421_v18 = vmul.f32 %v12215_v53, %v12215_v53 }
 0x1ee   : > { %v1470_v20 = vsel %vm707_vm1, %v1419_v55, 0.0 }
 0x1ef   : > { %v1368_v54 = vadd.f32 %v1367_v42, %v1366_v47  ;;  %v1461_v43 = vadd.f32 %v1460_v31, %v1459_v35  ;;  %v1418_v47 = vmul.f32 %v12191_v32, %v12191_v32  ;;  %v1422_v31 = vmul.f32 %v12223_v60, %v12223_v60 }
 0x1f1   : > { %v1370_v61 = vadd.f32 %v1369_v49, %v1368_v54  ;;  %v12263_v49 = vld [vmem:[%s12012_s18 + $0xe0] sm:$0xff]  ;;  %v1463_v52 = vadd.f32 %v1462_v40, %v1461_v43  ;;  %v1383_v54 = vsel %vm707_vm1, %v12255_v41, 0.0  ;;  %v1468_v8 = vsel %vm707_vm1, %v1418_v47, 0.0 }
 0x1f2   : > { %v1385_v62 = vsel %vm707_vm1, %v12263_v49, 0.0  ;;  %v1423_v40 = vmul.f32 %v12231_v11, %v12231_v11  ;;  %v1424_v47 = vmul.f32 %v12239_v21, %v12239_v21 }
 0x1f3   : > { %v1372_v12 = vadd.f32 %v1371_v56, %v1370_v61  ;;  %v1466_v56 = vsel %vm707_vm1, %v1417_v37, 0.0  ;;  %v1465_v61 = vadd.f32 %v1464_v48, %v1463_v52  ;;  %v1476_v48 = vsel %vm707_vm1, %v1422_v31, 0.0 }
 0x1f4   : > { %v1478_v55 = vsel %vm707_vm1, %v1423_v40, 0.0  ;;  %v1429_v31 = vmul.f32 %v12279_v10, %v12279_v10 }
 0x1f5   : > { %v1374_v24 = vadd.f32 %v1373_v7, %v1372_v12  ;;  %v1420_v7 = vmul.f32 %v12207_v46, %v12207_v46  ;;  %v1467_v15 = vadd.f32 %v1466_v56, %v1465_v61  ;;  %v1426_v61 = vmul.f32 %v12255_v41, %v12255_v41 }
 0x1f7   : > { %v1376_v34 = vadd.f32 %v1375_v17, %v1374_v24  ;;  %v1387_v17 = vsel %vm707_vm1, %v12271_v58, 0.0  ;;  %v12287_v24 = vld [vmem:[%s12012_s18 + $0xf8] sm:$0xff] }
 0x1f8   : > { %v1391_v37 = vsel %vm707_vm1, %v12287_v24, 0.0 }
 0x1f9   : > { %v1378_v42 = vadd.f32 %v1377_v27, %v1376_v34  ;;  %v1469_v27 = vadd.f32 %v1468_v8, %v1467_v15  ;;  %v1472_v34 = vsel %vm707_vm1, %v1420_v7, 0.0 }
 0x1fb   : > { %v1380_v50 = vadd.f32 %v1379_v36, %v1378_v42  ;;  %v1471_v36 = vadd.f32 %v1470_v20, %v1469_v27  ;;  %v1474_v42 = vsel %vm707_vm1, %v1421_v18, 0.0  ;;  %v1428_v20 = vmul.f32 %v12271_v58, %v12271_v58 }
 0x1fd   : > { %v1382_v59 = vadd.f32 %v1381_v44, %v1380_v50  ;;  %v1473_v44 = vadd.f32 %v1472_v34, %v1471_v36  ;;  %v1488_v40 = vsel %vm707_vm1, %v1428_v20, 0.0 }
 0x1ff   : > { %v1384_v12 = vadd.f32 %v1383_v54, %v1382_v59  ;;  %v1475_v52 = vadd.f32 %v1474_v42, %v1473_v44  ;;  %v1425_v54 = vmul.f32 %v12247_v33, %v12247_v33  ;;  %v1490_v44 = vsel %vm707_vm1, %v1429_v31, 0.0 }
 0x201   : > { %v1386_v26 = vadd.f32 %v1385_v62, %v1384_v12  ;;  %v1477_v59 = vadd.f32 %v1476_v48, %v1475_v52  ;;  %v1480_v62 = vsel %vm707_vm1, %v1424_v47, 0.0  ;;  %v1427_v12 = vmul.f32 %v12263_v49, %v12263_v49 }
 0x202   : > { %v1482_v15 = vsel %vm707_vm1, %v1425_v54, 0.0 }
 0x203   : > { %v1388_v35 = vadd.f32 %v1387_v17, %v1386_v26  ;;  %v1479_v8 = vadd.f32 %v1478_v55, %v1477_v59  ;;  %v1484_v26 = vsel %vm707_vm1, %v1426_v61, 0.0  ;;  %v1486_v34 = vsel %vm707_vm1, %v1427_v12, 0.0  ;;  %v2430_v12 = vld [vmem:[#allocation13 + $0x8] sm:$0x3] }
 0x205   : > { %v1390_v43 = vadd.f32 %v1389_v29, %v1388_v35  ;;  %v1481_v18 = vadd.f32 %v1480_v62, %v1479_v8  ;;  %v1850_v8 = vld [vmem:[#allocation13] sm:$0x3] }
 0x207   : > { %v1392_v50 = vadd.f32 %v1391_v37, %v1390_v43  ;;  %v1483_v29 = vadd.f32 %v1482_v15, %v1481_v18  ;;  %v1430_v37 = vmul.f32 %v12287_v24, %v12287_v24 }
 0x209   : > { %v1393_v56 = vrot.slane %v1392_v50, 4  ;;  %v1485_v36 = vadd.f32 %v1484_v26, %v1483_v29  ;;  %v1492_v48 = vsel %vm707_vm1, %v1430_v37, 0.0 }
 0x20b   : > { %v1394_v7 = vadd.f32 %v1393_v56, %v1392_v50  ;;  %v1487_v43 = vadd.f32 %v1486_v34, %v1485_v36  ;;  %v721_v34 = vlaneseq  ;;  %v1656_v36 = vld [vmem:[#allocation9] sm:$0x1] }
 0x20d   : > { %v1395_v17 = vrot.slane %v1394_v7, 2  ;;  %v1489_v47 = vadd.f32 %v1488_v40, %v1487_v43  ;;  %v1658_v43 = vld [vmem:[#allocation10] sm:$0x1] }
 0x20f   : > { %v1396_v27 = vadd.f32 %v1395_v17, %v1394_v7  ;;  %v1491_v50 = vadd.f32 %v1490_v44, %v1489_v47 }
 0x211   : > { %v1397_v35 = vrot.slane %v1396_v27, 1  ;;  %v1493_v52 = vadd.f32 %v1492_v48, %v1491_v50 }
 0x213   : > { %v1398_v42 = vadd.f32 %v1397_v35, %v1396_v27  ;;  %v1494_v54 = vrot.slane %v1493_v52, 4  ;;  %v12335_v35 = vshrl.u32 %v721_v34, 7 }
 0x215   : > { %9459 = vmatmul.mubr.msk.f32.vlgmr.msra.gmra.mrb[0].mxu1 %vm707_vm1, %v1398_v42  ;;  %v1495_v55 = vadd.f32 %v1494_v54, %v1493_v52  ;;  %16002 = vst [vmem:[#allocation41_spill] sm:$0xff] %v12335_v35  ;;  %v12338_v37 = vsub.s32 0, %v12335_v35  ;;  %v12346_v52 = vsel %vm2063_vm5, %v1850_v8, 0  ;;  %v12349_v54 = vsel %vm2063_vm5, %v2430_v12, 0 }
 0x216   : > { %9462 = vmatpush3.msk.msra.mxu1 %vm1504_vm3, %v12061_v2  ;;  %9463 = vmatprep.mubr.msk.f32.mxu1 %vm11521_vm0, %v15830_v0  ;;  %v1861_v2 = vld [vmem:[#allocation13 + $0x6] sm:$0x3] }
 0x217   : > { %v1496_v56 = vrot.slane %v1495_v55, 2  ;;  %10508 = vmatprep.subr.msk.bf16.mxu0 %vm2063_vm5, %v1861_v2  ;;  %10509 = vmatprep.subr.msk.bf16.mxu1 %vm2063_vm5, %v1861_v2  ;;  %v2065_v7 = vsel %vm2063_vm5, %v1861_v2, 0  ;;  %16003 = vst [vmem:[#allocation42_spill] sm:$0xff] %v12338_v37 }
 0x218   : > { %9467 = vmatpush3.bf16.msra.mxu0 %v2065_v7 }
 0x219   : > { %v1497_v59 = vadd.f32 %v1496_v56, %v1495_v55  ;;  %10510 = vmatprep.subr.msk.bf16.mxu0 %vm2063_vm5, %v1850_v8 }
 0x21b   : > { %v1498_v61 = vrot.slane %v1497_v59, 1 }
 0x21d   : > { %v1499_v62 = vadd.f32 %v1498_v61, %v1497_v59 }
 0x21f   : > { %9464 = vmatmul.mubr.msk.f32.vlgmr.msra.gmra.mrb[2].mxu1 %vm707_vm1, %v1499_v62 }
 0x220   : > { %10123 = vmatpush3.bf16.msra.mxu1 %v2065_v7 }
 0x221   : > { %10511 = vmatprep.subr.msk.bf16.mxu1 %vm2063_vm5, %v2430_v12 }
 0x2e8   : > { %v1574_v15 = vpop.f32.mrb[0].mxu1 }
 0x2e9   : > { %v9460_v17 = vpop.f32.mrb[1].mxu1  ;;  %v1651_v18 = vmul.f32 %v1574_v15, %v1574_v15 }
 0x2f2   : > { %v1647_v20 = vpop.f32.mrb[2].mxu1 }
 0x2f3   : > { %v1652_v26 = vsub.f32 %v1647_v20, %v1651_v18  ;;  %v9465_v27 = vpop.f32.mrb[3].mxu1 }
 0x2f5   : > { %v1653_v29 = vmax.f32 %v1652_v26, 0.0 }
 0x2f7   : > { %v1654_v31 = vadd.f32 1e-05, %v1653_v29 }
 0x2f9   : > { %10711 = vrsqrt.f32 %v1654_v31 }
 0x303   : > { %v10712_v40 = vpop.eup %10711 }
 0x304   : > { %v1657_v42 = vmul.f32 %v10712_v40, %v1656_v36 }
 0x306   : > { %v1659_v44 = vmul.f32 %v1657_v42, %v1574_v15  ;;  %v12341_v47 = vrot.slane %v1657_v42, %v12338_v37 }
 0x308   : > { %v1660_v48 = vsub.f32 %v1658_v43, %v1659_v44  ;;  %v1681_v50 = vmul.f32 %v12341_v47, %v12167_v63  ;;  %v1682_v55 = vmul.f32 %v12341_v47, %v12175_v14  ;;  %v1683_v56 = vmul.f32 %v12341_v47, %v12183_v23 }
 0x309   : > { %v1684_v59 = vmul.f32 %v12341_v47, %v12191_v32  ;;  %v1685_v61 = vmul.f32 %v12341_v47, %v12199_v39  ;;  %v1686_v62 = vmul.f32 %v12341_v47, %v12207_v46  ;;  %v1687_v2 = vmul.f32 %v12341_v47, %v12215_v53 }
 0x30a   : > { %v12360_v63 = vrot.slane %v1660_v48, %v12338_v37  ;;  %v1688_v14 = vmul.f32 %v12341_v47, %v12223_v60  ;;  %v1689_v23 = vmul.f32 %v12341_v47, %v12231_v11  ;;  %v1690_v32 = vmul.f32 %v12341_v47, %v12239_v21  ;;  %v12761_v37 = vld [vmem:[#allocation13 + $0xe] sm:$0x3] }
 0x30b   : > { %v1691_v39 = vmul.f32 %v12341_v47, %v12247_v33  ;;  %v1692_v7 = vmul.f32 %v12341_v47, %v12255_v41  ;;  %v1693_v46 = vmul.f32 %v12341_v47, %v12263_v49  ;;  %v1694_v53 = vmul.f32 %v12341_v47, %v12271_v58 }
 0x30c   : > { %v1695_v60 = vmul.f32 %v12341_v47, %v12279_v10  ;;  %v1696_v11 = vmul.f32 %v12341_v47, %v12287_v24  ;;  %v12385_v21 = vadd.f32 %v12360_v63, %v1681_v50  ;;  %v12388_v33 = vadd.f32 %v12360_v63, %v1682_v55 }
 0x30d   : > { %v1721_v41 = vadd.f32 %v12360_v63, %v1683_v56  ;;  %v1722_v8 = vadd.f32 %v12360_v63, %v1684_v59  ;;  %v1723_v49 = vadd.f32 %v12360_v63, %v1685_v61  ;;  %v1724_v58 = vadd.f32 %v12360_v63, %v1686_v62 }
 0x30e   : > { %v1725_v12 = vadd.f32 %v12360_v63, %v1687_v2  ;;  %v1726_v10 = vadd.f32 %v12360_v63, %v1688_v14  ;;  %v1727_v24 = vadd.f32 %v12360_v63, %v1689_v23  ;;  %v1728_v15 = vadd.f32 %v12360_v63, %v1690_v32 }
 0x30f   : > { %v1729_v17 = vadd.f32 %v12360_v63, %v1691_v39  ;;  %v1730_v18 = vadd.f32 %v12360_v63, %v1692_v7  ;;  %v1731_v20 = vadd.f32 %v12360_v63, %v1693_v46  ;;  %v1732_v26 = vadd.f32 %v12360_v63, %v1694_v53 }
 0x310   : > { %v1733_v27 = vadd.f32 %v12360_v63, %v1695_v60  ;;  %v1734_v29 = vadd.f32 %v12360_v63, %v1696_v11  ;;  %v1744_v31 = vpack.c.bf16 %v1722_v8, %v1721_v41  ;;  %v1745_v34 = vpack.c.bf16 %v1724_v58, %v1723_v49 }
 0x311   : > { %v1746_v36 = vpack.c.bf16 %v1726_v10, %v1725_v12  ;;  %v1747_v40 = vpack.c.bf16 %v1728_v15, %v1727_v24  ;;  %v1748_v42 = vpack.c.bf16 %v1730_v18, %v1729_v17  ;;  %v1749_v43 = vpack.c.bf16 %v1732_v26, %v1731_v20 }
 0x312   : > { %v1750_v44 = vpack.c.bf16 %v1734_v29, %v1733_v27  ;;  %v1665_v48 = vmul.f32 %v12341_v47, %v12064_v3  ;;  %v12406_v50 = vrot.slane %v1744_v31, 4  ;;  %v1787_v55 = vrot.slane %v1745_v34, 4 }
 0x313   : > { %v1789_v56 = vrot.slane %v1746_v36, 4  ;;  %v1791_v59 = vrot.slane %v1747_v40, 4  ;;  %v1793_v61 = vrot.slane %v1748_v42, 4  ;;  %v1795_v62 = vrot.slane %v1749_v43, 4 }
 0x314   : > { %v1797_v2 = vrot.slane %v1750_v44, 4  ;;  %v1666_v14 = vmul.f32 %v12341_v47, %v12067_v4  ;;  %v1667_v39 = vmul.f32 %v12341_v47, %v12072_v5  ;;  %v1668_v3 = vmul.f32 %v12341_v47, %v12075_v6 }
 0x315   : > { %v1790_v23 = vsel %vm1504_vm3, %v1787_v55, %v1789_v56  ;;  %v1792_v32 = vsel %vm1504_vm3, %v1789_v56, %v1791_v59  ;;  %v1794_v7 = vsel %vm1504_vm3, %v1791_v59, %v1793_v61  ;;  %v1796_v46 = vsel %vm1504_vm3, %v1793_v61, %v1795_v62 }
 0x316   : > { %v1798_v53 = vsel %vm1504_vm3, %v1795_v62, %v1797_v2  ;;  %1828 = vst.msk [vmem:[#allocation2 + $0x68] sm:$0xff] %vm707_vm1, %v1792_v32  ;;  %1827 = vst.msk [vmem:[#allocation2 + $0x60] sm:$0xff] %vm707_vm1, %v1790_v23  ;;  %v1703_v4 = vadd.f32 %v12360_v63, %v1665_v48  ;;  %v1704_v5 = vadd.f32 %v12360_v63, %v1666_v14 }
 0x317   : > { %1832 = vst.msk [vmem:[#allocation2 + $0x88] sm:$0xf] %vm709_vm2, %v1797_v2  ;;  %v1705_v6 = vadd.f32 %v12360_v63, %v1667_v39  ;;  %v1706_v60 = vadd.f32 %v12360_v63, %v1668_v3  ;;  %v1788_v11 = vsel %vm1504_vm3, %v12406_v50, %v1787_v55  ;;  %v1669_v41 = vmul.f32 %v12341_v47, %v12083_v9 }
 0x318   : > { %1829 = vst.msk [vmem:[#allocation2 + $0x70] sm:$0xff] %vm707_vm1, %v1794_v7  ;;  %1830 = vst.msk [vmem:[#allocation2 + $0x78] sm:$0xff] %vm707_vm1, %v1796_v46  ;;  %v1670_v8 = vmul.f32 %v12341_v47, %v12090_v13  ;;  %v1671_v49 = vmul.f32 %v12341_v47, %v12095_v16  ;;  %v1672_v58 = vmul.f32 %v12341_v47, %v12100_v19 }
 0x319   : > { %1831 = vst.msk [vmem:[#allocation2 + $0x80] sm:$0xff] %vm707_vm1, %v1798_v53  ;;  %1826 = vst.msk [vmem:[#allocation2 + $0x58] sm:$0xff] %vm707_vm1, %v1788_v11  ;;  %v1735_v12 = vpack.c.bf16 %v1704_v5, %v1703_v4  ;;  %v1736_v10 = vpack.c.bf16 %v1706_v60, %v1705_v6  ;;  %v1673_v24 = vmul.f32 %v12341_v47, %v12105_v22 }
 0x31a   : > { %v1674_v15 = vmul.f32 %v12341_v47, %v12110_v25  ;;  %v1707_v9 = vadd.f32 %v12360_v63, %v1669_v41  ;;  %v1708_v17 = vadd.f32 %v12360_v63, %v1670_v8  ;;  %v1709_v13 = vadd.f32 %v12360_v63, %v1671_v49 }
 0x31b   : > { %v1710_v16 = vadd.f32 %v12360_v63, %v1672_v58  ;;  %v1768_v18 = vrot.slane %v1735_v12, 4  ;;  %v1769_v20 = vrot.slane %v1736_v10, 4  ;;  %v1711_v19 = vadd.f32 %v12360_v63, %v1673_v24 }
 0x31c   : > { %v1712_v26 = vadd.f32 %v12360_v63, %v1674_v15  ;;  %v12452_v22 = vmul.f32 %v12341_v47, %v12151_v51  ;;  %v1737_v25 = vpack.c.bf16 %v1708_v17, %v1707_v9  ;;  %v1675_v29 = vmul.f32 %v12341_v47, %v12115_v28 }
 0x31d   : > { %v1738_v27 = vpack.c.bf16 %v1710_v16, %v1709_v13  ;;  %v1770_v31 = vsel %vm1504_vm3, %v1768_v18, %v1769_v20  ;;  %1816 = vst.msk [vmem:[#allocation2 + $0x8] sm:$0xf0] %vm711_vm4, %v1768_v18  ;;  %v12458_v34 = vld [vmem:[#allocation2 + $0x60] sm:$0xff]  ;;  %v12460_v36 = vld [vmem:[#allocation2 + $0x68] sm:$0xff]  ;;  %v1676_v42 = vmul.f32 %v12341_v47, %v12118_v30  ;;  %v12466_v51 = vmul.f32 %v12341_v47, %v12133_v38 }
 0x31e   : > { %v1739_v40 = vpack.c.bf16 %v1712_v26, %v1711_v19  ;;  %1817 = vst.msk [vmem:[#allocation2 + $0x10] sm:$0xff] %vm707_vm1, %v1770_v31  ;;  %v15841_v28 = vshrl.u32 %v12458_v34, 16  ;;  %v15840_v43 = vshll.u32 %v12458_v34, 16  ;;  %v1771_v44 = vrot.slane %v1737_v25, 4 }
 0x31f   : > { %v15839_v48 = vshrl.u32 %v12460_v36, 16  ;;  %v12472_v55 = vld [vmem:[#allocation2 + $0x70] sm:$0xff]  ;;  %v15838_v59 = vshll.u32 %v12460_v36, 16  ;;  %v1773_v30 = vrot.slane %v1738_v27, 4  ;;  %v12485_v32 = vld [vmem:[#allocation2 + $0x78] sm:$0xff]  ;;  %v1713_v10 = vadd.f32 %v12360_v63, %v1675_v29 }
 0x320   : > { %v12474_v56 = vld [vmem:[#allocation2 + $0x58] sm:$0xff]  ;;  %v15837_v61 = vshrl.u32 %v12472_v55, 16  ;;  %v15836_v38 = vshll.u32 %v12472_v55, 16  ;;  %v1964_v14 = vrot.slane %v15841_v28, 3  ;;  %v1967_v23 = vrot.slane %v15840_v43, 4  ;;  %v12521_v25 = vld [vmem:[#allocation2 + $0x80] sm:$0xff] }
 0x321   : > { %v15843_v62 = vshrl.u32 %v12474_v56, 16  ;;  %v15842_v2 = vshll.u32 %v12474_v56, 16  ;;  %v1772_v39 = vsel %vm1504_vm3, %v1769_v20, %v1771_v44  ;;  %v1973_v3 = vrot.slane %v15839_v48, 3 }
 0x322   : > { %v1976_v7 = vrot.slane %v15838_v59, 4  ;;  %v1774_v46 = vsel %vm1504_vm3, %v1771_v44, %v1773_v30  ;;  %v1968_v5 = vor.u32 %v1967_v23, %v1964_v14  ;;  %1818 = vst.msk [vmem:[#allocation2 + $0x18] sm:$0xff] %vm707_vm1, %v1772_v39  ;;  %v1982_v6 = vrot.slane %v15837_v61, 3 }
 0x323   : > { %v1955_v53 = vrot.slane %v15843_v62, 3  ;;  %v1958_v4 = vrot.slane %v15842_v2, 4  ;;  %1819 = vst.msk [vmem:[#allocation2 + $0x20] sm:$0xff] %vm707_vm1, %v1774_v46  ;;  %v1985_v11 = vrot.slane %v15836_v38, 4  ;;  %v1775_v41 = vrot.slane %v1739_v40, 4 }
 0x324   : > { %v1977_v60 = vor.u32 %v1976_v7, %v1973_v3  ;;  %v15835_v8 = vshrl.u32 %v12485_v32, 16  ;;  %v1857_v49 = vld [vmem:[#allocation2 + $0x8] sm:$0xf8]  ;;  %v15834_v12 = vshll.u32 %v12485_v32, 16  ;;  %v1714_v24 = vadd.f32 %v12360_v63, %v1676_v42  ;;  %v12531_v42 = vld [vmem:[#allocation13 + $0x2] sm:$0x3] }
 0x325   : > { %v12504_v58 = vor.u32 %v1958_v4, %v1955_v53  ;;  %v12509_v15 = vld [vmem:[#allocation2 + $0x10] sm:$0xff]  ;;  %v1864_v9 = vshrl.u32 %v1857_v49, 16  ;;  %v1867_v17 = vshll.u32 %v1857_v49, 16  ;;  %v1986_v16 = vor.u32 %v1985_v11, %v1982_v6 }
 0x326   : > { %v12512_v13 = vsel %vm1862_vm6, %v1968_v5, %v1977_v60  ;;  %v15855_v18 = vshrl.u32 %v12509_v15, 16  ;;  %v15854_v20 = vshll.u32 %v12509_v15, 16  ;;  %v1776_v26 = vsel %vm1504_vm3, %v1773_v30, %v1775_v41 }
 0x327   : > { %v12518_v19 = vsel %vm1862_vm6, %v12504_v58, %v1968_v5  ;;  %v1866_v27 = vrot.slane %v1864_v9, 3  ;;  %v1869_v29 = vrot.slane %v1867_v17, 4  ;;  %v12526_v31 = vsel %vm1862_vm6, %v1977_v60, %v1986_v16  ;;  %1820 = vst.msk [vmem:[#allocation2 + $0x28] sm:$0xff] %vm707_vm1, %v1776_v26 }
 0x328   : > { %9488 = vmatprep.mubr.msk.bf16.mxu1 %vm707_vm1, %v12518_v19  ;;  %v1991_v40 = vrot.slane %v15835_v8, 3  ;;  %v1874_v44 = vrot.slane %v15855_v18, 3  ;;  %v1877_v30 = vrot.slane %v15854_v20, 4  ;;  %v1994_v14 = vrot.slane %v15834_v12, 4  ;;  %v1833_v8 = vld [vmem:[#allocation2] sm:$0xf8] }
 0x329   : > { %9489 = vmatmul.mubr.msk.bf16.vlgmr.msra.gmra.mrb[4].mxu1 %vm707_vm1, %v12512_v13  ;;  %v1740_v23 = vpack.c.bf16 %v1714_v24, %v1713_v10  ;;  %v1870_v39 = vor.u32 %v1869_v29, %v1866_v27  ;;  %v12541_v3 = vld [vmem:[#allocation2 + $0x18] sm:$0xff]  ;;  %v15833_v46 = vshrl.u32 %v12521_v25, 16  ;;  %v15832_v53 = vshll.u32 %v12521_v25, 16  ;;  %v12572_v27 = vld [vmem:[#allocation2 + $0x88] sm:$0xf] }
 0x32a   : > { %v12543_v7 = vld [vmem:[#allocation2 + $0x20] sm:$0xff]  ;;  %9492 = vmatprep.mubr.msk.bf16.mxu1 %vm707_vm1, %v12526_v31  ;;  %v1715_v4 = vadd.f32 %v12360_v63, %v12466_v51  ;;  %9535 = vmatpush3.bf16.msra.mxu1 %v12349_v54  ;;  %v12552_v5 = vor.u32 %v1877_v30, %v1874_v44  ;;  %v1881_v6 = vshrl.u32 %v12541_v3, 16  ;;  %v1884_v60 = vshll.u32 %v12541_v3, 16 }
 0x32b   : > { %v15853_v11 = vshrl.u32 %v12543_v7, 16  ;;  %10512 = vmatprep.subr.msk.bf16.mxu1 %vm2063_vm5, %v12531_v42  ;;  %v15852_v49 = vshll.u32 %v12543_v7, 16  ;;  %v12560_v10 = vor.u32 %v1994_v14, %v1991_v40  ;;  %v1777_v24 = vrot.slane %v1740_v23, 4 }
 0x32c   : > { %v1678_v51 = vmul.f32 %v12341_v47, %v12143_v45  ;;  %v1879_v54 = vsel %vm1862_vm6, %v1870_v39, %v12552_v5  ;;  %v1883_v9 = vrot.slane %v1881_v6, 3  ;;  %v1886_v17 = vrot.slane %v1884_v60, 4 }
 0x32d   : > { %v2000_v26 = vrot.slane %v15833_v46, 3  ;;  %v1680_v29 = vmul.f32 %v12341_v47, %v12159_v57  ;;  %9468 = vmatprep.mubr.msk.bf16.mxu0 %vm707_vm1, %v1879_v54  ;;  %v1892_v45 = vrot.slane %v15853_v11, 3  ;;  %v1895_v40 = vrot.slane %v15852_v49, 4 }
 0x32e   : > { %v12583_v44 = vsel %vm1862_vm6, %v1986_v16, %v12560_v10  ;;  %v12585_v30 = vor.u32 %v1886_v17, %v1883_v9  ;;  %v12587_v14 = vld [vmem:[#allocation2 + $0x28] sm:$0xff]  ;;  %v1778_v23 = vsel %vm1504_vm3, %v1775_v41, %v1777_v24  ;;  %v2003_v57 = vrot.slane %v15832_v53, 4 }
 0x32f   : > { %v1716_v47 = vadd.f32 %v12360_v63, %v1678_v51  ;;  %v1896_v39 = vor.u32 %v1895_v40, %v1892_v45  ;;  %v15851_v54 = vshrl.u32 %v12587_v14, 16  ;;  %v15850_v1 = vshll.u32 %v12587_v14, 16  ;;  %1821 = vst.msk [vmem:[#allocation2 + $0x30] sm:$0xff] %vm707_vm1, %v1778_v23  ;;  %v12607_v45 = vld [vmem:[#allocation2 + $0x8] sm:$0xf0] }
 0x330   : > { %16004 = vst [vmem:[#allocation43_spill] sm:$0xff] %v12585_v30  ;;  %v2007_v16 = vshrl.u32 %v12572_v27, 16  ;;  %v12600_v9 = vsel %vm1862_vm6, %v12552_v5, %v12585_v30  ;;  %v12604_v41 = vor.u32 %v2003_v57, %v2000_v26  ;;  %v2010_v17 = vshll.u32 %v12572_v27, 16  ;;  %v12609_v40 = vld [vmem:[#allocation13 + $0xa] sm:$0x3] }
 0x331   : > { %9493 = vmatmul.mubr.msk.bf16.gmra.mrb[8].mxu1 %vm707_vm1, %v12583_v44  ;;  %v1741_v51 = vpack.c.bf16 %v1716_v47, %v1715_v4  ;;  %9469 = vmatmul.mubr.msk.bf16.vlgmr.msra.gmra.mrb[0].mxu0 %vm707_vm1, %v12600_v9  ;;  %v12615_v23 = vsel %vm1862_vm6, %v12585_v30, %v1896_v39  ;;  %v1901_v0 = vrot.slane %v15851_v54, 3  ;;  %v1904_v26 = vrot.slane %v15850_v1, 4 }
 0x332   : > { %v2009_v4 = vrot.slane %v2007_v16, 3  ;;  %9501 = vmatpush3.bf16.msra.mxu0 %v12346_v52  ;;  %9472 = vmatprep.mubr.msk.bf16.mxu0 %vm707_vm1, %v12615_v23  ;;  %v12627_v57 = vsel %vm1862_vm6, %v12560_v10, %v12604_v41  ;;  %v2012_v53 = vrot.slane %v2010_v17, 4  ;;  %v1717_v46 = vadd.f32 %v12360_v63, %v12452_v22 }
 0x333   : > { %16005 = vst [vmem:[#allocation44_spill] sm:$0xff] %v12627_v57  ;;  %v1779_v47 = vrot.slane %v1741_v51, 4  ;;  %v1905_v12 = vor.u32 %v1904_v26, %v1901_v0  ;;  %9496 = vmatprep.mubr.msk.bf16.mxu1 %vm707_vm1, %v12627_v57  ;;  %v1718_v16 = vadd.f32 %v12360_v63, %v1680_v29  ;;  %v2448_v52 = vrot.slane %v12607_v45, 4  ;;  %10513 = vmatprep.subr.msk.bf16.mxu0 %vm2063_vm5, %v12609_v40 }
 0x334   : > { %v2013_v61 = vor.u32 %v2012_v53, %v2009_v4  ;;  %v12639_v51 = vrot.slane %v12509_v15, 4  ;;  %v1743_v0 = vpack.c.bf16 %v12388_v33, %v12385_v21  ;;  %v2229_v29 = vshrl.u32 %v1833_v8, 16 }
 0x335   : > { %v1780_v38 = vsel %vm1504_vm3, %v1777_v24, %v1779_v47  ;;  %v1742_v22 = vpack.c.bf16 %v1718_v16, %v1717_v46  ;;  %v2232_v26 = vshll.u32 %v1833_v8, 16  ;;  %v12651_v4 = vsel %vm1862_vm6, %v1896_v39, %v1905_v12 }
 0x336   : > { %1822 = vst.msk [vmem:[#allocation2 + $0x38] sm:$0xff] %vm707_vm1, %v1780_v38  ;;  %v12644_v17 = vld [vmem:[#allocation2 + $0x30] sm:$0xff]  ;;  %v1783_v63 = vrot.slane %v1743_v0, 4  ;;  %v2014_v53 = vsel %vm1862_vm6, %v12604_v41, %v2013_v61  ;;  %16006 = vst [vmem:[#allocation45_spill] sm:$0xff] %v12651_v4  ;;  %v2450_v21 = vsel %vm1504_vm3, %v2448_v52, %v12639_v51  ;;  %v12658_v38 = vld [vmem:[#allocation2 + $0x8] sm:$0xff]  ;;  %v12675_v16 = vrot.slane %v2229_v29, 3 }
 0x337   : > { %v15849_v59 = vshrl.u32 %v12644_v17, 16  ;;  %v15848_v48 = vshll.u32 %v12644_v17, 16  ;;  %v1781_v24 = vrot.slane %v1742_v22, 4  ;;  %v12677_v52 = vrot.slane %v2232_v26, 4 }
 0x338   : > { %v1786_v33 = vsel %vm1504_vm3, %v1783_v63, %v12406_v50  ;;  %v12673_v50 = vrot.slane %v12541_v3, 4  ;;  %v15846_v22 = vshll.u32 %v12658_v38, 16  ;;  %v2457_v2 = vrot.slane %v12644_v17, 4 }
 0x339   : > { %9497 = vmatmul.mubr.msk.bf16.gmra.mrb[12].mxu1 %vm707_vm1, %v2014_v53  ;;  %9473 = vmatmul.mubr.msk.bf16.gmra.mrb[4].mxu0 %vm707_vm1, %v12651_v4  ;;  %v1910_v61 = vrot.slane %v15849_v59, 3  ;;  %v1913_v8 = vrot.slane %v15848_v48, 4  ;;  %v1782_v46 = vsel %vm1504_vm3, %v1779_v47, %v1781_v24  ;;  %v1784_v39 = vsel %vm1504_vm3, %v1781_v24, %v1783_v63  ;;  %1825 = vst.msk [vmem:[#allocation2 + $0x50] sm:$0xff] %vm707_vm1, %v1786_v33  ;;  %v12681_v53 = vld [vmem:[#allocation2] sm:$0xf0] }
 0x33a   : > { %9536 = vmatprep.mubr.msk.bf16.mxu1 %vm707_vm1, %v2450_v21  ;;  %1823 = vst.msk [vmem:[#allocation2 + $0x40] sm:$0xff] %vm707_vm1, %v1782_v46  ;;  %1824 = vst.msk [vmem:[#allocation2 + $0x48] sm:$0xff] %vm707_vm1, %v1784_v39  ;;  %v15844_v47 = vshrl.u32 %v12658_v38, 16  ;;  %v2453_v24 = vrot.slane %v12543_v7, 4  ;;  %v12696_v26 = vsel %vm1504_vm3, %v12639_v51, %v12673_v50  ;;  %v2242_v28 = vrot.slane %v15846_v22, 4 }
 0x33b   : > { %16007 = vst [vmem:[#allocation46_spill] sm:$0xff] %v12673_v50  ;;  %v1914_v0 = vor.u32 %v1913_v8, %v1910_v61  ;;  %v2235_v61 = vor.u32 %v12677_v52, %v12675_v16  ;;  %v2712_v8 = vsel %vm2063_vm5, %v12531_v42, 0  ;;  %v2455_v52 = vrot.slane %v12587_v14, 4 }
 0x33c   : > { %v2239_v43 = vrot.slane %v15844_v47, 3  ;;  %v12717_v42 = vsel %vm1504_vm3, %v12673_v50, %v2453_v24  ;;  %v12722_v62 = vrot.slane %v12521_v25, 4  ;;  %v2479_v59 = vrot.slane %v12572_v27, 4 }
 0x33d   : > { %v12683_v63 = vld [vmem:[#allocation2 + $0x38] sm:$0xff]  ;;  %v12687_v21 = vsel %vm1862_vm6, %v1905_v12, %v1914_v0  ;;  %v3169_v12 = vshrl.u32 %v12681_v53, 16 }
 0x33e   : > { %v15847_v33 = vshrl.u32 %v12683_v63, 16  ;;  %v15845_v29 = vshll.u32 %v12683_v63, 16  ;;  %9476 = vmatprep.mubr.msk.bf16.mxu0 %vm707_vm1, %v12687_v21  ;;  %v12744_v18 = vor.u32 %v2242_v28, %v2239_v43  ;;  %v2892_v28 = vrot.slane %v1884_v60, 5 }
 0x33f   : > { %v2459_v43 = vrot.slane %v12683_v63, 4 }
 0x340   : > { %v1919_v46 = vrot.slane %v15847_v33, 3  ;;  %v1922_v39 = vrot.slane %v15845_v29, 4  ;;  %v12713_v16 = vld [vmem:[#allocation2 + $0x50] sm:$0xff] }
 0x341   : > { %9537 = vmatmul.mubr.msk.bf16.vlgmr.msra.gmra.mrb[16].mxu1 %vm707_vm1, %v12696_v26  ;;  %v12724_v29 = vld [vmem:[#allocation2 + $0x40] sm:$0xff]  ;;  %v12726_v22 = vld [vmem:[#allocation2 + $0x48] sm:$0xff]  ;;  %v15856_v33 = vshrl.u32 %v12713_v16, 16  ;;  %v15857_v48 = vshll.u32 %v12713_v16, 16 }
 0x342   : > { %v1923_v47 = vor.u32 %v1922_v39, %v1919_v46  ;;  %9540 = vmatprep.mubr.msk.bf16.mxu1 %vm707_vm1, %v12717_v42  ;;  %9569 = vmatpush3.bf16.msra.mxu1 %v2712_v8  ;;  %v15860_v1 = vshrl.u32 %v12724_v29, 16  ;;  %v15863_v54 = vshll.u32 %v12724_v29, 16  ;;  %v15864_v46 = vshrl.u32 %v12726_v22, 16 }
 0x343   : > { %v15865_v39 = vshll.u32 %v12726_v22, 16  ;;  %v1946_v11 = vrot.slane %v15856_v33, 3  ;;  %v1949_v20 = vrot.slane %v15857_v48, 4  ;;  %v2891_v48 = vrot.slane %v1881_v6, 4  ;;  %10516 = vmatprep.subr.msk.bf16.mxu1 %vm2063_vm5, %v12761_v37 }
 0x344   : > { %v12738_v49 = vsel %vm1862_vm6, %v1914_v0, %v1923_v47  ;;  %v1928_v27 = vrot.slane %v15860_v1, 3  ;;  %v1931_v8 = vrot.slane %v15863_v54, 4  ;;  %v1937_v0 = vrot.slane %v15864_v46, 3 }
 0x345   : > { %9477 = vmatmul.mubr.msk.bf16.gmra.mrb[8].mxu0 %vm707_vm1, %v12738_v49  ;;  %v1940_v33 = vrot.slane %v15865_v39, 4  ;;  %v15868_v54 = vrot.slane %v12724_v29, 4  ;;  %v12766_v46 = vsel %vm1504_vm3, %v12722_v62, %v2479_v59  ;;  %v1950_v39 = vor.u32 %v1949_v20, %v1946_v11 }
 0x346   : > { %v1932_v1 = vor.u32 %v1931_v8, %v1928_v27  ;;  %v12771_v6 = vsel %vm1504_vm3, %v2453_v24, %v2455_v52  ;;  %v2244_v59 = vsel %vm1862_vm6, %v2235_v61, %v12744_v18  ;;  %v12784_v27 = vrot.slane %v3169_v12, 4 }
 0x347   : > { %v1941_v35 = vor.u32 %v1940_v33, %v1937_v0  ;;  %v12782_v33 = vsel %vm1504_vm3, %v2455_v52, %v2457_v2  ;;  %v12791_v20 = vsel %vm1504_vm3, %v2457_v2, %v2459_v43  ;;  %v2880_v11 = vshrl.u32 %v12607_v45, 16 }
 0x348   : > { %v12775_v60 = vsel %vm1862_vm6, %v1923_v47, %v1932_v1  ;;  %v2883_v47 = vshll.u32 %v12607_v45, 16  ;;  %v16008_v24 = vshrl.u32 %v12509_v15, 16  ;;  %v12803_v12 = vsel %vm1504_vm3, %v2459_v43, %v15868_v54 }
 0x349   : > { %9541 = vmatmul.mubr.msk.bf16.gmra.mrb[20].mxu1 %vm707_vm1, %v12771_v6  ;;  %9480 = vmatprep.mubr.msk.bf16.mxu0 %vm707_vm1, %v12775_v60  ;;  %v12798_v52 = vsel %vm1862_vm6, %v1932_v1, %v1941_v35  ;;  %v16009_v8 = vshll.u32 %v12509_v15, 16  ;;  %v12807_v2 = vor.u32 %v2892_v28, %v2891_v48  ;;  %v12810_v3 = vsel %vm1862_vm6, %v1941_v35, %v1950_v39 }
 0x34a   : > { %9544 = vmatprep.mubr.msk.bf16.mxu1 %vm707_vm1, %v12782_v33  ;;  %v2887_v61 = vrot.slane %v16008_v24, 4  ;;  %v2882_v45 = vrot.slane %v2880_v11, 4  ;;  %v2885_v57 = vrot.slane %v2883_v47, 5  ;;  %v16010_v24 = vshrl.u32 %v12543_v7, 16 }
 0x34b   : > { %v2888_v0 = vrot.slane %v16009_v8, 5  ;;  %v16011_v43 = vshll.u32 %v12543_v7, 16  ;;  %v16012_v15 = vshrl.u32 %v12587_v14, 16  ;;  %v16013_v28 = vshll.u32 %v12587_v14, 16 }
 0x34c   : > { %v2895_v30 = vrot.slane %v16010_v24, 4  ;;  %v2463_v11 = vrot.slane %v12726_v22, 4  ;;  %v2886_v47 = vor.u32 %v2885_v57, %v2882_v45  ;;  %v16014_v8 = vshrl.u32 %v12644_v17, 16 }
 0x34d   : > { %9481 = vmatmul.mubr.msk.bf16.gmra.mrb[12].mxu0 %vm707_vm1, %v12798_v52  ;;  %v12816_v1 = vor.u32 %v2888_v0, %v2887_v61  ;;  %v2896_v54 = vrot.slane %v16011_v43, 5  ;;  %v2899_v48 = vrot.slane %v16012_v15, 4  ;;  %v2900_v35 = vrot.slane %v16013_v28, 5 }
 0x34e   : > { %9484 = vmatprep.mubr.msk.bf16.mxu0 %vm707_vm1, %v12810_v3  ;;  %v2903_v24 = vrot.slane %v16014_v8, 4  ;;  %v16015_v61 = vshll.u32 %v12644_v17, 16  ;;  %v16017_v15 = vshrl.u32 %v12683_v63, 16  ;;  %v12840_v50 = vsel %vm1862_vm6, %v1950_v39, %v12504_v58 }
 0x34f   : > { %v12834_v7 = vsel %vm2878_vm7, %v12816_v1, %v12807_v2  ;;  %v2897_v43 = vor.u32 %v2896_v54, %v2895_v30  ;;  %v2901_v14 = vor.u32 %v2900_v35, %v2899_v48  ;;  %v12844_v57 = vsel %vm2878_vm7, %v2886_v47, %v12816_v1 }
 0x350   : > { %v2904_v0 = vrot.slane %v16015_v61, 5  ;;  %16016 = vst [vmem:[#allocation47_spill] sm:$0xff] %v12834_v7  ;;  %v2907_v28 = vrot.slane %v16017_v15, 4  ;;  %v16018_v45 = vshll.u32 %v12683_v63, 16  ;;  %v16021_v58 = vshrl.u32 %v12724_v29, 16 }
 0x351   : > { %9545 = vmatmul.mubr.msk.bf16.gmra.mrb[24].mxu1 %vm707_vm1, %v12791_v20  ;;  %v12852_v30 = vsel %vm2878_vm7, %v12807_v2, %v2897_v43  ;;  %v12855_v54 = vsel %vm2878_vm7, %v2897_v43, %v2901_v14  ;;  %v16022_v48 = vshll.u32 %v12724_v29, 16 }
 0x352   : > { %v2905_v17 = vor.u32 %v2904_v0, %v2903_v24  ;;  %v2908_v8 = vrot.slane %v16018_v45, 5  ;;  %16019 = vst [vmem:[#allocation48_spill] sm:$0xff] %v12852_v30  ;;  %16020 = vst [vmem:[#allocation49_spill] sm:$0xff] %v12855_v54  ;;  %v2911_v39 = vrot.slane %v16021_v58, 4  ;;  %9548 = vmatprep.mubr.msk.bf16.mxu1 %vm707_vm1, %v12803_v12  ;;  %v16023_v24 = vshrl.u32 %v12726_v22, 16 }
 0x353   : > { %v2912_v35 = vrot.slane %v16022_v48, 5  ;;  %v16024_v0 = vshll.u32 %v12726_v22, 16  ;;  %v16025_v45 = vshrl.u32 %v12713_v16, 16  ;;  %v16026_v54 = vshll.u32 %v12713_v16, 16 }
 0x354   : > { %v12864_v63 = vsel %vm2878_vm7, %v2901_v14, %v2905_v17  ;;  %v2909_v47 = vor.u32 %v2908_v8, %v2907_v28  ;;  %v2915_v61 = vrot.slane %v16023_v24, 4  ;;  %v16027_v30 = vshrl.u32 %v12474_v56, 16 }
 0x355   : > { %v2916_v43 = vrot.slane %v16024_v0, 5  ;;  %v2913_v15 = vor.u32 %v2912_v35, %v2911_v39  ;;  %v2919_v58 = vrot.slane %v16025_v45, 4  ;;  %v2920_v48 = vrot.slane %v16026_v54, 5  ;;  %9485 = vmatmul.mubr.msk.bf16.gmra.mrb[16].mxu0 %vm707_vm1, %v12840_v50 }
 0x356   : > { %v2923_v7 = vrot.slane %v16027_v30, 4  ;;  %v12877_v14 = vsel %vm2878_vm7, %v2905_v17, %v2909_v47  ;;  %v16029_v8 = vshll.u32 %v12474_v56, 16  ;;  %v16030_v22 = vshrl.u32 %v12458_v34, 16  ;;  %9502 = vmatprep.mubr.msk.bf16.mxu0 %vm707_vm1, %v2244_v59 }
 0x357   : > { %16028 = vst [vmem:[#allocation50_spill] sm:$0xff] %v12877_v14  ;;  %v2917_v28 = vor.u32 %v2916_v43, %v2915_v61  ;;  %v2465_v39 = vrot.slane %v12713_v16, 4  ;;  %v12887_v54 = vsel %vm2878_vm7, %v2909_v47, %v2913_v15  ;;  %v2921_v35 = vor.u32 %v2920_v48, %v2919_v58 }
 0x358   : > { %v2924_v24 = vrot.slane %v16029_v8, 5  ;;  %v2927_v0 = vrot.slane %v16030_v22, 4  ;;  %v16031_v30 = vshll.u32 %v12458_v34, 16  ;;  %v16032_v45 = vshrl.u32 %v12460_v36, 16 }
 0x359   : > { %v12893_v61 = vsel %vm2878_vm7, %v2913_v15, %v2917_v28  ;;  %v16033_v22 = vshll.u32 %v12460_v36, 16  ;;  %v12900_v16 = vsel %vm2878_vm7, %v2917_v28, %v2921_v35  ;;  %v16035_v58 = vshrl.u32 %v12472_v55, 16 }
 0x35a   : > { %v2928_v17 = vrot.slane %v16031_v30, 5  ;;  %v2925_v43 = vor.u32 %v2924_v24, %v2923_v7  ;;  %v2931_v8 = vrot.slane %v16032_v45, 4  ;;  %16034 = vst [vmem:[#allocation51_spill] sm:$0xff] %v12900_v16  ;;  %v16036_v30 = vshll.u32 %v12681_v53, 16  ;;  %v12946_v16 = vld [vmem:[#allocation13 + $0x4] sm:$0x3] }
 0x35b   : > { %v2932_v14 = vrot.slane %v16033_v22, 5  ;;  %v2935_v48 = vrot.slane %v16035_v58, 4  ;;  %v16037_v15 = vrot.slane %v12724_v29, 4  ;;  %v16039_v22 = vshll.u32 %v12472_v55, 16 }
 0x35c   : > { %v2929_v47 = vor.u32 %v2928_v17, %v2927_v0  ;;  %v3174_v59 = vrot.slane %v16036_v30, 5  ;;  %v12912_v24 = vsel %vm2878_vm7, %v2921_v35, %v2925_v43  ;;  %v12919_v0 = vsel %vm1504_vm3, %v2463_v11, %v2465_v39 }
 0x35d   : > { %v12909_v7 = vsel %vm1504_vm3, %v16037_v15, %v2463_v11  ;;  %16038 = vst [vmem:[#allocation52_spill] sm:$0xff] %v12912_v24  ;;  %v2933_v45 = vor.u32 %v2932_v14, %v2931_v8  ;;  %v2936_v28 = vrot.slane %v16039_v22, 5  ;;  %v16041_v29 = vshrl.u32 %v12485_v32, 16 }
 0x35e   : > { %9549 = vmatmul.mubr.msk.bf16.gmra.mrb[28].mxu1 %vm707_vm1, %v12909_v7  ;;  %v12922_v17 = vsel %vm2878_vm7, %v2925_v43, %v2929_v47  ;;  %v16042_v30 = vshll.u32 %v12485_v32, 16  ;;  %v3005_v14 = vsel %vm2063_vm5, %v12609_v40, 0  ;;  %v16043_v15 = vshrl.u32 %v12521_v25, 16 }
 0x35f   : > { %16040 = vst [vmem:[#allocation53_spill] sm:$0xff] %v12922_v17  ;;  %v2939_v58 = vrot.slane %v16041_v29, 4  ;;  %9552 = vmatprep.mubr.msk.bf16.mxu1 %vm707_vm1, %v12919_v0  ;;  %v12933_v8 = vsel %vm2878_vm7, %v2929_v47, %v2933_v45  ;;  %v2937_v11 = vor.u32 %v2936_v28, %v2935_v48  ;;  %v2467_v22 = vrot.slane %v12474_v56, 4 }
 0x360   : > { %v2940_v35 = vrot.slane %v16042_v30, 5  ;;  %v2943_v43 = vrot.slane %v16043_v15, 4  ;;  %v16044_v29 = vshll.u32 %v12521_v25, 16  ;;  %v3175_v24 = vor.u32 %v3174_v59, %v12784_v27 }
 0x361   : > { %v2245_v40 = vsel %vm1862_vm6, %v12744_v18, %v12552_v5  ;;  %v12949_v47 = vsel %vm2878_vm7, %v2933_v45, %v2937_v11  ;;  %v16045_v48 = vshrl.u32 %v12658_v38, 16  ;;  %v16046_v56 = vshll.u32 %v12658_v38, 16 }
 0x362   : > { %v12938_v17 = vor.u32 %v2940_v35, %v2939_v58  ;;  %v2944_v30 = vrot.slane %v16044_v29, 5  ;;  %v12955_v35 = vld [vmem:[#allocation2 + $0x90] sm:$0xf]  ;;  %9503 = vmatmul.mubr.msk.bf16.vlgmr.msra.gmra.mrb[0].mxu0 %vm707_vm1, %v2245_v40  ;;  %v2469_v25 = vrot.slane %v12458_v34, 4 }
 0x363   : > { %v3176_v28 = vrot.slane %v16045_v48, 4  ;;  %v3177_v58 = vrot.slane %v16046_v56, 5  ;;  %9603 = vmatpush3.bf16.msra.mxu0 %v3005_v14  ;;  %9506 = vmatprep.mubr.msk.bf16.mxu0 %vm707_vm1, %v12600_v9  ;;  %v3526_v34 = vshrl.u32 %v12955_v35, 16  ;;  %v3529_v45 = vshll.u32 %v12955_v35, 16 }
 0x364   : > { %v12961_v18 = vsel %vm2878_vm7, %v2937_v11, %v12938_v17  ;;  %v12963_v5 = vor.u32 %v2944_v30, %v2943_v43  ;;  %10514 = vmatprep.subr.msk.bf16.mxu0 %vm2063_vm5, %v12946_v16  ;;  %v12977_v11 = vsel %vm1504_vm3, %v2465_v39, %v2467_v22  ;;  %v12989_v15 = vsel %vm1504_vm3, %v2467_v22, %v2469_v25 }
 0x365   : > { %v3178_v27 = vor.u32 %v3177_v58, %v3176_v28  ;;  %v2471_v43 = vrot.slane %v12460_v36, 4  ;;  %v2473_v39 = vrot.slane %v12472_v55, 4  ;;  %v3528_v29 = vrot.slane %v3526_v34, 3  ;;  %v13010_v55 = vld [vmem:[#allocation2 + $0x10] sm:$0xf0] }
 0x366   : > { %v12972_v59 = vsel %vm2878_vm7, %v12938_v17, %v12963_v5  ;;  %9553 = vmatmul.mubr.msk.bf16.gmra.mrb[32].mxu1 %vm707_vm1, %v12977_v11  ;;  %v12996_v30 = vrot.slane %v12485_v32, 4  ;;  %v4082_v34 = vshll.u32 %v13010_v55, 16 }
 0x367   : > { %v12980_v14 = vsel %vm2878_vm7, %v3175_v24, %v3178_v27  ;;  %v12984_v9 = vsel %vm2878_vm7, %v3178_v27, %v12816_v1  ;;  %9556 = vmatprep.mubr.msk.bf16.mxu1 %vm707_vm1, %v12989_v15  ;;  %v3531_v24 = vrot.slane %v3529_v45, 4  ;;  %v13000_v1 = vld [vmem:[#allocation2 + $0x88] sm:$0xff]  ;;  %v13005_v22 = vsel %vm1504_vm3, %v2469_v25, %v2471_v43 }
 0x368   : > { %v13008_v36 = vsel %vm1504_vm3, %v2471_v43, %v2473_v39  ;;  %v13014_v32 = vsel %vm1504_vm3, %v2473_v39, %v12996_v30  ;;  %v13019_v48 = vsel %vm1504_vm3, %v12996_v30, %v12722_v62  ;;  %v3517_v28 = vshrl.u32 %v13000_v1, 16 }
 0x369   : > { %v3532_v40 = vor.u32 %v3531_v24, %v3528_v29  ;;  %v3520_v56 = vshll.u32 %v13000_v1, 16  ;;  %v4079_v25 = vshrl.u32 %v13010_v55, 16  ;;  %v4084_v39 = vrot.slane %v4082_v34, 5 }
 0x36a   : > { %9507 = vmatmul.mubr.msk.bf16.gmra.mrb[4].mxu0 %vm707_vm1, %v12615_v23  ;;  %v3519_v58 = vrot.slane %v3517_v28, 3 }
 0x36b   : > { %9510 = vmatprep.mubr.msk.bf16.mxu0 %vm707_vm1, %v12651_v4  ;;  %v3522_v27 = vrot.slane %v3520_v56, 4  ;;  %v4081_v45 = vrot.slane %v4079_v25, 4 }
 0x36d   : > { %v3523_v43 = vor.u32 %v3522_v27, %v3519_v58  ;;  %v4085_v4 = vor.u32 %v4084_v39, %v4081_v45  ;;  %v4142_v58 = vrot.slane %v3517_v28, 4  ;;  %v4143_v27 = vrot.slane %v3520_v56, 5  ;;  %v1849_v28 = vld [vmem:[#allocation2 + $0x80] sm:$0xf] }
 0x36e   : > { %9557 = vmatmul.mubr.msk.bf16.gmra.mrb[36].mxu1 %vm707_vm1, %v13005_v22  ;;  %v2247_v56 = vshrl.u32 %v1849_v28, 16  ;;  %v3200_v39 = vsel %vm2063_vm5, %v12946_v16, 0  ;;  %v16051_v16 = vld [vmem:[#allocation50_spill] sm:$0xff] }
 0x36f   : > { %9560 = vmatprep.mubr.msk.bf16.mxu1 %vm707_vm1, %v13008_v36  ;;  %v13035_v29 = vsel %vm1862_vm6, %v12604_v41, %v3523_v43  ;;  %v13038_v24 = vsel %vm1862_vm6, %v3523_v43, %v3532_v40  ;;  %v13044_v25 = vsel %vm2878_vm7, %v4085_v4, %v12807_v2  ;;  %v2696_v41 = vrot.slane %v12681_v53, 4 }
 0x370   : > { %v2697_v40 = vrot.slane %v12658_v38, 4  ;;  %v13052_v34 = vor.u32 %v4143_v27, %v4142_v58  ;;  %v3880_v38 = vsel %vm2063_vm5, %v12761_v37, 0  ;;  %v2250_v37 = vshll.u32 %v1849_v28, 16  ;;  %v3381_v58 = vld [vmem:[#allocation13 + $0xc] sm:$0x3]  ;;  %v16048_v27 = vld [vmem:[#allocation47_spill] sm:$0xff] }
 0x372   : > { %9511 = vmatmul.mubr.msk.bf16.gmra.mrb[8].mxu0 %vm707_vm1, %v12687_v21  ;;  %v13059_v4 = vsel %vm2878_vm7, %v12963_v5, %v13052_v34  ;;  %v2698_v2 = vsel %vm1504_vm3, %v2696_v41, %v2697_v40  ;;  %v2699_v53 = vsel %vm1504_vm3, %v2697_v40, %v12639_v51  ;;  %v2249_v51 = vrot.slane %v2247_v56, 3 }
 0x373   : > { %9514 = vmatprep.mubr.msk.bf16.mxu0 %vm707_vm1, %v12738_v49  ;;  %v2700_v41 = vrot.slane %v1849_v28, 4  ;;  %v3798_v40 = vrot.slane %v13010_v55, 4  ;;  %v16055_v28 = vld [vmem:[#allocation53_spill] sm:$0xff] }
 0x376   : > { %9561 = vmatmul.mubr.msk.bf16.gmra.mrb[40].mxu1 %vm707_vm1, %v13014_v32 }
 0x377   : > { %9564 = vmatprep.mubr.msk.bf16.mxu1 %vm707_vm1, %v13019_v48 }
 0x37a   : > { %9515 = vmatmul.mubr.msk.bf16.gmra.mrb[12].mxu0 %vm707_vm1, %v12775_v60 }
 0x37b   : > { %9518 = vmatprep.mubr.msk.bf16.mxu0 %vm707_vm1, %v12798_v52 }
 0x37e   : > { %9565 = vmatmul.mubr.msk.bf16.gmra.mrb[44].mxu1 %vm707_vm1, %v12766_v46  ;;  %v16047_v46 = vmov 0.0  }
 0x37f   : > { %9570 = vmatprep.mubr.msk.bf16.mxu1 %vm707_vm1, %v2698_v2  ;;  %v16052_v2 = vld [vmem:[#allocation51_spill] sm:$0xff] }
 0x382   : > { %9519 = vmatmul.mubr.msk.bf16.gmra.mrb[16].mxu0 %vm707_vm1, %v12810_v3 }
 0x383   : > { %9522 = vmatprep.mubr.msk.bf16.mxu0 %vm707_vm1, %v12840_v50 }
 0x386   : > { %9571 = vmatmul.mubr.msk.bf16.vlgmr.msra.gmra.mrb[16].mxu1 %vm707_vm1, %v2699_v53  ;;  %v16053_v53 = vld [vmem:[#allocation46_spill] sm:$0xff] }
 0x387   : > { %9574 = vmatprep.mubr.msk.bf16.mxu1 %vm707_vm1, %v12696_v26  ;;  %9705 = vmatpush3.bf16.msra.mxu1 %v3880_v38  ;;  %v2252_v26 = vrot.slane %v2250_v37, 4  ;;  %v2701_v38 = vsel %vm1504_vm3, %v12996_v30, %v2700_v41  ;;  %v3800_v56 = vsel %vm1504_vm3, %v3798_v40, %v16053_v53  ;;  %v16054_v37 = vld [vmem:[#allocation52_spill] sm:$0xff]  ;;  %v2875_v30 = vld [vmem:[#allocation2 + $0x88] sm:$0x1f] }
 0x388   : > { %9772 = vmatprep.subr.mxu1 %v16047_v46  ;;  %v2948_v55 = vshrl.u32 %v2875_v30, 16 }
 0x389   : > { %v2253_v45 = vor.u32 %v2252_v26, %v2249_v51  ;;  %v2951_v51 = vshll.u32 %v2875_v30, 16 }
 0x38a   : > { %9523 = vmatmul.mubr.msk.bf16.gmra.mrb[20].mxu0 %vm707_vm1, %v12518_v19  ;;  %v2950_v26 = vrot.slane %v2948_v55, 4 }
 0x38b   : > { %9526 = vmatprep.mubr.msk.bf16.mxu0 %vm707_vm1, %v12512_v13  ;;  %v2254_v43 = vsel %vm1862_vm6, %v12560_v10, %v2253_v45  ;;  %v16049_v10 = vld [vmem:[#allocation48_spill] sm:$0xff] }
 0x38e   : > { %9575 = vmatmul.mubr.msk.bf16.gmra.mrb[20].mxu1 %vm707_vm1, %v12717_v42 }
 0x38f   : > { %9578 = vmatprep.mubr.msk.bf16.mxu1 %vm707_vm1, %v12771_v6 }
 0x392   : > { %9527 = vmatmul.mubr.msk.bf16.gmra.mrb[24].mxu0 %vm707_vm1, %v12526_v31 }
 0x393   : > { %9530 = vmatprep.mubr.msk.bf16.mxu0 %vm707_vm1, %v12583_v44 }
 0x396   : > { %9579 = vmatmul.mubr.msk.bf16.gmra.mrb[24].mxu1 %vm707_vm1, %v12782_v33 }
 0x397   : > { %9582 = vmatprep.mubr.msk.bf16.mxu1 %vm707_vm1, %v12791_v20 }
 0x39a   : > { %9531 = vmatmul.mubr.msk.bf16.gmra.mrb[28].mxu0 %vm707_vm1, %v2254_v43 }
 0x39b   : > { %9604 = vmatprep.mubr.msk.bf16.mxu0 %vm707_vm1, %v12844_v57  ;;  %v16050_v57 = vld [vmem:[#allocation49_spill] sm:$0xff] }
 0x39e   : > { %9583 = vmatmul.mubr.msk.bf16.gmra.mrb[28].mxu1 %vm707_vm1, %v12803_v12 }
 0x39f   : > { %9586 = vmatprep.mubr.msk.bf16.mxu1 %vm707_vm1, %v12909_v7 }
 0x3a2   : > { %9605 = vmatmul.mubr.msk.bf16.vlgmr.msra.gmra.mrb[32].mxu0 %vm707_vm1, %v16048_v27 }
 0x3a3   : > { %9637 = vmatpush3.bf16.msra.mxu0 %v3200_v39  ;;  %9608 = vmatprep.mubr.msk.bf16.mxu0 %vm707_vm1, %v16049_v10 }
 0x3a4   : > { %10515 = vmatprep.subr.msk.bf16.mxu0 %vm2063_vm5, %v3381_v58 }
 0x3a6   : > { %9587 = vmatmul.mubr.msk.bf16.gmra.mrb[32].mxu1 %vm707_vm1, %v12919_v0 }
 0x3a7   : > { %9590 = vmatprep.mubr.msk.bf16.mxu1 %vm707_vm1, %v12977_v11 }
 0x3aa   : > { %9609 = vmatmul.mubr.msk.bf16.gmra.mrb[36].mxu0 %vm707_vm1, %v16050_v57 }
 0x3ab   : > { %9612 = vmatprep.mubr.msk.bf16.mxu0 %vm707_vm1, %v12864_v63 }
 0x3ae   : > { %9591 = vmatmul.mubr.msk.bf16.gmra.mrb[36].mxu1 %vm707_vm1, %v12989_v15 }
 0x3af   : > { %9594 = vmatprep.mubr.msk.bf16.mxu1 %vm707_vm1, %v13005_v22 }
 0x3b2   : > { %9613 = vmatmul.mubr.msk.bf16.gmra.mrb[40].mxu0 %vm707_vm1, %v16051_v16 }
 0x3b3   : > { %9616 = vmatprep.mubr.msk.bf16.mxu0 %vm707_vm1, %v12887_v54 }
 0x3b6   : > { %9595 = vmatmul.mubr.msk.bf16.gmra.mrb[40].mxu1 %vm707_vm1, %v13008_v36 }
 0x3b7   : > { %9598 = vmatprep.mubr.msk.bf16.mxu1 %vm707_vm1, %v13014_v32 }
 0x3ba   : > { %9617 = vmatmul.mubr.msk.bf16.gmra.mrb[44].mxu0 %vm707_vm1, %v12893_v61 }
 0x3bb   : > { %9620 = vmatprep.mubr.msk.bf16.mxu0 %vm707_vm1, %v16052_v2 }
 0x3be   : > { %9599 = vmatmul.mubr.msk.bf16.gmra.mrb[44].mxu1 %vm707_vm1, %v2701_v38 }
 0x3bf   : > { %9706 = vmatprep.mubr.msk.bf16.mxu1 %vm707_vm1, %v3800_v56 }
 0x3c2   : > { %9621 = vmatmul.mubr.msk.bf16.gmra.mrb[48].mxu0 %vm707_vm1, %v16054_v37 }
 0x3c3   : > { %9624 = vmatprep.mubr.msk.bf16.mxu0 %vm707_vm1, %v16055_v28 }
 0x3c6   : > { %9707 = vmatmul.mubr.msk.bf16.vlgmr.msra.gmra.mrb[16].mxu1 %vm707_vm1, %v12717_v42  ;;  %v2953_v42 = vrot.slane %v2951_v51, 5 }
 0x3c7   : > { %9710 = vmatprep.mubr.msk.bf16.mxu1 %vm707_vm1, %v12771_v6 }
 0x3c8   : > { %v2954_v6 = vor.u32 %v2953_v42, %v2950_v26 }
 0x3ca   : > { %9625 = vmatmul.mubr.msk.bf16.gmra.mrb[52].mxu0 %vm707_vm1, %v12933_v8 }
 0x3cb   : > { %9628 = vmatprep.mubr.msk.bf16.mxu0 %vm707_vm1, %v12949_v47 }
 0x3ce   : > { %9711 = vmatmul.mubr.msk.bf16.gmra.mrb[20].mxu1 %vm707_vm1, %v12782_v33  ;;  %v2955_v33 = vsel %vm2878_vm7, %v12963_v5, %v2954_v6  ;;  %v3829_v5 = vrot.slane %v12955_v35, 4  ;;  %v16056_v6 = vld [vmem:[#allocation43_spill] sm:$0xff] }
 0x3cf   : > { %9714 = vmatprep.mubr.msk.bf16.mxu1 %vm707_vm1, %v12791_v20  ;;  %v3583_v20 = vsel %vm2063_vm5, %v3381_v58, 0 }
 0x3d2   : > { %9629 = vmatmul.mubr.msk.bf16.gmra.mrb[56].mxu0 %vm707_vm1, %v12961_v18 }
 0x3d3   : > { %9632 = vmatprep.mubr.msk.bf16.mxu0 %vm707_vm1, %v12972_v59 }
 0x3d6   : > { %9715 = vmatmul.mubr.msk.bf16.gmra.mrb[24].mxu1 %vm707_vm1, %v12803_v12  ;;  %v4077_v12 = vld [vmem:[#allocation13 + $0x10] sm:$0x3] }
 0x3d7   : > { %9718 = vmatprep.mubr.msk.bf16.mxu1 %vm707_vm1, %v12909_v7  ;;  %v3827_v7 = vrot.slane %v13000_v1, 4 }
 0x3da   : > { %9633 = vmatmul.mubr.msk.bf16.gmra.mrb[60].mxu0 %vm707_vm1, %v2955_v33 }
 0x3db   : > { %9638 = vmatprep.mubr.msk.bf16.mxu0 %vm707_vm1, %v12980_v14 }
 0x3de   : > { %9719 = vmatmul.mubr.msk.bf16.gmra.mrb[28].mxu1 %vm707_vm1, %v12919_v0  ;;  %v3828_v0 = vsel %vm1504_vm3, %v12722_v62, %v3827_v7 }
 0x3df   : > { %9722 = vmatprep.mubr.msk.bf16.mxu1 %vm707_vm1, %v12977_v11  ;;  %v3830_v11 = vsel %vm1504_vm3, %v3827_v7, %v3829_v5  ;;  %v16057_v7 = vld [vmem:[#allocation45_spill] sm:$0xff] }
 0x3e2   : > { %9639 = vmatmul.mubr.msk.bf16.vlgmr.msra.gmra.mrb[32].mxu0 %vm707_vm1, %v12984_v9 }
 0x3e3   : > { %9671 = vmatpush3.bf16.msra.mxu0 %v3583_v20  ;;  %9642 = vmatprep.mubr.msk.bf16.mxu0 %vm707_vm1, %v16048_v27  ;;  %v4204_v20 = vsel %vm2063_vm5, %v4077_v12, 0 }
 0x3e4   : > { %10517 = vmatprep.subr.msk.bf16.mxu0 %vm2063_vm5, %v4077_v12 }
 0x3e6   : > { %9723 = vmatmul.mubr.msk.bf16.gmra.mrb[32].mxu1 %vm707_vm1, %v12989_v15 }
 0x3e7   : > { %9726 = vmatprep.mubr.msk.bf16.mxu1 %vm707_vm1, %v13005_v22  ;;  %v1854_v22 = vld [vmem:[#allocation2 + $0x80] sm:$0x1f] }
 0x3e8   : > { %v3182_v45 = vshrl.u32 %v1854_v22, 16  ;;  %v3185_v43 = vshll.u32 %v1854_v22, 16 }
 0x3ea   : > { %9643 = vmatmul.mubr.msk.bf16.gmra.mrb[36].mxu0 %vm707_vm1, %v16049_v10  ;;  %v3184_v27 = vrot.slane %v3182_v45, 4  ;;  %v3187_v41 = vrot.slane %v3185_v43, 5 }
 0x3eb   : > { %9646 = vmatprep.mubr.msk.bf16.mxu0 %vm707_vm1, %v16050_v57 }
 0x3ec   : > { %v3188_v51 = vor.u32 %v3187_v41, %v3184_v27  ;;  %v16060_v41 = vld [vmem:[#allocation41_spill] sm:$0xff] }
 0x3ee   : > { %9727 = vmatmul.mubr.msk.bf16.gmra.mrb[36].mxu1 %vm707_vm1, %v13008_v36  ;;  %v3189_v42 = vsel %vm2878_vm7, %v12938_v17, %v3188_v51  ;;  %v758_v51 = vand.u32 15, %v16060_v41 }
 0x3ef   : > { %9730 = vmatprep.mubr.msk.bf16.mxu1 %vm707_vm1, %v13014_v32  ;;  %v3363_v32 = vld [vmem:[#allocation2 + $0x10] sm:$0xf8] }
 0x3f0   : > { %v3383_v39 = vshrl.u32 %v3363_v32, 16  ;;  %v3386_v58 = vshll.u32 %v3363_v32, 16  ;;  %vm1138_vm11 = vcmp.ge.s32.totalorder %v758_v51, 1  ;;  %v730_v51 = vadd.s32 64, %v16060_v41 }
 0x3f2   : > { %9647 = vmatmul.mubr.msk.bf16.gmra.mrb[40].mxu0 %vm707_vm1, %v12864_v63  ;;  %v3385_v38 = vrot.slane %v3383_v39, 3  ;;  %v3388_v53 = vrot.slane %v3386_v58, 4 }
 0x3f3   : > { %9650 = vmatprep.mubr.msk.bf16.mxu0 %vm707_vm1, %v16051_v16 }
 0x3f4   : > { %v3389_v26 = vor.u32 %v3388_v53, %v3385_v38  ;;  %v724_v38 = vadd.s32 16, %v16060_v41 }
 0x3f6   : > { %9731 = vmatmul.mubr.msk.bf16.gmra.mrb[40].mxu1 %vm707_vm1, %v13019_v48  ;;  %v3398_v33 = vsel %vm1862_vm6, %v3389_v26, %v16056_v6  ;;  %v772_v53 = vand.u32 15, %v724_v38  ;;  %v728_v26 = vadd.s32 48, %v16060_v41 }
 0x3f7   : > { %9734 = vmatprep.mubr.msk.bf16.mxu1 %vm707_vm1, %v3828_v0 }
 0x3f8   : > { %vm1140_vm10 = vcmp.ge.s32.totalorder %v772_v53, 1 }
 0x3f9   : > { %v13383_v6 = vsel %vm1140_vm10, 1.0, %v16047_v46 }
 0x3fa   : > { %9651 = vmatmul.mubr.msk.bf16.gmra.mrb[44].mxu0 %vm707_vm1, %v12887_v54  ;;  %16061 = vst [vmem:[#allocation47_spill] sm:$0xff] %v13383_v6 }
 0x3fb   : > { %9654 = vmatprep.mubr.msk.bf16.mxu0 %vm707_vm1, %v12893_v61 }
 0x3fc   : > { %v13210_v14 = vpop.f32.mrb[4].mxu1 }
 0x3fd   : > { %v13214_v62 = vpop.f32.mrb[5].mxu1 }
 0x3fe   : > { %9735 = vmatmul.mubr.msk.bf16.gmra.mrb[44].mxu1 %vm707_vm1, %v3830_v11  ;;  %v13218_v35 = vpop.f32.mrb[6].mxu1 }
 0x3ff   : > { %9774 = vmatprep.mubr.msk.f32.mxu1 %vm11521_vm0, %v16047_v46  ;;  %v13220_v9 = vpop.f32.mrb[7].mxu1 }
 0x402   : > { %9655 = vmatmul.mubr.msk.bf16.gmra.mrb[48].mxu0 %vm707_vm1, %v16052_v2 }
 0x403   : > { %9658 = vmatprep.mubr.msk.bf16.mxu0 %vm707_vm1, %v16054_v37 }
 0x404   : > { %v13222_v15 = vpop.f32.mrb[8].mxu1 }
 0x405   : > { %v13226_v1 = vpop.f32.mrb[9].mxu1 }
 0x406   : > { %v13230_v36 = vpop.f32.mrb[10].mxu1 }
 0x407   : > { %v13232_v48 = vpop.f32.mrb[11].mxu1 }
 0x40a   : > { %9659 = vmatmul.mubr.msk.bf16.gmra.mrb[52].mxu0 %vm707_vm1, %v16055_v28 }
 0x40b   : > { %9662 = vmatprep.mubr.msk.bf16.mxu0 %vm707_vm1, %v12933_v8 }
 0x40c   : > { %v13234_v40 = vpop.f32.mrb[12].mxu1 }
 0x40d   : > { %v13238_v56 = vpop.f32.mrb[13].mxu1 }
 0x40e   : > { %v13242_v30 = vpop.f32.mrb[14].mxu1 }
 0x40f   : > { %v13244_v55 = vpop.f32.mrb[15].mxu1 }
 0x412   : > { %9663 = vmatmul.mubr.msk.bf16.gmra.mrb[56].mxu0 %vm707_vm1, %v12949_v47 }
 0x413   : > { %9666 = vmatprep.mubr.msk.bf16.mxu0 %vm707_vm1, %v12961_v18 }
 0x41a   : > { %9667 = vmatmul.mubr.msk.bf16.gmra.mrb[60].mxu0 %vm707_vm1, %v3189_v42  ;;  %v726_v42 = vadd.s32 32, %v16060_v41 }
 0x41b   : > { %9672 = vmatprep.mubr.msk.bf16.mxu0 %vm707_vm1, %v3398_v33  ;;  %v13386_v33 = vsel %vm1138_vm11, 1.0, %v16047_v46 }
 0x41c   : > { %16062 = vst [vmem:[#allocation48_spill] sm:$0xff] %v13386_v33 }
 0x422   : > { %9673 = vmatmul.mubr.msk.bf16.vlgmr.msra.gmra.mrb[0].mxu0 %vm707_vm1, %v12615_v23 }
 0x423   : > { %9739 = vmatpush3.bf16.msra.mxu0 %v4204_v20  ;;  %9676 = vmatprep.mubr.msk.bf16.mxu0 %vm707_vm1, %v16057_v7  ;;  %v800_v20 = vand.u32 15, %v728_v26 }
 0x425   : > { %vm1144_vm12 = vcmp.ge.s32.totalorder %v800_v20, 1  ;;  %v814_v20 = vand.u32 15, %v730_v51  ;;  %v734_v51 = vadd.s32 96, %v16060_v41 }
 0x427   : > { %vm1146_vm15 = vcmp.ge.s32.totalorder %v814_v20, 1 }
 0x42a   : > { %9677 = vmatmul.mubr.msk.bf16.gmra.mrb[4].mxu0 %vm707_vm1, %v12687_v21 }
 0x42b   : > { %9680 = vmatprep.mubr.msk.bf16.mxu0 %vm707_vm1, %v12738_v49  ;;  %v16058_v49 = vld [vmem:[#allocation44_spill] sm:$0xff] }
 0x432   : > { %9681 = vmatmul.mubr.msk.bf16.gmra.mrb[8].mxu0 %vm707_vm1, %v12775_v60 }
 0x433   : > { %9684 = vmatprep.mubr.msk.bf16.mxu0 %vm707_vm1, %v12798_v52 }
 0x43a   : > { %9685 = vmatmul.mubr.msk.bf16.gmra.mrb[12].mxu0 %vm707_vm1, %v12810_v3 }
 0x43b   : > { %9688 = vmatprep.mubr.msk.bf16.mxu0 %vm707_vm1, %v12840_v50 }
 0x442   : > { %9689 = vmatmul.mubr.msk.bf16.gmra.mrb[16].mxu0 %vm707_vm1, %v12518_v19 }
 0x443   : > { %9692 = vmatprep.mubr.msk.bf16.mxu0 %vm707_vm1, %v12512_v13  ;;  %v4075_v13 = vld [vmem:[#allocation2 + $0x90] sm:$0x1f] }
 0x444   : > { %v4147_v19 = vshrl.u32 %v4075_v13, 16 }
 0x44a   : > { %9693 = vmatmul.mubr.msk.bf16.gmra.mrb[20].mxu0 %vm707_vm1, %v12526_v31  ;;  %v4150_v31 = vshll.u32 %v4075_v13, 16 }
 0x44b   : > { %9696 = vmatprep.mubr.msk.bf16.mxu0 %vm707_vm1, %v12583_v44  ;;  %v4149_v44 = vrot.slane %v4147_v19, 4 }
 0x44c   : > { %v4152_v23 = vrot.slane %v4150_v31, 5 }
 0x44e   : > { %v4153_v50 = vor.u32 %v4152_v23, %v4149_v44 }
 0x450   : > { %v4154_v21 = vsel %vm2878_vm7, %v13052_v34, %v4153_v50 }
 0x452   : > { %9697 = vmatmul.mubr.msk.bf16.gmra.mrb[24].mxu0 %vm707_vm1, %v16058_v49  ;;  %v786_v49 = vand.u32 15, %v726_v42  ;;  %v13401_v42 = vsel %vm1144_vm12, 1.0, %v16047_v46 }
 0x453   : > { %9700 = vmatprep.mubr.msk.bf16.mxu0 %vm707_vm1, %v13035_v29  ;;  %16063 = vst [vmem:[#allocation49_spill] sm:$0xff] %v13401_v42 }
 0x454   : > { %vm1142_vm13 = vcmp.ge.s32.totalorder %v786_v49, 1 }
 0x45a   : > { %9701 = vmatmul.mubr.msk.bf16.gmra.mrb[28].mxu0 %vm707_vm1, %v13038_v24 }
 0x45b   : > { %9740 = vmatprep.mubr.msk.bf16.mxu0 %vm707_vm1, %v13044_v25 }
 0x462   : > { %9741 = vmatmul.mubr.msk.bf16.vlgmr.msra.gmra.mrb[32].mxu0 %vm707_vm1, %v16049_v10  ;;  %v16059_v10 = vmov 0  }
 0x463   : > { %9744 = vmatprep.mubr.msk.bf16.mxu0 %vm707_vm1, %v16050_v57  ;;  %715 = vst.msk [vmem:[#allocation3] sm:$0xff] %vm714_vm8, %v16059_v10  ;;  %720 = vst.msk [vmem:[#allocation3 + $0x90] sm:$0xff] %vm714_vm8, %v16059_v10 }
 0x464   : > { %719 = vst.msk [vmem:[#allocation3 + $0x88] sm:$0xf0] %vm718_vm9, %v16059_v10 }
 0x46a   : > { %9745 = vmatmul.mubr.msk.bf16.gmra.mrb[36].mxu0 %vm707_vm1, %v12864_v63 }
 0x46b   : > { %9748 = vmatprep.mubr.msk.bf16.mxu0 %vm707_vm1, %v16051_v16 }
 0x472   : > { %9749 = vmatmul.mubr.msk.bf16.gmra.mrb[40].mxu0 %vm707_vm1, %v12887_v54 }
 0x473   : > { %9752 = vmatprep.mubr.msk.bf16.mxu0 %vm707_vm1, %v12893_v61 }
 0x47a   : > { %9753 = vmatmul.mubr.msk.bf16.gmra.mrb[44].mxu0 %vm707_vm1, %v16052_v2 }
 0x47b   : > { %9756 = vmatprep.mubr.msk.bf16.mxu0 %vm707_vm1, %v16054_v37 }
 0x482   : > { %9757 = vmatmul.mubr.msk.bf16.gmra.mrb[48].mxu0 %vm707_vm1, %v16055_v28 }
 0x483   : > { %9760 = vmatprep.mubr.msk.bf16.mxu0 %vm707_vm1, %v12933_v8 }
 0x48a   : > { %9761 = vmatmul.mubr.msk.bf16.gmra.mrb[52].mxu0 %vm707_vm1, %v12949_v47 }
 0x48b   : > { %9764 = vmatprep.mubr.msk.bf16.mxu0 %vm707_vm1, %v12961_v18 }
 0x492   : > { %9765 = vmatmul.mubr.msk.bf16.gmra.mrb[56].mxu0 %vm707_vm1, %v12972_v59 }
 0x493   : > { %9768 = vmatprep.mubr.msk.bf16.mxu0 %vm707_vm1, %v13059_v4 }
 0x499   : > { %v9708_v3 = vpop.f32.mrb[16].mxu1 }
 0x49a   : > { %9769 = vmatmul.mubr.msk.bf16.gmra.mrb[60].mxu0 %vm707_vm1, %v4154_v21  ;;  %v3916_v60 = vpop.f32.mrb[17].mxu1  ;;  %v732_v21 = vadd.s32 80, %v16060_v41 }
 0x49b   : > { %v9709_v52 = vpop.f32.mrb[18].mxu1 }
 0x49c   : > { %v3919_v63 = vpop.f32.mrb[19].mxu1 }
 0x4a1   : > { %v13316_v54 = vpop.f32.mrb[20].mxu1 }
 0x4a2   : > { %v13318_v61 = vpop.f32.mrb[21].mxu1 }
 0x4a3   : > { %v13320_v17 = vpop.f32.mrb[22].mxu1 }
 0x4a4   : > { %v13322_v8 = vpop.f32.mrb[23].mxu1 }
 0x4a9   : > { %v13324_v47 = vpop.f32.mrb[24].mxu1 }
 0x4aa   : > { %v13326_v18 = vpop.f32.mrb[25].mxu1 }
 0x4ab   : > { %v13328_v59 = vpop.f32.mrb[26].mxu1 }
 0x4ac   : > { %v13330_v29 = vpop.f32.mrb[27].mxu1 }
 0x4b1   : > { %v13332_v24 = vpop.f32.mrb[28].mxu1 }
 0x4b2   : > { %v13334_v25 = vpop.f32.mrb[29].mxu1 }
 0x4b3   : > { %v13336_v34 = vpop.f32.mrb[30].mxu1 }
 0x4b4   : > { %v13338_v4 = vpop.f32.mrb[31].mxu1 }
 0x4b9   : > { %v13344_v57 = vpop.f32.mrb[32].mxu1 }
 0x4ba   : > { %v13346_v16 = vpop.f32.mrb[33].mxu1 }
 0x4bb   : > { %v13348_v2 = vpop.f32.mrb[34].mxu1 }
 0x4bc   : > { %v13350_v37 = vpop.f32.mrb[35].mxu1 }
 0x4c1   : > { %v13352_v28 = vpop.f32.mrb[36].mxu1 }
 0x4c2   : > { %v13354_v12 = vpop.f32.mrb[37].mxu1 }
 0x4c3   : > { %v13356_v0 = vpop.f32.mrb[38].mxu1 }
 0x4c4   : > { %v13358_v5 = vpop.f32.mrb[39].mxu1 }
 0x4c9   : > { %v13360_v11 = vpop.f32.mrb[40].mxu1 }
 0x4ca   : > { %v13362_v22 = vpop.f32.mrb[41].mxu1 }
 0x4cb   : > { %v13364_v32 = vpop.f32.mrb[42].mxu1 }
 0x4cc   : > { %v13366_v45 = vpop.f32.mrb[43].mxu1 }
 0x4d1   : > { %v13368_v43 = vpop.f32.mrb[44].mxu1 }
 0x4d2   : > { %v13370_v39 = vpop.f32.mrb[45].mxu1 }
 0x4d3   : > { %v13372_v58 = vpop.f32.mrb[46].mxu1 }
 0x4d4   : > { %v13374_v27 = vpop.f32.mrb[47].mxu1 }
 0x4f5   : > { %v9674_v7 = vpop.f32.mrb[0].mxu0 }
 0x4f6   : > { %v4401_v13 = vmul.f32 %v9674_v7, %v13383_v6  ;;  %v3619_v19 = vpop.f32.mrb[1].mxu0  ;;  %v13404_v7 = vsel %vm1142_vm13, 1.0, %v16047_v46 }
 0x4f7   : > { %v4399_v31 = vmul.f32 %v13386_v33, %v3619_v19  ;;  %v9675_v44 = vpop.f32.mrb[2].mxu0  ;;  %16064 = vst [vmem:[#allocation50_spill] sm:$0xff] %v13404_v7 }
 0x4f8   : > { %v13390_v23 = vadd.f32 %v9709_v52, %v9675_v44  ;;  %v3622_v50 = vpop.f32.mrb[3].mxu0  ;;  %v13393_v38 = vadd.f32 %v9708_v3, %v4401_v13  ;;  %v828_v52 = vand.u32 15, %v732_v21 }
 0x4f9   : > { %v13395_v53 = vadd.f32 %v3919_v63, %v3622_v50  ;;  %v13398_v26 = vadd.f32 %v4399_v31, %v3916_v60  ;;  %v736_v31 = vadd.s32 112, %v16060_v41 }
 0x4fa   : > { %vm1148_vm14 = vcmp.ge.s32.totalorder %v828_v52, 1 }
 0x4fb   : > { %v856_v52 = vand.u32 15, %v736_v31 }
 0x4fd   : > { %v9678_v19 = vpop.f32.mrb[4].mxu0  ;;  %vm1152_vm2 = vcmp.ge.s32.totalorder %v856_v52, 1 }
 0x4fe   : > { %v4405_v44 = vmul.f32 %v9678_v19, %v13401_v42  ;;  %v3635_v3 = vpop.f32.mrb[5].mxu0 }
 0x4ff   : > { %v4403_v63 = vmul.f32 %v13404_v7, %v3635_v3  ;;  %v9679_v13 = vpop.f32.mrb[6].mxu0  ;;  %v13423_v3 = vsel %vm1148_vm14, 1.0, %v16047_v46  ;;  %v842_v7 = vand.u32 15, %v734_v51  ;;  %v738_v51 = vadd.s32 128, %v16060_v41 }
 0x500   : > { %v13409_v49 = vadd.f32 %v13320_v17, %v9679_v13  ;;  %v3638_v60 = vpop.f32.mrb[7].mxu0  ;;  %v13413_v50 = vadd.f32 %v13316_v54, %v4405_v44  ;;  %16065 = vst [vmem:[#allocation51_spill] sm:$0xff] %v13423_v3  ;;  %v13426_v17 = vsel %vm1146_vm15, 1.0, %v16047_v46 }
 0x501   : > { %v13416_v21 = vadd.f32 %v13322_v8, %v3638_v60  ;;  %v13420_v19 = vadd.f32 %v4403_v63, %v13318_v61  ;;  %16066 = vst [vmem:[#allocation46_spill] sm:$0xff] %v13426_v17  ;;  %v740_v63 = vadd.s32 144, %v16060_v41  ;;  %vm1150_vm4 = vcmp.ge.s32.totalorder %v842_v7, 1 }
 0x503   : > { %v884_v52 = vand.u32 15, %v740_v63 }
 0x505   : > { %v9682_v13 = vpop.f32.mrb[8].mxu0  ;;  %vm1156_vm10 = vcmp.ge.s32.totalorder %v884_v52, 1 }
 0x506   : > { %v4409_v54 = vmul.f32 %v9682_v13, %v13423_v3  ;;  %v3651_v44 = vpop.f32.mrb[9].mxu0 }
 0x507   : > { %v4407_v8 = vmul.f32 %v13426_v17, %v3651_v44  ;;  %v9683_v20 = vpop.f32.mrb[10].mxu0  ;;  %v13445_v44 = vsel %vm1152_vm2, 1.0, %v16047_v46  ;;  %v870_v17 = vand.u32 15, %v738_v51  ;;  %v744_v51 = vadd.s32 176, %v16060_v41 }
 0x508   : > { %v13431_v60 = vadd.f32 %v13328_v59, %v9683_v20  ;;  %v3654_v61 = vpop.f32.mrb[11].mxu0  ;;  %v13435_v42 = vadd.f32 %v13324_v47, %v4409_v54  ;;  %16067 = vst [vmem:[#allocation52_spill] sm:$0xff] %v13445_v44  ;;  %v13448_v59 = vsel %vm1150_vm4, 1.0, %v16047_v46 }
 0x509   : > { %v13438_v31 = vadd.f32 %v13330_v29, %v3654_v61  ;;  %v13442_v13 = vadd.f32 %v4407_v8, %v13326_v18  ;;  %16068 = vst [vmem:[#allocation53_spill] sm:$0xff] %v13448_v59  ;;  %vm1154_vm11 = vcmp.ge.s32.totalorder %v870_v17, 1 }
 0x50d   : > { %v9686_v20 = vpop.f32.mrb[12].mxu0 }
 0x50e   : > { %v4413_v47 = vmul.f32 %v9686_v20, %v13445_v44  ;;  %v3667_v54 = vpop.f32.mrb[13].mxu0  ;;  %v13466_v20 = vsel %vm1156_vm10, 1.0, %v16047_v46 }
 0x50f   : > { %v4411_v29 = vmul.f32 %v13448_v59, %v3667_v54  ;;  %v9687_v7 = vpop.f32.mrb[14].mxu0  ;;  %16069 = vst [vmem:[#allocation43_spill] sm:$0xff] %v13466_v20  ;;  %v13470_v54 = vsel %vm1154_vm11, 1.0, %v16047_v46 }
 0x510   : > { %v13453_v61 = vadd.f32 %v13336_v34, %v9687_v7  ;;  %v3670_v18 = vpop.f32.mrb[15].mxu0  ;;  %v13456_v8 = vadd.f32 %v13332_v24, %v4413_v47  ;;  %v742_v34 = vadd.s32 160, %v16060_v41  ;;  %16070 = vst [vmem:[#allocation45_spill] sm:$0xff] %v13470_v54 }
 0x511   : > { %v13459_v3 = vadd.f32 %v13338_v4, %v3670_v18  ;;  %v13462_v63 = vadd.f32 %v4411_v29, %v13334_v25  ;;  %v912_v4 = vand.u32 15, %v744_v51  ;;  %v748_v51 = vadd.s32 208, %v16060_v41 }
 0x512   : > { %v898_v25 = vand.u32 15, %v742_v34 }
 0x513   : > { %vm1160_vm12 = vcmp.ge.s32.totalorder %v912_v4, 1 }
 0x514   : > { %vm1158_vm13 = vcmp.ge.s32.totalorder %v898_v25, 1  ;;  %v13489_v34 = vsel %vm1160_vm12, 1.0, %v16047_v46  ;;  %vm716_vm12 = vcmask 60416  }
 0x515   : > { %v9690_v52 = vpop.f32.mrb[16].mxu0  ;;  %16071 = vst [vmem:[#allocation44_spill] sm:$0xff] %v13489_v34  ;;  %717 = vst.msk [vmem:[#allocation3 + $0x8] sm:$0xf] %vm716_vm12, %v16059_v10 }
 0x516   : > { %v4417_v24 = vmul.f32 %v9690_v52, %v13466_v20  ;;  %v3683_v47 = vpop.f32.mrb[17].mxu0  ;;  %v746_v52 = vadd.s32 192, %v16060_v41 }
 0x517   : > { %v4415_v17 = vmul.f32 %v13470_v54, %v3683_v47  ;;  %v9691_v7 = vpop.f32.mrb[18].mxu0 }
 0x518   : > { %v13475_v29 = vadd.f32 %v13348_v2, %v9691_v7  ;;  %v3686_v18 = vpop.f32.mrb[19].mxu0  ;;  %v13478_v59 = vadd.f32 %v13344_v57, %v4417_v24  ;;  %v13493_v57 = vsel %vm1158_vm13, 1.0, %v16047_v46  ;;  %v940_v24 = vand.u32 15, %v748_v51 }
 0x519   : > { %v13481_v44 = vadd.f32 %v13350_v37, %v3686_v18  ;;  %v13484_v33 = vadd.f32 %v4415_v17, %v13346_v16  ;;  %16072 = vst [vmem:[#allocation41_spill] sm:$0xff] %v13493_v57  ;;  %v926_v4 = vand.u32 15, %v746_v52 }
 0x51a   : > { %vm1164_vm14 = vcmp.ge.s32.totalorder %v940_v24, 1 }
 0x51b   : > { %vm1162_vm15 = vcmp.ge.s32.totalorder %v926_v4, 1 }
 0x51d   : > { %v9694_v2 = vpop.f32.mrb[20].mxu0 }
 0x51e   : > { %v10124_v47 = vadd.f32 %v9694_v2, %v13210_v14  ;;  %v3699_v37 = vpop.f32.mrb[21].mxu0  ;;  %v752_v2 = vadd.s32 240, %v16060_v41 }
 0x51f   : > { %v10125_v16 = vadd.f32 %v3699_v37, %v13214_v62  ;;  %v9695_v17 = vpop.f32.mrb[22].mxu0  ;;  %v13519_v37 = vsel %vm1162_vm15, 1.0, %v16047_v46 }
 0x520   : > { %v4421_v7 = vmul.f32 %v10124_v47, %v13489_v34  ;;  %v10126_v25 = vadd.f32 %v9695_v17, %v13218_v35  ;;  %v3702_v18 = vpop.f32.mrb[23].mxu0  ;;  %v750_v35 = vadd.s32 224, %v16060_v41  ;;  %16074 = vst [vmem:[#allocation55_spill] sm:$0xff] %v13519_v37  ;;  %v968_v24 = vand.u32 15, %v752_v2 }
 0x521   : > { %v4419_v54 = vmul.f32 %v10125_v16, %v13493_v57  ;;  %v10127_v20 = vadd.f32 %v3702_v18, %v13220_v9  ;;  %v13515_v9 = vsel %vm1164_vm14, 1.0, %v16047_v46 }
 0x522   : > { %v13501_v14 = vadd.f32 %v10126_v25, %v13356_v0  ;;  %v13505_v51 = vadd.f32 %v13352_v28, %v4421_v7  ;;  %16073 = vst [vmem:[#allocation54_spill] sm:$0xff] %v13515_v9  ;;  %v954_v16 = vand.u32 15, %v750_v35  ;;  %vm1168_vm2 = vcmp.ge.s32.totalorder %v968_v24, 1 }
 0x523   : > { %v13508_v62 = vadd.f32 %v10127_v20, %v13358_v5  ;;  %v13512_v52 = vadd.f32 %v4419_v54, %v13354_v12 }
 0x524   : > { %vm1166_vm4 = vcmp.ge.s32.totalorder %v954_v16, 1 }
 0x525   : > { %v9698_v0 = vpop.f32.mrb[24].mxu0 }
 0x526   : > { %v10128_v47 = vadd.f32 %v9698_v0, %v13222_v15  ;;  %v3715_v28 = vpop.f32.mrb[25].mxu0  ;;  %v725_v15 = vadd.s32 24, %v16060_v41 }
 0x527   : > { %v10129_v5 = vadd.f32 %v3715_v28, %v13226_v1  ;;  %v9699_v20 = vpop.f32.mrb[26].mxu0 }
 0x528   : > { %v4425_v17 = vmul.f32 %v10128_v47, %v13515_v9  ;;  %v10130_v12 = vadd.f32 %v9699_v20, %v13230_v36  ;;  %v3718_v54 = vpop.f32.mrb[27].mxu0  ;;  %v723_v36 = vadd.s32 8, %v16060_v41  ;;  %v779_v0 = vand.u32 15, %v725_v15  ;;  %v4967_v20 = vld [vmem:[#allocation19] sm:$0xff] }
 0x529   : > { %v4423_v4 = vmul.f32 %v10129_v5, %v13519_v37  ;;  %v10131_v7 = vadd.f32 %v3718_v54, %v13232_v48  ;;  %v13541_v48 = vsel %vm1168_vm2, 1.0, %v16047_v46  ;;  %v13545_v47 = vsel %vm1166_vm4, 1.0, %v16047_v46  ;;  %9773 = vmatpush3.msra.mxu1 %v4967_v20 }
 0x52a   : > { %v13528_v25 = vadd.f32 %v10130_v12, %v13364_v32  ;;  %v13531_v18 = vadd.f32 %v13360_v11, %v4425_v17  ;;  %16075 = vst [vmem:[#allocation56_spill] sm:$0xff] %v13541_v48  ;;  %16076 = vst [vmem:[#allocation57_spill] sm:$0xff] %v13545_v47  ;;  %v765_v5 = vand.u32 15, %v723_v36  ;;  %vm1237_vm10 = vcmp.le.s32.totalorder %v779_v0, 14  ;;  %9777 = vmatprep.subr.mxu1 %v16047_v46 }
 0x52b   : > { %v13534_v1 = vadd.f32 %v10131_v7, %v13366_v45  ;;  %v13538_v2 = vadd.f32 %v4423_v4, %v13362_v22  ;;  %v729_v45 = vadd.s32 56, %v16060_v41  ;;  %v727_v22 = vadd.s32 40, %v16060_v41 }
 0x52c   : > { %v733_v7 = vadd.s32 88, %v16060_v41  ;;  %vm1235_vm11 = vcmp.le.s32.totalorder %v765_v5, 14 }
 0x52d   : > { %v9702_v35 = vpop.f32.mrb[28].mxu0  ;;  %v807_v4 = vand.u32 15, %v729_v45  ;;  %v793_v36 = vand.u32 15, %v727_v22 }
 0x52e   : > { %v10132_v32 = vadd.f32 %v9702_v35, %v13234_v40  ;;  %v3731_v11 = vpop.f32.mrb[29].mxu0  ;;  %v835_v45 = vand.u32 15, %v733_v7 }
 0x52f   : > { %v10133_v28 = vadd.f32 %v3731_v11, %v13238_v56  ;;  %v9703_v24 = vpop.f32.mrb[30].mxu0  ;;  %vm1241_vm13 = vcmp.le.s32.totalorder %v807_v4, 14  ;;  %vm13581_vm14 = vcmp.le.s32.totalorder %v793_v36, 14  ;;  %v741_v4 = vadd.s32 152, %v16060_v41 }
 0x530   : > { %v4429_v16 = vmul.f32 %v10132_v32, %v13541_v48  ;;  %v10134_v17 = vadd.f32 %v9703_v24, %v13242_v30  ;;  %v3734_v12 = vpop.f32.mrb[31].mxu0  ;;  %v13569_v32 = vld [vmem:[#allocation15] ss:$0 sm:$0xff]  ;;  %vm1245_vm15 = vcmp.le.s32.totalorder %v835_v45, 14 }
 0x531   : > { %v4427_v40 = vmul.f32 %v10133_v28, %v13545_v47  ;;  %v10135_v54 = vadd.f32 %v3734_v12, %v13244_v55  ;;  %v731_v55 = vadd.s32 72, %v16060_v41  ;;  %v735_v12 = vadd.s32 104, %v16060_v41 }
 0x532   : > { %v13556_v56 = vadd.f32 %v10134_v17, %v13372_v58  ;;  %v13560_v15 = vadd.f32 %v13368_v43, %v4429_v16  ;;  %v13572_v58 = vsel %vm1237_vm10, 1.0, %v16047_v46  ;;  %v737_v16 = vadd.s32 120, %v16060_v41 }
 0x533   : > { %v13563_v30 = vadd.f32 %v10135_v54, %v13374_v27  ;;  %v13566_v35 = vadd.f32 %v4427_v40, %v13370_v39  ;;  %16080 = vst [vmem:[#allocation61_spill] sm:$0xff] %v13572_v58  ;;  %v13576_v27 = vsel %vm1235_vm11, 1.0, %v16047_v46  ;;  %v821_v20 = vand.u32 15, %v731_v55 }
 0x534   : > { %16077 = vst [vmem:[#allocation58_spill] sm:$0xff] %v13556_v56  ;;  %16081 = vst [vmem:[#allocation62_spill] sm:$0xff] %v13576_v27  ;;  %v13606_v55 = vsel %vm13581_vm14, 1.0, %v16047_v46  ;;  %v863_v45 = vand.u32 15, %v737_v16  ;;  %v13620_v24 = vsel %vm1245_vm15, 1.0, %v16047_v46 }
 0x535   : > { %16078 = vst [vmem:[#allocation59_spill] sm:$0xff] %v13563_v30  ;;  %16079 = vst [vmem:[#allocation60_spill] sm:$0xff] %v13566_v35  ;;  %v9742_v0 = vpop.f32.mrb[32].mxu0  ;;  %vm13612_vm2 = vcmp.le.s32.totalorder %v821_v20, 14  ;;  %v891_v20 = vand.u32 15, %v741_v4 }
 0x536   : > { %v4497_v43 = vadd.f32 %v9742_v0, %v13393_v38  ;;  %v4240_v11 = vpop.f32.mrb[33].mxu0  ;;  %16085 = vst [vmem:[#allocation64_spill] sm:$0xff] %v13606_v55  ;;  %v739_v0 = vadd.s32 136, %v16060_v41  ;;  %16088 = vst [vmem:[#allocation65_spill] sm:$0xff] %v13620_v24  ;;  %vm13630_vm4 = vcmp.le.s32.totalorder %v863_v45, 14 }
 0x537   : > { %v4495_v39 = vadd.f32 %v13398_v26, %v4240_v11  ;;  %v9743_v28 = vpop.f32.mrb[34].mxu0  ;;  %v13595_v26 = vsel %vm1241_vm13, 1.0, %v16047_v46  ;;  %vm1253_vm11 = vcmp.le.s32.totalorder %v891_v20, 14 }
 0x538   : > { %v13586_v5 = vadd.f32 %v13569_v32, %v4497_v43  ;;  %v4466_v38 = vmul.f32 %v9743_v28, %v13572_v58  ;;  %v4243_v22 = vpop.f32.mrb[35].mxu0  ;;  %16084 = vst [vmem:[#allocation63_spill] sm:$0xff] %v13595_v26 }
 0x539   : > { %v13591_v17 = vadd.f32 %v13569_v32, %v4495_v39  ;;  %v4464_v10 = vmul.f32 %v13576_v27, %v4243_v22 }
 0x53a   : > { %v4568_v40 = vsub.f32 0.0, %v13586_v5  ;;  %v4498_v54 = vadd.f32 %v4466_v38, %v13390_v23  ;;  %v849_v38 = vand.u32 15, %v735_v12 }
 0x53b   : > { %v4566_v7 = vsub.f32 0.0, %v13591_v17  ;;  %v4496_v36 = vadd.f32 %v4464_v10, %v13395_v53 }
 0x53c   : > { %v4602_v43 = vmul.f32 1.442695, %v4568_v40  ;;  %v13610_v11 = vadd.f32 %v13569_v32, %v4498_v54  ;;  %vm13638_vm10 = vcmp.le.s32.totalorder %v849_v38, 14  ;;  %v13652_v38 = vsel %vm13612_vm2, 1.0, %v16047_v46 }
 0x53d   : > { %v4598_v39 = vmul.f32 1.442695, %v4566_v7  ;;  %v13617_v28 = vadd.f32 %v13569_v32, %v4496_v36  ;;  %v9746_v53 = vpop.f32.mrb[36].mxu0  ;;  %v877_v36 = vand.u32 15, %v739_v0  ;;  %16093 = vst [vmem:[#allocation66_spill] sm:$0xff] %v13652_v38 }
 0x53e   : > { %10713 = vpow2.f32 %v4602_v43  ;;  %v4569_v22 = vsub.f32 0.0, %v13610_v11  ;;  %v4501_v10 = vadd.f32 %v9746_v53, %v13413_v50  ;;  %v4256_v40 = vpop.f32.mrb[37].mxu0 }
 0x53f   : > { %10715 = vpow2.f32 %v4598_v39  ;;  %v4567_v54 = vsub.f32 0.0, %v13617_v28  ;;  %v4499_v16 = vadd.f32 %v13420_v19, %v4256_v40  ;;  %v9747_v7 = vpop.f32.mrb[38].mxu0  ;;  %vm1251_vm13 = vcmp.le.s32.totalorder %v877_v36, 14 }
 0x540   : > { %v4604_v47 = vmul.f32 1.442695, %v4569_v22  ;;  %v13627_v48 = vadd.f32 %v13569_v32, %v4501_v10  ;;  %v4470_v12 = vmul.f32 %v9747_v7, %v13595_v26  ;;  %v4259_v43 = vpop.f32.mrb[39].mxu0  ;;  %v13673_v36 = vsel %vm1251_vm13, 1.0, %v16047_v46 }
 0x541   : > { %v4600_v50 = vmul.f32 1.442695, %v4567_v54  ;;  %v13635_v4 = vadd.f32 %v13569_v32, %v4499_v16  ;;  %v4468_v39 = vmul.f32 %v13606_v55, %v4259_v43  ;;  %v13665_v54 = vsel %vm13638_vm10, 1.0, %v16047_v46  ;;  %16097 = vst [vmem:[#allocation70_spill] sm:$0xff] %v13673_v36 }
 0x542   : > { %10717 = vpow2.f32 %v4604_v47  ;;  %v4572_v0 = vsub.f32 0.0, %v13627_v48  ;;  %v4502_v53 = vadd.f32 %v4470_v12, %v13409_v49  ;;  %v13657_v49 = vsel %vm13630_vm4, 1.0, %v16047_v46  ;;  %16095 = vst [vmem:[#allocation68_spill] sm:$0xff] %v13665_v54 }
 0x543   : > { %10719 = vpow2.f32 %v4600_v50  ;;  %v4570_v45 = vsub.f32 0.0, %v13635_v4  ;;  %v4500_v22 = vadd.f32 %v4468_v39, %v13416_v21  ;;  %16094 = vst [vmem:[#allocation67_spill] sm:$0xff] %v13657_v49  ;;  %v13668_v16 = vsel %vm1253_vm11, 1.0, %v16047_v46 }
 0x544   : > { %v4610_v10 = vmul.f32 1.442695, %v4572_v0  ;;  %v13647_v40 = vadd.f32 %v13569_v32, %v4502_v53  ;;  %16096 = vst [vmem:[#allocation69_spill] sm:$0xff] %v13668_v16  ;;  %v745_v39 = vadd.s32 184, %v16060_v41 }
 0x545   : > { %v4606_v47 = vmul.f32 1.442695, %v4570_v45  ;;  %v13660_v20 = vadd.f32 %v13569_v32, %v4500_v22  ;;  %v9750_v21 = vpop.f32.mrb[40].mxu0  ;;  %v13683_v22 = vadd.s32 168, %v16060_v41 }
 0x546   : > { %10721 = vpow2.f32 %v4610_v10  ;;  %v4573_v23 = vsub.f32 0.0, %v13647_v40  ;;  %v4505_v37 = vadd.f32 %v9750_v21, %v13435_v42  ;;  %v4272_v7 = vpop.f32.mrb[41].mxu0  ;;  %v919_v34 = vand.u32 15, %v745_v39 }
 0x547   : > { %10723 = vpow2.f32 %v4606_v47  ;;  %v4571_v12 = vsub.f32 0.0, %v13660_v20  ;;  %v4503_v43 = vadd.f32 %v13442_v13, %v4272_v7  ;;  %v9751_v50 = vpop.f32.mrb[42].mxu0 }
 0x548   : > { %v10714_v19 = vpop.eup %10713  ;;  %v4612_v0 = vmul.f32 1.442695, %v4573_v23  ;;  %v13679_v53 = vadd.f32 %v13569_v32, %v4505_v37  ;;  %v4474_v45 = vmul.f32 %v9751_v50, %v13620_v24  ;;  %v4275_v42 = vpop.f32.mrb[43].mxu0  ;;  %vm13704_vm14 = vcmp.le.s32.totalorder %v919_v34, 14 }
 0x549   : > { %v10716_v10 = vpop.eup %10715  ;;  %v4664_v47 = vadd.f32 1.0, %v10714_v19  ;;  %v4608_v21 = vmul.f32 1.442695, %v4571_v12  ;;  %v13686_v9 = vadd.f32 %v13569_v32, %v4503_v43  ;;  %v4472_v13 = vmul.f32 %v13652_v38, %v4275_v42 }
 0x54a   : > { %v4662_v7 = vadd.f32 1.0, %v10716_v10  ;;  %10725 = vpow2.f32 %v4612_v0  ;;  %v4576_v23 = vsub.f32 0.0, %v13679_v53  ;;  %v4506_v37 = vadd.f32 %v4474_v45, %v13431_v60 }
 0x54b   : > { %10727 = vrcp.f32 %v4664_v47  ;;  %v4574_v50 = vsub.f32 0.0, %v13686_v9  ;;  %v4504_v57 = vadd.f32 %v4472_v13, %v13438_v31 }
 0x54c   : > { %v10718_v6 = vpop.eup %10717  ;;  %10729 = vrcp.f32 %v4662_v7  ;;  %v4618_v12 = vmul.f32 1.442695, %v4576_v23  ;;  %v13694_v43 = vadd.f32 %v13569_v32, %v4506_v37 }
 0x54d   : > { %v10720_v42 = vpop.eup %10719  ;;  %v4665_v0 = vadd.f32 1.0, %v10718_v6  ;;  %10731 = vpow2.f32 %v4608_v21  ;;  %v4614_v10 = vmul.f32 1.442695, %v4574_v50  ;;  %v13698_v60 = vadd.f32 %v13569_v32, %v4504_v57  ;;  %v9754_v45 = vpop.f32.mrb[44].mxu0 }
 0x54e   : > { %v4663_v47 = vadd.f32 1.0, %v10720_v42  ;;  %10733 = vpow2.f32 %v4618_v12  ;;  %v4577_v31 = vsub.f32 0.0, %v13694_v43  ;;  %v4509_v39 = vadd.f32 %v9754_v45, %v13456_v8  ;;  %v4288_v13 = vpop.f32.mrb[45].mxu0 }
 0x54f   : > { %10735 = vrcp.f32 %v4665_v0  ;;  %v4575_v7 = vsub.f32 0.0, %v13698_v60  ;;  %v4507_v23 = vadd.f32 %v13462_v63, %v4288_v13  ;;  %v9755_v37 = vpop.f32.mrb[46].mxu0  ;;  %v13709_v57 = vadd.s32 216, %v16060_v41 }
 0x550   : > { %v10722_v21 = vpop.eup %10721  ;;  %10737 = vrcp.f32 %v4663_v47  ;;  %v4620_v50 = vmul.f32 1.442695, %v4577_v31  ;;  %v13712_v12 = vadd.f32 %v13569_v32, %v4509_v39  ;;  %v4478_v8 = vmul.f32 %v9755_v37, %v13657_v49  ;;  %v4291_v42 = vpop.f32.mrb[47].mxu0 }
 0x551   : > { %v10724_v0 = vpop.eup %10723  ;;  %v4668_v45 = vadd.f32 1.0, %v10722_v21  ;;  %10739 = vpow2.f32 %v4614_v10  ;;  %v4616_v63 = vmul.f32 1.442695, %v4575_v7  ;;  %v13716_v34 = vadd.f32 %v13569_v32, %v4507_v23 }
 0x552   : > { %v4666_v13 = vadd.f32 1.0, %v10724_v0  ;;  %10741 = vpow2.f32 %v4620_v50  ;;  %v4580_v19 = vsub.f32 0.0, %v13712_v12  ;;  %v4510_v47 = vadd.f32 %v4478_v8, %v13453_v61  ;;  %v13733_v61 = vld [vmem:[%s577_s28] ss:$0 sm:$0xff] }
 0x553   : > { %10743 = vrcp.f32 %v4668_v45  ;;  %v4578_v31 = vsub.f32 0.0, %v13716_v34  ;;  %v4476_v39 = vmul.f32 %v13665_v54, %v4291_v42  ;;  %v13723_v37 = vadd.s32 200, %v16060_v41 }
 0x554   : > { %v10726_v10 = vpop.eup %10725  ;;  %10745 = vrcp.f32 %v4666_v13  ;;  %v4626_v7 = vmul.f32 1.442695, %v4580_v19  ;;  %v13726_v23 = vadd.f32 %v13569_v32, %v4510_v47  ;;  %v13729_v21 = vadd.s32 248, %v16060_v41 }
 0x555   : > { %v10728_v50 = vpop.eup %10727  ;;  %v4669_v8 = vadd.f32 1.0, %v10726_v10  ;;  %10747 = vpow2.f32 %v4616_v63  ;;  %v4622_v0 = vmul.f32 1.442695, %v4578_v31  ;;  %v4508_v42 = vadd.f32 %v4476_v39, %v13459_v3  ;;  %v9758_v45 = vpop.f32.mrb[48].mxu0 }
 0x556   : > { %v10730_v54 = vpop.eup %10729  ;;  %v4728_v13 = vmul.f32 %v10728_v50, %v13586_v5  ;;  %10749 = vpow2.f32 %v4626_v7  ;;  %v4581_v19 = vsub.f32 0.0, %v13726_v23  ;;  %v13739_v47 = vadd.f32 %v9758_v45, %v13478_v59  ;;  %v4304_v49 = vpop.f32.mrb[49].mxu0 }
 0x557   : > { %v10732_v38 = vpop.eup %10731  ;;  %v4726_v24 = vmul.f32 %v10730_v54, %v13591_v17  ;;  %10751 = vrcp.f32 %v4669_v8  ;;  %v13743_v63 = vadd.f32 %v13569_v32, %v4508_v42  ;;  %v13746_v3 = vadd.f32 %v13484_v33, %v4304_v49  ;;  %v13748_v31 = vpop.f32.mrb[50].mxu0 }
 0x558   : > { %v10734_v5 = vpop.eup %10733  ;;  %v13751_v39 = vadd.f32 %v13733_v61, %v4728_v13  ;;  %v4667_v10 = vadd.f32 1.0, %v10732_v38  ;;  %10753 = vpow2.f32 %v4622_v0  ;;  %v13753_v59 = vpop.f32.mrb[51].mxu0  ;;  %v947_v7 = vand.u32 15, %v13709_v57 }
 0x559   : > { %v10736_v17 = vpop.eup %10735  ;;  %v13757_v54 = vadd.f32 %v13733_v61, %v4726_v24  ;;  %v4672_v50 = vadd.f32 1.0, %v10734_v5  ;;  %v4628_v8 = vmul.f32 1.442695, %v4581_v19  ;;  %v4579_v33 = vsub.f32 0.0, %v13743_v63 }
 0x55a   : > { %16100 = vst [vmem:[#allocation71_spill] sm:$0xff] %v13751_v39  ;;  %v10738_v49 = vpop.eup %10737  ;;  %v4729_v42 = vmul.f32 %v10736_v17, %v13610_v11  ;;  %10755 = vrcp.f32 %v4667_v10  ;;  %v13764_v38 = vsel %vm13704_vm14, 1.0, %v16047_v46  ;;  %v933_v0 = vand.u32 15, %v13723_v37 }
 0x55b   : > { %16101 = vst [vmem:[#allocation72_spill] sm:$0xff] %v13757_v54  ;;  %16102 = vst [vmem:[#allocation73_spill] sm:$0xff] %v13764_v38  ;;  %v10740_v57 = vpop.eup %10739  ;;  %v4727_v45 = vmul.f32 %v10738_v49, %v13617_v28  ;;  %10757 = vrcp.f32 %v4672_v50  ;;  %v13770_v13 = vadd.s32 232, %v16060_v41  ;;  %v4800_v11 = vsel %vm714_vm8, %v13751_v39, 0.0 }
 0x55c   : > { %v10742_v19 = vpop.eup %10741  ;;  %v4866_v6 = vmul.f32 %v13757_v54, %v13757_v54  ;;  %v13777_v5 = vadd.f32 %v13733_v61, %v4729_v42  ;;  %v4670_v37 = vadd.f32 1.0, %v10740_v57  ;;  %10759 = vpow2.f32 %v4628_v8 }
 0x55d   : > { %v10744_v10 = vpop.eup %10743  ;;  %v13780_v28 = vadd.f32 %v13733_v61, %v4727_v45  ;;  %v4673_v17 = vadd.f32 1.0, %v10742_v19  ;;  %v4624_v50 = vmul.f32 1.442695, %v4579_v33  ;;  %v13782_v41 = vpop.f32.mrb[52].mxu0  ;;  %v16105_v49 = vand.u32 15, %v13683_v22 }
 0x55e   : > { %16103 = vst [vmem:[#allocation74_spill] sm:$0xff] %v13777_v5  ;;  %vm13790_vm2 = vcmp.le.s32.totalorder %v947_v7, 14  ;;  %v10746_v42 = vpop.eup %10745  ;;  %v4868_v57 = vmul.f32 %v13751_v39, %v13751_v39  ;;  %v4797_v8 = vsel %vm714_vm8, %v13757_v54, 0.0  ;;  %v4732_v33 = vmul.f32 %v10744_v10, %v13627_v48  ;;  %v13799_v45 = vpop.f32.mrb[53].mxu0 }
 0x55f   : > { %16104 = vst [vmem:[#allocation75_spill] sm:$0xff] %v13780_v28  ;;  %vm13786_vm15 = vcmp.le.s32.totalorder %v16105_v49, 14  ;;  %10761 = vrcp.f32 %v4670_v37  ;;  %v10748_v22 = vpop.eup %10747  ;;  %v4798_v19 = vsel %vm714_vm8, %v13780_v28, 0.0  ;;  %v4867_v7 = vmul.f32 %v13780_v28, %v13780_v28  ;;  %v13806_v26 = vpop.f32.mrb[54].mxu0 }
 0x560   : > { %v4730_v49 = vmul.f32 %v10746_v42, %v13635_v4  ;;  %10763 = vrcp.f32 %v4673_v17  ;;  %vm13808_vm4 = vcmp.le.s32.totalorder %v933_v0, 14  ;;  %v10750_v48 = vpop.eup %10749  ;;  %v4898_v37 = vsel %vm714_vm8, %v4866_v6, 0.0  ;;  %v13815_v54 = vpop.f32.mrb[55].mxu0 }
 0x561   : > { %v4869_v10 = vmul.f32 %v13777_v5, %v13777_v5  ;;  %v4799_v58 = vadd.f32 %v4798_v19, %v4797_v8  ;;  %v4671_v39 = vadd.f32 1.0, %v10748_v22  ;;  %v10752_v28 = vpop.eup %10751  ;;  %v4899_v4 = vsel %vm714_vm8, %v4867_v7, 0.0 }
 0x562   : > { %v13819_v17 = vadd.f32 %v13733_v61, %v4730_v49  ;;  %v4676_v0 = vadd.f32 1.0, %v10750_v48  ;;  %10765 = vpow2.f32 %v4624_v50  ;;  %v10754_v42 = vpop.eup %10753  ;;  %v4901_v30 = vsel %vm714_vm8, %v4868_v57, 0.0 }
 0x563   : > { %v4802_v6 = vsel %vm714_vm8, %v13777_v5, 0.0  ;;  %v4900_v56 = vadd.f32 %v4899_v4, %v4898_v37  ;;  %v4801_v35 = vadd.f32 %v4800_v11, %v4799_v58  ;;  %v13825_v8 = vadd.f32 %v13733_v61, %v4732_v33 }
 0x564   : > { %16112 = vst [vmem:[#allocation76_spill] sm:$0xff] %v13819_v17  ;;  %v4870_v22 = vmul.f32 %v13819_v17, %v13819_v17  ;;  %v4733_v19 = vmul.f32 %v10752_v28, %v13647_v40  ;;  %10767 = vrcp.f32 %v4671_v39  ;;  %v10756_v7 = vpop.eup %10755  ;;  %v13832_v57 = vadd.f32 %v13569_v32, %v13739_v47 }
 0x565   : > { %16113 = vst [vmem:[#allocation77_spill] sm:$0xff] %v13825_v8  ;;  %v4803_v49 = vadd.f32 %v4802_v6, %v4801_v35  ;;  %v4902_v50 = vadd.f32 %v4901_v30, %v4900_v56  ;;  %10769 = vrcp.f32 %v4676_v0  ;;  %v10758_v48 = vpop.eup %10757  ;;  %v4903_v58 = vsel %vm714_vm8, %v4869_v10, 0.0  ;;  %v13838_v4 = vpop.f32.mrb[56].mxu0 }
 0x566   : > { %v4804_v11 = vsel %vm714_vm8, %v13819_v17, 0.0  ;;  %v4731_v33 = vmul.f32 %v10756_v7, %v13660_v20  ;;  %v4674_v37 = vadd.f32 1.0, %v10754_v42  ;;  %v13841_v56 = vadd.f32 %v13733_v61, %v4733_v19  ;;  %v13843_v30 = vpop.f32.mrb[57].mxu0  ;;  %v10760_v47 = vpop.eup %10759 }
 0x567   : > { %v4805_v40 = vadd.f32 %v4804_v11, %v4803_v49  ;;  %v4904_v39 = vadd.f32 %v4903_v58, %v4902_v50  ;;  %v961_v35 = vand.u32 15, %v13770_v13  ;;  %v4872_v28 = vmul.f32 %v13825_v8, %v13825_v8  ;;  %v13852_v0 = vpop.f32.mrb[58].mxu0 }
 0x568   : > { %v4905_v10 = vsel %vm714_vm8, %v4870_v22, 0.0  ;;  %v13850_v20 = vadd.f32 %v13733_v61, %v4731_v33  ;;  %10771 = vrcp.f32 %v4674_v37  ;;  %v4736_v19 = vmul.f32 %v10758_v48, %v13679_v53  ;;  %v13865_v22 = vpop.f32.mrb[59].mxu0 }
 0x569   : > { %v10762_v42 = vpop.eup %10761  ;;  %v4906_v6 = vadd.f32 %v4905_v10, %v4904_v39  ;;  %v13858_v13 = vsel %vm13786_vm15, 1.0, %v16047_v46  ;;  %v13863_v7 = vsel %vm13790_vm2, 1.0, %v16047_v46  ;;  %v4584_v24 = vsub.f32 0.0, %v13832_v57 }
 0x56a   : > { %16114 = vst [vmem:[#allocation78_spill] sm:$0xff] %v13850_v20  ;;  %16115 = vst [vmem:[#allocation79_spill] sm:$0xff] %v13858_v13  ;;  %v10764_v49 = vpop.eup %10763  ;;  %v4806_v50 = vsel %vm714_vm8, %v13850_v20, 0.0  ;;  %v4871_v58 = vmul.f32 %v13850_v20, %v13850_v20  ;;  %v4734_v53 = vmul.f32 %v10762_v42, %v13686_v9  ;;  %v4873_v48 = vmul.f32 %v13841_v56, %v13841_v56 }
 0x56b   : > { %16116 = vst [vmem:[#allocation80_spill] sm:$0xff] %v13863_v7  ;;  %v4807_v11 = vadd.f32 %v4806_v50, %v4805_v40  ;;  %v4677_v55 = vadd.f32 1.0, %v10760_v47  ;;  %v13878_v33 = vsel %vm13808_vm4, 1.0, %v16047_v46  ;;  %v4808_v39 = vsel %vm714_vm8, %v13825_v8, 0.0 }
 0x56c   : > { %16117 = vst [vmem:[#allocation81_spill] sm:$0xff] %v13878_v33  ;;  %v10766_v37 = vpop.eup %10765  ;;  %v4909_v10 = vsel %vm714_vm8, %v4872_v28, 0.0  ;;  %v4907_v9 = vsel %vm714_vm8, %v4871_v58, 0.0  ;;  %v13885_v42 = vadd.f32 %v13733_v61, %v4734_v53  ;;  %v16118_v20 = vand.u32 15, %v13729_v21 }
 0x56d   : > { %vm13893_vm11 = vcmp.le.s32.totalorder %v961_v35, 14  ;;  %v4908_v47 = vadd.f32 %v4907_v9, %v4906_v6  ;;  %v4809_v50 = vadd.f32 %v4808_v39, %v4807_v11  ;;  %v4737_v8 = vmul.f32 %v10764_v49, %v13694_v43  ;;  %v13907_v17 = vpop.f32.mrb[60].mxu0 }
 0x56e   : > { %vm13889_vm10 = vcmp.le.s32.totalorder %v16118_v20, 14  ;;  %v13900_v28 = vadd.f32 %v13569_v32, %v13746_v3  ;;  %v10768_v58 = vpop.eup %10767  ;;  %v4810_v21 = vsel %vm714_vm8, %v13841_v56, 0.0  ;;  %v13905_v20 = vadd.f32 %v13733_v61, %v4736_v19  ;;  %v13910_v49 = vpop.f32.mrb[61].mxu0 }
 0x56f   : > { %v4675_v53 = vadd.f32 1.0, %v10766_v37  ;;  %v4634_v35 = vmul.f32 1.442695, %v4584_v24  ;;  %v10770_v5 = vpop.eup %10769  ;;  %v4911_v6 = vsel %vm714_vm8, %v4873_v48, 0.0  ;;  %v4811_v11 = vadd.f32 %v4810_v21, %v4809_v50  ;;  %v13916_v37 = vpop.f32.mrb[62].mxu0 }
 0x570   : > { %v4910_v43 = vadd.f32 %v4909_v10, %v4908_v47  ;;  %10773 = vrcp.f32 %v4677_v55  ;;  %v4874_v3 = vmul.f32 %v13885_v42, %v13885_v42  ;;  %v4735_v39 = vmul.f32 %v10768_v58, %v13698_v60  ;;  %v13924_v10 = vpop.f32.mrb[63].mxu0 }
 0x571   : > { %v4740_v19 = vmul.f32 %v10770_v5, %v13712_v12  ;;  %10775 = vrcp.f32 %v4675_v53  ;;  %v4812_v24 = vsel %vm714_vm8, %v13885_v42, 0.0  ;;  %v13921_v48 = vadd.f32 %v13733_v61, %v4737_v8 }
 0x572   : > { %v4912_v9 = vadd.f32 %v4911_v6, %v4910_v43  ;;  %v4582_v55 = vsub.f32 0.0, %v13900_v28  ;;  %v10772_v47 = vpop.eup %10771  ;;  %v13927_v50 = vadd.f32 %v13733_v61, %v4735_v39  ;;  %10777 = vpow2.f32 %v4634_v35 }
 0x573   : > { %16123 = vst [vmem:[#allocation82_spill] sm:$0xff] %v13921_v48  ;;  %v4482_v60 = vmul.f32 %v13748_v31, %v13668_v16  ;;  %v4480_v12 = vmul.f32 %v13673_v36, %v13753_v59  ;;  %v4813_v5 = vadd.f32 %v4812_v24, %v4811_v11  ;;  %v4738_v58 = vmul.f32 %v10772_v47, %v13716_v34 }
 0x574   : > { %v4630_v8 = vmul.f32 1.442695, %v4582_v55  ;;  %v4517_v21 = vadd.f32 %v13782_v41, %v13505_v51  ;;  %v4913_v53 = vsel %vm714_vm8, %v4874_v3, 0.0  ;;  %v4814_v6 = vsel %vm714_vm8, %v13927_v50, 0.0 }
 0x575   : > { %v4875_v35 = vmul.f32 %v13927_v50, %v13927_v50  ;;  %v13942_v31 = vadd.f32 %v13733_v61, %v4740_v19  ;;  %v4876_v59 = vmul.f32 %v13905_v20, %v13905_v20  ;;  %v4914_v11 = vadd.f32 %v4913_v53, %v4912_v9 }
 0x576   : > { %10779 = vpow2.f32 %v4630_v8  ;;  %v4514_v34 = vadd.f32 %v4482_v60, %v13475_v29  ;;  %v4877_v51 = vmul.f32 %v13921_v48, %v13921_v48  ;;  %v4512_v43 = vadd.f32 %v4480_v12, %v13481_v44 }
 0x577   : > { %v4915_v41 = vsel %vm714_vm8, %v4875_v35, 0.0  ;;  %v13952_v3 = vadd.f32 %v13569_v32, %v4517_v21  ;;  %v4815_v39 = vadd.f32 %v4814_v6, %v4813_v5  ;;  %v13955_v19 = vadd.f32 %v13733_v61, %v4738_v58 }
 0x578   : > { %v13960_v24 = vsel %vm13889_vm10, 1.0, %v16047_v46  ;;  %v13965_v29 = vsel %vm13893_vm11, 1.0, %v16047_v46  ;;  %v4880_v44 = vmul.f32 %v13942_v31, %v13942_v31  ;;  %v13970_v9 = vadd.f32 %v13569_v32, %v4514_v34 }
 0x579   : > { %16124 = vst [vmem:[#allocation83_spill] sm:$0xff] %v13960_v24  ;;  %16125 = vst [vmem:[#allocation84_spill] sm:$0xff] %v13965_v29  ;;  %v13973_v55 = vadd.f32 %v13569_v32, %v4512_v43  ;;  %v4588_v47 = vsub.f32 0.0, %v13952_v3  ;;  %v4816_v40 = vsel %vm714_vm8, %v13905_v20, 0.0  ;;  %v4917_v12 = vsel %vm714_vm8, %v4876_v59, 0.0 }
 0x57a   : > { %v10774_v60 = vpop.eup %10773  ;;  %v4818_v27 = vsel %vm714_vm8, %v13921_v48, 0.0  ;;  %v4916_v5 = vadd.f32 %v4915_v41, %v4914_v11  ;;  %v4919_v8 = vsel %vm714_vm8, %v4877_v51, 0.0  ;;  %v4585_v21 = vsub.f32 0.0, %v13970_v9 }
 0x57b   : > { %v10776_v58 = vpop.eup %10775  ;;  %v4583_v53 = vsub.f32 0.0, %v13973_v55  ;;  %v4642_v6 = vmul.f32 1.442695, %v4588_v47  ;;  %v13986_v35 = vsel %vm714_vm8, %v13942_v31, 0.0  ;;  %v4817_v34 = vadd.f32 %v4816_v40, %v4815_v39 }
 0x57c   : > { %v4878_v59 = vmul.f32 %v13955_v19, %v13955_v19  ;;  %v4739_v43 = vmul.f32 %v10776_v58, %v13743_v63  ;;  %v10778_v36 = vpop.eup %10777  ;;  %v13992_v11 = vsel %vm714_vm8, %v4880_v44, 0.0  ;;  %v4820_v51 = vsel %vm714_vm8, %v13955_v19, 0.0 }
 0x57d   : > { %v4636_v41 = vmul.f32 1.442695, %v4585_v21  ;;  %v4632_v16 = vmul.f32 1.442695, %v4583_v53  ;;  %v4918_v47 = vadd.f32 %v4917_v12, %v4916_v5  ;;  %v4741_v48 = vmul.f32 %v10774_v60, %v13726_v23 }
 0x57e   : > { %10781 = vpow2.f32 %v4642_v6  ;;  %v4515_v39 = vadd.f32 %v13512_v52, %v13799_v45  ;;  %v14000_v40 = vadd.f32 %v13733_v61, %v4739_v43  ;;  %v4486_v63 = vmul.f32 %v13806_v26, %v13764_v38 }
 0x57f   : > { %10783 = vpow2.f32 %v4636_v41  ;;  %v4484_v44 = vmul.f32 %v13858_v13, %v13815_v54  ;;  %v4819_v21 = vadd.f32 %v4818_v27, %v4817_v34  ;;  %v4921_v12 = vsel %vm714_vm8, %v4878_v59, 0.0 }
 0x580   : > { %v10780_v58 = vpop.eup %10779  ;;  %10785 = vpow2.f32 %v4632_v16  ;;  %v14008_v23 = vadd.f32 %v13569_v32, %v4515_v39  ;;  %v4680_v60 = vadd.f32 1.0, %v10778_v36  ;;  %v4518_v45 = vadd.f32 %v4486_v63, %v13501_v14 }
 0x581   : > { %v4678_v52 = vadd.f32 1.0, %v10780_v58  ;;  %v4516_v5 = vadd.f32 %v4484_v44, %v13508_v62  ;;  %v14013_v53 = vadd.f32 %v13733_v61, %v4741_v48  ;;  %v4521_v54 = vadd.f32 %v13838_v4, %v13531_v18 }
 0x582   : > { %v4586_v26 = vsub.f32 0.0, %v14008_v23  ;;  %v4519_v16 = vadd.f32 %v13538_v2, %v13843_v30  ;;  %v4920_v27 = vadd.f32 %v4919_v8, %v4918_v47  ;;  %v4879_v36 = vmul.f32 %v14000_v40, %v14000_v40 }
 0x583   : > { %10787 = vrcp.f32 %v4678_v52  ;;  %v14023_v14 = vadd.f32 %v13569_v32, %v4518_v45  ;;  %v14026_v48 = vadd.f32 %v13569_v32, %v4516_v5  ;;  %v14029_v6 = vadd.f32 %v13569_v32, %v4521_v54 }
 0x584   : > { %v4638_v62 = vmul.f32 1.442695, %v4586_v26  ;;  %v14032_v18 = vadd.f32 %v13569_v32, %v4519_v16  ;;  %v4821_v4 = vadd.f32 %v4820_v51, %v4819_v21  ;;  %10789 = vrcp.f32 %v4680_v60 }
 0x585   : > { %v4589_v2 = vsub.f32 0.0, %v14023_v14  ;;  %v4490_v30 = vmul.f32 %v13852_v0, %v13863_v7  ;;  %v14039_v8 = vsel %vm714_vm8, %v14013_v53, 0.0  ;;  %v4587_v34 = vsub.f32 0.0, %v14026_v48 }
 0x586   : > { %10791 = vpow2.f32 %v4638_v62  ;;  %v4592_v59 = vsub.f32 0.0, %v14029_v6  ;;  %v4922_v43 = vadd.f32 %v4921_v12, %v4920_v27  ;;  %v4590_v47 = vsub.f32 0.0, %v14032_v18 }
 0x587   : > { %v4644_v41 = vmul.f32 1.442695, %v4589_v2  ;;  %v4522_v51 = vadd.f32 %v4490_v30, %v13528_v25  ;;  %v4822_v63 = vsel %vm714_vm8, %v14000_v40, 0.0  ;;  %v4923_v0 = vsel %vm714_vm8, %v4879_v36, 0.0 }
 0x588   : > { %v10782_v39 = vpop.eup %10781  ;;  %v4640_v44 = vmul.f32 1.442695, %v4587_v34  ;;  %v4488_v58 = vmul.f32 %v13878_v33, %v13865_v22  ;;  %v4650_v52 = vmul.f32 1.442695, %v4592_v59  ;;  %v4525_v26 = vadd.f32 %v13907_v17, %v13560_v15 }
 0x589   : > { %v10784_v21 = vpop.eup %10783  ;;  %v4684_v60 = vadd.f32 1.0, %v10782_v39  ;;  %10793 = vpow2.f32 %v4644_v41  ;;  %v14051_v12 = vadd.f32 %v13569_v32, %v4522_v51  ;;  %v4823_v54 = vadd.f32 %v4822_v63, %v4821_v4 }
 0x58a   : > { %v10786_v45 = vpop.eup %10785  ;;  %v4681_v5 = vadd.f32 1.0, %v10784_v21  ;;  %10795 = vpow2.f32 %v4640_v44  ;;  %v4520_v25 = vadd.f32 %v4488_v58, %v13534_v1  ;;  %v4646_v27 = vmul.f32 1.442695, %v4590_v47  ;;  %v16126_v1 = vld [vmem:[#allocation60_spill] sm:$0xff] }
 0x58b   : > { %v4679_v16 = vadd.f32 1.0, %v10786_v45  ;;  %10797 = vrcp.f32 %v4684_v60  ;;  %v4593_v22 = vsub.f32 0.0, %v14051_v12  ;;  %v14061_v62 = vadd.f32 %v13569_v32, %v4525_v26 }
 0x58c   : > { %10799 = vrcp.f32 %v4681_v5  ;;  %v14058_v36 = vadd.f32 %v13569_v32, %v4520_v25  ;;  %v4924_v30 = vadd.f32 %v4923_v0, %v4922_v43  ;;  %v4523_v34 = vadd.f32 %v16126_v1, %v13910_v49  ;;  %v16127_v43 = vld [vmem:[#allocation58_spill] sm:$0xff] }
 0x58d   : > { %v10788_v2 = vpop.eup %10787  ;;  %10801 = vrcp.f32 %v4679_v16  ;;  %v4494_v15 = vmul.f32 %v13916_v37, %v13960_v24  ;;  %v4652_v4 = vmul.f32 1.442695, %v4593_v22  ;;  %v4825_v47 = vadd.f32 %v13986_v35, %v4823_v54 }
 0x58e   : > { %v4742_v17 = vmul.f32 %v10788_v2, %v13900_v28  ;;  %10803 = vpow2.f32 %v4650_v52  ;;  %v4591_v59 = vsub.f32 0.0, %v14058_v36  ;;  %v10790_v41 = vpop.eup %10789  ;;  %v14071_v51 = vadd.f32 %v13569_v32, %v4523_v34  ;;  %v16128_v52 = vld [vmem:[#allocation59_spill] sm:$0xff] }
 0x58f   : > { %10805 = vpow2.f32 %v4646_v27  ;;  %v4526_v39 = vadd.f32 %v4494_v15, %v16127_v43  ;;  %v4596_v37 = vsub.f32 0.0, %v14061_v62  ;;  %v4492_v28 = vmul.f32 %v13965_v29, %v13924_v10 }
 0x590   : > { %v10792_v63 = vpop.eup %10791  ;;  %10807 = vpow2.f32 %v4652_v4  ;;  %v4648_v49 = vmul.f32 1.442695, %v4591_v59  ;;  %v14078_v0 = vadd.f32 %v13733_v61, %v4742_v17  ;;  %v4594_v35 = vsub.f32 0.0, %v14071_v51 }
 0x591   : > { %v4682_v44 = vadd.f32 1.0, %v10792_v63  ;;  %v14082_v58 = vadd.f32 %v13569_v32, %v4526_v39  ;;  %v4881_v21 = vmul.f32 %v14013_v53, %v14013_v53  ;;  %v4926_v60 = vadd.f32 %v13992_v11, %v4924_v30 }
 0x592   : > { %10809 = vpow2.f32 %v4648_v49  ;;  %v4524_v45 = vadd.f32 %v4492_v28, %v16128_v52  ;;  %v4744_v10 = vmul.f32 %v10790_v41, %v13832_v57  ;;  %v4654_v25 = vmul.f32 1.442695, %v4594_v35 }
 0x593   : > { %v10794_v5 = vpop.eup %10793  ;;  %10811 = vrcp.f32 %v4682_v44  ;;  %v4597_v26 = vsub.f32 0.0, %v14082_v58  ;;  %v4827_v16 = vadd.f32 %v14039_v8, %v4825_v47  ;;  %v4658_v22 = vmul.f32 1.442695, %v4596_v37 }
 0x594   : > { %v10796_v54 = vpop.eup %10795  ;;  %v4685_v27 = vadd.f32 1.0, %v10794_v5  ;;  %v14092_v2 = vadd.f32 %v13569_v32, %v4524_v45  ;;  %v4882_v11 = vmul.f32 %v14078_v0, %v14078_v0  ;;  %10813 = vpow2.f32 %v4654_v25 }
 0x595   : > { %v10798_v1 = vpop.eup %10797  ;;  %v4683_v30 = vadd.f32 1.0, %v10796_v54  ;;  %v4660_v34 = vmul.f32 1.442695, %v4597_v26  ;;  %v4927_v15 = vsel %vm714_vm8, %v4881_v21, 0.0  ;;  %v14099_v8 = vadd.f32 %v13733_v61, %v4744_v10 }
 0x596   : > { %v10800_v57 = vpop.eup %10799  ;;  %10815 = vrcp.f32 %v4685_v27  ;;  %v4595_v17 = vsub.f32 0.0, %v14092_v2  ;;  %v4928_v59 = vadd.f32 %v4927_v15, %v4926_v60  ;;  %v4828_v47 = vsel %vm714_vm8, %v14078_v0, 0.0 }
 0x597   : > { %v10802_v4 = vpop.eup %10801  ;;  %v4745_v32 = vmul.f32 %v10800_v57, %v13970_v9  ;;  %10817 = vrcp.f32 %v4683_v30  ;;  %v4829_v63 = vadd.f32 %v4828_v47, %v4827_v16  ;;  %v4929_v49 = vsel %vm714_vm8, %v4882_v11, 0.0 }
 0x598   : > { %v10804_v41 = vpop.eup %10803  ;;  %v4743_v43 = vmul.f32 %v10802_v4, %v13973_v55  ;;  %10819 = vpow2.f32 %v4658_v22  ;;  %v4656_v21 = vmul.f32 1.442695, %v4595_v17  ;;  %v4884_v60 = vmul.f32 %v14099_v8, %v14099_v8 }
 0x599   : > { %v10806_v39 = vpop.eup %10805  ;;  %v4688_v37 = vadd.f32 1.0, %v10804_v41  ;;  %10821 = vpow2.f32 %v4660_v34  ;;  %v14107_v44 = vadd.f32 %v13733_v61, %v4745_v32  ;;  %v4930_v55 = vadd.f32 %v4929_v49, %v4928_v59 }
 0x59a   : > { %v10808_v28 = vpop.eup %10807  ;;  %v14110_v9 = vadd.f32 %v13733_v61, %v4743_v43  ;;  %v4686_v35 = vadd.f32 1.0, %v10806_v39  ;;  %v4748_v25 = vmul.f32 %v10798_v1, %v13952_v3  ;;  %v4832_v54 = vsel %vm714_vm8, %v14099_v8, 0.0 }
 0x59b   : > { %10823 = vrcp.f32 %v4688_v37  ;;  %v4689_v52 = vadd.f32 1.0, %v10808_v28  ;;  %v4885_v22 = vmul.f32 %v14107_v44, %v14107_v44  ;;  %v4933_v57 = vsel %vm714_vm8, %v4884_v60, 0.0 }
 0x59c   : > { %v10810_v45 = vpop.eup %10809  ;;  %v4830_v5 = vsel %vm714_vm8, %v14110_v9, 0.0  ;;  %v4883_v10 = vmul.f32 %v14110_v9, %v14110_v9  ;;  %10825 = vrcp.f32 %v4686_v35  ;;  %v4834_v17 = vsel %vm714_vm8, %v14107_v44, 0.0 }
 0x59d   : > { %v10812_v26 = vpop.eup %10811  ;;  %v4831_v16 = vadd.f32 %v4830_v5, %v4829_v63  ;;  %10827 = vrcp.f32 %v4689_v52  ;;  %v4687_v27 = vadd.f32 1.0, %v10810_v45  ;;  %v14129_v4 = vadd.f32 %v13733_v61, %v4748_v25 }
 0x59e   : > { %v4931_v11 = vsel %vm714_vm8, %v4883_v10, 0.0  ;;  %v4746_v30 = vmul.f32 %v10812_v26, %v14008_v23  ;;  %10829 = vpow2.f32 %v4656_v21  ;;  %v10814_v34 = vpop.eup %10813  ;;  %v4935_v63 = vsel %vm714_vm8, %v4885_v22, 0.0 }
 0x59f   : > { %v4932_v3 = vadd.f32 %v4931_v11, %v4930_v55  ;;  %v4833_v1 = vadd.f32 %v4832_v54, %v4831_v16  ;;  %10831 = vrcp.f32 %v4687_v27  ;;  %v4690_v32 = vadd.f32 1.0, %v10814_v34 }
 0x5a0   : > { %v10816_v15 = vpop.eup %10815  ;;  %v14132_v59 = vadd.f32 %v13733_v61, %v4746_v30 }
 0x5a1   : > { %v10818_v41 = vpop.eup %10817  ;;  %v4835_v23 = vadd.f32 %v4834_v17, %v4833_v1  ;;  %v4934_v47 = vadd.f32 %v4933_v57, %v4932_v3  ;;  %v4749_v43 = vmul.f32 %v10816_v15, %v14023_v14  ;;  %10833 = vrcp.f32 %v4690_v32 }
 0x5a2   : > { %v10820_v39 = vpop.eup %10819  ;;  %v4836_v49 = vsel %vm714_vm8, %v14132_v59, 0.0  ;;  %v4886_v37 = vmul.f32 %v14132_v59, %v14132_v59  ;;  %v4747_v28 = vmul.f32 %v10818_v41, %v14026_v48  ;;  %v4888_v14 = vmul.f32 %v14129_v4, %v14129_v4 }
 0x5a3   : > { %v10822_v35 = vpop.eup %10821  ;;  %v4837_v21 = vadd.f32 %v4836_v49, %v4835_v23  ;;  %v4936_v60 = vadd.f32 %v4935_v63, %v4934_v47  ;;  %v14142_v55 = vadd.f32 %v13733_v61, %v4749_v43  ;;  %v4692_v25 = vadd.f32 1.0, %v10820_v39 }
 0x5a4   : > { %v4937_v52 = vsel %vm714_vm8, %v4886_v37, 0.0  ;;  %v14148_v45 = vadd.f32 %v13733_v61, %v4747_v28  ;;  %v4693_v27 = vadd.f32 1.0, %v10822_v35  ;;  %v4840_v57 = vsel %vm714_vm8, %v14129_v4, 0.0 }
 0x5a5   : > { %v10824_v5 = vpop.eup %10823  ;;  %v4938_v10 = vadd.f32 %v4937_v52, %v4936_v60  ;;  %v4889_v48 = vmul.f32 %v14142_v55, %v14142_v55  ;;  %v4941_v3 = vsel %vm714_vm8, %v4888_v14, 0.0  ;;  %10835 = vrcp.f32 %v4692_v25 }
 0x5a6   : > { %v10826_v26 = vpop.eup %10825  ;;  %v4838_v54 = vsel %vm714_vm8, %v14148_v45, 0.0  ;;  %v4887_v16 = vmul.f32 %v14148_v45, %v14148_v45  ;;  %v4752_v15 = vmul.f32 %v10824_v5, %v14029_v6  ;;  %10837 = vrcp.f32 %v4693_v27 }
 0x5a7   : > { %v10828_v22 = vpop.eup %10827  ;;  %v4839_v11 = vadd.f32 %v4838_v54, %v4837_v21  ;;  %v4750_v30 = vmul.f32 %v10826_v26, %v14032_v18  ;;  %v4842_v18 = vsel %vm714_vm8, %v14142_v55, 0.0  ;;  %v4943_v47 = vsel %vm714_vm8, %v4889_v48, 0.0 }
 0x5a8   : > { %v10830_v34 = vpop.eup %10829  ;;  %v4939_v1 = vsel %vm714_vm8, %v4887_v16, 0.0  ;;  %v14172_v37 = vadd.f32 %v13733_v61, %v4752_v15  ;;  %v4753_v35 = vmul.f32 %v10828_v22, %v14051_v12 }
 0x5a9   : > { %v10832_v17 = vpop.eup %10831  ;;  %v4940_v32 = vadd.f32 %v4939_v1, %v4938_v10  ;;  %v14163_v41 = vadd.f32 %v13733_v61, %v4750_v30  ;;  %v4841_v23 = vadd.f32 %v4840_v57, %v4839_v11  ;;  %v4691_v49 = vadd.f32 1.0, %v10830_v34 }
 0x5aa   : > { %v4751_v43 = vmul.f32 %v10832_v17, %v14058_v36  ;;  %v4892_v12 = vmul.f32 %v14172_v37, %v14172_v37  ;;  %v14188_v48 = vadd.f32 %v13733_v61, %v4753_v35  ;;  %v4848_v22 = vsel %vm714_vm8, %v14172_v37, 0.0 }
 0x5ab   : > { %v4843_v39 = vadd.f32 %v4842_v18, %v4841_v23  ;;  %v4890_v63 = vmul.f32 %v14163_v41, %v14163_v41  ;;  %v4942_v6 = vadd.f32 %v4941_v3, %v4940_v32  ;;  %v4844_v28 = vsel %vm714_vm8, %v14163_v41, 0.0  ;;  %v10834_v60 = vpop.eup %10833 }
 0x5ac   : > { %v14178_v21 = vadd.f32 %v13733_v61, %v4751_v43  ;;  %10839 = vrcp.f32 %v4691_v49  ;;  %v4754_v16 = vmul.f32 %v10834_v60, %v14071_v51  ;;  %v4949_v57 = vsel %vm714_vm8, %v4892_v12, 0.0 }
 0x5ad   : > { %v4845_v36 = vadd.f32 %v4844_v28, %v4843_v39  ;;  %v4944_v14 = vadd.f32 %v4943_v47, %v4942_v6  ;;  %v4945_v52 = vsel %vm714_vm8, %v4890_v63, 0.0  ;;  %v4893_v3 = vmul.f32 %v14188_v48, %v14188_v48 }
 0x5ae   : > { %v4846_v5 = vsel %vm714_vm8, %v14178_v21, 0.0  ;;  %v4891_v10 = vmul.f32 %v14178_v21, %v14178_v21  ;;  %v14198_v1 = vadd.f32 %v13733_v61, %v4754_v16  ;;  %v4850_v17 = vsel %vm714_vm8, %v14188_v48, 0.0 }
 0x5af   : > { %v4946_v25 = vadd.f32 %v4945_v52, %v4944_v14  ;;  %v4847_v26 = vadd.f32 %v4846_v5, %v4845_v36  ;;  %v10836_v11 = vpop.eup %10835  ;;  %v4951_v23 = vsel %vm714_vm8, %v4893_v3, 0.0 }
 0x5b0   : > { %v4947_v54 = vsel %vm714_vm8, %v4891_v10, 0.0  ;;  %v10838_v34 = vpop.eup %10837  ;;  %v4756_v51 = vmul.f32 %v10836_v11, %v14061_v62  ;;  %v4894_v18 = vmul.f32 %v14198_v1, %v14198_v1  ;;  %v4852_v6 = vsel %vm714_vm8, %v14198_v1, 0.0 }
 0x5b1   : > { %v4948_v27 = vadd.f32 %v4947_v54, %v4946_v25  ;;  %v4849_v30 = vadd.f32 %v4848_v22, %v4847_v26  ;;  %v4757_v47 = vmul.f32 %v10838_v34, %v14082_v58 }
 0x5b2   : > { %v14208_v63 = vadd.f32 %v13733_v61, %v4756_v51  ;;  %v4953_v62 = vsel %vm714_vm8, %v4894_v18, 0.0 }
 0x5b3   : > { %v4950_v15 = vadd.f32 %v4949_v57, %v4948_v27  ;;  %v4851_v32 = vadd.f32 %v4850_v17, %v4849_v30  ;;  %v14215_v35 = vadd.f32 %v13733_v61, %v4757_v47 }
 0x5b4   : > { %v4896_v36 = vmul.f32 %v14208_v63, %v14208_v63  ;;  %v4856_v5 = vsel %vm714_vm8, %v14208_v63, 0.0 }
 0x5b5   : > { %v4952_v39 = vadd.f32 %v4951_v23, %v4950_v15  ;;  %v4853_v28 = vadd.f32 %v4852_v6, %v4851_v32  ;;  %v4897_v10 = vmul.f32 %v14215_v35, %v14215_v35  ;;  %v4858_v54 = vsel %vm714_vm8, %v14215_v35, 0.0  ;;  %v5323_v6 = vld [vmem:[#allocation21 + $0xc] sm:$0xf] }
 0x5b6   : > { %v10840_v43 = vpop.eup %10839  ;;  %v4957_v12 = vsel %vm714_vm8, %v4896_v36, 0.0 }
 0x5b7   : > { %v4755_v49 = vmul.f32 %v10840_v43, %v14092_v2  ;;  %v4954_v58 = vadd.f32 %v4953_v62, %v4952_v39  ;;  %v4959_v22 = vsel %vm714_vm8, %v4897_v10, 0.0  ;;  %v10971_v43 = vld [vmem:[#allocation19] sm:$0xff] }
 0x5b9   : > { %v14218_v60 = vadd.f32 %v13733_v61, %v4755_v49  ;;  %v6337_v49 = vld [vmem:[#allocation21 + $0x14] sm:$0xf] }
 0x5ba   : > { %10522 = vmatprep.subr.msk.bf16.mxu0 %vm1504_vm3, %v6337_v49  ;;  %v6464_v62 = vsel %vm1504_vm3, %v6337_v49, 0 }
 0x5bb   : > { %v4854_v14 = vsel %vm714_vm8, %v14218_v60, 0.0  ;;  %v4895_v52 = vmul.f32 %v14218_v60, %v14218_v60  ;;  %9919 = vmatpush3.bf16.msra.mxu0 %v6464_v62 }
 0x5bc   : > { %v4855_v2 = vadd.f32 %v4854_v14, %v4853_v28  ;;  %v5525_v28 = vsel %vm1504_vm3, %v5323_v6, 0 }
 0x5bd   : > { %v4955_v61 = vsel %vm714_vm8, %v4895_v52, 0.0 }
 0x5be   : > { %v4857_v25 = vadd.f32 %v4856_v5, %v4855_v2  ;;  %v4956_v26 = vadd.f32 %v4955_v61, %v4954_v58  ;;  %v14243_v58 = vld [vmem:[#allocation21] sm:$0xf] }
 0x5c0   : > { %v4859_v16 = vadd.f32 %v4858_v54, %v4857_v25  ;;  %v4958_v27 = vadd.f32 %v4957_v12, %v4956_v26  ;;  %v5119_v26 = vld [vmem:[#allocation16] sm:$0x1] }
 0x5c2   : > { %v4860_v11 = vrot.slane %v4859_v16, 4  ;;  %v4960_v30 = vadd.f32 %v4959_v22, %v4958_v27  ;;  %v16129_v22 = vld [vmem:[#allocation42_spill] sm:$0xff] }
 0x5c4   : > { %v4861_v34 = vadd.f32 %v4860_v11, %v4859_v16  ;;  %v4961_v57 = vrot.slane %v4960_v30, 4  ;;  %v5121_v16 = vld [vmem:[#allocation18] sm:$0x1] }
 0x5c6   : > { %v4862_v3 = vrot.slane %v4861_v34, 2  ;;  %v4962_v15 = vadd.f32 %v4961_v57, %v4960_v30 }
 0x5c8   : > { %v4863_v17 = vadd.f32 %v4862_v3, %v4861_v34  ;;  %v4963_v51 = vrot.slane %v4962_v15, 2  ;;  %v16130_v34 = vld [vmem:[#allocation72_spill] sm:$0xff]  ;;  %v16131_v3 = vld [vmem:[#allocation75_spill] sm:$0xff] }
 0x5ca   : > { %v4864_v32 = vrot.slane %v4863_v17, 1  ;;  %v4964_v23 = vadd.f32 %v4963_v51, %v4962_v15 }
 0x5cc   : > { %v4865_v18 = vadd.f32 %v4864_v32, %v4863_v17  ;;  %v4965_v47 = vrot.slane %v4964_v23, 1  ;;  %v16132_v17 = vld [vmem:[#allocation71_spill] sm:$0xff]  ;;  %v16133_v32 = vld [vmem:[#allocation74_spill] sm:$0xff] }
 0x5ce   : > { %9775 = vmatmul.mubr.msk.f32.vlgmr.msra.gmra.mrb[48].mxu1 %vm714_vm8, %v4865_v18  ;;  %v4966_v39 = vadd.f32 %v4965_v47, %v4964_v23  ;;  %v16134_v18 = vld [vmem:[#allocation76_spill] sm:$0xff] }
 0x5cf   : > { %9778 = vmatpush3.msra.mxu1 %v10971_v43  ;;  %9779 = vmatprep.mubr.msk.f32.mxu1 %vm11521_vm0, %v16047_v46  ;;  %v14247_v46 = vld [vmem:[#allocation21 + $0x8] sm:$0xf]  ;;  %v16135_v43 = vld [vmem:[#allocation78_spill] sm:$0xff] }
 0x5d0   : > { %10518 = vmatprep.subr.msk.bf16.mxu1 %vm1504_vm3, %v5323_v6  ;;  %10523 = vmatprep.subr.msk.bf16.mxu0 %vm1504_vm3, %v14247_v46  ;;  %v16136_v6 = vld [vmem:[#allocation77_spill] sm:$0xff] }
 0x5d2   : > { %9780 = vmatmul.mubr.msk.f32.vlgmr.msra.gmra.mrb[50].mxu1 %vm714_vm8, %v4966_v39 }
 0x5d3   : > { %9783 = vmatpush3.bf16.msra.mxu1 %v5525_v28 }
 0x5d4   : > { %10519 = vmatprep.subr.msk.bf16.mxu1 %vm1504_vm3, %v14243_v58 }
 0x6a1   : > { %v5037_v36 = vpop.f32.mrb[48].mxu1 }
 0x6a2   : > { %v9776_v14 = vpop.f32.mrb[49].mxu1  ;;  %v5114_v52 = vmul.f32 %v5037_v36, %v5037_v36 }
 0x6a5   : > { %v5110_v2 = vpop.f32.mrb[50].mxu1 }
 0x6a6   : > { %v5115_v5 = vsub.f32 %v5110_v2, %v5114_v52  ;;  %v9781_v10 = vpop.f32.mrb[51].mxu1  ;;  %v16137_v2 = vld [vmem:[#allocation82_spill] sm:$0xff] }
 0x6a8   : > { %v5116_v61 = vmax.f32 %v5115_v5, 0.0 }
 0x6aa   : > { %v5117_v25 = vadd.f32 1e-05, %v5116_v61 }
 0x6ac   : > { %10841 = vrsqrt.f32 %v5117_v25 }
 0x6b6   : > { %v10842_v12 = vpop.eup %10841 }
 0x6b7   : > { %v5120_v54 = vmul.f32 %v10842_v12, %v5119_v26 }
 0x6b9   : > { %v5122_v27 = vmul.f32 %v5120_v54, %v5037_v36  ;;  %v5127_v11 = vrot.slane %v5120_v54, %v16129_v22 }
 0x6bb   : > { %v5123_v30 = vsub.f32 %v5121_v16, %v5122_v27  ;;  %v5128_v57 = vmul.f32 %v5127_v11, %v16130_v34  ;;  %v5129_v15 = vmul.f32 %v5127_v11, %v16131_v3  ;;  %v5130_v51 = vmul.f32 %v5127_v11, %v16132_v17 }
 0x6bc   : > { %v5131_v23 = vmul.f32 %v5127_v11, %v16133_v32  ;;  %v5132_v47 = vmul.f32 %v5127_v11, %v16134_v18  ;;  %v5133_v39 = vmul.f32 %v5127_v11, %v16135_v43  ;;  %v5134_v49 = vmul.f32 %v5127_v11, %v16136_v6 }
 0x6bd   : > { %v5164_v28 = vrot.slane %v5123_v30, %v16129_v22  ;;  %v5135_v62 = vmul.f32 %v5127_v11, %v13841_v56  ;;  %v5136_v36 = vmul.f32 %v5127_v11, %v13885_v42  ;;  %v5137_v14 = vmul.f32 %v5127_v11, %v13927_v50 }
 0x6be   : > { %v5138_v52 = vmul.f32 %v5127_v11, %v13905_v20  ;;  %v5139_v5 = vmul.f32 %v5127_v11, %v16137_v2  ;;  %v5140_v10 = vmul.f32 %v5127_v11, %v13955_v19  ;;  %v5141_v61 = vmul.f32 %v5127_v11, %v14000_v40 }
 0x6bf   : > { %v5142_v25 = vmul.f32 %v5127_v11, %v13942_v31  ;;  %v5143_v26 = vmul.f32 %v5127_v11, %v14013_v53  ;;  %v5144_v12 = vmul.f32 %v5127_v11, %v14078_v0  ;;  %v5145_v56 = vmul.f32 %v5127_v11, %v14110_v9 }
 0x6c0   : > { %v5146_v42 = vmul.f32 %v5127_v11, %v14099_v8  ;;  %v5147_v50 = vmul.f32 %v5127_v11, %v14107_v44  ;;  %v5148_v20 = vmul.f32 %v5127_v11, %v14132_v59  ;;  %v5149_v54 = vmul.f32 %v5127_v11, %v14148_v45 }
 0x6c1   : > { %v5150_v19 = vmul.f32 %v5127_v11, %v14129_v4  ;;  %v5151_v40 = vmul.f32 %v5127_v11, %v14142_v55  ;;  %v5152_v31 = vmul.f32 %v5127_v11, %v14163_v41  ;;  %v5153_v53 = vmul.f32 %v5127_v11, %v14178_v21 }
 0x6c2   : > { %v5154_v0 = vmul.f32 %v5127_v11, %v14172_v37  ;;  %v5155_v9 = vmul.f32 %v5127_v11, %v14188_v48  ;;  %v5156_v8 = vmul.f32 %v5127_v11, %v14198_v1  ;;  %v5157_v44 = vmul.f32 %v5127_v11, %v14218_v60 }
 0x6c3   : > { %v5158_v59 = vmul.f32 %v5127_v11, %v14208_v63  ;;  %v5159_v45 = vmul.f32 %v5127_v11, %v14215_v35  ;;  %v5166_v16 = vadd.f32 %v5164_v28, %v5128_v57  ;;  %v5167_v4 = vadd.f32 %v5164_v28, %v5129_v15 }
 0x6c4   : > { %v5168_v27 = vadd.f32 %v5164_v28, %v5130_v51  ;;  %v5169_v55 = vadd.f32 %v5164_v28, %v5131_v23  ;;  %v5170_v22 = vadd.f32 %v5164_v28, %v5132_v47  ;;  %v5171_v41 = vadd.f32 %v5164_v28, %v5133_v39 }
 0x6c5   : > { %v5172_v30 = vadd.f32 %v5164_v28, %v5134_v49  ;;  %v5173_v21 = vadd.f32 %v5164_v28, %v5135_v62  ;;  %v5174_v34 = vadd.f32 %v5164_v28, %v5136_v36  ;;  %v5175_v37 = vadd.f32 %v5164_v28, %v5137_v14 }
 0x6c6   : > { %v5176_v3 = vadd.f32 %v5164_v28, %v5138_v52  ;;  %v5177_v48 = vadd.f32 %v5164_v28, %v5139_v5  ;;  %v5178_v17 = vadd.f32 %v5164_v28, %v5140_v10  ;;  %v5179_v1 = vadd.f32 %v5164_v28, %v5141_v61 }
 0x6c7   : > { %v5180_v32 = vadd.f32 %v5164_v28, %v5142_v25  ;;  %v5181_v60 = vadd.f32 %v5164_v28, %v5143_v26  ;;  %v5182_v18 = vadd.f32 %v5164_v28, %v5144_v12  ;;  %v5183_v63 = vadd.f32 %v5164_v28, %v5145_v56 }
 0x6c8   : > { %v5184_v43 = vadd.f32 %v5164_v28, %v5146_v42  ;;  %v5185_v35 = vadd.f32 %v5164_v28, %v5147_v50  ;;  %v5186_v11 = vadd.f32 %v5164_v28, %v5148_v20  ;;  %v5187_v57 = vadd.f32 %v5164_v28, %v5149_v54 }
 0x6c9   : > { %v5188_v15 = vadd.f32 %v5164_v28, %v5150_v19  ;;  %v5189_v51 = vadd.f32 %v5164_v28, %v5151_v40  ;;  %v5190_v23 = vadd.f32 %v5164_v28, %v5152_v31  ;;  %v5191_v47 = vadd.f32 %v5164_v28, %v5153_v53 }
 0x6ca   : > { %v5192_v39 = vadd.f32 %v5164_v28, %v5154_v0  ;;  %v5193_v6 = vadd.f32 %v5164_v28, %v5155_v9  ;;  %v5194_v49 = vadd.f32 %v5164_v28, %v5156_v8  ;;  %v5195_v62 = vadd.f32 %v5164_v28, %v5157_v44 }
 0x6cb   : > { %v5196_v36 = vadd.f32 %v5164_v28, %v5158_v59  ;;  %v5197_v14 = vadd.f32 %v5164_v28, %v5159_v45  ;;  %v5198_v52 = vpack.c.bf16 %v5167_v4, %v5166_v16  ;;  %v5199_v2 = vpack.c.bf16 %v5169_v55, %v5168_v27 }
 0x6cc   : > { %v5200_v5 = vpack.c.bf16 %v5171_v41, %v5170_v22  ;;  %v5201_v10 = vpack.c.bf16 %v5173_v21, %v5172_v30  ;;  %v5202_v61 = vpack.c.bf16 %v5175_v37, %v5174_v34  ;;  %v5203_v25 = vpack.c.bf16 %v5177_v48, %v5176_v3 }
 0x6cd   : > { %v5204_v26 = vpack.c.bf16 %v5179_v1, %v5178_v17  ;;  %v5205_v12 = vpack.c.bf16 %v5181_v60, %v5180_v32  ;;  %v5206_v56 = vpack.c.bf16 %v5183_v63, %v5182_v18  ;;  %v5207_v42 = vpack.c.bf16 %v5185_v35, %v5184_v43 }
 0x6ce   : > { %v5208_v50 = vpack.c.bf16 %v5187_v57, %v5186_v11  ;;  %v5209_v20 = vpack.c.bf16 %v5189_v51, %v5188_v15  ;;  %v5210_v54 = vpack.c.bf16 %v5191_v47, %v5190_v23  ;;  %v5211_v19 = vpack.c.bf16 %v5193_v6, %v5192_v39 }
 0x6cf   : > { %v5212_v40 = vpack.c.bf16 %v5195_v62, %v5194_v49  ;;  %v5213_v31 = vpack.c.bf16 %v5197_v14, %v5196_v36  ;;  %v5230_v53 = vrot.slane %v5198_v52, 4  ;;  %v5231_v0 = vrot.slane %v5199_v2, 4 }
 0x6d0   : > { %v5233_v9 = vrot.slane %v5200_v5, 4  ;;  %v5235_v28 = vrot.slane %v5201_v10, 4  ;;  %v5237_v8 = vrot.slane %v5202_v61, 4  ;;  %v5239_v44 = vrot.slane %v5203_v25, 4 }
 0x6d1   : > { %v5232_v59 = vsel %vm1504_vm3, %v5230_v53, %v5231_v0  ;;  %v5241_v45 = vrot.slane %v5204_v26, 4  ;;  %v5243_v16 = vrot.slane %v5205_v12, 4  ;;  %v5245_v4 = vrot.slane %v5206_v56, 4  ;;  %5278 = vst.msk [vmem:[#allocation3 + $0x8] sm:$0xf0] %vm718_vm9, %v5230_v53 }
 0x6d2   : > { %v5234_v27 = vsel %vm1504_vm3, %v5231_v0, %v5233_v9  ;;  %v5236_v55 = vsel %vm1504_vm3, %v5233_v9, %v5235_v28  ;;  %v5238_v22 = vsel %vm1504_vm3, %v5235_v28, %v5237_v8  ;;  %v5240_v41 = vsel %vm1504_vm3, %v5237_v8, %v5239_v44  ;;  %5279 = vst.msk [vmem:[#allocation3 + $0x10] sm:$0xff] %vm714_vm8, %v5232_v59 }
 0x6d3   : > { %v5242_v30 = vsel %vm1504_vm3, %v5239_v44, %v5241_v45  ;;  %v5244_v21 = vsel %vm1504_vm3, %v5241_v45, %v5243_v16  ;;  %v5246_v34 = vsel %vm1504_vm3, %v5243_v16, %v5245_v4  ;;  %v5247_v37 = vrot.slane %v5207_v42, 4  ;;  %5280 = vst.msk [vmem:[#allocation3 + $0x18] sm:$0xff] %vm714_vm8, %v5234_v27  ;;  %5281 = vst.msk [vmem:[#allocation3 + $0x20] sm:$0xff] %vm714_vm8, %v5236_v55 }
 0x6d4   : > { %5282 = vst.msk [vmem:[#allocation3 + $0x28] sm:$0xff] %vm714_vm8, %v5238_v22  ;;  %5283 = vst.msk [vmem:[#allocation3 + $0x30] sm:$0xff] %vm714_vm8, %v5240_v41  ;;  %v5249_v3 = vrot.slane %v5208_v50, 4  ;;  %v5251_v48 = vrot.slane %v5209_v20, 4  ;;  %v5253_v17 = vrot.slane %v5210_v54, 4  ;;  %v5255_v1 = vrot.slane %v5211_v19, 4 }
 0x6d5   : > { %5284 = vst.msk [vmem:[#allocation3 + $0x38] sm:$0xff] %vm714_vm8, %v5242_v30  ;;  %5285 = vst.msk [vmem:[#allocation3 + $0x40] sm:$0xff] %vm714_vm8, %v5244_v21  ;;  %v5248_v32 = vsel %vm1504_vm3, %v5245_v4, %v5247_v37  ;;  %v5257_v60 = vrot.slane %v5212_v40, 4  ;;  %v5259_v18 = vrot.slane %v5213_v31, 4  ;;  %v5725_v2 = vsel %vm1504_vm3, %v14243_v58, 0 }
 0x6d6   : > { %5286 = vst.msk [vmem:[#allocation3 + $0x48] sm:$0xff] %vm714_vm8, %v5246_v34  ;;  %v5250_v63 = vsel %vm1504_vm3, %v5247_v37, %v5249_v3  ;;  %v5252_v43 = vsel %vm1504_vm3, %v5249_v3, %v5251_v48  ;;  %v5254_v35 = vsel %vm1504_vm3, %v5251_v48, %v5253_v17  ;;  %v5256_v11 = vsel %vm1504_vm3, %v5253_v17, %v5255_v1 }
 0x6d7   : > { %5287 = vst.msk [vmem:[#allocation3 + $0x50] sm:$0xff] %vm714_vm8, %v5248_v32  ;;  %v5258_v57 = vsel %vm1504_vm3, %v5255_v1, %v5257_v60  ;;  %v5260_v15 = vsel %vm1504_vm3, %v5257_v60, %v5259_v18  ;;  %5288 = vst.msk [vmem:[#allocation3 + $0x58] sm:$0xff] %vm714_vm8, %v5250_v63  ;;  %v6659_v5 = vsel %vm1504_vm3, %v14247_v46, 0  ;;  %v14371_v63 = vld [vmem:[#allocation21 + $0x10] sm:$0xf] }
 0x6d8   : > { %5289 = vst.msk [vmem:[#allocation3 + $0x60] sm:$0xff] %vm714_vm8, %v5252_v43  ;;  %5290 = vst.msk [vmem:[#allocation3 + $0x68] sm:$0xff] %vm714_vm8, %v5254_v35  ;;  %v5319_v51 = vld [vmem:[#allocation3 + $0x8] sm:$0xf8] }
 0x6d9   : > { %5291 = vst.msk [vmem:[#allocation3 + $0x70] sm:$0xff] %vm714_vm8, %v5256_v11  ;;  %5292 = vst.msk [vmem:[#allocation3 + $0x78] sm:$0xff] %vm714_vm8, %v5258_v57  ;;  %v14317_v23 = vld [vmem:[#allocation3 + $0x8] sm:$0xf0]  ;;  %v14319_v47 = vld [vmem:[#allocation3 + $0x10] sm:$0xff]  ;;  %v5325_v39 = vshrl.u32 %v5319_v51, 16 }
 0x6da   : > { %5294 = vst.msk [vmem:[#allocation3 + $0x88] sm:$0xf] %vm716_vm12, %v5259_v18  ;;  %v5328_v6 = vshll.u32 %v5319_v51, 16  ;;  %v6339_v49 = vshrl.u32 %v14317_v23, 16  ;;  %v6342_v62 = vshll.u32 %v14317_v23, 16  ;;  %v5333_v36 = vshrl.u32 %v14319_v47, 16 }
 0x6db   : > { %5293 = vst.msk [vmem:[#allocation3 + $0x80] sm:$0xff] %vm714_vm8, %v5260_v15  ;;  %v5336_v14 = vshll.u32 %v14319_v47, 16  ;;  %v14325_v52 = vld [vmem:[#allocation3 + $0x18] sm:$0xff]  ;;  %v5327_v10 = vrot.slane %v5325_v39, 3  ;;  %v14331_v12 = vld [vmem:[#allocation3 + $0x20] sm:$0xff]  ;;  %v14341_v59 = vld [vmem:[#allocation3 + $0x28] sm:$0xff] }
 0x6dc   : > { %v5330_v61 = vrot.slane %v5328_v6, 4  ;;  %v6341_v25 = vrot.slane %v6339_v49, 4  ;;  %v6344_v26 = vrot.slane %v6342_v62, 5  ;;  %v5335_v56 = vrot.slane %v5333_v36, 3  ;;  %v14343_v45 = vld [vmem:[#allocation3 + $0x30] sm:$0xff]  ;;  %v14369_v18 = vld [vmem:[#allocation3 + $0x38] sm:$0xff] }
 0x6dd   : > { %v5338_v42 = vrot.slane %v5336_v14, 4  ;;  %v6346_v50 = vrot.slane %v5333_v36, 4  ;;  %v6347_v20 = vrot.slane %v5336_v14, 5  ;;  %v5342_v40 = vshrl.u32 %v14325_v52, 16  ;;  %v14381_v15 = vld [vmem:[#allocation21 + $0x20] sm:$0xf] }
 0x6de   : > { %v5331_v54 = vor.u32 %v5330_v61, %v5327_v10  ;;  %v6345_v19 = vor.u32 %v6344_v26, %v6341_v25  ;;  %v5345_v31 = vshll.u32 %v14325_v52, 16  ;;  %v5351_v46 = vshrl.u32 %v14331_v12, 16  ;;  %v14389_v62 = vld [vmem:[#allocation3 + $0x40] sm:$0xff] }
 0x6df   : > { %v14335_v58 = vor.u32 %v5338_v42, %v5335_v56  ;;  %v14337_v53 = vor.u32 %v6347_v20, %v6346_v50  ;;  %v5354_v0 = vshll.u32 %v14331_v12, 16  ;;  %v5344_v9 = vrot.slane %v5342_v40, 3 }
 0x6e0   : > { %v5347_v28 = vrot.slane %v5345_v31, 4  ;;  %v6350_v8 = vrot.slane %v5342_v40, 4  ;;  %v6351_v44 = vrot.slane %v5345_v31, 5  ;;  %v5353_v27 = vrot.slane %v5351_v46, 3  ;;  %v14467_v33 = vld [vmem:[#allocation3 + $0x70] sm:$0xff] }
 0x6e1   : > { %v5340_v16 = vsel %vm1862_vm6, %v5331_v54, %v14335_v58  ;;  %v6349_v4 = vsel %vm2878_vm7, %v6345_v19, %v14337_v53  ;;  %v5356_v55 = vrot.slane %v5354_v0, 4  ;;  %v6354_v30 = vrot.slane %v5351_v46, 4 }
 0x6e2   : > { %9784 = vmatprep.mubr.msk.bf16.mxu1 %vm714_vm8, %v5340_v16  ;;  %9920 = vmatprep.mubr.msk.bf16.mxu0 %vm714_vm8, %v6349_v4  ;;  %v14351_v22 = vor.u32 %v5347_v28, %v5344_v9  ;;  %v14353_v41 = vor.u32 %v6351_v44, %v6350_v8  ;;  %v6355_v21 = vrot.slane %v5354_v0, 5  ;;  %v5360_v37 = vshrl.u32 %v14341_v59, 16  ;;  %v14413_v9 = vld [vmem:[#allocation3 + $0x48] sm:$0xff]  ;;  %v14419_v4 = vld [vmem:[#allocation3 + $0x50] sm:$0xff] }
 0x6e3   : > { %v5357_v34 = vor.u32 %v5356_v55, %v5353_v27  ;;  %v5363_v3 = vshll.u32 %v14341_v59, 16  ;;  %v5369_v48 = vshrl.u32 %v14343_v45, 16  ;;  %v5372_v60 = vshll.u32 %v14343_v45, 16 }
 0x6e4   : > { %16138 = vst [vmem:[#allocation60_spill] sm:$0xff] %v14351_v22  ;;  %16139 = vst [vmem:[#allocation58_spill] sm:$0xff] %v14353_v41  ;;  %v14361_v17 = vsel %vm1862_vm6, %v14335_v58, %v14351_v22  ;;  %v14366_v1 = vsel %vm2878_vm7, %v14337_v53, %v14353_v41  ;;  %v6356_v32 = vor.u32 %v6355_v21, %v6354_v30  ;;  %v5362_v35 = vrot.slane %v5360_v37, 3 }
 0x6e5   : > { %9785 = vmatmul.mubr.msk.bf16.vlgmr.msra.gmra.mrb[52].mxu1 %vm714_vm8, %v14361_v17  ;;  %9921 = vmatmul.mubr.msk.bf16.vlgmr.msra.gmra.mrb[64].mxu0 %vm714_vm8, %v14366_v1  ;;  %v14379_v43 = vsel %vm1862_vm6, %v14351_v22, %v5357_v34  ;;  %v5365_v11 = vrot.slane %v5363_v3, 4  ;;  %v6358_v57 = vrot.slane %v5360_v37, 4  ;;  %v6359_v39 = vrot.slane %v5363_v3, 5 }
 0x6e6   : > { %9817 = vmatpush3.bf16.msra.mxu1 %v5725_v2  ;;  %9788 = vmatprep.mubr.msk.bf16.mxu1 %vm714_vm8, %v14379_v43  ;;  %v14387_v51 = vsel %vm2878_vm7, %v14353_v41, %v6356_v32  ;;  %v5371_v6 = vrot.slane %v5369_v48, 3  ;;  %v5374_v49 = vrot.slane %v5372_v60, 4  ;;  %v6362_v36 = vrot.slane %v5369_v48, 4 }
 0x6e7   : > { %9924 = vmatprep.mubr.msk.bf16.mxu0 %vm714_vm8, %v14387_v51  ;;  %v6363_v14 = vrot.slane %v5372_v60, 5  ;;  %v5378_v10 = vshrl.u32 %v14369_v18, 16  ;;  %9953 = vmatpush3.bf16.msra.mxu0 %v6659_v5  ;;  %v5366_v2 = vor.u32 %v5365_v11, %v5362_v35  ;;  %v6360_v61 = vor.u32 %v6359_v39, %v6358_v57 }
 0x6e8   : > { %v5375_v25 = vor.u32 %v5374_v49, %v5371_v6  ;;  %v5381_v26 = vshll.u32 %v14369_v18, 16  ;;  %10520 = vmatprep.subr.msk.bf16.mxu1 %vm1504_vm3, %v14371_v63  ;;  %10526 = vmatprep.subr.msk.bf16.mxu0 %vm1504_vm3, %v14381_v15  ;;  %v5387_v42 = vshrl.u32 %v14389_v62, 16  ;;  %v5390_v5 = vshll.u32 %v14389_v62, 16  ;;  %v14435_v49 = vld [vmem:[#allocation3 + $0x58] sm:$0xff] }
 0x6e9   : > { %v6364_v56 = vor.u32 %v6363_v14, %v6362_v36  ;;  %v5380_v50 = vrot.slane %v5378_v10, 3  ;;  %v6366_v54 = vrot.slane %v5378_v10, 4  ;;  %v14402_v40 = vsel %vm1862_vm6, %v5357_v34, %v5366_v2  ;;  %v5295_v34 = vld [vmem:[#allocation3] sm:$0xf8] }
 0x6ea   : > { %v5383_v20 = vrot.slane %v5381_v26, 4  ;;  %v6367_v19 = vrot.slane %v5381_v26, 5  ;;  %v14405_v31 = vsel %vm2878_vm7, %v6356_v32, %v6360_v61  ;;  %v14408_v46 = vsel %vm1862_vm6, %v5366_v2, %v5375_v25 }
 0x6eb   : > { %v14411_v0 = vsel %vm2878_vm7, %v6360_v61, %v6364_v56  ;;  %v5389_v28 = vrot.slane %v5387_v42, 3  ;;  %v5392_v8 = vrot.slane %v5390_v5, 4  ;;  %v6370_v44 = vrot.slane %v5387_v42, 4  ;;  %v14437_v61 = vld [vmem:[#allocation3 + $0x60] sm:$0xff] }
 0x6ec   : > { %16140 = vst [vmem:[#allocation59_spill] sm:$0xff] %v14411_v0  ;;  %v6371_v16 = vrot.slane %v5390_v5, 5  ;;  %v5384_v27 = vor.u32 %v5383_v20, %v5380_v50  ;;  %v6368_v55 = vor.u32 %v6367_v19, %v6366_v54  ;;  %v5396_v30 = vshrl.u32 %v14413_v9, 16  ;;  %v14455_v54 = vld [vmem:[#allocation3] sm:$0xf0] }
 0x6ed   : > { %9789 = vmatmul.mubr.msk.bf16.gmra.mrb[56].mxu1 %vm714_vm8, %v14402_v40  ;;  %9925 = vmatmul.mubr.msk.bf16.gmra.mrb[68].mxu0 %vm714_vm8, %v14405_v31  ;;  %v5399_v21 = vshll.u32 %v14413_v9, 16  ;;  %v5405_v37 = vshrl.u32 %v14419_v4, 16  ;;  %v5408_v3 = vshll.u32 %v14419_v4, 16  ;;  %v5393_v48 = vor.u32 %v5392_v8, %v5389_v28 }
 0x6ee   : > { %9792 = vmatprep.mubr.msk.bf16.mxu1 %vm714_vm8, %v14408_v46  ;;  %9928 = vmatprep.mubr.msk.bf16.mxu0 %vm714_vm8, %v14411_v0  ;;  %v6372_v32 = vor.u32 %v6371_v16, %v6370_v44  ;;  %v5689_v60 = vshrl.u32 %v5295_v34, 16  ;;  %v5692_v35 = vshll.u32 %v5295_v34, 16  ;;  %v14430_v11 = vsel %vm1862_vm6, %v5375_v25, %v5384_v27  ;;  %v14507_v0 = vld [vmem:[#allocation3 + $0x88] sm:$0xf] }
 0x6ef   : > { %16141 = vst [vmem:[#allocation42_spill] sm:$0xff] %v14430_v11  ;;  %v14433_v57 = vsel %vm2878_vm7, %v6364_v56, %v6368_v55  ;;  %v5398_v39 = vrot.slane %v5396_v30, 3  ;;  %v5401_v6 = vrot.slane %v5399_v21, 4  ;;  %v6374_v36 = vrot.slane %v5396_v30, 4  ;;  %v14463_v30 = vld [vmem:[#allocation3 + $0x68] sm:$0xff] }
 0x6f0   : > { %16142 = vst [vmem:[#allocation72_spill] sm:$0xff] %v14433_v57  ;;  %v6375_v14 = vrot.slane %v5399_v21, 5  ;;  %v5407_v10 = vrot.slane %v5405_v37, 3  ;;  %v5410_v2 = vrot.slane %v5408_v3, 4  ;;  %v14444_v25 = vsel %vm1862_vm6, %v5384_v27, %v5393_v48 }
 0x6f1   : > { %16143 = vst [vmem:[#allocation75_spill] sm:$0xff] %v14444_v25  ;;  %v14447_v26 = vsel %vm2878_vm7, %v6368_v55, %v6372_v32  ;;  %v6378_v56 = vrot.slane %v5405_v37, 4  ;;  %v6379_v42 = vrot.slane %v5408_v3, 5  ;;  %v5414_v50 = vshrl.u32 %v14435_v49, 16 }
 0x6f2   : > { %16144 = vst [vmem:[#allocation71_spill] sm:$0xff] %v14447_v26  ;;  %v5417_v20 = vshll.u32 %v14435_v49, 16  ;;  %v5423_v19 = vshrl.u32 %v14437_v61, 16  ;;  %v5426_v5 = vshll.u32 %v14437_v61, 16  ;;  %v5402_v28 = vor.u32 %v5401_v6, %v5398_v39 }
 0x6f3   : > { %v6376_v8 = vor.u32 %v6375_v14, %v6374_v36  ;;  %v14459_v44 = vrot.slane %v5689_v60, 3  ;;  %v14461_v16 = vrot.slane %v5692_v35, 4  ;;  %v5411_v27 = vor.u32 %v5410_v2, %v5407_v10  ;;  %v14469_v35 = vld [vmem:[#allocation3 + $0x78] sm:$0xff] }
 0x6f4   : > { %v6380_v55 = vor.u32 %v6379_v42, %v6378_v56  ;;  %v6628_v21 = vshrl.u32 %v14455_v54, 16  ;;  %v5416_v37 = vrot.slane %v5414_v50, 3  ;;  %v5419_v3 = vrot.slane %v5417_v20, 4  ;;  %v14479_v42 = vld [vmem:[#allocation3 + $0x80] sm:$0xff] }
 0x6f5   : > { %9793 = vmatmul.mubr.msk.bf16.gmra.mrb[60].mxu1 %vm714_vm8, %v14430_v11  ;;  %9929 = vmatmul.mubr.msk.bf16.gmra.mrb[72].mxu0 %vm714_vm8, %v14433_v57  ;;  %v6382_v29 = vrot.slane %v5414_v50, 4  ;;  %v6383_v24 = vrot.slane %v5417_v20, 5  ;;  %v5425_v39 = vrot.slane %v5423_v19, 3  ;;  %v5428_v6 = vrot.slane %v5426_v5, 4 }
 0x6f6   : > { %9796 = vmatprep.mubr.msk.bf16.mxu1 %vm714_vm8, %v14444_v25  ;;  %9932 = vmatprep.mubr.msk.bf16.mxu0 %vm714_vm8, %v14447_v26  ;;  %v6386_v60 = vrot.slane %v5423_v19, 4  ;;  %v6387_v36 = vrot.slane %v5426_v5, 5  ;;  %v14472_v14 = vsel %vm1862_vm6, %v5393_v48, %v5402_v28  ;;  %v14475_v10 = vsel %vm2878_vm7, %v6372_v32, %v6376_v8 }
 0x6f7   : > { %16145 = vst [vmem:[#allocation74_spill] sm:$0xff] %v14472_v14  ;;  %16146 = vst [vmem:[#allocation76_spill] sm:$0xff] %v14475_v10  ;;  %v5432_v2 = vshrl.u32 %v14463_v30, 16  ;;  %v5435_v56 = vshll.u32 %v14463_v30, 16  ;;  %v14486_v50 = vsel %vm1862_vm6, %v5402_v28, %v5411_v27  ;;  %v14489_v48 = vsel %vm2878_vm7, %v6376_v8, %v6380_v55 }
 0x6f8   : > { %16147 = vst [vmem:[#allocation78_spill] sm:$0xff] %v14486_v50  ;;  %16148 = vst [vmem:[#allocation77_spill] sm:$0xff] %v14489_v48  ;;  %v5441_v32 = vshrl.u32 %v14467_v33, 16  ;;  %v5444_v20 = vshll.u32 %v14467_v33, 16  ;;  %v5420_v19 = vor.u32 %v5419_v3, %v5416_v37  ;;  %v6384_v5 = vor.u32 %v6383_v24, %v6382_v29 }
 0x6f9   : > { %v5450_v34 = vshrl.u32 %v14469_v35, 16  ;;  %v5453_v28 = vshll.u32 %v14469_v35, 16  ;;  %v5429_v7 = vor.u32 %v5428_v6, %v5425_v39  ;;  %v6388_v13 = vor.u32 %v6387_v36, %v6386_v60 }
 0x6fa   : > { %v5459_v8 = vshrl.u32 %v14479_v42, 16  ;;  %v5462_v38 = vshll.u32 %v14479_v42, 16  ;;  %v5434_v22 = vrot.slane %v5432_v2, 3  ;;  %v5437_v41 = vrot.slane %v5435_v56, 4 }
 0x6fb   : > { %v5446_v26 = vrot.slane %v5444_v20, 4  ;;  %v6394_v25 = vrot.slane %v5441_v32, 4  ;;  %v5452_v37 = vrot.slane %v5450_v34, 3  ;;  %v5455_v24 = vrot.slane %v5453_v28, 4 }
 0x6fc   : > { %v6398_v29 = vrot.slane %v5450_v34, 4  ;;  %v6399_v3 = vrot.slane %v5453_v28, 5  ;;  %v14502_v57 = vsel %vm1862_vm6, %v5411_v27, %v5420_v19  ;;  %v14505_v39 = vsel %vm2878_vm7, %v6380_v55, %v6384_v5 }
 0x6fd   : > { %9797 = vmatmul.mubr.msk.bf16.gmra.mrb[64].mxu1 %vm714_vm8, %v14472_v14  ;;  %9933 = vmatmul.mubr.msk.bf16.gmra.mrb[76].mxu0 %vm714_vm8, %v14475_v10  ;;  %v6390_v10 = vrot.slane %v5432_v2, 4  ;;  %v6391_v14 = vrot.slane %v5435_v56, 5  ;;  %v5461_v6 = vrot.slane %v5459_v8, 3  ;;  %v5464_v60 = vrot.slane %v5462_v38, 4 }
 0x6fe   : > { %9800 = vmatprep.mubr.msk.bf16.mxu1 %vm714_vm8, %v14486_v50  ;;  %9936 = vmatprep.mubr.msk.bf16.mxu0 %vm714_vm8, %v14489_v48  ;;  %v5443_v50 = vrot.slane %v5441_v32, 3  ;;  %v6395_v48 = vrot.slane %v5444_v20, 5  ;;  %v5438_v36 = vor.u32 %v5437_v41, %v5434_v22  ;;  %v6402_v2 = vrot.slane %v5459_v8, 4  ;;  %v14519_v32 = vld [vmem:[#allocation3 + $0x8] sm:$0xff] }
 0x6ff   : > { %v6392_v11 = vor.u32 %v6391_v14, %v6390_v10  ;;  %v6403_v56 = vrot.slane %v5462_v38, 5  ;;  %v14514_v27 = vsel %vm1862_vm6, %v5420_v19, %v5429_v7  ;;  %v14517_v55 = vsel %vm2878_vm7, %v6384_v5, %v6388_v13  ;;  %v6335_v10 = vld [vmem:[#allocation3 + $0x88] sm:$0x1f] }
 0x700   : > { %v5447_v34 = vor.u32 %v5446_v26, %v5443_v50  ;;  %v14521_v22 = vrot.slane %v6628_v21, 4  ;;  %v6396_v38 = vor.u32 %v6395_v48, %v6394_v25  ;;  %v14527_v41 = vor.u32 %v5455_v24, %v5452_v37 }
 0x701   : > { %v14529_v14 = vor.u32 %v6399_v3, %v6398_v29  ;;  %v16150_v20 = vshll.u32 %v14455_v54, 16  ;;  %v14535_v26 = vor.u32 %v5464_v60, %v5461_v6  ;;  %v5468_v21 = vshrl.u32 %v14507_v0, 16 }
 0x702   : > { %v5471_v50 = vshll.u32 %v14507_v0, 16  ;;  %v14541_v28 = vsel %vm1862_vm6, %v5429_v7, %v5438_v36  ;;  %v14544_v25 = vsel %vm2878_vm7, %v6388_v13, %v6392_v11  ;;  %v14546_v48 = vor.u32 %v6403_v56, %v6402_v2 }
 0x703   : > { %16149 = vst [vmem:[#allocation82_spill] sm:$0xff] %v14529_v14  ;;  %v14533_v19 = vrot.slane %v16150_v20, 5  ;;  %v5697_v8 = vshrl.u32 %v14519_v32, 16  ;;  %v6407_v37 = vshrl.u32 %v6335_v10, 16  ;;  %v6410_v24 = vshll.u32 %v6335_v10, 16 }
 0x704   : > { %v5908_v29 = vrot.slane %v14317_v23, 4  ;;  %v14551_v3 = vrot.slane %v14319_v47, 4  ;;  %v14554_v6 = vsel %vm1862_vm6, %v5438_v36, %v5447_v34  ;;  %v14557_v7 = vsel %vm2878_vm7, %v6392_v11, %v6396_v38 }
 0x705   : > { %9801 = vmatmul.mubr.msk.bf16.gmra.mrb[68].mxu1 %vm714_vm8, %v14502_v57  ;;  %9937 = vmatmul.mubr.msk.bf16.gmra.mrb[80].mxu0 %vm714_vm8, %v14505_v39  ;;  %v14561_v13 = vsel %vm1862_vm6, %v5447_v34, %v14527_v41  ;;  %v14565_v60 = vsel %vm2878_vm7, %v6396_v38, %v14529_v14  ;;  %v14570_v23 = vsel %vm1862_vm6, %v14527_v41, %v14535_v26  ;;  %v14572_v47 = vrot.slane %v5468_v21, 3 }
 0x706   : > { %9804 = vmatprep.mubr.msk.bf16.mxu1 %vm714_vm8, %v14514_v27  ;;  %9940 = vmatprep.mubr.msk.bf16.mxu0 %vm714_vm8, %v14517_v55  ;;  %16151 = vst [vmem:[#allocation85_spill] sm:$0xff] %v14570_v23  ;;  %v14574_v36 = vrot.slane %v5471_v50, 4  ;;  %v14578_v11 = vsel %vm1504_vm3, %v5908_v29, %v14551_v3  ;;  %v14583_v2 = vsel %vm2878_vm7, %v14529_v14, %v14546_v48  ;;  %v5699_v56 = vrot.slane %v5697_v8, 3 }
 0x707   : > { %16152 = vst [vmem:[#allocation86_spill] sm:$0xff] %v14578_v11  ;;  %16153 = vst [vmem:[#allocation87_spill] sm:$0xff] %v14583_v2  ;;  %v5700_v34 = vshll.u32 %v14519_v32, 16  ;;  %v14587_v38 = vrot.slane %v14325_v52, 4  ;;  %v14593_v10 = vrot.slane %v6407_v37, 4  ;;  %v14595_v20 = vrot.slane %v6410_v24, 5 }
 0x708   : > { %v5913_v21 = vrot.slane %v14331_v12, 4  ;;  %v5915_v50 = vrot.slane %v14341_v59, 4  ;;  %v6635_v52 = vrot.slane %v5697_v8, 4  ;;  %v5917_v37 = vrot.slane %v14343_v45, 4 }
 0x709   : > { %v14606_v29 = vsel %vm1504_vm3, %v14551_v3, %v14587_v38  ;;  %v5919_v24 = vrot.slane %v14369_v18, 4  ;;  %v5921_v5 = vrot.slane %v14389_v62, 4  ;;  %v5923_v8 = vrot.slane %v14413_v9, 4  ;;  %v14634_v9 = vld [vmem:[#allocation3 + $0x88] sm:$0xff] }
 0x70a   : > { %16154 = vst [vmem:[#allocation88_spill] sm:$0xff] %v14606_v29  ;;  %v14612_v12 = vsel %vm1504_vm3, %v14587_v38, %v5913_v21  ;;  %v14615_v59 = vsel %vm1504_vm3, %v5913_v21, %v5915_v50  ;;  %v5702_v11 = vrot.slane %v5700_v34, 4  ;;  %v14620_v14 = vsel %vm1504_vm3, %v5915_v50, %v5917_v37 }
 0x70b   : > { %16155 = vst [vmem:[#allocation89_spill] sm:$0xff] %v14612_v12  ;;  %16156 = vst [vmem:[#allocation90_spill] sm:$0xff] %v14615_v59  ;;  %v14623_v29 = vsel %vm1504_vm3, %v5917_v37, %v5919_v24  ;;  %v5925_v45 = vrot.slane %v14419_v4, 4  ;;  %v14627_v18 = vsel %vm1504_vm3, %v5919_v24, %v5921_v5  ;;  %v14630_v12 = vsel %vm1504_vm3, %v5921_v5, %v5923_v8 }
 0x70c   : > { %16157 = vst [vmem:[#allocation91_spill] sm:$0xff] %v14623_v29  ;;  %v5927_v21 = vrot.slane %v14435_v49, 4  ;;  %v5929_v62 = vrot.slane %v14437_v61, 4  ;;  %v6636_v59 = vrot.slane %v5700_v34, 5  ;;  %v5931_v37 = vrot.slane %v14463_v30, 4 }
 0x70d   : > { %9805 = vmatmul.mubr.msk.bf16.gmra.mrb[72].mxu1 %vm714_vm8, %v14541_v28  ;;  %9941 = vmatmul.mubr.msk.bf16.gmra.mrb[84].mxu0 %vm714_vm8, %v14544_v25  ;;  %v14637_v50 = vsel %vm1504_vm3, %v5923_v8, %v5925_v45  ;;  %v5933_v4 = vrot.slane %v14467_v33, 4  ;;  %v14641_v29 = vld [vmem:[#allocation3 + $0x80] sm:$0xf]  ;;  %v5935_v49 = vrot.slane %v14469_v35, 4  ;;  %v5937_v61 = vrot.slane %v14479_v42, 4 }
 0x70e   : > { %9808 = vmatprep.mubr.msk.bf16.mxu1 %vm714_vm8, %v14554_v6  ;;  %9944 = vmatprep.mubr.msk.bf16.mxu0 %vm714_vm8, %v14557_v7  ;;  %v14644_v24 = vsel %vm1504_vm3, %v5925_v45, %v5927_v21  ;;  %v14647_v5 = vsel %vm1504_vm3, %v5927_v21, %v5929_v62  ;;  %v14651_v34 = vld [vmem:[#allocation3 + $0x90] sm:$0xf]  ;;  %v14654_v8 = vsel %vm1504_vm3, %v5929_v62, %v5931_v37  ;;  %v5939_v21 = vrot.slane %v14507_v0, 4  ;;  %v14681_v45 = vld [vmem:[#allocation3 + $0x10] sm:$0xf0] }
 0x70f   : > { %16158 = vst [vmem:[#allocation92_spill] sm:$0xff] %v14651_v34  ;;  %v14657_v30 = vsel %vm1504_vm3, %v5931_v37, %v5933_v4  ;;  %v14666_v35 = vsel %vm1504_vm3, %v5933_v4, %v5935_v49  ;;  %v14669_v42 = vsel %vm1504_vm3, %v5935_v49, %v5937_v61  ;;  %v6157_v62 = vrot.slane %v14519_v32, 4 }
 0x710   : > { %16159 = vst [vmem:[#allocation93_spill] sm:$0xff] %v14669_v42  ;;  %v5695_v37 = vor.u32 %v14461_v16, %v14459_v44  ;;  %v6634_v4 = vor.u32 %v14533_v19, %v14521_v22  ;;  %v6160_v33 = vrot.slane %v14641_v29, 4  ;;  %v7288_v0 = vrot.slane %v14651_v34, 4 }
 0x711   : > { %v5474_v32 = vor.u32 %v14574_v36, %v14572_v47  ;;  %v16160_v42 = vrot.slane %v14455_v54, 4  ;;  %v14697_v44 = vsel %vm1504_vm3, %v6157_v62, %v14551_v3  ;;  %v6413_v16 = vor.u32 %v14595_v20, %v14593_v10 }
 0x712   : > { %v5703_v22 = vor.u32 %v5702_v11, %v5699_v56  ;;  %v14702_v19 = vsel %vm1504_vm3, %v5935_v49, %v6160_v33  ;;  %v16162_v47 = vshrl.u32 %v14634_v9, 16  ;;  %v16163_v54 = vshll.u32 %v14634_v9, 16 }
 0x713   : > { %v5475_v56 = vsel %vm1862_vm6, %v14535_v26, %v5474_v32  ;;  %v6414_v20 = vsel %vm2878_vm7, %v14546_v48, %v6413_v16  ;;  %v7663_v33 = vsel %vm1504_vm3, %v14381_v15, 0  ;;  %v16169_v15 = vld [vmem:[#allocation74_spill] sm:$0xff]  ;;  %v5707_v32 = vshrl.u32 %v14641_v29, 16 }
 0x714   : > { %v6978_v36 = vrot.slane %v16162_v47, 3  ;;  %v6981_v34 = vrot.slane %v16163_v54, 4  ;;  %v5710_v16 = vshll.u32 %v14641_v29, 16 }
 0x715   : > { %9809 = vmatmul.mubr.msk.bf16.gmra.mrb[76].mxu1 %vm714_vm8, %v14561_v13  ;;  %9945 = vmatmul.mubr.msk.bf16.gmra.mrb[88].mxu0 %vm714_vm8, %v14565_v60  ;;  %v5709_v54 = vrot.slane %v5707_v32, 3 }
 0x716   : > { %9812 = vmatprep.mubr.msk.bf16.mxu1 %vm714_vm8, %v14570_v23  ;;  %9948 = vmatprep.mubr.msk.bf16.mxu0 %vm714_vm8, %v14583_v2  ;;  %v14688_v23 = vsel %vm1504_vm3, %v5937_v61, %v5939_v21  ;;  %v14693_v2 = vsel %vm1504_vm3, %v16160_v42, %v6157_v62  ;;  %v6637_v21 = vor.u32 %v6636_v59, %v6635_v52  ;;  %v7257_v42 = vrot.slane %v14681_v45, 4  ;;  %v16170_v62 = vld [vmem:[#allocation76_spill] sm:$0xff] }
 0x717   : > { %16161 = vst [vmem:[#allocation94_spill] sm:$0xff] %v14693_v2  ;;  %v7286_v2 = vrot.slane %v14634_v9, 4  ;;  %v14710_v3 = vor.u32 %v6981_v34, %v6978_v36  ;;  %v5704_v59 = vsel %vm1862_vm6, %v5695_v37, %v5703_v22  ;;  %v16171_v37 = vld [vmem:[#allocation78_spill] sm:$0xff]  ;;  %v7538_v36 = vshrl.u32 %v14681_v45, 16 }
 0x718   : > { %v14714_v10 = vsel %vm1504_vm3, %v7257_v42, %v14587_v38  ;;  %v6638_v38 = vsel %vm2878_vm7, %v6634_v4, %v6637_v21  ;;  %v6639_v34 = vsel %vm2878_vm7, %v6637_v21, %v14337_v53  ;;  %v16165_v53 = vld [vmem:[#allocation42_spill] sm:$0xff]  ;;  %v16172_v4 = vld [vmem:[#allocation77_spill] sm:$0xff]  ;;  %v7541_v21 = vshll.u32 %v14681_v45, 16 }
 0x719   : > { %v14717_v11 = vsel %vm1504_vm3, %v5937_v61, %v7286_v2  ;;  %v14724_v52 = vsel %vm1504_vm3, %v7286_v2, %v7288_v0  ;;  %v14733_v49 = vsel %vm1862_vm6, %v14535_v26, %v14710_v3  ;;  %v5990_v2 = vsel %vm1504_vm3, %v14371_v63, 0  ;;  %v5315_v26 = vld [vmem:[#allocation21 + $0x4] sm:$0xf]  ;;  %v16168_v63 = vld [vmem:[#allocation71_spill] sm:$0xff] }
 0x71a   : > { %v5705_v61 = vsel %vm1862_vm6, %v5703_v22, %v14335_v58  ;;  %v16164_v58 = vld [vmem:[#allocation59_spill] sm:$0xff]  ;;  %v5712_v42 = vrot.slane %v5710_v16, 4  ;;  %v16175_v16 = vld [vmem:[#allocation86_spill] sm:$0xff] }
 0x71b   : > { %v5316_v0 = vld [vmem:[#allocation3 + $0x80] sm:$0x1f] }
 0x71c   : > { %v6641_v22 = vshrl.u32 %v5316_v0, 16  ;;  %v6644_v47 = vshll.u32 %v5316_v0, 16  ;;  %v5713_v29 = vor.u32 %v5712_v42, %v5709_v54  ;;  %v16174_v0 = vld [vmem:[#allocation58_spill] sm:$0xff] }
 0x71d   : > { %9813 = vmatmul.mubr.msk.bf16.gmra.mrb[80].mxu1 %vm714_vm8, %v5475_v56  ;;  %9949 = vmatmul.mubr.msk.bf16.gmra.mrb[92].mxu0 %vm714_vm8, %v6414_v20 }
 0x71e   : > { %9818 = vmatprep.mubr.msk.bf16.mxu1 %vm714_vm8, %v5704_v59  ;;  %9954 = vmatprep.mubr.msk.bf16.mxu0 %vm714_vm8, %v6638_v38  ;;  %v6643_v56 = vrot.slane %v6641_v22, 4  ;;  %v6646_v20 = vrot.slane %v6644_v47, 5  ;;  %v7540_v59 = vrot.slane %v7538_v36, 4  ;;  %v7543_v38 = vrot.slane %v7541_v21, 5  ;;  %v6840_v47 = vld [vmem:[#allocation21 + $0x18] sm:$0xf] }
 0x71f   : > { %v6172_v22 = vsel %vm1504_vm3, %v5315_v26, 0  ;;  %v16176_v36 = vld [vmem:[#allocation88_spill] sm:$0xff]  ;;  %v16178_v21 = vld [vmem:[#allocation90_spill] sm:$0xff] }
 0x720   : > { %v6647_v45 = vor.u32 %v6646_v20, %v6643_v56  ;;  %v16183_v56 = vld [vmem:[#allocation93_spill] sm:$0xff] }
 0x725   : > { %9819 = vmatmul.mubr.msk.bf16.vlgmr.msra.gmra.mrb[52].mxu1 %vm714_vm8, %v5705_v61  ;;  %9955 = vmatmul.mubr.msk.bf16.vlgmr.msra.gmra.mrb[64].mxu0 %vm714_vm8, %v6639_v34  ;;  %v5714_v61 = vsel %vm1862_vm6, %v14527_v41, %v5713_v29  ;;  %v16173_v34 = vld [vmem:[#allocation82_spill] sm:$0xff]  ;;  %v16177_v41 = vld [vmem:[#allocation89_spill] sm:$0xff] }
 0x726   : > { %9851 = vmatpush3.bf16.msra.mxu1 %v5990_v2  ;;  %9822 = vmatprep.mubr.msk.bf16.mxu1 %vm714_vm8, %v14361_v17  ;;  %v16166_v17 = vld [vmem:[#allocation72_spill] sm:$0xff]  ;;  %v7544_v2 = vor.u32 %v7543_v38, %v7540_v59  ;;  %v16184_v59 = vld [vmem:[#allocation94_spill] sm:$0xff]  ;;  %v7239_v38 = vld [vmem:[#allocation21 + $0x1c] sm:$0xf] }
 0x727   : > { %9958 = vmatprep.mubr.msk.bf16.mxu0 %vm714_vm8, %v14366_v1  ;;  %10055 = vmatpush3.bf16.msra.mxu0 %v7663_v33  ;;  %v16167_v1 = vld [vmem:[#allocation75_spill] sm:$0xff]  ;;  %v6648_v33 = vsel %vm2878_vm7, %v16173_v34, %v6647_v45  ;;  %v10974_v45 = vld [vmem:[%s12012_s18 + $0x10] sm:$0xff] }
 0x728   : > { %10521 = vmatprep.subr.msk.bf16.mxu1 %vm1504_vm3, %v5315_v26  ;;  %v7548_v32 = vsel %vm2878_vm7, %v7544_v2, %v16174_v0  ;;  %v10975_v2 = vld [vmem:[%s12012_s18 + $0x18] sm:$0xff]  ;;  %v10976_v34 = vld [vmem:[%s12012_s18 + $0x20] sm:$0xff] }
 0x72d   : > { %9823 = vmatmul.mubr.msk.bf16.gmra.mrb[56].mxu1 %vm714_vm8, %v14379_v43  ;;  %9959 = vmatmul.mubr.msk.bf16.gmra.mrb[68].mxu0 %vm714_vm8, %v14387_v51 }
 0x72e   : > { %9826 = vmatprep.mubr.msk.bf16.mxu1 %vm714_vm8, %v14402_v40  ;;  %9962 = vmatprep.mubr.msk.bf16.mxu0 %vm714_vm8, %v14405_v31 }
 0x735   : > { %9827 = vmatmul.mubr.msk.bf16.gmra.mrb[60].mxu1 %vm714_vm8, %v14408_v46  ;;  %9963 = vmatmul.mubr.msk.bf16.gmra.mrb[72].mxu0 %vm714_vm8, %v16164_v58 }
 0x736   : > { %9830 = vmatprep.mubr.msk.bf16.mxu1 %vm714_vm8, %v16165_v53  ;;  %9966 = vmatprep.mubr.msk.bf16.mxu0 %vm714_vm8, %v16166_v17 }
 0x73d   : > { %9831 = vmatmul.mubr.msk.bf16.gmra.mrb[64].mxu1 %vm714_vm8, %v16167_v1  ;;  %9967 = vmatmul.mubr.msk.bf16.gmra.mrb[76].mxu0 %vm714_vm8, %v16168_v63 }
 0x73e   : > { %9834 = vmatprep.mubr.msk.bf16.mxu1 %vm714_vm8, %v16169_v15  ;;  %9970 = vmatprep.mubr.msk.bf16.mxu0 %vm714_vm8, %v16170_v62 }
 0x745   : > { %9835 = vmatmul.mubr.msk.bf16.gmra.mrb[68].mxu1 %vm714_vm8, %v16171_v37  ;;  %9971 = vmatmul.mubr.msk.bf16.gmra.mrb[80].mxu0 %vm714_vm8, %v16172_v4 }
 0x746   : > { %9838 = vmatprep.mubr.msk.bf16.mxu1 %vm714_vm8, %v14502_v57  ;;  %9974 = vmatprep.mubr.msk.bf16.mxu0 %vm714_vm8, %v14505_v39 }
 0x74d   : > { %9839 = vmatmul.mubr.msk.bf16.gmra.mrb[72].mxu1 %vm714_vm8, %v14514_v27  ;;  %9975 = vmatmul.mubr.msk.bf16.gmra.mrb[84].mxu0 %vm714_vm8, %v14517_v55 }
 0x74e   : > { %9842 = vmatprep.mubr.msk.bf16.mxu1 %vm714_vm8, %v14541_v28  ;;  %9978 = vmatprep.mubr.msk.bf16.mxu0 %vm714_vm8, %v14544_v25 }
 0x755   : > { %9843 = vmatmul.mubr.msk.bf16.gmra.mrb[76].mxu1 %vm714_vm8, %v14554_v6  ;;  %9979 = vmatmul.mubr.msk.bf16.gmra.mrb[88].mxu0 %vm714_vm8, %v14557_v7 }
 0x756   : > { %9846 = vmatprep.mubr.msk.bf16.mxu1 %vm714_vm8, %v14561_v13  ;;  %9982 = vmatprep.mubr.msk.bf16.mxu0 %vm714_vm8, %v14565_v60 }
 0x75d   : > { %9847 = vmatmul.mubr.msk.bf16.gmra.mrb[80].mxu1 %vm714_vm8, %v5714_v61  ;;  %9983 = vmatmul.mubr.msk.bf16.gmra.mrb[92].mxu0 %vm714_vm8, %v6648_v33  ;;  %v8218_v61 = vpack.c.bf16 %v10975_v2, %v10974_v45  ;;  %v10977_v33 = vld [vmem:[%s12012_s18 + $0x28] sm:$0xff]  ;;  %v10990_v2 = vld [vmem:[%s12012_s18 + $0x90] sm:$0xff] }
 0x75e   : > { %9852 = vmatprep.mubr.msk.bf16.mxu1 %vm714_vm8, %v16175_v16  ;;  %10056 = vmatprep.mubr.msk.bf16.mxu0 %vm714_vm8, %v7548_v32  ;;  %v8219_v0 = vpack.c.bf16 %v10977_v33, %v10976_v34  ;;  %v10978_v32 = vld [vmem:[%s12012_s18 + $0x30] sm:$0xff]  ;;  %v10979_v16 = vld [vmem:[%s12012_s18 + $0x38] sm:$0xff]  ;;  %v10993_v34 = vld [vmem:[%s12012_s18 + $0xa8] sm:$0xff] }
 0x765   : > { %9853 = vmatmul.mubr.msk.bf16.vlgmr.msra.gmra.mrb[84].mxu1 %vm714_vm8, %v16176_v36  ;;  %10057 = vmatmul.mubr.msk.bf16.vlgmr.msra.gmra.mrb[64].mxu0 %vm714_vm8, %v14387_v51  ;;  %v16179_v51 = vld [vmem:[#allocation91_spill] sm:$0xff] }
 0x766   : > { %9885 = vmatpush3.bf16.msra.mxu1 %v6172_v22  ;;  %9856 = vmatprep.mubr.msk.bf16.mxu1 %vm714_vm8, %v16177_v41  ;;  %v8220_v22 = vpack.c.bf16 %v10979_v16, %v10978_v32  ;;  %v10995_v32 = vld [vmem:[%s12012_s18 + $0xb8] sm:$0xff] }
 0x767   : > { %10060 = vmatprep.mubr.msk.bf16.mxu0 %vm714_vm8, %v14405_v31  ;;  %10524 = vmatprep.subr.msk.bf16.mxu1 %vm1504_vm3, %v6840_v47  ;;  %v8233_v31 = vld [vmem:[#allocation24] sm:$0x3] }
 0x768   : > { %10527 = vmatprep.subr.msk.bf16.mxu0 %vm2063_vm5, %v8233_v31  ;;  %v8290_v26 = vsel %vm2063_vm5, %v8233_v31, 0 }
 0x769   : > { %10089 = vmatpush3.bf16.msra.mxu0 %v8290_v26  ;;  %v10980_v26 = vld [vmem:[%s12012_s18 + $0x40] sm:$0xff] }
 0x76d   : > { %9857 = vmatmul.mubr.msk.bf16.gmra.mrb[88].mxu1 %vm714_vm8, %v16178_v21  ;;  %10061 = vmatmul.mubr.msk.bf16.gmra.mrb[68].mxu0 %vm714_vm8, %v16164_v58  ;;  %v16181_v58 = vshll.u32 %v14634_v9, 16 }
 0x76e   : > { %9860 = vmatprep.mubr.msk.bf16.mxu1 %vm714_vm8, %v14620_v14  ;;  %10064 = vmatprep.mubr.msk.bf16.mxu0 %vm714_vm8, %v16166_v17 }
 0x76f   : > { %v7602_v17 = vrot.slane %v16181_v58, 5  ;;  %v10982_v58 = vld [vmem:[%s12012_s18 + $0x50] sm:$0xff] }
 0x775   : > { %9861 = vmatmul.mubr.msk.bf16.gmra.mrb[92].mxu1 %vm714_vm8, %v16179_v51  ;;  %10065 = vmatmul.mubr.msk.bf16.gmra.mrb[72].mxu0 %vm714_vm8, %v16168_v63  ;;  %v7534_v63 = vld [vmem:[#allocation3 + $0x90] sm:$0x1f] }
 0x776   : > { %9864 = vmatprep.mubr.msk.bf16.mxu1 %vm714_vm8, %v14627_v18  ;;  %10068 = vmatprep.mubr.msk.bf16.mxu0 %vm714_vm8, %v16170_v62  ;;  %v7609_v62 = vshll.u32 %v7534_v63, 16 }
 0x778   : > { %v7611_v42 = vrot.slane %v7609_v62, 5 }
 0x77d   : > { %9865 = vmatmul.mubr.msk.bf16.gmra.mrb[96].mxu1 %vm714_vm8, %v14630_v12  ;;  %10069 = vmatmul.mubr.msk.bf16.gmra.mrb[76].mxu0 %vm714_vm8, %v16172_v4 }
 0x77e   : > { %9868 = vmatprep.mubr.msk.bf16.mxu1 %vm714_vm8, %v14637_v50  ;;  %10072 = vmatprep.mubr.msk.bf16.mxu0 %vm714_vm8, %v14505_v39  ;;  %v16180_v39 = vshrl.u32 %v14634_v9, 16 }
 0x785   : > { %9869 = vmatmul.mubr.msk.bf16.gmra.mrb[100].mxu1 %vm714_vm8, %v14644_v24  ;;  %10073 = vmatmul.mubr.msk.bf16.gmra.mrb[80].mxu0 %vm714_vm8, %v14517_v55  ;;  %v7601_v55 = vrot.slane %v16180_v39, 4  ;;  %v10981_v39 = vld [vmem:[%s12012_s18 + $0x48] sm:$0xff] }
 0x786   : > { %9872 = vmatprep.mubr.msk.bf16.mxu1 %vm714_vm8, %v14647_v5  ;;  %10076 = vmatprep.mubr.msk.bf16.mxu0 %vm714_vm8, %v14544_v25  ;;  %v7606_v25 = vshrl.u32 %v7534_v63, 16 }
 0x787   : > { %v7603_v4 = vor.u32 %v7602_v17, %v7601_v55  ;;  %v8221_v55 = vpack.c.bf16 %v10981_v39, %v10980_v26  ;;  %v10983_v17 = vld [vmem:[%s12012_s18 + $0x58] sm:$0xff]  ;;  %v11000_v26 = vld [vmem:[%s12012_s18 + $0xe0] sm:$0xff] }
 0x788   : > { %v7608_v54 = vrot.slane %v7606_v25, 4  ;;  %v8222_v63 = vpack.c.bf16 %v10983_v17, %v10982_v58 }
 0x789   : > { %v7604_v9 = vsel %vm2878_vm7, %v14546_v48, %v7603_v4  ;;  %v7042_v48 = vsel %vm1504_vm3, %v6840_v47, 0  ;;  %v6822_v47 = vld [vmem:[#allocation3 + $0x10] sm:$0xf8] }
 0x78a   : > { %v6845_v31 = vshll.u32 %v6822_v47, 16 }
 0x78c   : > { %v6847_v62 = vrot.slane %v6845_v31, 4 }
 0x78d   : > { %9873 = vmatmul.mubr.msk.bf16.gmra.mrb[104].mxu1 %vm714_vm8, %v14654_v8  ;;  %10077 = vmatmul.mubr.msk.bf16.gmra.mrb[84].mxu0 %vm714_vm8, %v14557_v7  ;;  %v16182_v7 = vld [vmem:[#allocation87_spill] sm:$0xff] }
 0x78e   : > { %9876 = vmatprep.mubr.msk.bf16.mxu1 %vm714_vm8, %v14657_v30  ;;  %10080 = vmatprep.mubr.msk.bf16.mxu0 %vm714_vm8, %v14565_v60  ;;  %v7612_v60 = vor.u32 %v7611_v42, %v7608_v54  ;;  %v10984_v54 = vld [vmem:[%s12012_s18 + $0x60] sm:$0xff]  ;;  %v10985_v42 = vld [vmem:[%s12012_s18 + $0x68] sm:$0xff] }
 0x790   : > { %v7613_v20 = vsel %vm2878_vm7, %v7603_v4, %v7612_v60  ;;  %v10987_v60 = vld [vmem:[%s12012_s18 + $0x78] sm:$0xff] }
 0x795   : > { %9877 = vmatmul.mubr.msk.bf16.gmra.mrb[108].mxu1 %vm714_vm8, %v14666_v35  ;;  %10081 = vmatmul.mubr.msk.bf16.gmra.mrb[88].mxu0 %vm714_vm8, %v16182_v7  ;;  %v8223_v7 = vpack.c.bf16 %v10985_v42, %v10984_v54 }
 0x796   : > { %9880 = vmatprep.mubr.msk.bf16.mxu1 %vm714_vm8, %v16183_v56  ;;  %10084 = vmatprep.mubr.msk.bf16.mxu0 %vm714_vm8, %v7604_v9  ;;  %v10986_v9 = vld [vmem:[%s12012_s18 + $0x70] sm:$0xff] }
 0x79d   : > { %9881 = vmatmul.mubr.msk.bf16.gmra.mrb[112].mxu1 %vm714_vm8, %v14688_v23  ;;  %10085 = vmatmul.mubr.msk.bf16.gmra.mrb[92].mxu0 %vm714_vm8, %v7613_v20  ;;  %v10972_v23 = vld [vmem:[%s12012_s18] sm:$0xff]  ;;  %v8224_v20 = vpack.c.bf16 %v10987_v60, %v10986_v9 }
 0x79e   : > { %9886 = vmatprep.mubr.msk.bf16.mxu1 %vm714_vm8, %v16184_v59  ;;  %v16185_v59 = vld [vmem:[#allocation60_spill] sm:$0xff] }
 0x7a5   : > { %9887 = vmatmul.mubr.msk.bf16.vlgmr.msra.gmra.mrb[84].mxu1 %vm714_vm8, %v14697_v44  ;;  %v10973_v44 = vld [vmem:[%s12012_s18 + $0x8] sm:$0xff] }
 0x7a6   : > { %9987 = vmatpush3.bf16.msra.mxu1 %v7042_v48  ;;  %9890 = vmatprep.mubr.msk.bf16.mxu1 %vm714_vm8, %v16176_v36  ;;  %v8217_v29 = vpack.c.bf16 %v10973_v44, %v10972_v23  ;;  %v6842_v36 = vshrl.u32 %v6822_v47, 16  ;;  %v7339_v23 = vsel %vm1504_vm3, %v7239_v38, 0  ;;  %v10988_v44 = vld [vmem:[%s12012_s18 + $0x80] sm:$0xff]  ;;  %v10998_v47 = vld [vmem:[%s12012_s18 + $0xd0] sm:$0xff] }
 0x7a7   : > { %10525 = vmatprep.subr.msk.bf16.mxu1 %vm1504_vm3, %v7239_v38  ;;  %v10992_v38 = vld [vmem:[%s12012_s18 + $0xa0] sm:$0xff] }
 0x7a8   : > { %10090 = vmatprep.mubr.msk.bf16.mxu0 %vm707_vm1, %v8217_v29  ;;  %v6844_v25 = vrot.slane %v6842_v36, 3  ;;  %v10989_v29 = vld [vmem:[%s12012_s18 + $0x88] sm:$0xff]  ;;  %v8227_v33 = vpack.c.bf16 %v10993_v34, %v10992_v38  ;;  %v10999_v36 = vld [vmem:[%s12012_s18 + $0xd8] sm:$0xff] }
 0x7a9   : > { %10091 = vmatmul.mubr.msk.bf16.vlgmr.msra.gmra.mrb[96].mxu0 %vm707_vm1, %v8218_v61  ;;  %v8225_v45 = vpack.c.bf16 %v10989_v29, %v10988_v44  ;;  %v8230_v31 = vpack.c.bf16 %v10999_v36, %v10998_v47 }
 0x7aa   : > { %10094 = vmatprep.mubr.msk.bf16.mxu0 %vm707_vm1, %v8219_v0  ;;  %v6848_v4 = vor.u32 %v6847_v62, %v6844_v25  ;;  %v10994_v0 = vld [vmem:[%s12012_s18 + $0xb0] sm:$0xff] }
 0x7ab   : > { %v8228_v16 = vpack.c.bf16 %v10995_v32, %v10994_v0 }
 0x7ac   : > { %v6857_v48 = vsel %vm1862_vm6, %v6848_v4, %v16185_v59 }
 0x7ad   : > { %9891 = vmatmul.mubr.msk.bf16.gmra.mrb[88].mxu1 %vm714_vm8, %v16177_v41 }
 0x7ae   : > { %9894 = vmatprep.mubr.msk.bf16.mxu1 %vm714_vm8, %v16178_v21 }
 0x7b1   : > { %10095 = vmatmul.mubr.msk.bf16.gmra.mrb[100].mxu0 %vm707_vm1, %v8220_v22 }
 0x7b2   : > { %10098 = vmatprep.mubr.msk.bf16.mxu0 %vm707_vm1, %v8221_v55  ;;  %v11003_v55 = vld [vmem:[%s12012_s18 + $0xf8] sm:$0xff] }
 0x7b5   : > { %9895 = vmatmul.mubr.msk.bf16.gmra.mrb[92].mxu1 %vm714_vm8, %v14620_v14 }
 0x7b6   : > { %9898 = vmatprep.mubr.msk.bf16.mxu1 %vm714_vm8, %v16179_v51 }
 0x7b9   : > { %10099 = vmatmul.mubr.msk.bf16.gmra.mrb[104].mxu0 %vm707_vm1, %v8222_v63  ;;  %v16187_v63 = vld [vmem:[#allocation85_spill] sm:$0xff] }
 0x7ba   : > { %10102 = vmatprep.mubr.msk.bf16.mxu0 %vm707_vm1, %v8223_v7 }
 0x7bd   : > { %9899 = vmatmul.mubr.msk.bf16.gmra.mrb[96].mxu1 %vm714_vm8, %v14627_v18 }
 0x7be   : > { %9902 = vmatprep.mubr.msk.bf16.mxu1 %vm714_vm8, %v14630_v12 }
 0x7c1   : > { %10103 = vmatmul.mubr.msk.bf16.gmra.mrb[108].mxu0 %vm707_vm1, %v8224_v20 }
 0x7c2   : > { %10106 = vmatprep.mubr.msk.bf16.mxu0 %vm707_vm1, %v8225_v45 }
 0x7c5   : > { %9903 = vmatmul.mubr.msk.bf16.gmra.mrb[100].mxu1 %vm714_vm8, %v14637_v50 }
 0x7c6   : > { %9906 = vmatprep.mubr.msk.bf16.mxu1 %vm714_vm8, %v14644_v24 }
 0x7cd   : > { %9907 = vmatmul.mubr.msk.bf16.gmra.mrb[104].mxu1 %vm714_vm8, %v14647_v5 }
 0x7ce   : > { %9910 = vmatprep.mubr.msk.bf16.mxu1 %vm714_vm8, %v14654_v8 }
 0x7d5   : > { %9911 = vmatmul.mubr.msk.bf16.gmra.mrb[108].mxu1 %vm714_vm8, %v14657_v30 }
 0x7d6   : > { %9914 = vmatprep.mubr.msk.bf16.mxu1 %vm714_vm8, %v14666_v35 }
 0x7dd   : > { %9915 = vmatmul.mubr.msk.bf16.gmra.mrb[112].mxu1 %vm714_vm8, %v14702_v19  ;;  %v10991_v19 = vld [vmem:[%s12012_s18 + $0x98] sm:$0xff] }
 0x7de   : > { %9988 = vmatprep.mubr.msk.bf16.mxu1 %vm714_vm8, %v6857_v48  ;;  %v8226_v61 = vpack.c.bf16 %v10991_v19, %v10990_v2 }
 0x7e0   : > { %10107 = vmatmul.mubr.msk.bf16.gmra.mrb[112].mxu0 %vm707_vm1, %v8226_v61 }
 0x7e1   : > { %10110 = vmatprep.mubr.msk.bf16.mxu0 %vm707_vm1, %v8227_v33 }
 0x7e5   : > { %9989 = vmatmul.mubr.msk.bf16.vlgmr.msra.gmra.mrb[52].mxu1 %vm714_vm8, %v14379_v43  ;;  %v10996_v43 = vld [vmem:[%s12012_s18 + $0xc0] sm:$0xff] }
 0x7e6   : > { %10021 = vmatpush3.bf16.msra.mxu1 %v7339_v23  ;;  %9992 = vmatprep.mubr.msk.bf16.mxu1 %vm714_vm8, %v14402_v40  ;;  %v10997_v40 = vld [vmem:[%s12012_s18 + $0xc8] sm:$0xff] }
 0x7e7   : > { %v8229_v22 = vpack.c.bf16 %v10997_v40, %v10996_v43 }
 0x7e8   : > { %10111 = vmatmul.mubr.msk.bf16.gmra.mrb[116].mxu0 %vm707_vm1, %v8228_v16 }
 0x7e9   : > { %10114 = vmatprep.mubr.msk.bf16.mxu0 %vm707_vm1, %v8229_v22 }
 0x7ed   : > { %9993 = vmatmul.mubr.msk.bf16.gmra.mrb[56].mxu1 %vm714_vm8, %v14408_v46  ;;  %v11001_v46 = vld [vmem:[%s12012_s18 + $0xe8] sm:$0xff] }
 0x7ee   : > { %9996 = vmatprep.mubr.msk.bf16.mxu1 %vm714_vm8, %v16165_v53  ;;  %v8231_v39 = vpack.c.bf16 %v11001_v46, %v11000_v26  ;;  %v11002_v53 = vld [vmem:[%s12012_s18 + $0xf0] sm:$0xff]  ;;  %s11406_s18 = scalar_lea.vmem %s11405_s29, 8192 }
 0x7ef   : > { %v8232_v58 = vpack.c.bf16 %v11003_v55, %v11002_v53  ;;  %p11408_p1 = scmp.lt.s32.totalorder %s11406_s18, %s11400_s8 }
 0x7f0   : > { %10115 = vmatmul.mubr.msk.bf16.gmra.mrb[120].mxu0 %vm707_vm1, %v8230_v31 }
 0x7f1   : > { %10118 = vmatprep.mubr.msk.bf16.mxu0 %vm707_vm1, %v8231_v39  ;;  %p11409_p3 = por %p11408_p1, %p11407_p13 }
 0x7f3   : > { %p11410_p2 = pnand %p11409_p3, %p11403_p4 }
 0x7f5   : > { %9997 = vmatmul.mubr.msk.bf16.gmra.mrb[60].mxu1 %vm714_vm8, %v16167_v1  ;;  %v16186_v1 = vld [vmem:[#allocation92_spill] sm:$0xff] }
 0x7f6   : > { %10000 = vmatprep.mubr.msk.bf16.mxu1 %vm714_vm8, %v16169_v15  ;;  %v6985_v15 = vshrl.u32 %v16186_v1, 16 }
 0x7f8   : > { %10119 = vmatmul.mubr.msk.bf16.gmra.mrb[124].mxu0 %vm707_vm1, %v8232_v58  ;;  %v6987_v17 = vrot.slane %v6985_v15, 3 }
 0x7fd   : > { %10001 = vmatmul.mubr.msk.bf16.gmra.mrb[64].mxu1 %vm714_vm8, %v16171_v37  ;;  %v6988_v37 = vshll.u32 %v16186_v1, 16 }
 0x7fe   : > { %10004 = vmatprep.mubr.msk.bf16.mxu1 %vm714_vm8, %v14502_v57 }
 0x7ff   : > { %v6990_v57 = vrot.slane %v6988_v37, 4 }
 0x805   : > { %10005 = vmatmul.mubr.msk.bf16.gmra.mrb[68].mxu1 %vm714_vm8, %v14514_v27  ;;  %v6991_v27 = vor.u32 %v6990_v57, %v6987_v17 }
 0x806   : > { %10008 = vmatprep.mubr.msk.bf16.mxu1 %vm714_vm8, %v14541_v28 }
 0x807   : > { %v6992_v28 = vsel %vm1862_vm6, %v14710_v3, %v6991_v27 }
 0x80d   : > { %10009 = vmatmul.mubr.msk.bf16.gmra.mrb[72].mxu1 %vm714_vm8, %v14554_v6 }
 0x80e   : > { %10012 = vmatprep.mubr.msk.bf16.mxu1 %vm714_vm8, %v14561_v13 }
 0x815   : > { %10013 = vmatmul.mubr.msk.bf16.gmra.mrb[76].mxu1 %vm714_vm8, %v16187_v63 }
 0x816   : > { %10016 = vmatprep.mubr.msk.bf16.mxu1 %vm714_vm8, %v14733_v49 }
 0x81d   : > { %10017 = vmatmul.mubr.msk.bf16.gmra.mrb[80].mxu1 %vm714_vm8, %v6992_v28 }
 0x81e   : > { %10022 = vmatprep.mubr.msk.bf16.mxu1 %vm714_vm8, %v14714_v10 }
 0x825   : > { %10023 = vmatmul.mubr.msk.bf16.vlgmr.msra.gmra.mrb[84].mxu1 %vm714_vm8, %v16177_v41 }
 0x826   : > { %10026 = vmatprep.mubr.msk.bf16.mxu1 %vm714_vm8, %v16178_v21 }
 0x82d   : > { %10027 = vmatmul.mubr.msk.bf16.gmra.mrb[88].mxu1 %vm714_vm8, %v14620_v14 }
 0x82e   : > { %10030 = vmatprep.mubr.msk.bf16.mxu1 %vm714_vm8, %v16179_v51 }
 0x835   : > { %10031 = vmatmul.mubr.msk.bf16.gmra.mrb[92].mxu1 %vm714_vm8, %v14627_v18 }
 0x836   : > { %10034 = vmatprep.mubr.msk.bf16.mxu1 %vm714_vm8, %v14630_v12 }
 0x838   : > { %v15017_v6 = vpop.f32.mrb[64].mxu0 }
 0x839   : > { %v15019_v13 = vpop.f32.mrb[65].mxu0 }
 0x83a   : > { %v15021_v3 = vpop.f32.mrb[66].mxu0 }
 0x83b   : > { %v15023_v10 = vpop.f32.mrb[67].mxu0 }
 0x83d   : > { %10035 = vmatmul.mubr.msk.bf16.gmra.mrb[96].mxu1 %vm714_vm8, %v14637_v50 }
 0x83e   : > { %10038 = vmatprep.mubr.msk.bf16.mxu1 %vm714_vm8, %v14644_v24 }
 0x840   : > { %v15029_v14 = vpop.f32.mrb[68].mxu0 }
 0x841   : > { %v15031_v18 = vpop.f32.mrb[69].mxu0 }
 0x842   : > { %v15033_v49 = vpop.f32.mrb[70].mxu0 }
 0x843   : > { %v15035_v12 = vpop.f32.mrb[71].mxu0 }
 0x845   : > { %10039 = vmatmul.mubr.msk.bf16.gmra.mrb[100].mxu1 %vm714_vm8, %v14647_v5 }
 0x846   : > { %10042 = vmatprep.mubr.msk.bf16.mxu1 %vm714_vm8, %v14654_v8 }
 0x848   : > { %v15041_v41 = vpop.f32.mrb[72].mxu0 }
 0x849   : > { %16188 = vst [vmem:[#allocation59_spill] sm:$0xff] %v15041_v41  ;;  %v15043_v50 = vpop.f32.mrb[73].mxu0 }
 0x84a   : > { %16189 = vst [vmem:[#allocation42_spill] sm:$0xff] %v15043_v50  ;;  %v15045_v21 = vpop.f32.mrb[74].mxu0 }
 0x84b   : > { %v15047_v24 = vpop.f32.mrb[75].mxu0 }
 0x84d   : > { %10043 = vmatmul.mubr.msk.bf16.gmra.mrb[104].mxu1 %vm714_vm8, %v14657_v30 }
 0x84e   : > { %10046 = vmatprep.mubr.msk.bf16.mxu1 %vm714_vm8, %v14666_v35 }
 0x850   : > { %v15053_v51 = vpop.f32.mrb[76].mxu0 }
 0x851   : > { %16190 = vst [vmem:[#allocation72_spill] sm:$0xff] %v15053_v51  ;;  %v15055_v5 = vpop.f32.mrb[77].mxu0 }
 0x852   : > { %16191 = vst [vmem:[#allocation75_spill] sm:$0xff] %v15055_v5  ;;  %v15057_v25 = vpop.f32.mrb[78].mxu0 }
 0x853   : > { %v15059_v8 = vpop.f32.mrb[79].mxu0 }
 0x855   : > { %10047 = vmatmul.mubr.msk.bf16.gmra.mrb[108].mxu1 %vm714_vm8, %v16183_v56 }
 0x856   : > { %10050 = vmatprep.mubr.msk.bf16.mxu1 %vm714_vm8, %v14717_v11 }
 0x858   : > { %v15065_v62 = vpop.f32.mrb[80].mxu0 }
 0x859   : > { %16192 = vst [vmem:[#allocation71_spill] sm:$0xff] %v15065_v62  ;;  %v15067_v30 = vpop.f32.mrb[81].mxu0 }
 0x85a   : > { %16193 = vst [vmem:[#allocation74_spill] sm:$0xff] %v15067_v30  ;;  %v15069_v4 = vpop.f32.mrb[82].mxu0 }
 0x85b   : > { %v15071_v35 = vpop.f32.mrb[83].mxu0 }
 0x85d   : > { %10051 = vmatmul.mubr.msk.bf16.gmra.mrb[112].mxu1 %vm714_vm8, %v14724_v52 }
 0x860   : > { %v15075_v54 = vpop.f32.mrb[84].mxu0 }
 0x861   : > { %16194 = vst [vmem:[#allocation76_spill] sm:$0xff] %v15075_v54  ;;  %v15077_v42 = vpop.f32.mrb[85].mxu0 }
 0x862   : > { %16195 = vst [vmem:[#allocation78_spill] sm:$0xff] %v15077_v42  ;;  %v15079_v7 = vpop.f32.mrb[86].mxu0 }
 0x863   : > { %v15081_v56 = vpop.f32.mrb[87].mxu0 }
 0x868   : > { %v15083_v11 = vpop.f32.mrb[88].mxu0 }
 0x869   : > { %16196 = vst [vmem:[#allocation77_spill] sm:$0xff] %v15083_v11  ;;  %v15085_v9 = vpop.f32.mrb[89].mxu0 }
 0x86a   : > { %16197 = vst [vmem:[#allocation82_spill] sm:$0xff] %v15085_v9  ;;  %v15087_v60 = vpop.f32.mrb[90].mxu0 }
 0x86b   : > { %v15089_v20 = vpop.f32.mrb[91].mxu0 }
 0x870   : > { %v15091_v59 = vpop.f32.mrb[92].mxu0 }
 0x871   : > { %16198 = vst [vmem:[#allocation58_spill] sm:$0xff] %v15091_v59  ;;  %v15093_v48 = vpop.f32.mrb[93].mxu0 }
 0x872   : > { %16199 = vst [vmem:[#allocation86_spill] sm:$0xff] %v15093_v48  ;;  %v15095_v52 = vpop.f32.mrb[94].mxu0 }
 0x873   : > { %v15097_v23 = vpop.f32.mrb[95].mxu0 }
 0x87c   : > { %v15099_v44 = vpop.f32.mrb[96].mxu0 }
 0x87d   : > { %v15101_v29 = vpop.f32.mrb[97].mxu0 }
 0x87e   : > { %v15103_v45 = vpop.f32.mrb[98].mxu0 }
 0x87f   : > { %v15105_v2 = vpop.f32.mrb[99].mxu0 }
 0x884   : > { %v15113_v34 = vpop.f32.mrb[100].mxu0 }
 0x885   : > { %v15117_v0 = vpop.f32.mrb[101].mxu0 }
 0x886   : > { %v15119_v32 = vpop.f32.mrb[102].mxu0 }
 0x887   : > { %v15129_v47 = vpop.f32.mrb[103].mxu0 }
 0x88c   : > { %v15131_v36 = vpop.f32.mrb[104].mxu0 }
 0x88d   : > { %v15133_v31 = vpop.f32.mrb[105].mxu0 }
 0x88e   : > { %v15135_v26 = vpop.f32.mrb[106].mxu0 }
 0x88f   : > { %v15145_v58 = vpop.f32.mrb[107].mxu0 }
 0x894   : > { %v15147_v1 = vpop.f32.mrb[108].mxu0 }
 0x895   : > { %v15157_v63 = vpop.f32.mrb[109].mxu0 }
 0x896   : > { %v15159_v27 = vpop.f32.mrb[110].mxu0 }
 0x897   : > { %v15161_v28 = vpop.f32.mrb[111].mxu0 }
 0x8b3   : > { %v15163_v48 = vpop.f32.mrb[112].mxu0 }
 0x8b4   : > { %v15167_v9 = vpop.f32.mrb[113].mxu0 }
 0x8b5   : > { %v15171_v42 = vpop.f32.mrb[114].mxu0 }
 0x8b6   : > { %16205 = vst [vmem:[#allocation93_spill] sm:$0xff] %v15171_v42  ;;  %v15175_v30 = vpop.f32.mrb[115].mxu0 }
 0x8b7   : > { %16207 = vst [vmem:[#allocation60_spill] sm:$0xff] %v15175_v30 }
 0x8b8   : > { %v15107_v19 = vpop.f32.mrb[52].mxu1 }
 0x8b9   : > { %v15109_v61 = vpop.f32.mrb[53].mxu1 }
 0x8ba   : > { %v15111_v38 = vpop.f32.mrb[54].mxu1 }
 0x8bb   : > { %v15115_v33 = vpop.f32.mrb[55].mxu1  ;;  %v15179_v5 = vpop.f32.mrb[116].mxu0 }
 0x8bc   : > { %16209 = vst [vmem:[#allocation85_spill] sm:$0xff] %v15179_v5 }
 0x8c0   : > { %v15121_v16 = vpop.f32.mrb[56].mxu1 }
 0x8c1   : > { %v15123_v43 = vpop.f32.mrb[57].mxu1 }
 0x8c2   : > { %v15125_v40 = vpop.f32.mrb[58].mxu1 }
 0x8c3   : > { %v15127_v22 = vpop.f32.mrb[59].mxu1 }
 0x8c8   : > { %v15137_v46 = vpop.f32.mrb[60].mxu1 }
 0x8c9   : > { %v15139_v39 = vpop.f32.mrb[61].mxu1 }
 0x8ca   : > { %v15141_v53 = vpop.f32.mrb[62].mxu1 }
 0x8cb   : > { %16200 = vst [vmem:[#allocation88_spill] sm:$0xff] %v15141_v53  ;;  %v15143_v55 = vpop.f32.mrb[63].mxu1 }
 0x8cc   : > { %16201 = vst [vmem:[#allocation89_spill] sm:$0xff] %v15143_v55 }
 0x8d0   : > { %v15149_v15 = vpop.f32.mrb[64].mxu1 }
 0x8d1   : > { %v15151_v37 = vpop.f32.mrb[65].mxu1 }
 0x8d2   : > { %v15153_v17 = vpop.f32.mrb[66].mxu1 }
 0x8d3   : > { %16202 = vst [vmem:[#allocation90_spill] sm:$0xff] %v15153_v17  ;;  %v15155_v57 = vpop.f32.mrb[67].mxu1 }
 0x8d4   : > { %16203 = vst [vmem:[#allocation91_spill] sm:$0xff] %v15155_v57  ;;  %v15181_v57 = vpop.f32.mrb[117].mxu0 }
 0x8d5   : > { %16210 = vst [vmem:[#allocation95_spill] sm:$0xff] %v15181_v57  ;;  %v15183_v51 = vpop.f32.mrb[118].mxu0  ;;  %v15203_v57 = vld [vmem:[#allocation25] ss:$0 sm:$0xff] }
 0x8d6   : > { %16211 = vst [vmem:[#allocation96_spill] sm:$0xff] %v15183_v51  ;;  %v15185_v17 = vpop.f32.mrb[119].mxu0  ;;  %16221 = vst [vmem:[#allocation106_spill] sm:$0xff] %v15203_v57 }
 0x8d7   : > { %16212 = vst [vmem:[#allocation97_spill] sm:$0xff] %v15185_v17  ;;  %v15187_v55 = vpop.f32.mrb[120].mxu0 }
 0x8d8   : > { %v15165_v59 = vpop.f32.mrb[68].mxu1  ;;  %16213 = vst [vmem:[#allocation98_spill] sm:$0xff] %v15187_v55  ;;  %v15191_v53 = vpop.f32.mrb[121].mxu0 }
 0x8d9   : > { %v15169_v11 = vpop.f32.mrb[69].mxu1  ;;  %16215 = vst [vmem:[#allocation100_spill] sm:$0xff] %v15191_v53 }
 0x8da   : > { %16204 = vst [vmem:[#allocation87_spill] sm:$0xff] %v15169_v11  ;;  %v15173_v54 = vpop.f32.mrb[70].mxu1 }
 0x8db   : > { %16206 = vst [vmem:[#allocation94_spill] sm:$0xff] %v15173_v54  ;;  %v15177_v62 = vpop.f32.mrb[71].mxu1  ;;  %v15195_v54 = vpop.f32.mrb[122].mxu0 }
 0x8dc   : > { %16208 = vst [vmem:[#allocation92_spill] sm:$0xff] %v15177_v62  ;;  %16217 = vst [vmem:[#allocation102_spill] sm:$0xff] %v15195_v54  ;;  %v15199_v62 = vpop.f32.mrb[123].mxu0 }
 0x8dd   : > { %16219 = vst [vmem:[#allocation104_spill] sm:$0xff] %v15199_v62  ;;  %v10120_v51 = vpop.f32.mrb[124].mxu0 }
 0x8de   : > { %v15206_v17 = vadd.f32 %v10120_v51, %v15203_v57  ;;  %v8438_v55 = vpop.f32.mrb[125].mxu0 }
 0x8df   : > { %v10121_v53 = vpop.f32.mrb[126].mxu0 }
 0x8e0   : > { %v15189_v50 = vpop.f32.mrb[72].mxu1  ;;  %16222 = vst [vmem:[#allocation107_spill] sm:$0xff] %v15206_v17  ;;  %v8441_v54 = vpop.f32.mrb[127].mxu0 }
 0x8e1   : > { %16214 = vst [vmem:[#allocation99_spill] sm:$0xff] %v15189_v50  ;;  %v15193_v41 = vpop.f32.mrb[73].mxu1  ;;  %v15209_v50 = vadd.f32 %v15203_v57, %v8438_v55 }
 0x8e2   : > { %16216 = vst [vmem:[#allocation101_spill] sm:$0xff] %v15193_v41  ;;  %v15197_v30 = vpop.f32.mrb[74].mxu1  ;;  %v15212_v41 = vadd.f32 %v10121_v53, %v15203_v57  ;;  %v16233_v53 = vld [vmem:[#allocation61_spill] sm:$0xff] }
 0x8e3   : > { %16218 = vst [vmem:[#allocation103_spill] sm:$0xff] %v15197_v30  ;;  %v15201_v5 = vpop.f32.mrb[75].mxu1  ;;  %16223 = vst [vmem:[#allocation108_spill] sm:$0xff] %v15209_v50  ;;  %v15215_v30 = vadd.f32 %v15203_v57, %v8441_v54  ;;  %v16235_v54 = vld [vmem:[#allocation62_spill] sm:$0xff] }
 0x8e4   : > { %16220 = vst [vmem:[#allocation105_spill] sm:$0xff] %v15201_v5  ;;  %16224 = vst [vmem:[#allocation109_spill] sm:$0xff] %v15212_v41  ;;  %v7925_v41 = vmul.f32 %v15021_v3, %v16233_v53  ;;  %v16240_v53 = vld [vmem:[#allocation67_spill] sm:$0xff] }
 0x8e5   : > { %16225 = vst [vmem:[#allocation110_spill] sm:$0xff] %v15215_v30  ;;  %v7923_v30 = vmul.f32 %v16235_v54, %v15023_v10  ;;  %v16241_v10 = vld [vmem:[#allocation68_spill] sm:$0xff] }
 0x8e6   : > { %v16246_v54 = vld [vmem:[#allocation80_spill] sm:$0xff] }
 0x8e8   : > { %v15217_v62 = vpop.f32.mrb[76].mxu1 }
 0x8e9   : > { %16226 = vst [vmem:[#allocation111_spill] sm:$0xff] %v15217_v62  ;;  %v15219_v5 = vpop.f32.mrb[77].mxu1  ;;  %v16236_v62 = vld [vmem:[#allocation63_spill] sm:$0xff] }
 0x8ea   : > { %16227 = vst [vmem:[#allocation112_spill] sm:$0xff] %v15219_v5  ;;  %v15221_v42 = vpop.f32.mrb[78].mxu1  ;;  %v15239_v5 = vmul.f32 %v15033_v49, %v16236_v62  ;;  %v15259_v49 = vmul.f32 %v16241_v10, %v15059_v8  ;;  %v16242_v62 = vld [vmem:[#allocation69_spill] sm:$0xff]  ;;  %v15279_v8 = vmul.f32 %v15087_v60, %v16246_v54  ;;  %v16248_v10 = vld [vmem:[#allocation83_spill] sm:$0xff]  ;;  %v15299_v54 = vadd.f32 %v15099_v44, %v15203_v57 }
 0x8eb   : > { %16228 = vst [vmem:[#allocation113_spill] sm:$0xff] %v15221_v42  ;;  %v15223_v51 = vpop.f32.mrb[79].mxu1  ;;  %v15319_v44 = vadd.f32 %v15203_v57, %v15117_v0 }
 0x8ec   : > { %16229 = vst [vmem:[#allocation114_spill] sm:$0xff] %v15223_v51  ;;  %v16237_v51 = vld [vmem:[#allocation64_spill] sm:$0xff] }
 0x8ed   : > { %v15243_v42 = vmul.f32 %v16237_v51, %v15035_v12  ;;  %v15263_v12 = vmul.f32 %v15069_v4, %v16242_v62  ;;  %v16243_v51 = vld [vmem:[#allocation70_spill] sm:$0xff]  ;;  %v16250_v62 = vld [vmem:[#allocation84_spill] sm:$0xff] }
 0x8f0   : > { %v15225_v17 = vpop.f32.mrb[80].mxu1 }
 0x8f1   : > { %16230 = vst [vmem:[#allocation115_spill] sm:$0xff] %v15225_v17  ;;  %v15227_v55 = vpop.f32.mrb[81].mxu1  ;;  %v16238_v17 = vld [vmem:[#allocation65_spill] sm:$0xff] }
 0x8f2   : > { %16231 = vst [vmem:[#allocation116_spill] sm:$0xff] %v15227_v55  ;;  %v15229_v50 = vpop.f32.mrb[82].mxu1  ;;  %v15247_v55 = vmul.f32 %v15045_v21, %v16238_v17  ;;  %v15267_v21 = vmul.f32 %v16243_v51, %v15071_v35  ;;  %v16244_v17 = vld [vmem:[#allocation73_spill] sm:$0xff]  ;;  %v15287_v35 = vmul.f32 %v15095_v52, %v16248_v10  ;;  %v16252_v51 = vld [vmem:[#allocation47_spill] sm:$0xff]  ;;  %v15307_v52 = vadd.f32 %v15103_v45, %v15203_v57  ;;  %v16255_v45 = vld [vmem:[#allocation50_spill] sm:$0xff] }
 0x8f3   : > { %16232 = vst [vmem:[#allocation117_spill] sm:$0xff] %v15229_v50  ;;  %v15233_v11 = vpop.f32.mrb[83].mxu1  ;;  %v16239_v50 = vld [vmem:[#allocation66_spill] sm:$0xff] }
 0x8f4   : > { %16234 = vst [vmem:[#allocation61_spill] sm:$0xff] %v15233_v11  ;;  %v15251_v3 = vmul.f32 %v16239_v50, %v15047_v24  ;;  %v15255_v11 = vmul.f32 %v15057_v25, %v16240_v53  ;;  %v15271_v50 = vmul.f32 %v15079_v7, %v16244_v17  ;;  %v16245_v24 = vld [vmem:[#allocation79_spill] sm:$0xff]  ;;  %v16247_v53 = vld [vmem:[#allocation81_spill] sm:$0xff]  ;;  %16249 = vst [vmem:[#allocation62_spill] sm:$0xff] %v15287_v35 }
 0x8f5   : > { %v15275_v25 = vmul.f32 %v16245_v24, %v15081_v56  ;;  %v15283_v4 = vmul.f32 %v16247_v53, %v15089_v20  ;;  %v15291_v7 = vmul.f32 %v16250_v62, %v15097_v23  ;;  %v7860_v56 = vmul.f32 %v15107_v19, %v16252_v51  ;;  %v16253_v17 = vld [vmem:[#allocation48_spill] sm:$0xff] }
 0x8f6   : > { %v7858_v24 = vmul.f32 %v16253_v17, %v15109_v61  ;;  %v15303_v20 = vadd.f32 %v15203_v57, %v15101_v29  ;;  %v15311_v19 = vadd.f32 %v15203_v57, %v15105_v2  ;;  %v15315_v61 = vadd.f32 %v15113_v34, %v15203_v57  ;;  %v16254_v29 = vld [vmem:[#allocation49_spill] sm:$0xff]  ;;  %v15325_v51 = vld [vmem:[#allocation22] ss:$0 sm:$0xff] }
 0x8f7   : > { %16251 = vst [vmem:[#allocation63_spill] sm:$0xff] %v15291_v7  ;;  %v7864_v10 = vmul.f32 %v15121_v16, %v16254_v29  ;;  %v7862_v62 = vmul.f32 %v16255_v45, %v15123_v43  ;;  %v15329_v2 = vadd.f32 %v15119_v32, %v15203_v57  ;;  %v15335_v7 = vadd.f32 %v15203_v57, %v15129_v47 }
 0x8f8   : > { %v10024_v60 = vpop.f32.mrb[84].mxu1  ;;  %v15339_v16 = vadd.f32 %v15131_v36, %v15203_v57  ;;  %v15345_v32 = vadd.f32 %v15203_v57, %v15133_v31  ;;  %v15363_v31 = vadd.f32 %v15203_v57, %v15145_v58 }
 0x8f9   : > { %v7892_v23 = vadd.f32 %v10024_v60, %v7860_v56  ;;  %v7375_v53 = vpop.f32.mrb[85].mxu1 }
 0x8fa   : > { %v7890_v56 = vadd.f32 %v7858_v24, %v7375_v53  ;;  %v10025_v17 = vpop.f32.mrb[86].mxu1 }
 0x8fb   : > { %v7956_v34 = vadd.f32 %v15017_v6, %v7892_v23  ;;  %v7893_v60 = vadd.f32 %v10025_v17, %v15111_v38  ;;  %v7378_v0 = vpop.f32.mrb[87].mxu1  ;;  %v15349_v6 = vadd.f32 %v15135_v26, %v15203_v57  ;;  %v16256_v38 = vld [vmem:[#allocation51_spill] sm:$0xff]  ;;  %v16257_v23 = vld [vmem:[#allocation46_spill] sm:$0xff]  ;;  %v15367_v26 = vadd.f32 %v15147_v1, %v15203_v57 }
 0x8fc   : > { %v7954_v43 = vadd.f32 %v7890_v56, %v15019_v13  ;;  %v7891_v24 = vadd.f32 %v7378_v0, %v15115_v33  ;;  %v7868_v47 = vmul.f32 %v15137_v46, %v16256_v38  ;;  %v7866_v53 = vmul.f32 %v16257_v23, %v15139_v39  ;;  %v16259_v46 = vld [vmem:[#allocation52_spill] sm:$0xff]  ;;  %v16260_v39 = vld [vmem:[#allocation53_spill] sm:$0xff] }
 0x8fd   : > { %v15356_v36 = vadd.f32 %v15325_v51, %v7956_v34  ;;  %v7957_v13 = vadd.f32 %v7925_v41, %v7893_v60  ;;  %16258 = vst [vmem:[#allocation64_spill] sm:$0xff] %v15367_v26  ;;  %v15371_v45 = vmul.f32 %v15149_v15, %v16259_v46  ;;  %v15375_v56 = vmul.f32 %v16260_v39, %v15151_v37 }
 0x8fe   : > { %v15359_v33 = vadd.f32 %v15325_v51, %v7954_v43  ;;  %v7955_v29 = vadd.f32 %v7923_v30, %v7891_v24  ;;  %v15387_v34 = vadd.f32 %v15203_v57, %v15157_v63  ;;  %v15391_v15 = vadd.f32 %v15159_v27, %v15203_v57 }
 0x8ff   : > { %v8027_v41 = vsub.f32 0.0, %v15356_v36  ;;  %v15379_v30 = vadd.f32 %v15325_v51, %v7957_v13  ;;  %v15396_v24 = vadd.f32 %v15203_v57, %v15161_v28  ;;  %v15401_v63 = vadd.f32 %v15163_v48, %v15203_v57 }
 0x900   : > { %v8025_v58 = vsub.f32 0.0, %v15359_v33  ;;  %v15383_v17 = vadd.f32 %v15325_v51, %v7955_v29  ;;  %v10028_v1 = vpop.f32.mrb[88].mxu1  ;;  %16261 = vst [vmem:[#allocation65_spill] sm:$0xff] %v15387_v34  ;;  %16262 = vst [vmem:[#allocation66_spill] sm:$0xff] %v15391_v15 }
 0x901   : > { %v8061_v37 = vmul.f32 1.442695, %v8027_v41  ;;  %v8028_v60 = vsub.f32 0.0, %v15379_v30  ;;  %v7896_v0 = vadd.f32 %v10028_v1, %v7864_v10  ;;  %v7391_v43 = vpop.f32.mrb[89].mxu1  ;;  %16263 = vst [vmem:[#allocation67_spill] sm:$0xff] %v15396_v24  ;;  %16264 = vst [vmem:[#allocation68_spill] sm:$0xff] %v15401_v63 }
 0x902   : > { %v8057_v38 = vmul.f32 1.442695, %v8025_v58  ;;  %v8026_v23 = vsub.f32 0.0, %v15383_v17  ;;  %v7894_v13 = vadd.f32 %v7862_v62, %v7391_v43  ;;  %v10029_v29 = vpop.f32.mrb[90].mxu1  ;;  %v16265_v1 = vld [vmem:[#allocation43_spill] sm:$0xff]  ;;  %v16282_v24 = vld [vmem:[#allocation89_spill] sm:$0xff] }
 0x903   : > { %10843 = vpow2.f32 %v8061_v37  ;;  %v8063_v27 = vmul.f32 1.442695, %v8028_v60  ;;  %v7960_v46 = vadd.f32 %v15029_v14, %v7896_v0  ;;  %v7897_v10 = vadd.f32 %v10029_v29, %v15125_v40  ;;  %v7394_v39 = vpop.f32.mrb[91].mxu1  ;;  %v16268_v60 = vld [vmem:[#allocation45_spill] sm:$0xff] }
 0x904   : > { %10845 = vpow2.f32 %v8057_v38  ;;  %v8059_v41 = vmul.f32 1.442695, %v8026_v23  ;;  %v7958_v28 = vadd.f32 %v7894_v13, %v15031_v18  ;;  %v7895_v58 = vadd.f32 %v7394_v39, %v15127_v22  ;;  %v16267_v22 = vld [vmem:[#allocation87_spill] sm:$0xff]  ;;  %v16271_v23 = vld [vmem:[#allocation44_spill] sm:$0xff]  ;;  %v16275_v39 = vld [vmem:[#allocation101_spill] sm:$0xff] }
 0x905   : > { %v15409_v62 = vmul.f32 %v15165_v59, %v16265_v1  ;;  %10847 = vpow2.f32 %v8063_v27  ;;  %v15412_v48 = vadd.f32 %v15325_v51, %v7960_v46  ;;  %v7961_v37 = vadd.f32 %v15239_v5, %v7897_v10  ;;  %v16269_v5 = vld [vmem:[#allocation93_spill] sm:$0xff]  ;;  %v16272_v13 = vld [vmem:[#allocation99_spill] sm:$0xff]  ;;  %v16273_v46 = vld [vmem:[#allocation60_spill] sm:$0xff] }
 0x906   : > { %10849 = vpow2.f32 %v8059_v41  ;;  %v15416_v14 = vadd.f32 %v15325_v51, %v7958_v28  ;;  %v7959_v40 = vadd.f32 %v15243_v42, %v7895_v58  ;;  %v15421_v18 = vadd.f32 %v15203_v57, %v15167_v9  ;;  %v16276_v41 = vld [vmem:[#allocation41_spill] sm:$0xff] }
 0x907   : > { %v15425_v59 = vmul.f32 %v16268_v60, %v16267_v22  ;;  %v8031_v0 = vsub.f32 0.0, %v15412_v48  ;;  %v15429_v43 = vadd.f32 %v15325_v51, %v7961_v37  ;;  %v15433_v38 = vadd.f32 %v16269_v5, %v15203_v57  ;;  %v16277_v60 = vld [vmem:[#allocation54_spill] sm:$0xff]  ;;  %v16278_v5 = vld [vmem:[#allocation111_spill] sm:$0xff] }
 0x908   : > { %16266 = vst [vmem:[#allocation69_spill] sm:$0xff] %v15421_v18  ;;  %v15437_v42 = vmul.f32 %v16272_v13, %v16271_v23  ;;  %v8029_v9 = vsub.f32 0.0, %v15416_v14  ;;  %v15441_v29 = vadd.f32 %v15325_v51, %v7959_v40  ;;  %v10032_v27 = vpop.f32.mrb[92].mxu1  ;;  %v15445_v10 = vadd.f32 %v15203_v57, %v16273_v46 }
 0x909   : > { %16270 = vst [vmem:[#allocation70_spill] sm:$0xff] %v15433_v38  ;;  %v15449_v28 = vmul.f32 %v16276_v41, %v16275_v39  ;;  %v8069_v58 = vmul.f32 1.442695, %v8031_v0  ;;  %v8032_v1 = vsub.f32 0.0, %v15429_v43  ;;  %v7900_v37 = vadd.f32 %v10032_v27, %v7868_v47  ;;  %v7407_v22 = vpop.f32.mrb[93].mxu1  ;;  %v16280_v39 = vld [vmem:[#allocation88_spill] sm:$0xff] }
 0x90a   : > { %16274 = vst [vmem:[#allocation73_spill] sm:$0xff] %v15445_v10  ;;  %v15454_v23 = vmul.f32 %v16278_v5, %v16277_v60  ;;  %v8065_v40 = vmul.f32 1.442695, %v8029_v9  ;;  %v8030_v13 = vsub.f32 0.0, %v15441_v29  ;;  %v7898_v38 = vadd.f32 %v7866_v53, %v7407_v22  ;;  %v10033_v18 = vpop.f32.mrb[94].mxu1  ;;  %v16279_v10 = vld [vmem:[#allocation59_spill] sm:$0xff] }
 0x90b   : > { %10851 = vpow2.f32 %v8069_v58  ;;  %v8071_v46 = vmul.f32 1.442695, %v8032_v1  ;;  %v7964_v63 = vadd.f32 %v16279_v10, %v7900_v37  ;;  %v7901_v41 = vadd.f32 %v10033_v18, %v16280_v39  ;;  %v7410_v0 = vpop.f32.mrb[95].mxu1  ;;  %v16281_v47 = vld [vmem:[#allocation42_spill] sm:$0xff]  ;;  %v16283_v5 = vld [vmem:[#allocation112_spill] sm:$0xff]  ;;  %v16284_v9 = vld [vmem:[#allocation55_spill] sm:$0xff] }
 0x90c   : > { %10853 = vpow2.f32 %v8065_v40  ;;  %v8067_v57 = vmul.f32 1.442695, %v8030_v13  ;;  %v7962_v27 = vadd.f32 %v7898_v38, %v16281_v47  ;;  %v7899_v35 = vadd.f32 %v7410_v0, %v16282_v24  ;;  %v16285_v37 = vld [vmem:[#allocation56_spill] sm:$0xff]  ;;  %v16286_v22 = vld [vmem:[#allocation115_spill] sm:$0xff] }
 0x90d   : > { %v10844_v60 = vpop.eup %10843  ;;  %v15463_v15 = vmul.f32 %v16284_v9, %v16283_v5  ;;  %10855 = vpow2.f32 %v8071_v46  ;;  %v15466_v53 = vadd.f32 %v15325_v51, %v7964_v63  ;;  %v7965_v10 = vadd.f32 %v15247_v55, %v7901_v41 }
 0x90e   : > { %v10846_v58 = vpop.eup %10845  ;;  %v8123_v18 = vadd.f32 1.0, %v10844_v60  ;;  %10857 = vpow2.f32 %v8067_v57  ;;  %v15470_v1 = vadd.f32 %v15325_v51, %v7962_v27  ;;  %v7963_v38 = vadd.f32 %v15251_v3, %v7899_v35 }
 0x90f   : > { %v10848_v24 = vpop.eup %10847  ;;  %v15475_v40 = vmul.f32 %v16286_v22, %v16285_v37  ;;  %v8121_v13 = vadd.f32 1.0, %v10846_v58  ;;  %v8035_v46 = vsub.f32 0.0, %v15466_v53  ;;  %v15479_v63 = vadd.f32 %v15325_v51, %v7965_v10 }
 0x910   : > { %v10850_v55 = vpop.eup %10849  ;;  %10859 = vrcp.f32 %v8123_v18  ;;  %v8124_v39 = vadd.f32 1.0, %v10848_v24  ;;  %v8033_v57 = vsub.f32 0.0, %v15470_v1  ;;  %v15483_v41 = vadd.f32 %v15325_v51, %v7963_v38  ;;  %v10036_v3 = vpop.f32.mrb[96].mxu1  ;;  %v16288_v38 = vld [vmem:[#allocation90_spill] sm:$0xff] }
 0x911   : > { %16287 = vst [vmem:[#allocation79_spill] sm:$0xff] %v15475_v40  ;;  %10861 = vrcp.f32 %v8121_v13  ;;  %v8122_v35 = vadd.f32 1.0, %v10850_v55  ;;  %v8077_v0 = vmul.f32 1.442695, %v8035_v46  ;;  %v8036_v47 = vsub.f32 0.0, %v15479_v63  ;;  %v7423_v27 = vpop.f32.mrb[97].mxu1 }
 0x912   : > { %10863 = vrcp.f32 %v8124_v39  ;;  %v8073_v60 = vmul.f32 1.442695, %v8033_v57  ;;  %v8034_v5 = vsub.f32 0.0, %v15483_v41  ;;  %v7904_v9 = vadd.f32 %v10036_v3, %v15371_v45  ;;  %v10037_v10 = vpop.f32.mrb[98].mxu1  ;;  %v16289_v13 = vld [vmem:[#allocation72_spill] sm:$0xff]  ;;  %v16290_v55 = vld [vmem:[#allocation91_spill] sm:$0xff] }
 0x913   : > { %10865 = vrcp.f32 %v8122_v35  ;;  %v8079_v58 = vmul.f32 1.442695, %v8036_v47  ;;  %v7902_v18 = vadd.f32 %v15375_v56, %v7423_v27  ;;  %v7905_v24 = vadd.f32 %v10037_v10, %v16288_v38  ;;  %v7426_v37 = vpop.f32.mrb[99].mxu1  ;;  %v16291_v57 = vld [vmem:[#allocation116_spill] sm:$0xff]  ;;  %v16292_v40 = vld [vmem:[#allocation57_spill] sm:$0xff]  ;;  %v16293_v45 = vld [vmem:[#allocation75_spill] sm:$0xff] }
 0x914   : > { %10867 = vpow2.f32 %v8077_v0  ;;  %v8075_v22 = vmul.f32 1.442695, %v8034_v5  ;;  %v7968_v46 = vadd.f32 %v16289_v13, %v7904_v9  ;;  %v7903_v34 = vadd.f32 %v7426_v37, %v16290_v55 }
 0x915   : > { %v10852_v39 = vpop.eup %10851  ;;  %v15494_v26 = vmul.f32 %v16292_v40, %v16291_v57  ;;  %10869 = vpow2.f32 %v8073_v60  ;;  %v7966_v3 = vadd.f32 %v7902_v18, %v16293_v45  ;;  %v7969_v35 = vadd.f32 %v15255_v11, %v7905_v24 }
 0x916   : > { %v10854_v56 = vpop.eup %10853  ;;  %v8127_v47 = vadd.f32 1.0, %v10852_v39  ;;  %10871 = vpow2.f32 %v8079_v58  ;;  %v15499_v0 = vadd.f32 %v15325_v51, %v7968_v46  ;;  %v7967_v27 = vadd.f32 %v15259_v49, %v7903_v34 }
 0x917   : > { %v10856_v5 = vpop.eup %10855  ;;  %v8125_v9 = vadd.f32 1.0, %v10854_v56  ;;  %10873 = vpow2.f32 %v8075_v22  ;;  %v15503_v10 = vadd.f32 %v15325_v51, %v7966_v3  ;;  %v15506_v40 = vadd.f32 %v15325_v51, %v7969_v35 }
 0x918   : > { %v10858_v60 = vpop.eup %10857  ;;  %10875 = vrcp.f32 %v8127_v47  ;;  %v8128_v11 = vadd.f32 1.0, %v10856_v5  ;;  %v8039_v18 = vsub.f32 0.0, %v15499_v0  ;;  %v15510_v58 = vadd.f32 %v15325_v51, %v7967_v27  ;;  %v10040_v38 = vpop.f32.mrb[100].mxu1  ;;  %v16294_v5 = vld [vmem:[#allocation71_spill] sm:$0xff] }
 0x919   : > { %10877 = vrcp.f32 %v8125_v9  ;;  %v8126_v49 = vadd.f32 1.0, %v10858_v60  ;;  %v8037_v34 = vsub.f32 0.0, %v15503_v10  ;;  %v8040_v24 = vsub.f32 0.0, %v15506_v40  ;;  %v7439_v37 = vpop.f32.mrb[101].mxu1 }
 0x91a   : > { %v10860_v22 = vpop.eup %10859  ;;  %10879 = vrcp.f32 %v8128_v11  ;;  %v8085_v13 = vmul.f32 1.442695, %v8039_v18  ;;  %v8038_v46 = vsub.f32 0.0, %v15510_v58  ;;  %v7908_v55 = vadd.f32 %v10040_v38, %v15409_v62  ;;  %v10041_v39 = vpop.f32.mrb[102].mxu1 }
 0x91b   : > { %v10862_v57 = vpop.eup %10861  ;;  %10881 = vrcp.f32 %v8126_v49  ;;  %v8081_v45 = vmul.f32 1.442695, %v8037_v34  ;;  %v8087_v3 = vmul.f32 1.442695, %v8040_v24  ;;  %v8187_v35 = vmul.f32 %v10860_v22, %v15356_v36  ;;  %v7442_v56 = vpop.f32.mrb[103].mxu1  ;;  %v16295_v24 = vld [vmem:[#allocation94_spill] sm:$0xff] }
 0x91c   : > { %v10864_v47 = vpop.eup %10863  ;;  %10883 = vpow2.f32 %v8085_v13  ;;  %v8083_v27 = vmul.f32 1.442695, %v8038_v46  ;;  %v7972_v9 = vadd.f32 %v16294_v5, %v7908_v55  ;;  %v8185_v60 = vmul.f32 %v10862_v57, %v15359_v33 }
 0x91d   : > { %v10866_v11 = vpop.eup %10865  ;;  %10885 = vpow2.f32 %v8081_v45  ;;  %v8455_v62 = vadd.f32 %v15299_v54, %v8187_v35  ;;  %v7906_v18 = vadd.f32 %v15425_v59, %v7439_v37  ;;  %v8188_v38 = vmul.f32 %v10864_v47, %v15379_v30  ;;  %v16296_v54 = vld [vmem:[#allocation74_spill] sm:$0xff] }
 0x91e   : > { %v10868_v49 = vpop.eup %10867  ;;  %10887 = vpow2.f32 %v8087_v3  ;;  %v15523_v36 = vadd.f32 %v15325_v51, %v7972_v9  ;;  %v8453_v34 = vadd.f32 %v15303_v20, %v8185_v60  ;;  %v7909_v22 = vadd.f32 %v10041_v39, %v16295_v24 }
 0x91f   : > { %v10870_v13 = vpop.eup %10869  ;;  %v8131_v46 = vadd.f32 1.0, %v10868_v49  ;;  %10889 = vpow2.f32 %v8083_v27  ;;  %8487 = vst.msk [vmem:[%s15529_s20 + $0x10] sm:$0xff] %vm714_vm8, %v8455_v62  ;;  %v7970_v33 = vadd.f32 %v7906_v18, %v16296_v54  ;;  %v8456_v30 = vadd.f32 %v15307_v52, %v8188_v38  ;;  %v16297_v52 = vld [vmem:[#allocation92_spill] sm:$0xff] }
 0x920   : > { %v10872_v59 = vpop.eup %10871  ;;  %v8129_v37 = vadd.f32 1.0, %v10870_v13  ;;  %v8043_v20 = vsub.f32 0.0, %v15523_v36  ;;  %8485 = vst.msk [vmem:[%s15529_s20] sm:$0xff] %vm714_vm8, %v8453_v34  ;;  %v7973_v55 = vadd.f32 %v15263_v12, %v7909_v22  ;;  %v8186_v39 = vmul.f32 %v10866_v11, %v15383_v17  ;;  %v10044_v57 = vpop.f32.mrb[104].mxu1 }
 0x921   : > { %v10874_v45 = vpop.eup %10873  ;;  %10891 = vrcp.f32 %v8131_v46  ;;  %v8132_v3 = vadd.f32 1.0, %v10872_v59  ;;  %v15541_v35 = vadd.f32 %v15325_v51, %v7970_v33  ;;  %8488 = vst.msk [vmem:[%s15529_s20 + $0x18] sm:$0xff] %vm714_vm8, %v8456_v30  ;;  %v7907_v47 = vadd.f32 %v7442_v56, %v16297_v52  ;;  %v7455_v27 = vpop.f32.mrb[105].mxu1  ;;  %v16298_v59 = vld [vmem:[#allocation76_spill] sm:$0xff] }
 0x922   : > { %v10876_v5 = vpop.eup %10875  ;;  %10893 = vrcp.f32 %v8129_v37  ;;  %v8130_v9 = vadd.f32 1.0, %v10874_v45  ;;  %v8093_v60 = vmul.f32 1.442695, %v8043_v20  ;;  %v15547_v12 = vadd.f32 %v15325_v51, %v7973_v55  ;;  %v10045_v17 = vpop.f32.mrb[106].mxu1 }
 0x923   : > { %v10878_v11 = vpop.eup %10877  ;;  %10895 = vrcp.f32 %v8132_v3  ;;  %v8041_v62 = vsub.f32 0.0, %v15541_v35  ;;  %v8454_v18 = vadd.f32 %v15311_v19, %v8186_v39  ;;  %v7971_v38 = vadd.f32 %v15267_v21, %v7907_v47  ;;  %v7458_v49 = vpop.f32.mrb[107].mxu1 }
 0x924   : > { %v10880_v56 = vpop.eup %10879  ;;  %10897 = vrcp.f32 %v8130_v9  ;;  %v8044_v34 = vsub.f32 0.0, %v15547_v12  ;;  %v8191_v24 = vmul.f32 %v10876_v5, %v15412_v48  ;;  %v7912_v22 = vadd.f32 %v10044_v57, %v15437_v42 }
 0x925   : > { %v10882_v13 = vpop.eup %10881  ;;  %10899 = vpow2.f32 %v8093_v60  ;;  %v8089_v46 = vmul.f32 1.442695, %v8041_v62  ;;  %8486 = vst.msk [vmem:[%s15529_s20 + $0x8] sm:$0xff] %vm714_vm8, %v8454_v18  ;;  %v15558_v54 = vadd.f32 %v15325_v51, %v7971_v38  ;;  %v8189_v21 = vmul.f32 %v10878_v11, %v15416_v14 }
 0x926   : > { %v10884_v19 = vpop.eup %10883  ;;  %v8095_v33 = vmul.f32 1.442695, %v8044_v34  ;;  %v8459_v30 = vadd.f32 %v15315_v61, %v8191_v24  ;;  %v7976_v37 = vadd.f32 %v16298_v59, %v7912_v22  ;;  %v7910_v48 = vadd.f32 %v15449_v28, %v7455_v27  ;;  %v16299_v61 = vld [vmem:[#allocation78_spill] sm:$0xff]  ;;  %v16300_v34 = vld [vmem:[#allocation103_spill] sm:$0xff] }
 0x927   : > { %v10886_v42 = vpop.eup %10885  ;;  %v8135_v20 = vadd.f32 1.0, %v10884_v19  ;;  %10901 = vpow2.f32 %v8089_v46  ;;  %v8042_v55 = vsub.f32 0.0, %v15558_v54  ;;  %v8457_v39 = vadd.f32 %v15319_v44, %v8189_v21  ;;  %v16301_v19 = vld [vmem:[#allocation105_spill] sm:$0xff] }
 0x928   : > { %v10888_v57 = vpop.eup %10887  ;;  %v8133_v45 = vadd.f32 1.0, %v10886_v42  ;;  %10903 = vpow2.f32 %v8095_v33  ;;  %8491 = vst.msk [vmem:[%s15529_s20 + $0x30] sm:$0xff] %vm714_vm8, %v8459_v30  ;;  %v15569_v14 = vadd.f32 %v15325_v51, %v7976_v37  ;;  %v7974_v3 = vadd.f32 %v7910_v48, %v16299_v61  ;;  %v10048_v52 = vpop.f32.mrb[108].mxu1  ;;  %v16303_v61 = vld [vmem:[#allocation82_spill] sm:$0xff] }
 0x929   : > { %v10890_v28 = vpop.eup %10889  ;;  %10905 = vrcp.f32 %v8135_v20  ;;  %v8136_v47 = vadd.f32 1.0, %v10888_v57  ;;  %v8091_v27 = vmul.f32 1.442695, %v8042_v55  ;;  %8489 = vst.msk [vmem:[%s15529_s20 + $0x20] sm:$0xff] %vm714_vm8, %v8457_v39  ;;  %v8192_v5 = vmul.f32 %v10880_v56, %v15429_v43  ;;  %v7471_v44 = vpop.f32.mrb[109].mxu1 }
 0x92a   : > { %10907 = vrcp.f32 %v8133_v45  ;;  %v8134_v9 = vadd.f32 1.0, %v10890_v28  ;;  %v8047_v60 = vsub.f32 0.0, %v15569_v14  ;;  %v15577_v11 = vadd.f32 %v15325_v51, %v7974_v3  ;;  %v10049_v62 = vpop.f32.mrb[110].mxu1 }
 0x92b   : > { %v10892_v18 = vpop.eup %10891  ;;  %10909 = vrcp.f32 %v8136_v47  ;;  %v8460_v38 = vadd.f32 %v15329_v2, %v8192_v5  ;;  %v7913_v24 = vadd.f32 %v10045_v17, %v16300_v34  ;;  %v8190_v22 = vmul.f32 %v10882_v13, %v15441_v29  ;;  %v7474_v46 = vpop.f32.mrb[111].mxu1 }
 0x92c   : > { %v10894_v43 = vpop.eup %10893  ;;  %10911 = vrcp.f32 %v8134_v9  ;;  %v8101_v56 = vmul.f32 1.442695, %v8047_v60  ;;  %v8045_v21 = vsub.f32 0.0, %v15577_v11  ;;  %v7911_v33 = vadd.f32 %v7458_v49, %v16301_v19 }
 0x92d   : > { %v10896_v30 = vpop.eup %10895  ;;  %10913 = vpow2.f32 %v8091_v27  ;;  %8492 = vst.msk [vmem:[%s15529_s20 + $0x38] sm:$0xff] %vm714_vm8, %v8460_v38  ;;  %v7977_v59 = vadd.f32 %v15271_v50, %v7913_v24  ;;  %v8458_v2 = vadd.f32 %v15335_v7, %v8190_v22  ;;  %v8195_v17 = vmul.f32 %v10892_v18, %v15466_v53  ;;  %v16304_v22 = vld [vmem:[#allocation113_spill] sm:$0xff] }
 0x92e   : > { %v10898_v29 = vpop.eup %10897  ;;  %10915 = vpow2.f32 %v8101_v56  ;;  %v8097_v13 = vmul.f32 1.442695, %v8045_v21  ;;  %v7975_v37 = vadd.f32 %v15275_v25, %v7911_v33  ;;  %v7916_v48 = vadd.f32 %v10048_v52, %v15454_v23  ;;  %v16302_v25 = vld [vmem:[#allocation77_spill] sm:$0xff]  ;;  %v16305_v33 = vld [vmem:[#allocation114_spill] sm:$0xff] }
 0x92f   : > { %v10900_v42 = vpop.eup %10899  ;;  %v15592_v49 = vadd.f32 %v15325_v51, %v7977_v59  ;;  %8490 = vst.msk [vmem:[%s15529_s20 + $0x28] sm:$0xff] %vm714_vm8, %v8458_v2  ;;  %v8463_v50 = vadd.f32 %v15339_v16, %v8195_v17  ;;  %v8193_v7 = vmul.f32 %v10894_v43, %v15470_v1  ;;  %v7914_v53 = vadd.f32 %v15463_v15, %v7471_v44 }
 0x930   : > { %v8139_v20 = vadd.f32 1.0, %v10900_v42  ;;  %10917 = vpow2.f32 %v8097_v13  ;;  %v15600_v55 = vadd.f32 %v15325_v51, %v7975_v37  ;;  %v7980_v39 = vadd.f32 %v16302_v25, %v7916_v48  ;;  %v10052_v23 = vpop.f32.mrb[112].mxu1 }
 0x931   : > { %v10902_v57 = vpop.eup %10901  ;;  %v8048_v45 = vsub.f32 0.0, %v15592_v49  ;;  %8495 = vst.msk [vmem:[%s15529_s20 + $0x50] sm:$0xff] %vm714_vm8, %v8463_v50  ;;  %v8461_v16 = vadd.f32 %v15345_v32, %v8193_v7  ;;  %v7978_v1 = vadd.f32 %v7914_v53, %v16303_v61  ;;  %v8196_v15 = vmul.f32 %v10896_v30, %v15479_v63  ;;  %v7487_v3 = vpop.f32.mrb[113].mxu1 }
 0x932   : > { %v10904_v52 = vpop.eup %10903  ;;  %10919 = vrcp.f32 %v8139_v20  ;;  %v8137_v28 = vadd.f32 1.0, %v10902_v57  ;;  %v8046_v47 = vsub.f32 0.0, %v15600_v55  ;;  %v15611_v27 = vadd.f32 %v15325_v51, %v7980_v39  ;;  %v10053_v5 = vpop.f32.mrb[114].mxu1 }
 0x933   : > { %v10906_v44 = vpop.eup %10905  ;;  %v8140_v9 = vadd.f32 1.0, %v10904_v52  ;;  %v8103_v60 = vmul.f32 1.442695, %v8048_v45  ;;  %8493 = vst.msk [vmem:[%s15529_s20 + $0x40] sm:$0xff] %vm714_vm8, %v8461_v16  ;;  %v15616_v32 = vadd.f32 %v15325_v51, %v7978_v1  ;;  %v8464_v63 = vadd.f32 %v15349_v6, %v8196_v15  ;;  %v7490_v18 = vpop.f32.mrb[115].mxu1  ;;  %v16308_v45 = vld [vmem:[#allocation58_spill] sm:$0xff] }
 0x934   : > { %v10908_v38 = vpop.eup %10907  ;;  %10921 = vrcp.f32 %v8137_v28  ;;  %v8099_v34 = vmul.f32 1.442695, %v8046_v47  ;;  %v8051_v24 = vsub.f32 0.0, %v15611_v27  ;;  %v7917_v43 = vadd.f32 %v10049_v62, %v16304_v22  ;;  %v16310_v52 = vld [vmem:[#allocation86_spill] sm:$0xff] }
 0x935   : > { %v10910_v56 = vpop.eup %10909  ;;  %10923 = vrcp.f32 %v8140_v9  ;;  %v8049_v21 = vsub.f32 0.0, %v15616_v32  ;;  %8496 = vst.msk [vmem:[%s15529_s20 + $0x58] sm:$0xff] %vm714_vm8, %v8464_v63  ;;  %v8194_v19 = vmul.f32 %v10898_v29, %v15483_v41  ;;  %v7915_v30 = vadd.f32 %v7474_v46, %v16305_v33  ;;  %v16306_v29 = vld [vmem:[#allocation64_spill] sm:$0xff]  ;;  %v16312_v63 = vld [vmem:[#allocation66_spill] sm:$0xff]  ;;  %v16315_v33 = vld [vmem:[#allocation67_spill] sm:$0xff] }
 0x936   : > { %v10912_v59 = vpop.eup %10911  ;;  %10925 = vpow2.f32 %v8103_v60  ;;  %v8109_v6 = vmul.f32 1.442695, %v8051_v24  ;;  %v7981_v2 = vadd.f32 %v15279_v8, %v7917_v43  ;;  %v8199_v17 = vmul.f32 %v10906_v44, %v15499_v0  ;;  %v16307_v0 = vld [vmem:[#allocation79_spill] sm:$0xff]  ;;  %v16313_v22 = vld [vmem:[#allocation62_spill] sm:$0xff] }
 0x937   : > { %v10914_v13 = vpop.eup %10913  ;;  %10927 = vpow2.f32 %v8099_v34  ;;  %v8105_v62 = vmul.f32 1.442695, %v8049_v21  ;;  %v8462_v37 = vadd.f32 %v15363_v31, %v8194_v19  ;;  %v7979_v48 = vadd.f32 %v15283_v4, %v7915_v30 }
 0x938   : > { %v10916_v42 = vpop.eup %10915  ;;  %v8138_v41 = vadd.f32 1.0, %v10914_v13  ;;  %10929 = vpow2.f32 %v8109_v6  ;;  %v15631_v46 = vadd.f32 %v15325_v51, %v7981_v2  ;;  %v8467_v50 = vadd.f32 %v16306_v29, %v8199_v17  ;;  %v16316_v13 = vld [vmem:[#allocation63_spill] sm:$0xff] }
 0x939   : > { %v8143_v7 = vadd.f32 1.0, %v10916_v42  ;;  %10931 = vpow2.f32 %v8105_v62  ;;  %8494 = vst.msk [vmem:[%s15529_s20 + $0x48] sm:$0xff] %vm714_vm8, %v8462_v37  ;;  %v15637_v8 = vadd.f32 %v15325_v51, %v7979_v48  ;;  %v7920_v53 = vadd.f32 %v10052_v23, %v16307_v0  ;;  %v16309_v23 = vld [vmem:[#allocation65_spill] sm:$0xff]  ;;  %v16317_v37 = vld [vmem:[#allocation106_spill] sm:$0xff] }
 0x93a   : > { %v10918_v31 = vpop.eup %10917  ;;  %10933 = vrcp.f32 %v8138_v41  ;;  %v8052_v4 = vsub.f32 0.0, %v15631_v46  ;;  %8499 = vst.msk [vmem:[%s15529_s20 + $0x70] sm:$0xff] %vm714_vm8, %v8467_v50  ;;  %v8197_v20 = vmul.f32 %v10908_v38, %v15503_v10  ;;  %v7918_v25 = vadd.f32 %v15494_v26, %v7487_v3  ;;  %v16311_v10 = vld [vmem:[#allocation117_spill] sm:$0xff] }
 0x93b   : > { %10935 = vrcp.f32 %v8143_v7  ;;  %v8141_v39 = vadd.f32 1.0, %v10918_v31  ;;  %v8050_v57 = vsub.f32 0.0, %v15637_v8  ;;  %v7984_v16 = vadd.f32 %v16308_v45, %v7920_v53 }
 0x93c   : > { %v10920_v61 = vpop.eup %10919  ;;  %v8111_v1 = vmul.f32 1.442695, %v8052_v4  ;;  %v8465_v15 = vadd.f32 %v16309_v23, %v8197_v20  ;;  %v7982_v28 = vadd.f32 %v7918_v25, %v16310_v52  ;;  %v8200_v47 = vmul.f32 %v10910_v56, %v15506_v40  ;;  %v16314_v56 = vld [vmem:[#allocation61_spill] sm:$0xff]  ;;  %v16322_v52 = vld [vmem:[#allocation95_spill] sm:$0xff] }
 0x93d   : > { %10937 = vrcp.f32 %v8141_v39  ;;  %v8107_v44 = vmul.f32 1.442695, %v8050_v57  ;;  %v15651_v26 = vadd.f32 %v15325_v51, %v7984_v16  ;;  %v7921_v3 = vadd.f32 %v10053_v5, %v16311_v10 }
 0x93e   : > { %v10922_v9 = vpop.eup %10921  ;;  %10939 = vpow2.f32 %v8111_v1  ;;  %8497 = vst.msk [vmem:[%s15529_s20 + $0x60] sm:$0xff] %vm714_vm8, %v8465_v15  ;;  %v15657_v60 = vadd.f32 %v15325_v51, %v7982_v28  ;;  %v8468_v38 = vadd.f32 %v16312_v63, %v8200_v47  ;;  %v8198_v34 = vmul.f32 %v10912_v59, %v15510_v58 }
 0x93f   : > { %v10924_v40 = vpop.eup %10923  ;;  %10941 = vpow2.f32 %v8107_v44  ;;  %v8055_v24 = vsub.f32 0.0, %v15651_v26  ;;  %v7985_v43 = vadd.f32 %v16313_v22, %v7921_v3  ;;  %v7919_v5 = vadd.f32 %v7490_v18, %v16314_v56  ;;  %v16318_v18 = vld [vmem:[#allocation85_spill] sm:$0xff]  ;;  %v16325_v56 = vld [vmem:[#allocation98_spill] sm:$0xff] }
 0x940   : > { %v10926_v21 = vpop.eup %10925  ;;  %v8053_v19 = vsub.f32 0.0, %v15657_v60  ;;  %8500 = vst.msk [vmem:[%s15529_s20 + $0x78] sm:$0xff] %vm714_vm8, %v8468_v38  ;;  %v8466_v30 = vadd.f32 %v16315_v33, %v8198_v34  ;;  %v8203_v6 = vmul.f32 %v10920_v61, %v15523_v36  ;;  %v8201_v58 = vmul.f32 %v10922_v9, %v15541_v35  ;;  %v16319_v36 = vld [vmem:[#allocation68_spill] sm:$0xff]  ;;  %v16320_v35 = vld [vmem:[#allocation69_spill] sm:$0xff] }
 0x941   : > { %v10928_v59 = vpop.eup %10927  ;;  %v8144_v2 = vadd.f32 1.0, %v10926_v21  ;;  %v15671_v17 = vadd.f32 %v15325_v51, %v7985_v43  ;;  %v7983_v62 = vadd.f32 %v16316_v13, %v7919_v5  ;;  %v8415_v48 = vadd.f32 %v16318_v18, %v16317_v37  ;;  %v16323_v44 = vld [vmem:[#allocation73_spill] sm:$0xff] }
 0x942   : > { %v10930_v42 = vpop.eup %10929  ;;  %v8142_v41 = vadd.f32 1.0, %v10928_v59  ;;  %v8117_v29 = vmul.f32 1.442695, %v8055_v24  ;;  %8498 = vst.msk [vmem:[%s15529_s20 + $0x68] sm:$0xff] %vm714_vm8, %v8466_v30  ;;  %v8471_v50 = vadd.f32 %v16319_v36, %v8203_v6  ;;  %v8469_v7 = vadd.f32 %v16320_v35, %v8201_v58  ;;  %v16326_v33 = vld [vmem:[#allocation97_spill] sm:$0xff]  ;;  %v16327_v6 = vld [vmem:[#allocation100_spill] sm:$0xff] }
 0x943   : > { %v10932_v0 = vpop.eup %10931  ;;  %10943 = vrcp.f32 %v8144_v2  ;;  %v8147_v53 = vadd.f32 1.0, %v10930_v42  ;;  %v8056_v31 = vsub.f32 0.0, %v15671_v17  ;;  %v15682_v4 = vadd.f32 %v15325_v51, %v7983_v62  ;;  %v16321_v51 = vld [vmem:[#allocation70_spill] sm:$0xff] }
 0x944   : > { %v10934_v20 = vpop.eup %10933  ;;  %10945 = vrcp.f32 %v8142_v41  ;;  %v8145_v25 = vadd.f32 1.0, %v10932_v0  ;;  %v8113_v39 = vmul.f32 1.442695, %v8053_v19  ;;  %8503 = vst.msk [vmem:[%s15529_s20 + $0x90] sm:$0xff] %vm714_vm8, %v8471_v50  ;;  %8501 = vst.msk [vmem:[%s15529_s20 + $0x80] sm:$0xff] %vm714_vm8, %v8469_v7  ;;  %v8204_v57 = vmul.f32 %v10924_v40, %v15547_v12 }
 0x945   : > { %v10936_v45 = vpop.eup %10935  ;;  %10947 = vrcp.f32 %v8147_v53  ;;  %v8119_v16 = vmul.f32 1.442695, %v8056_v31  ;;  %v8054_v61 = vsub.f32 0.0, %v15682_v4  ;;  %v8202_v1 = vmul.f32 %v10934_v20, %v15558_v54  ;;  %v16328_v53 = vld [vmem:[#allocation102_spill] sm:$0xff] }
 0x946   : > { %10949 = vrcp.f32 %v8145_v25  ;;  %v8472_v23 = vadd.f32 %v16321_v51, %v8204_v57  ;;  %v8207_v15 = vmul.f32 %v10936_v45, %v15569_v14  ;;  %v8407_v28 = vadd.f32 %v16317_v37, %v16322_v52  ;;  %v16329_v25 = vld [vmem:[#allocation104_spill] sm:$0xff]  ;;  %v16330_v51 = vld [vmem:[#allocation107_spill] sm:$0xff] }
 0x947   : > { %v10938_v47 = vpop.eup %10937  ;;  %10951 = vpow2.f32 %v8117_v29  ;;  %v8115_v12 = vmul.f32 1.442695, %v8054_v61  ;;  %v8470_v10 = vadd.f32 %v16323_v44, %v8202_v1  ;;  %v8431_v5 = vadd.f32 %v16325_v56, %v16317_v37  ;;  %v16331_v52 = vld [vmem:[#allocation108_spill] sm:$0xff] }
 0x948   : > { %v10940_v3 = vpop.eup %10939  ;;  %10953 = vpow2.f32 %v8113_v39  ;;  %8504 = vst.msk [vmem:[%s15529_s20 + $0x98] sm:$0xff] %vm714_vm8, %v8472_v23  ;;  %v8475_v54 = vadd.f32 %v8415_v48, %v8207_v15  ;;  %v8205_v9 = vmul.f32 %v10938_v47, %v15577_v11  ;;  %v16324_v11 = vld [vmem:[#allocation96_spill] sm:$0xff]  ;;  %v8410_v30 = vadd.f32 %v16317_v37, %v16326_v33 }
 0x949   : > { %v10942_v63 = vpop.eup %10941  ;;  %v8148_v38 = vadd.f32 1.0, %v10940_v3  ;;  %10955 = vpow2.f32 %v8119_v16  ;;  %8502 = vst.msk [vmem:[%s15529_s20 + $0x88] sm:$0xff] %vm714_vm8, %v8470_v10  ;;  %v8418_v43 = vadd.f32 %v16324_v11, %v16317_v37  ;;  %v8423_v58 = vadd.f32 %v16317_v37, %v16327_v6 }
 0x94a   : > { %v8146_v14 = vadd.f32 1.0, %v10942_v63  ;;  %10957 = vpow2.f32 %v8115_v12  ;;  %8507 = vst.msk [vmem:[%s15529_s20 + $0xb0] sm:$0xff] %vm714_vm8, %v8475_v54  ;;  %v8473_v34 = vadd.f32 %v8407_v28, %v8205_v9  ;;  %v8434_v31 = vadd.f32 %v16328_v53, %v16317_v37 }
 0x94b   : > { %10959 = vrcp.f32 %v8148_v38  ;;  %v8426_v39 = vadd.f32 %v16317_v37, %v16329_v25 }
 0x94c   : > { %10961 = vrcp.f32 %v8146_v14  ;;  %8505 = vst.msk [vmem:[%s15529_s20 + $0xa0] sm:$0xff] %vm714_vm8, %v8473_v34 }
 0x94d   : > { %v10944_v40 = vpop.eup %10943 }
 0x94e   : > { %v10946_v24 = vpop.eup %10945  ;;  %v8208_v22 = vmul.f32 %v10944_v40, %v15592_v49 }
 0x94f   : > { %v10948_v21 = vpop.eup %10947  ;;  %v8206_v19 = vmul.f32 %v10946_v24, %v15600_v55 }
 0x950   : > { %v10950_v59 = vpop.eup %10949  ;;  %v8476_v2 = vadd.f32 %v8418_v43, %v8208_v22  ;;  %v8211_v49 = vmul.f32 %v10948_v21, %v15611_v27 }
 0x951   : > { %v10952_v13 = vpop.eup %10951  ;;  %v8474_v62 = vadd.f32 %v8410_v30, %v8206_v19  ;;  %v8209_v18 = vmul.f32 %v10950_v59, %v15616_v32 }
 0x952   : > { %v10954_v48 = vpop.eup %10953  ;;  %v8151_v42 = vadd.f32 1.0, %v10952_v13  ;;  %8508 = vst.msk [vmem:[%s15529_s20 + $0xb8] sm:$0xff] %vm714_vm8, %v8476_v2  ;;  %v8479_v55 = vadd.f32 %v8431_v5, %v8211_v49 }
 0x953   : > { %v10956_v41 = vpop.eup %10955  ;;  %v8149_v29 = vadd.f32 1.0, %v10954_v48  ;;  %8506 = vst.msk [vmem:[%s15529_s20 + $0xa8] sm:$0xff] %vm714_vm8, %v8474_v62  ;;  %v8477_v36 = vadd.f32 %v8423_v58, %v8209_v18 }
 0x954   : > { %v10958_v50 = vpop.eup %10957  ;;  %10963 = vrcp.f32 %v8151_v42  ;;  %v8152_v35 = vadd.f32 1.0, %v10956_v41  ;;  %8511 = vst.msk [vmem:[%s15529_s20 + $0xd0] sm:$0xff] %vm714_vm8, %v8479_v55 }
 0x955   : > { %v10960_v27 = vpop.eup %10959  ;;  %10965 = vrcp.f32 %v8149_v29  ;;  %v8150_v32 = vadd.f32 1.0, %v10958_v50  ;;  %8509 = vst.msk [vmem:[%s15529_s20 + $0xc0] sm:$0xff] %vm714_vm8, %v8477_v36 }
 0x956   : > { %v10962_v7 = vpop.eup %10961  ;;  %10967 = vrcp.f32 %v8152_v35  ;;  %v8212_v0 = vmul.f32 %v10960_v27, %v15631_v46 }
 0x957   : > { %10969 = vrcp.f32 %v8150_v32  ;;  %v8210_v20 = vmul.f32 %v10962_v7, %v15637_v8 }
 0x958   : > { %v8480_v57 = vadd.f32 %v8434_v31, %v8212_v0 }
 0x959   : > { %v8478_v45 = vadd.f32 %v8426_v39, %v8210_v20 }
 0x95a   : > { %8512 = vst.msk [vmem:[%s15529_s20 + $0xd8] sm:$0xff] %vm714_vm8, %v8480_v57 }
 0x95b   : > { %8510 = vst.msk [vmem:[%s15529_s20 + $0xc8] sm:$0xff] %vm714_vm8, %v8478_v45 }
 0x95e   : > { %v10964_v16 = vpop.eup %10963 }
 0x95f   : > { %v10966_v61 = vpop.eup %10965  ;;  %v8215_v46 = vmul.f32 %v10964_v16, %v15651_v26  ;;  %v16332_v26 = vld [vmem:[#allocation109_spill] sm:$0xff] }
 0x960   : > { %v10968_v1 = vpop.eup %10967  ;;  %v8213_v8 = vmul.f32 %v10966_v61, %v15657_v60  ;;  %v16334_v60 = vld [vmem:[#allocation110_spill] sm:$0xff] }
 0x961   : > { %v10970_v37 = vpop.eup %10969  ;;  %v8483_v23 = vadd.f32 %v16330_v51, %v8215_v46  ;;  %v8216_v15 = vmul.f32 %v10968_v1, %v15671_v17 }
 0x962   : > { %v8481_v28 = vadd.f32 %v16331_v52, %v8213_v8  ;;  %v8214_v47 = vmul.f32 %v10970_v37, %v15682_v4 }
 0x963   : > { %8515 = vst.msk [vmem:[%s15529_s20 + $0xf0] sm:$0xff] %vm714_vm8, %v8483_v23  ;;  %v8484_v12 = vadd.f32 %v16332_v26, %v8216_v15 }
 0x964   : > { %8513 = vst.msk [vmem:[%s15529_s20 + $0xe0] sm:$0xff] %vm714_vm8, %v8481_v28  ;;  %v8482_v17 = vadd.f32 %v16334_v60, %v8214_v47 }
 0x965   : > { %8516 = vst.msk [vmem:[%s15529_s20 + $0xf8] sm:$0xff] %vm714_vm8, %v8484_v12 }
 0x966   : > { %8514 = vst.msk [vmem:[%s15529_s20 + $0xe8] sm:$0xff] %vm714_vm8, %v8482_v17 }
 0x967   : > { %11413 = shalt.err (!%p11410_p2)
}
 0x968   : > { %s11414_s5 = scalar_lea.hbm %s15749_s21, 4096  ;;  %s11418_s28 = scalar_lea.hbm %s16333_s14, 8192 }
 0x969   : > { %p11415_p10 = scmp.ne.s32.totalorder %s15749_s21, %s11414_s5  ;;  %p11419_p7 = scmp.lt.u32.totalorder %s15749_s21, %s16333_s14 }
 0x96a   : > { %p11420_p0 = scmp.lt.u32.totalorder %s11418_s28, %s11414_s5  ;;  %p11422_p12 = scmp.lt.u32.totalorder %s11414_s5, %s15749_s21 }
 0x96b   : > { %p11416_p11 = pnand %p11415_p10, %p16335_p8 }
 0x96c   : > { %p11421_p6 = por %p11420_p0, %p11419_p7 }
 0x96d   : > { %p11417_p5 = pneg %p11416_p11 }
 0x96e   : > { %p11423_p9 = por %p11422_p12, %p11421_p6 }
 0x970   : > { %p11424_p4 = pnand %p11423_p9, %p11417_p5 }
 0x972   : > { %11427 = shalt.err (!%p11424_p4)
}
 0x973   : > { %s11524_s19 = smov 128   ;;  %s11525_s6 = smov 8  }
 0x974   : > { %10580 = dma.vmem_to_hbm [thread:$0]  (%p16335_p8), %s15751_s0, 4096, %s15749_s21, %s8518_s27, %s11524_s19, %s11524_s19, %s11525_s6  }
 0x975 PF: > { %s16336_s8 = sld [smem:[#allocation38_spill]]  ;;  %p16337_p13 = scmp.ne.s32.totalorder %s15979_s24, 0 }
 0x976   : > { %p16338_p1 = scmp.ge.s32.totalorder %s11498_s16, 2 }
 0x978   : > { %p10627_p3 = pnand %p16338_p1, %p16337_p13 }
 0x97b   : > { %s8546_s23 = sand.u32 1, %s16336_s8  }
 0x97c   : > { %s8547_s29 = scalar_lea.sflag [#allocation6], %s8546_s23 }
 0x97d   : > { %11481 = dma.done.wait (!%p10627_p3), %s8547_s29, 4096  }
 0x97e   : > { %11483 = vsyncadd (!%p10627_p3), %s8547_s29, 4294963200  ;;  %p36_p2 = scmp.ge.s32.totalorder %s11895_s26, 4   ;;  %s16339_s29 = smov %s11490_s30 }
 0x97f   : > { %s16340_s30 = smov %s11494_s15  ;;  %s16341_s15 = smov %s11906_s3 }
 0x980   : > { %s16342_s16 = smov %s11895_s26  ;;  %38 = sbr.rel (!%p36_p2) target bundleno = 24 (0x18), region = 198 }
 0x987   :  { %8552 = vsyncpa [#allocation5], 1 }
 0x988   :  { %8554 = vsyncpa [#allocation5 + $0x1], 1 }
 0x989   :  { %8555 = vsyncpa [#allocation8], 1 }
 0x98a   :  { %8557 = vsyncpa [#allocation8 + $0x1], 1 }
 0x98b   :  { %8558 = vsyncpa [#allocation11], 1 }
 0x98c   :  { %8559 = vsyncpa [#allocation14], 1 }
 0x98d   :  { %8560 = vsyncpa [#allocation17], 1 }
 0x98e   :  { %8561 = vsyncpa [#allocation20], 1 }
 0x98f   :  { %8562 = vsyncpa [#allocation23], 1 }
 0x990   :  { %8563 = vsyncpa [#allocation26], 1 }
 0x991   :  { %8564 = vsyncpa [#allocation6], 1 }
 0x992   :  { %8566 = vsyncpa [#allocation6 + $0x1], 1 }

</bundles_post_ra>
